<compile_context>
chip_gen: v7x
topology: tpu7x:2x2x1
jax: 0.10.0
libtpu: 0.0.40
codegen_flags: <defaults>
</compile_context>

<pallas_src>
import functools

import jax
import jax.numpy as jnp
from jax import lax
from jax.experimental import pallas as pl
from jax.experimental.pallas import tpu as pltpu

_IMAGENET_MEAN = (0.485, 0.456, 0.406)
_IMAGENET_STD = (0.229, 0.224, 0.225)
_INV_STD = tuple(1.0 / s for s in _IMAGENET_STD)

# torchvision vgg19 `.features` conv layers.  Entry: (Cin, Cout, pool_before, save).
_CONV_PLAN = (
    (3,   64,  False, False),   # layer 0   (runs as lax.conv in the wrapper)
    (64,  64,  False, True),    # layer 2   -> feature[0]
    (64,  128, True,  False),   # layer 5
    (128, 128, False, True),    # layer 7   -> feature[1]
    (128, 256, True,  False),   # layer 10
    (256, 256, False, False),   # layer 12
    (256, 256, False, False),   # layer 14
    (256, 256, False, True),    # layer 16  -> feature[2]
    (256, 512, True,  False),   # layer 19
    (512, 512, False, False),   # layer 21
    (512, 512, False, False),   # layer 23
    (512, 512, False, True),    # layer 25  -> feature[3]
    (512, 512, True,  False),   # layer 28
    (512, 512, False, False),   # layer 30
    (512, 512, False, False),   # layer 32
    (512, 512, False, True),    # layer 34  -> feature[4]
)

_MIN_STRIP_M = 512              # min flat-M (output pixels) of MXU work per grid step
_ACC_TARGET_BYTES = 512 * 1024  # f32 accumulator scratch budget per sub-strip


# --------------------------------------------------------------------------- #
# Pallas kernel: fused [2x2 maxpool] + ReLU + 3x3 SAME conv + bias, one row strip
# --------------------------------------------------------------------------- #
def _conv3x3_kernel(x_ref, top_ref, bot_ref, w_ref, b_ref, o_ref,
                    xpad_ref, acc_ref, *, R, W, Wp, Cin, Cout,
                    fuse_pool, rows_per_sub):
    # x_ref   : (f*R, Win, Cin) bf16  body rows of this strip (f = 2 if pooled else 1)
    # top_ref : (f,   Win, Cin) bf16  row above the strip (zeros substituted at s == 0)
    # bot_ref : (f,   Win, Cin) bf16  row below the strip (zeros at the last strip)
    # w_ref   : (9, Cin, Cout)  bf16  taps flattened row-major (dy*3 + dx)
    # b_ref   : (1, Cout)       f32
    # o_ref   : (R, W, Cout)    bf16  raw (pre-ReLU) conv output rows of this strip
    # xpad_ref: ((R+2)*Wp, Cin) bf16  flat zero-padded transformed-input scratch
    # acc_ref : (M_sub, Cout)   f32   explicit MXU accumulator scratch
    s = pl.program_id(1)
    last = pl.num_programs(1) - 1
    f = 2 if fuse_pool else 1

    pad_l = jnp.zeros((1, Cin), jnp.bfloat16)
    pad_r = jnp.zeros((Wp - 1 - W, Cin), jnp.bfloat16)
    zero_slab = jnp.zeros((Wp, Cin), jnp.bfloat16)

    def transformed_row(ref, i):
        # Fused maxpool(2x2)/ReLU of the input rows feeding one padded row.
        if fuse_pool:
            v = jnp.maximum(ref[f * i], ref[f * i + 1])   # 2 dense loads, vertical max
            row = jnp.maximum(v[0::2], v[1::2])           # pairwise horizontal max
        else:
            row = ref[i]
        return jnp.maximum(row, 0).astype(jnp.bfloat16)   # (W, Cin)

    def store_padded_row(p, row):
        # One contiguous (Wp, Cin) slab per row: [0 | row | 0...] (fused border zeroing;
        # Wp is a sublane multiple for large W so these stores are aligned).
        xpad_ref[pl.ds(p * Wp, Wp), :] = jnp.concatenate([pad_l, row, pad_r], axis=0)

    # ---- interior padded rows 1..R (strip body) -------------------------------
    # Static Python loops are fine: the strip grid bounds R to a handful of rows.
    for i in range(R):
        store_padded_row(i + 1, transformed_row(x_ref, i))

    # ---- halo padded rows 0 and R+1 (zeros at the image boundary) -------------
    @pl.when(s == 0)
    def _():
        xpad_ref[pl.ds(0, Wp), :] = zero_slab

    @pl.when(s > 0)
    def _():
        store_padded_row(0, transformed_row(top_ref, 0))

    @pl.when(s == last)
    def _():
        xpad_ref[pl.ds((R + 1) * Wp, Wp), :] = zero_slab

    @pl.when(s < last)
    def _():
        store_padded_row(R + 1, transformed_row(bot_ref, 0))

    # ---- 9 tap matmuls per sub-strip: big-M bf16 MXU, explicit f32 accumulator --
    # TODO(synk): K-pack the 3 dx taps (K = 3*Cin) for Cin in {64, 128} to fill the
    # 256-deep v6e/v7x MXU (per review); not needed for Cin >= 256.
    bias = b_ref[...].astype(jnp.float32)                 # (1, Cout)
    n_sub = -(-R // rows_per_sub)
    for ss in range(n_sub):
        r0 = ss * rows_per_sub
        rows = min(rows_per_sub, R - r0)
        m = (rows - 1) * Wp + W           # includes wrap columns that are never stored
        for t in range(9):
            dy, dx = divmod(t, 3)
            win = xpad_ref[pl.ds((r0 + dy) * Wp + dx, m), :]        # (m, Cin) bf16
            part = jnp.dot(win, w_ref[t], preferred_element_type=jnp.float32)
            if t == 0:
                acc_ref[pl.ds(0, m), :] = part
            else:
                acc_ref[pl.ds(0, m), :] += part
        out = (acc_ref[pl.ds(0, m), :] + bias).astype(o_ref.dtype)  # (m, Cout)
        for r in range(rows):             # store valid rows, drop the wrap columns
            o_ref[r0 + r] = out[r * Wp:r * Wp + W]


# --------------------------------------------------------------------------- #
# pallas_call builder
# --------------------------------------------------------------------------- #
def _round_up(x, m):
    return -(-x // m) * m


def _vmem_limit_bytes():
    # Per-generation VMEM budget: v5e/v6e have 128 MiB -> ~100 MiB, v7x 64 MiB -> 48.
    try:
        cap = int(pltpu.get_tpu_info().vmem_capacity_bytes)
    except Exception:
        cap = 64 * 1024 * 1024
    return max(32 * 1024 * 1024, min(cap - 16 * 1024 * 1024, 100 * 1024 * 1024))


def _const_block_spec(block_shape, index_map):
    # Single-buffer blocks whose index never changes (weights / bias).
    try:
        return pl.BlockSpec(block_shape, index_map, pipeline_mode=pl.Buffered(1))
    except TypeError:
        return pl.BlockSpec(block_shape, index_map)


@functools.lru_cache(maxsize=None)
def _build_conv3x3(N, Hin, Win, Cin, Cout, fuse_pool):
    f = 2 if fuse_pool else 1
    H, W = Hin // f, Win // f

    # Padded row pitch; rounded to a multiple of 8 sublanes once W is large enough
    # that the wrap-column waste is negligible (review: gate at W <= 28).
    Wp = _round_up(W + 2, 8) if W > 28 else W + 2

    # Spatial strip axis: S strips of R output rows each (S | H); pick the largest S
    # that still leaves at least _MIN_STRIP_M flat-M rows of MXU work per grid step.
    S = 1
    for cand in range(1, H + 1):
        if H % cand == 0 and (H // cand) * W >= _MIN_STRIP_M:
            S = cand
    R = H // S

    # Sub-strip (accumulator) sizing: bound the f32 scratch accumulator.
    m_target = max(W, _ACC_TARGET_BYTES // (4 * Cout))
    rows_per_sub = max(1, min(R, m_target // Wp))
    m_sub_max = (rows_per_sub - 1) * Wp + W

    kernel = functools.partial(
        _conv3x3_kernel, R=R, W=W, Wp=Wp, Cin=Cin, Cout=Cout,
        fuse_pool=fuse_pool, rows_per_sub=rows_per_sub)

    # Body rows of the strip plus two overlapping 1-row (f-row pre-pool) halo blocks;
    # the halo index_maps clamp at the image border and the kernel zero-fills there.
    body_spec = pl.BlockSpec((None, f * R, Win, Cin), lambda n, s: (n, s, 0, 0))
    top_spec = pl.BlockSpec(
        (None, f, Win, Cin), lambda n, s: (n, jnp.maximum(s * R - 1, 0), 0, 0))
    bot_spec = pl.BlockSpec(
        (None, f, Win, Cin), lambda n, s: (n, jnp.minimum(s * R + R, H - 1), 0, 0))
    w_spec = _const_block_spec((9, Cin, Cout), lambda n, s: (0, 0, 0))
    b_spec = _const_block_spec((1, Cout), lambda n, s: (0, 0))
    out_spec = pl.BlockSpec((None, R, W, Cout), lambda n, s: (n, s, 0, 0))

    return pl.pallas_call(
        kernel,
        out_shape=jax.ShapeDtypeStruct((N, H, W, Cout), jnp.bfloat16),
        grid_spec=pltpu.PrefetchScalarGridSpec(
            num_scalar_prefetch=0,
            grid=(N, S),
            in_specs=[body_spec, top_spec, bot_spec, w_spec, b_spec],
            out_specs=out_spec,
            scratch_shapes=[
                pltpu.VMEM(((R + 2) * Wp, Cin), jnp.bfloat16),   # flat padded input
                pltpu.VMEM((m_sub_max, Cout), jnp.float32),      # MXU accumulator
            ]),
        compiler_params=pltpu.CompilerParams(
            # Batch AND strip axes are independent -> both "parallel" (v7x megacore).
            dimension_semantics=("parallel", "parallel"),
            vmem_limit_bytes=_vmem_limit_bytes(),
        ),
    )


def conv3x3_fused(x, w, b, fuse_pool):
    """x: (N, Hin, Win, Cin) NHWC bf16; w: (3, 3, Cin, Cout) HWIO; b: (Cout,)."""
    N, Hin, Win, Cin = x.shape
    Cout = w.shape[-1]
    fn = _build_conv3x3(N, Hin, Win, Cin, Cout, fuse_pool)
    return fn(x, x, x,                                  # body + top/bottom halo views
              w.reshape(9, Cin, Cout).astype(jnp.bfloat16),
              b.reshape(1, Cout).astype(jnp.float32))


# --------------------------------------------------------------------------- #
# Model: parameter init + forward (list of 5 features, like the PyTorch module)
# --------------------------------------------------------------------------- #
def init_vgg19_params(key):
    # TODO(synk): pretrained torchvision VGG19 weights cannot be loaded in-script;
    # deterministic He-initialised weights stand in (same shapes / layer plan).
    params = []
    for (cin, cout, _pool, _save) in _CONV_PLAN:
        key, wk, bk = jax.random.split(key, 3)
        w = jax.random.normal(wk, (3, 3, cin, cout), jnp.float32) * jnp.sqrt(
            2.0 / (9 * cin))
        b = 0.01 * jax.random.normal(bk, (cout,), jnp.float32)
        params.append((w, b))
    return params


def vgg_feature_extractor(x_nchw, params, use_input_norm=True, use_range_norm=False):
    """Returns the 5 saved features (NCHW, float32), matching the PyTorch module."""
    x = jnp.transpose(x_nchw.astype(jnp.float32), (0, 2, 3, 1))      # NCHW -> NHWC
    if use_range_norm:
        x = (x + 1.0) / 2.0
    if use_input_norm:
        mean = jnp.asarray(_IMAGENET_MEAN, jnp.float32).reshape(1, 1, 1, 3)
        inv_std = jnp.asarray(_INV_STD, jnp.float32).reshape(1, 1, 1, 3)
        x = (x - mean) * inv_std
    # Layer 0 (Cin = 3) stays in XLA (review item): a 3-wide minor dim lane-pads to
    # 128 and runs the MXU at K=3; it is <1% of the total FLOPs.
    w0, b0 = params[0]
    y = lax.conv_general_dilated(
        x.astype(jnp.bfloat16), w0.astype(jnp.bfloat16), (1, 1), "SAME",
        dimension_numbers=("NHWC", "HWIO", "NHWC"),
        preferred_element_type=jnp.float32,
        precision=lax.Precision.HIGHEST)
    x = (y + b0.reshape(1, 1, 1, -1)).astype(jnp.bfloat16)
    feats = []
    for idx in range(1, len(_CONV_PLAN)):
        _cin, _cout, pool_before, save = _CONV_PLAN[idx]
        w, b = params[idx]
        # Fused [maxpool] + ReLU + conv3x3 + bias Pallas kernel (bf16 activations).
        x = conv3x3_fused(x, w, b, pool_before)
        if save:
            feats.append(jnp.transpose(x, (0, 3, 1, 2)).astype(jnp.float32))
    return feats


# --------------------------------------------------------------------------- #
# Pure-JAX reference (literal torchvision layer sequence) for validation
# --------------------------------------------------------------------------- #
_VGG19_LAYER_OPS = (
    "conv", "relu", "conv", "relu", "pool",
    "conv", "relu", "conv", "relu", "pool",
    "conv", "relu", "conv", "relu", "conv", "relu", "conv", "relu", "pool",
    "conv", "relu", "conv", "relu", "conv", "relu", "conv", "relu", "pool",
    "conv", "relu", "conv", "relu", "conv", "relu", "conv",
)
_FEATURE_LAYERS = (2, 7, 16, 25, 34)


def vgg_feature_extractor_ref(x_nchw, params, compute_dtype=jnp.float32):
    """compute_dtype=bfloat16 mirrors the kernel's quantization points (bf16 operands,
    f32 accumulation, bf16 storage); compute_dtype=float32 is the exact reference."""
    x = jnp.transpose(x_nchw.astype(jnp.float32), (0, 2, 3, 1))
    mean = jnp.asarray(_IMAGENET_MEAN, jnp.float32).reshape(1, 1, 1, 3)
    inv_std = jnp.asarray(_INV_STD, jnp.float32).reshape(1, 1, 1, 3)
    x = ((x - mean) * inv_std).astype(compute_dtype)
    feats, ci = [], 0
    for li, op in enumerate(_VGG19_LAYER_OPS):
        if op == "conv":
            w, b = params[ci]
            ci += 1
            y = lax.conv_general_dilated(
                x, w.astype(compute_dtype), (1, 1), "SAME",
                dimension_numbers=("NHWC", "HWIO", "NHWC"),
                preferred_element_type=jnp.float32,
                precision=lax.Precision.HIGHEST)
            x = (y + b.reshape(1, 1, 1, -1)).astype(compute_dtype)
        elif op == "relu":
            x = jnp.maximum(x, 0)
        else:
            x = lax.reduce_window(x, jnp.array(-jnp.inf, x.dtype), lax.max,
                                  (1, 2, 2, 1), (1, 2, 2, 1), "VALID")
        if li in _FEATURE_LAYERS:
            feats.append(jnp.transpose(x, (0, 3, 1, 2)).astype(jnp.float32))
    return feats


if __name__ == "__main__":
    key = jax.random.PRNGKey(0)
    pkey, xkey = jax.random.split(key)
    params = init_vgg19_params(pkey)

    # Small deterministic input consistent with the module: NCHW, 3 channels, [0, 1].
    x = jax.random.uniform(xkey, (2, 3, 32, 32), dtype=jnp.float32)

    feats = vgg_feature_extractor(x, params)
    feats = jax.block_until_ready(feats)

    expected_shapes = [(2, 64, 32, 32), (2, 128, 16, 16), (2, 256, 8, 8),
                       (2, 512, 4, 4), (2, 512, 2, 2)]
    got_shapes = [tuple(f.shape) for f in feats]
    assert got_shapes == expected_shapes, got_shapes

    ref_b = vgg_feature_extractor_ref(x, params, jnp.bfloat16)   # quantization-matched
    ref_f = vgg_feature_extractor_ref(x, params, jnp.float32)    # exact f32 reference
    for i, (a, rb, rf) in enumerate(zip(feats, ref_b, ref_f)):
        scale = float(jnp.max(jnp.abs(rf))) + 1e-6
        err_b = float(jnp.max(jnp.abs(a - rb))) / scale
        err_f = float(jnp.max(jnp.abs(a - rf))) / scale
        assert err_b < 3e-2, f"feature {i}: structural mismatch vs bf16 ref ({err_b})"
        assert err_f < 1.5e-1, f"feature {i}: accuracy drift vs f32 ref ({err_f})"

    print("KERNEL_OK")
</pallas_src>

<mosaic_0001>
module attributes {stable_mosaic.version = 11 : i64} {
  func.func @_conv3x3_kernel(%arg0: i32, %arg1: i32, %arg2: memref<1x16x32x64xbf16, #tpu.memory_space<vmem>>, %arg3: memref<1x1x32x64xbf16, #tpu.memory_space<vmem>>, %arg4: memref<1x1x32x64xbf16, #tpu.memory_space<vmem>>, %arg5: memref<9x64x64xbf16, #tpu.memory_space<vmem>>, %arg6: memref<1x64xf32, #tpu.memory_space<vmem>>, %arg7: memref<1x16x32x64xbf16, #tpu.memory_space<vmem>>, %arg8: memref<720x64xbf16, #tpu.memory_space<vmem>>, %arg9: memref<632x64xf32, #tpu.memory_space<vmem>>) attributes {dimension_semantics = [#tpu.dimension_semantics<parallel>, #tpu.dimension_semantics<parallel>], iteration_bounds = array<i64: 2, 2>, scalar_prefetch = 0 : i64, scratch_operands = 2 : i64, tpu.core_type = #tpu.core_type<tc>, window_params = [{transform_indices = @transform_0, window_bounds = array<i64: 1, 16, 32, 64>}, {transform_indices = @transform_1, window_bounds = array<i64: 1, 1, 32, 64>}, {transform_indices = @transform_2, window_bounds = array<i64: 1, 1, 32, 64>}, {pipeline_mode = #tpu.pipeline_mode<synchronous>, transform_indices = @transform_3, window_bounds = array<i64: 9, 64, 64>}, {pipeline_mode = #tpu.pipeline_mode<synchronous>, transform_indices = @transform_4, window_bounds = array<i64: 1, 64>}, {transform_indices = @transform_5, window_bounds = array<i64: 1, 16, 32, 64>}]} {
    %cst = arith.constant 0.000000e+00 : bf16
    %0 = vector.broadcast %cst : bf16 to vector<1x64xbf16>
    %cst_0 = arith.constant 0.000000e+00 : bf16
    %1 = vector.broadcast %cst_0 : bf16 to vector<7x64xbf16>
    %cst_1 = arith.constant 0.000000e+00 : bf16
    %2 = vector.broadcast %cst_1 : bf16 to vector<40x64xbf16>
    %c0 = arith.constant 0 : index
    %c0_2 = arith.constant 0 : index
    %c0_3 = arith.constant 0 : index
    %c0_4 = arith.constant 0 : index
    %3 = vector.load %arg2[%c0, %c0_2, %c0_3, %c0_4] : memref<1x16x32x64xbf16, #tpu.memory_space<vmem>>, vector<1x1x32x64xbf16>
    %4 = vector.shape_cast %3 : vector<1x1x32x64xbf16> to vector<32x64xbf16>
    %cst_5 = arith.constant 0.000000e+00 : bf16
    %5 = vector.broadcast %cst_5 : bf16 to vector<32x64xbf16>
    %6 = arith.maximumf %4, %5 : vector<32x64xbf16>
    %7 = tpu.concatenate %0, %6, %1 in 0 : vector<1x64xbf16>, vector<32x64xbf16>, vector<7x64xbf16> -> vector<40x64xbf16>
    %c40 = arith.constant 40 : index
    %c0_6 = arith.constant 0 : index
    %8 = vector.load %arg8[%c40, %c0_6] : memref<720x64xbf16, #tpu.memory_space<vmem>>, vector<40x64xbf16>
    tpu.vector_store %arg8[%c40, %c0_6], %7 {strides = array<i32>} : memref<720x64xbf16, #tpu.memory_space<vmem>>, vector<40x64xbf16>,
    %c0_7 = arith.constant 0 : index
    %c1 = arith.constant 1 : index
    %c0_8 = arith.constant 0 : index
    %c0_9 = arith.constant 0 : index
    %9 = vector.load %arg2[%c0_7, %c1, %c0_8, %c0_9] : memref<1x16x32x64xbf16, #tpu.memory_space<vmem>>, vector<1x1x32x64xbf16>
    %10 = vector.shape_cast %9 : vector<1x1x32x64xbf16> to vector<32x64xbf16>
    %cst_10 = arith.constant 0.000000e+00 : bf16
    %11 = vector.broadcast %cst_10 : bf16 to vector<32x64xbf16>
    %12 = arith.maximumf %10, %11 : vector<32x64xbf16>
    %13 = tpu.concatenate %0, %12, %1 in 0 : vector<1x64xbf16>, vector<32x64xbf16>, vector<7x64xbf16> -> vector<40x64xbf16>
    %c80 = arith.constant 80 : index
    %c0_11 = arith.constant 0 : index
    %14 = vector.load %arg8[%c80, %c0_11] : memref<720x64xbf16, #tpu.memory_space<vmem>>, vector<40x64xbf16>
    tpu.vector_store %arg8[%c80, %c0_11], %13 {strides = array<i32>} : memref<720x64xbf16, #tpu.memory_space<vmem>>, vector<40x64xbf16>,
    %c0_12 = arith.constant 0 : index
    %c2 = arith.constant 2 : index
    %c0_13 = arith.constant 0 : index
    %c0_14 = arith.constant 0 : index
    %15 = vector.load %arg2[%c0_12, %c2, %c0_13, %c0_14] : memref<1x16x32x64xbf16, #tpu.memory_space<vmem>>, vector<1x1x32x64xbf16>
    %16 = vector.shape_cast %15 : vector<1x1x32x64xbf16> to vector<32x64xbf16>
    %cst_15 = arith.constant 0.000000e+00 : bf16
    %17 = vector.broadcast %cst_15 : bf16 to vector<32x64xbf16>
    %18 = arith.maximumf %16, %17 : vector<32x64xbf16>
    %19 = tpu.concatenate %0, %18, %1 in 0 : vector<1x64xbf16>, vector<32x64xbf16>, vector<7x64xbf16> -> vector<40x64xbf16>
    %c120 = arith.constant 120 : index
    %c0_16 = arith.constant 0 : index
    %20 = vector.load %arg8[%c120, %c0_16] : memref<720x64xbf16, #tpu.memory_space<vmem>>, vector<40x64xbf16>
    tpu.vector_store %arg8[%c120, %c0_16], %19 {strides = array<i32>} : memref<720x64xbf16, #tpu.memory_space<vmem>>, vector<40x64xbf16>,
    %c0_17 = arith.constant 0 : index
    %c3 = arith.constant 3 : index
    %c0_18 = arith.constant 0 : index
    %c0_19 = arith.constant 0 : index
    %21 = vector.load %arg2[%c0_17, %c3, %c0_18, %c0_19] : memref<1x16x32x64xbf16, #tpu.memory_space<vmem>>, vector<1x1x32x64xbf16>
    %22 = vector.shape_cast %21 : vector<1x1x32x64xbf16> to vector<32x64xbf16>
    %cst_20 = arith.constant 0.000000e+00 : bf16
    %23 = vector.broadcast %cst_20 : bf16 to vector<32x64xbf16>
    %24 = arith.maximumf %22, %23 : vector<32x64xbf16>
    %25 = tpu.concatenate %0, %24, %1 in 0 : vector<1x64xbf16>, vector<32x64xbf16>, vector<7x64xbf16> -> vector<40x64xbf16>
    %c160 = arith.constant 160 : index
    %c0_21 = arith.constant 0 : index
    %26 = vector.load %arg8[%c160, %c0_21] : memref<720x64xbf16, #tpu.memory_space<vmem>>, vector<40x64xbf16>
    tpu.vector_store %arg8[%c160, %c0_21], %25 {strides = array<i32>} : memref<720x64xbf16, #tpu.memory_space<vmem>>, vector<40x64xbf16>,
    %c0_22 = arith.constant 0 : index
    %c4 = arith.constant 4 : index
    %c0_23 = arith.constant 0 : index
    %c0_24 = arith.constant 0 : index
    %27 = vector.load %arg2[%c0_22, %c4, %c0_23, %c0_24] : memref<1x16x32x64xbf16, #tpu.memory_space<vmem>>, vector<1x1x32x64xbf16>
    %28 = vector.shape_cast %27 : vector<1x1x32x64xbf16> to vector<32x64xbf16>
    %cst_25 = arith.constant 0.000000e+00 : bf16
    %29 = vector.broadcast %cst_25 : bf16 to vector<32x64xbf16>
    %30 = arith.maximumf %28, %29 : vector<32x64xbf16>
    %31 = tpu.concatenate %0, %30, %1 in 0 : vector<1x64xbf16>, vector<32x64xbf16>, vector<7x64xbf16> -> vector<40x64xbf16>
    %c200 = arith.constant 200 : index
    %c0_26 = arith.constant 0 : index
    %32 = vector.load %arg8[%c200, %c0_26] : memref<720x64xbf16, #tpu.memory_space<vmem>>, vector<40x64xbf16>
    tpu.vector_store %arg8[%c200, %c0_26], %31 {strides = array<i32>} : memref<720x64xbf16, #tpu.memory_space<vmem>>, vector<40x64xbf16>,
    %c0_27 = arith.constant 0 : index
    %c5 = arith.constant 5 : index
    %c0_28 = arith.constant 0 : index
    %c0_29 = arith.constant 0 : index
    %33 = vector.load %arg2[%c0_27, %c5, %c0_28, %c0_29] : memref<1x16x32x64xbf16, #tpu.memory_space<vmem>>, vector<1x1x32x64xbf16>
    %34 = vector.shape_cast %33 : vector<1x1x32x64xbf16> to vector<32x64xbf16>
    %cst_30 = arith.constant 0.000000e+00 : bf16
    %35 = vector.broadcast %cst_30 : bf16 to vector<32x64xbf16>
    %36 = arith.maximumf %34, %35 : vector<32x64xbf16>
    %37 = tpu.concatenate %0, %36, %1 in 0 : vector<1x64xbf16>, vector<32x64xbf16>, vector<7x64xbf16> -> vector<40x64xbf16>
    %c240 = arith.constant 240 : index
    %c0_31 = arith.constant 0 : index
    %38 = vector.load %arg8[%c240, %c0_31] : memref<720x64xbf16, #tpu.memory_space<vmem>>, vector<40x64xbf16>
    tpu.vector_store %arg8[%c240, %c0_31], %37 {strides = array<i32>} : memref<720x64xbf16, #tpu.memory_space<vmem>>, vector<40x64xbf16>,
    %c0_32 = arith.constant 0 : index
    %c6 = arith.constant 6 : index
    %c0_33 = arith.constant 0 : index
    %c0_34 = arith.constant 0 : index
    %39 = vector.load %arg2[%c0_32, %c6, %c0_33, %c0_34] : memref<1x16x32x64xbf16, #tpu.memory_space<vmem>>, vector<1x1x32x64xbf16>
    %40 = vector.shape_cast %39 : vector<1x1x32x64xbf16> to vector<32x64xbf16>
    %cst_35 = arith.constant 0.000000e+00 : bf16
    %41 = vector.broadcast %cst_35 : bf16 to vector<32x64xbf16>
    %42 = arith.maximumf %40, %41 : vector<32x64xbf16>
    %43 = tpu.concatenate %0, %42, %1 in 0 : vector<1x64xbf16>, vector<32x64xbf16>, vector<7x64xbf16> -> vector<40x64xbf16>
    %c280 = arith.constant 280 : index
    %c0_36 = arith.constant 0 : index
    %44 = vector.load %arg8[%c280, %c0_36] : memref<720x64xbf16, #tpu.memory_space<vmem>>, vector<40x64xbf16>
    tpu.vector_store %arg8[%c280, %c0_36], %43 {strides = array<i32>} : memref<720x64xbf16, #tpu.memory_space<vmem>>, vector<40x64xbf16>,
    %c0_37 = arith.constant 0 : index
    %c7 = arith.constant 7 : index
    %c0_38 = arith.constant 0 : index
    %c0_39 = arith.constant 0 : index
    %45 = vector.load %arg2[%c0_37, %c7, %c0_38, %c0_39] : memref<1x16x32x64xbf16, #tpu.memory_space<vmem>>, vector<1x1x32x64xbf16>
    %46 = vector.shape_cast %45 : vector<1x1x32x64xbf16> to vector<32x64xbf16>
    %cst_40 = arith.constant 0.000000e+00 : bf16
    %47 = vector.broadcast %cst_40 : bf16 to vector<32x64xbf16>
    %48 = arith.maximumf %46, %47 : vector<32x64xbf16>
    %49 = tpu.concatenate %0, %48, %1 in 0 : vector<1x64xbf16>, vector<32x64xbf16>, vector<7x64xbf16> -> vector<40x64xbf16>
    %c320 = arith.constant 320 : index
    %c0_41 = arith.constant 0 : index
    %50 = vector.load %arg8[%c320, %c0_41] : memref<720x64xbf16, #tpu.memory_space<vmem>>, vector<40x64xbf16>
    tpu.vector_store %arg8[%c320, %c0_41], %49 {strides = array<i32>} : memref<720x64xbf16, #tpu.memory_space<vmem>>, vector<40x64xbf16>,
    %c0_42 = arith.constant 0 : index
    %c8 = arith.constant 8 : index
    %c0_43 = arith.constant 0 : index
    %c0_44 = arith.constant 0 : index
    %51 = vector.load %arg2[%c0_42, %c8, %c0_43, %c0_44] : memref<1x16x32x64xbf16, #tpu.memory_space<vmem>>, vector<1x1x32x64xbf16>
    %52 = vector.shape_cast %51 : vector<1x1x32x64xbf16> to vector<32x64xbf16>
    %cst_45 = arith.constant 0.000000e+00 : bf16
    %53 = vector.broadcast %cst_45 : bf16 to vector<32x64xbf16>
    %54 = arith.maximumf %52, %53 : vector<32x64xbf16>
    %55 = tpu.concatenate %0, %54, %1 in 0 : vector<1x64xbf16>, vector<32x64xbf16>, vector<7x64xbf16> -> vector<40x64xbf16>
    %c360 = arith.constant 360 : index
    %c0_46 = arith.constant 0 : index
    %56 = vector.load %arg8[%c360, %c0_46] : memref<720x64xbf16, #tpu.memory_space<vmem>>, vector<40x64xbf16>
    tpu.vector_store %arg8[%c360, %c0_46], %55 {strides = array<i32>} : memref<720x64xbf16, #tpu.memory_space<vmem>>, vector<40x64xbf16>,
    %c0_47 = arith.constant 0 : index
    %c9 = arith.constant 9 : index
    %c0_48 = arith.constant 0 : index
    %c0_49 = arith.constant 0 : index
    %57 = vector.load %arg2[%c0_47, %c9, %c0_48, %c0_49] : memref<1x16x32x64xbf16, #tpu.memory_space<vmem>>, vector<1x1x32x64xbf16>
    %58 = vector.shape_cast %57 : vector<1x1x32x64xbf16> to vector<32x64xbf16>
    %cst_50 = arith.constant 0.000000e+00 : bf16
    %59 = vector.broadcast %cst_50 : bf16 to vector<32x64xbf16>
    %60 = arith.maximumf %58, %59 : vector<32x64xbf16>
    %61 = tpu.concatenate %0, %60, %1 in 0 : vector<1x64xbf16>, vector<32x64xbf16>, vector<7x64xbf16> -> vector<40x64xbf16>
    %c400 = arith.constant 400 : index
    %c0_51 = arith.constant 0 : index
    %62 = vector.load %arg8[%c400, %c0_51] : memref<720x64xbf16, #tpu.memory_space<vmem>>, vector<40x64xbf16>
    tpu.vector_store %arg8[%c400, %c0_51], %61 {strides = array<i32>} : memref<720x64xbf16, #tpu.memory_space<vmem>>, vector<40x64xbf16>,
    %c0_52 = arith.constant 0 : index
    %c10 = arith.constant 10 : index
    %c0_53 = arith.constant 0 : index
    %c0_54 = arith.constant 0 : index
    %63 = vector.load %arg2[%c0_52, %c10, %c0_53, %c0_54] : memref<1x16x32x64xbf16, #tpu.memory_space<vmem>>, vector<1x1x32x64xbf16>
    %64 = vector.shape_cast %63 : vector<1x1x32x64xbf16> to vector<32x64xbf16>
    %cst_55 = arith.constant 0.000000e+00 : bf16
    %65 = vector.broadcast %cst_55 : bf16 to vector<32x64xbf16>
    %66 = arith.maximumf %64, %65 : vector<32x64xbf16>
    %67 = tpu.concatenate %0, %66, %1 in 0 : vector<1x64xbf16>, vector<32x64xbf16>, vector<7x64xbf16> -> vector<40x64xbf16>
    %c440 = arith.constant 440 : index
    %c0_56 = arith.constant 0 : index
    %68 = vector.load %arg8[%c440, %c0_56] : memref<720x64xbf16, #tpu.memory_space<vmem>>, vector<40x64xbf16>
    tpu.vector_store %arg8[%c440, %c0_56], %67 {strides = array<i32>} : memref<720x64xbf16, #tpu.memory_space<vmem>>, vector<40x64xbf16>,
    %c0_57 = arith.constant 0 : index
    %c11 = arith.constant 11 : index
    %c0_58 = arith.constant 0 : index
    %c0_59 = arith.constant 0 : index
    %69 = vector.load %arg2[%c0_57, %c11, %c0_58, %c0_59] : memref<1x16x32x64xbf16, #tpu.memory_space<vmem>>, vector<1x1x32x64xbf16>
    %70 = vector.shape_cast %69 : vector<1x1x32x64xbf16> to vector<32x64xbf16>
    %cst_60 = arith.constant 0.000000e+00 : bf16
    %71 = vector.broadcast %cst_60 : bf16 to vector<32x64xbf16>
    %72 = arith.maximumf %70, %71 : vector<32x64xbf16>
    %73 = tpu.concatenate %0, %72, %1 in 0 : vector<1x64xbf16>, vector<32x64xbf16>, vector<7x64xbf16> -> vector<40x64xbf16>
    %c480 = arith.constant 480 : index
    %c0_61 = arith.constant 0 : index
    %74 = vector.load %arg8[%c480, %c0_61] : memref<720x64xbf16, #tpu.memory_space<vmem>>, vector<40x64xbf16>
    tpu.vector_store %arg8[%c480, %c0_61], %73 {strides = array<i32>} : memref<720x64xbf16, #tpu.memory_space<vmem>>, vector<40x64xbf16>,
    %c0_62 = arith.constant 0 : index
    %c12 = arith.constant 12 : index
    %c0_63 = arith.constant 0 : index
    %c0_64 = arith.constant 0 : index
    %75 = vector.load %arg2[%c0_62, %c12, %c0_63, %c0_64] : memref<1x16x32x64xbf16, #tpu.memory_space<vmem>>, vector<1x1x32x64xbf16>
    %76 = vector.shape_cast %75 : vector<1x1x32x64xbf16> to vector<32x64xbf16>
    %cst_65 = arith.constant 0.000000e+00 : bf16
    %77 = vector.broadcast %cst_65 : bf16 to vector<32x64xbf16>
    %78 = arith.maximumf %76, %77 : vector<32x64xbf16>
    %79 = tpu.concatenate %0, %78, %1 in 0 : vector<1x64xbf16>, vector<32x64xbf16>, vector<7x64xbf16> -> vector<40x64xbf16>
    %c520 = arith.constant 520 : index
    %c0_66 = arith.constant 0 : index
    %80 = vector.load %arg8[%c520, %c0_66] : memref<720x64xbf16, #tpu.memory_space<vmem>>, vector<40x64xbf16>
    tpu.vector_store %arg8[%c520, %c0_66], %79 {strides = array<i32>} : memref<720x64xbf16, #tpu.memory_space<vmem>>, vector<40x64xbf16>,
    %c0_67 = arith.constant 0 : index
    %c13 = arith.constant 13 : index
    %c0_68 = arith.constant 0 : index
    %c0_69 = arith.constant 0 : index
    %81 = vector.load %arg2[%c0_67, %c13, %c0_68, %c0_69] : memref<1x16x32x64xbf16, #tpu.memory_space<vmem>>, vector<1x1x32x64xbf16>
    %82 = vector.shape_cast %81 : vector<1x1x32x64xbf16> to vector<32x64xbf16>
    %cst_70 = arith.constant 0.000000e+00 : bf16
    %83 = vector.broadcast %cst_70 : bf16 to vector<32x64xbf16>
    %84 = arith.maximumf %82, %83 : vector<32x64xbf16>
    %85 = tpu.concatenate %0, %84, %1 in 0 : vector<1x64xbf16>, vector<32x64xbf16>, vector<7x64xbf16> -> vector<40x64xbf16>
    %c560 = arith.constant 560 : index
    %c0_71 = arith.constant 0 : index
    %86 = vector.load %arg8[%c560, %c0_71] : memref<720x64xbf16, #tpu.memory_space<vmem>>, vector<40x64xbf16>
    tpu.vector_store %arg8[%c560, %c0_71], %85 {strides = array<i32>} : memref<720x64xbf16, #tpu.memory_space<vmem>>, vector<40x64xbf16>,
    %c0_72 = arith.constant 0 : index
    %c14 = arith.constant 14 : index
    %c0_73 = arith.constant 0 : index
    %c0_74 = arith.constant 0 : index
    %87 = vector.load %arg2[%c0_72, %c14, %c0_73, %c0_74] : memref<1x16x32x64xbf16, #tpu.memory_space<vmem>>, vector<1x1x32x64xbf16>
    %88 = vector.shape_cast %87 : vector<1x1x32x64xbf16> to vector<32x64xbf16>
    %cst_75 = arith.constant 0.000000e+00 : bf16
    %89 = vector.broadcast %cst_75 : bf16 to vector<32x64xbf16>
    %90 = arith.maximumf %88, %89 : vector<32x64xbf16>
    %91 = tpu.concatenate %0, %90, %1 in 0 : vector<1x64xbf16>, vector<32x64xbf16>, vector<7x64xbf16> -> vector<40x64xbf16>
    %c600 = arith.constant 600 : index
    %c0_76 = arith.constant 0 : index
    %92 = vector.load %arg8[%c600, %c0_76] : memref<720x64xbf16, #tpu.memory_space<vmem>>, vector<40x64xbf16>
    tpu.vector_store %arg8[%c600, %c0_76], %91 {strides = array<i32>} : memref<720x64xbf16, #tpu.memory_space<vmem>>, vector<40x64xbf16>,
    %c0_77 = arith.constant 0 : index
    %c15 = arith.constant 15 : index
    %c0_78 = arith.constant 0 : index
    %c0_79 = arith.constant 0 : index
    %93 = vector.load %arg2[%c0_77, %c15, %c0_78, %c0_79] : memref<1x16x32x64xbf16, #tpu.memory_space<vmem>>, vector<1x1x32x64xbf16>
    %94 = vector.shape_cast %93 : vector<1x1x32x64xbf16> to vector<32x64xbf16>
    %cst_80 = arith.constant 0.000000e+00 : bf16
    %95 = vector.broadcast %cst_80 : bf16 to vector<32x64xbf16>
    %96 = arith.maximumf %94, %95 : vector<32x64xbf16>
    %97 = tpu.concatenate %0, %96, %1 in 0 : vector<1x64xbf16>, vector<32x64xbf16>, vector<7x64xbf16> -> vector<40x64xbf16>
    %c640 = arith.constant 640 : index
    %c0_81 = arith.constant 0 : index
    %98 = vector.load %arg8[%c640, %c0_81] : memref<720x64xbf16, #tpu.memory_space<vmem>>, vector<40x64xbf16>
    tpu.vector_store %arg8[%c640, %c0_81], %97 {strides = array<i32>} : memref<720x64xbf16, #tpu.memory_space<vmem>>, vector<40x64xbf16>,
    %c0_i32 = arith.constant 0 : i32
    %99 = arith.cmpi eq, %arg1, %c0_i32 : i32
    %100 = arith.extui %99 : i1 to i32
    %c0_i32_82 = arith.constant 0 : i32
    %101 = arith.cmpi ne, %100, %c0_i32_82 : i32
    scf.if %101 {
      %c0_240 = arith.constant 0 : index
      %c0_241 = arith.constant 0 : index
      %241 = vector.load %arg8[%c0_240, %c0_241] : memref<720x64xbf16, #tpu.memory_space<vmem>>, vector<40x64xbf16>
      tpu.vector_store %arg8[%c0_240, %c0_241], %2 {strides = array<i32>} : memref<720x64xbf16, #tpu.memory_space<vmem>>, vector<40x64xbf16>,
    } else {
    }
    %c0_i32_83 = arith.constant 0 : i32
    %102 = arith.cmpi sgt, %arg1, %c0_i32_83 : i32
    %103 = arith.extui %102 : i1 to i32
    %c0_i32_84 = arith.constant 0 : i32
    %104 = arith.cmpi ne, %103, %c0_i32_84 : i32
    scf.if %104 {
      %c0_240 = arith.constant 0 : index
      %c0_241 = arith.constant 0 : index
      %c0_242 = arith.constant 0 : index
      %c0_243 = arith.constant 0 : index
      %241 = vector.load %arg3[%c0_240, %c0_241, %c0_242, %c0_243] : memref<1x1x32x64xbf16, #tpu.memory_space<vmem>>, vector<1x1x32x64xbf16>
      %242 = vector.shape_cast %241 : vector<1x1x32x64xbf16> to vector<32x64xbf16>
      %cst_244 = arith.constant 0.000000e+00 : bf16
      %243 = vector.broadcast %cst_244 : bf16 to vector<32x64xbf16>
      %244 = arith.maximumf %242, %243 : vector<32x64xbf16>
      %245 = tpu.concatenate %0, %244, %1 in 0 : vector<1x64xbf16>, vector<32x64xbf16>, vector<7x64xbf16> -> vector<40x64xbf16>
      %c0_245 = arith.constant 0 : index
      %c0_246 = arith.constant 0 : index
      %246 = vector.load %arg8[%c0_245, %c0_246] : memref<720x64xbf16, #tpu.memory_space<vmem>>, vector<40x64xbf16>
      tpu.vector_store %arg8[%c0_245, %c0_246], %245 {strides = array<i32>} : memref<720x64xbf16, #tpu.memory_space<vmem>>, vector<40x64xbf16>,
    } else {
    }
    %c1_i32 = arith.constant 1 : i32
    %105 = arith.cmpi eq, %arg1, %c1_i32 : i32
    %106 = arith.extui %105 : i1 to i32
    %c0_i32_85 = arith.constant 0 : i32
    %107 = arith.cmpi ne, %106, %c0_i32_85 : i32
    scf.if %107 {
      %c680 = arith.constant 680 : index
      %c0_240 = arith.constant 0 : index
      %241 = vector.load %arg8[%c680, %c0_240] : memref<720x64xbf16, #tpu.memory_space<vmem>>, vector<40x64xbf16>
      tpu.vector_store %arg8[%c680, %c0_240], %2 {strides = array<i32>} : memref<720x64xbf16, #tpu.memory_space<vmem>>, vector<40x64xbf16>,
    } else {
    }
    %c1_i32_86 = arith.constant 1 : i32
    %108 = arith.cmpi slt, %arg1, %c1_i32_86 : i32
    %109 = arith.extui %108 : i1 to i32
    %c0_i32_87 = arith.constant 0 : i32
    %110 = arith.cmpi ne, %109, %c0_i32_87 : i32
    scf.if %110 {
      %c0_240 = arith.constant 0 : index
      %c0_241 = arith.constant 0 : index
      %c0_242 = arith.constant 0 : index
      %c0_243 = arith.constant 0 : index
      %241 = vector.load %arg4[%c0_240, %c0_241, %c0_242, %c0_243] : memref<1x1x32x64xbf16, #tpu.memory_space<vmem>>, vector<1x1x32x64xbf16>
      %242 = vector.shape_cast %241 : vector<1x1x32x64xbf16> to vector<32x64xbf16>
      %cst_244 = arith.constant 0.000000e+00 : bf16
      %243 = vector.broadcast %cst_244 : bf16 to vector<32x64xbf16>
      %244 = arith.maximumf %242, %243 : vector<32x64xbf16>
      %245 = tpu.concatenate %0, %244, %1 in 0 : vector<1x64xbf16>, vector<32x64xbf16>, vector<7x64xbf16> -> vector<40x64xbf16>
      %c680 = arith.constant 680 : index
      %c0_245 = arith.constant 0 : index
      %246 = vector.load %arg8[%c680, %c0_245] : memref<720x64xbf16, #tpu.memory_space<vmem>>, vector<40x64xbf16>
      tpu.vector_store %arg8[%c680, %c0_245], %245 {strides = array<i32>} : memref<720x64xbf16, #tpu.memory_space<vmem>>, vector<40x64xbf16>,
    } else {
    }
    %c0_88 = arith.constant 0 : index
    %c0_89 = arith.constant 0 : index
    %111 = vector.load %arg6[%c0_88, %c0_89] : memref<1x64xf32, #tpu.memory_space<vmem>>, vector<1x64xf32>
    %c0_90 = arith.constant 0 : index
    %c0_91 = arith.constant 0 : index
    %112 = vector.load %arg8[%c0_90, %c0_91] : memref<720x64xbf16, #tpu.memory_space<vmem>>, vector<632x64xbf16>
    %c0_92 = arith.constant 0 : index
    %c0_93 = arith.constant 0 : index
    %c0_94 = arith.constant 0 : index
    %113 = vector.load %arg5[%c0_92, %c0_93, %c0_94] : memref<9x64x64xbf16, #tpu.memory_space<vmem>>, vector<1x64x64xbf16>
    %114 = vector.shape_cast %113 : vector<1x64x64xbf16> to vector<64x64xbf16>
    %cst_95 = arith.constant dense<0.000000e+00> : vector<632x64xf32>
    %115 = tpu.matmul %112, %114, %cst_95 {dimension_numbers = #tpu.dot_dimension_numbers<[1], [0], [0], [1], [0, 0, 1, 1], [], []>} : vector<632x64xbf16>, vector<64x64xbf16>, vector<632x64xf32> -> vector<632x64xf32>
    %c0_96 = arith.constant 0 : index
    %c0_97 = arith.constant 0 : index
    %116 = vector.load %arg9[%c0_96, %c0_97] : memref<632x64xf32, #tpu.memory_space<vmem>>, vector<632x64xf32>
    tpu.vector_store %arg9[%c0_96, %c0_97], %115 {strides = array<i32>} : memref<632x64xf32, #tpu.memory_space<vmem>>, vector<632x64xf32>,
    %c1_98 = arith.constant 1 : index
    %c0_99 = arith.constant 0 : index
    %117 = vector.load %arg8[%c1_98, %c0_99] : memref<720x64xbf16, #tpu.memory_space<vmem>>, vector<632x64xbf16>
    %c1_100 = arith.constant 1 : index
    %c0_101 = arith.constant 0 : index
    %c0_102 = arith.constant 0 : index
    %118 = vector.load %arg5[%c1_100, %c0_101, %c0_102] : memref<9x64x64xbf16, #tpu.memory_space<vmem>>, vector<1x64x64xbf16>
    %119 = vector.shape_cast %118 : vector<1x64x64xbf16> to vector<64x64xbf16>
    %cst_103 = arith.constant dense<0.000000e+00> : vector<632x64xf32>
    %120 = tpu.matmul %117, %119, %cst_103 {dimension_numbers = #tpu.dot_dimension_numbers<[1], [0], [0], [1], [0, 0, 1, 1], [], []>} : vector<632x64xbf16>, vector<64x64xbf16>, vector<632x64xf32> -> vector<632x64xf32>
    %c0_104 = arith.constant 0 : index
    %c0_105 = arith.constant 0 : index
    %121 = vector.load %arg9[%c0_104, %c0_105] : memref<632x64xf32, #tpu.memory_space<vmem>>, vector<632x64xf32>
    %122 = arith.addf %121, %120 : vector<632x64xf32>
    %c0_106 = arith.constant 0 : index
    %c0_107 = arith.constant 0 : index
    %123 = vector.load %arg9[%c0_106, %c0_107] : memref<632x64xf32, #tpu.memory_space<vmem>>, vector<632x64xf32>
    tpu.vector_store %arg9[%c0_106, %c0_107], %122 {strides = array<i32>} : memref<632x64xf32, #tpu.memory_space<vmem>>, vector<632x64xf32>,
    %c2_108 = arith.constant 2 : index
    %c0_109 = arith.constant 0 : index
    %124 = vector.load %arg8[%c2_108, %c0_109] : memref<720x64xbf16, #tpu.memory_space<vmem>>, vector<632x64xbf16>
    %c2_110 = arith.constant 2 : index
    %c0_111 = arith.constant 0 : index
    %c0_112 = arith.constant 0 : index
    %125 = vector.load %arg5[%c2_110, %c0_111, %c0_112] : memref<9x64x64xbf16, #tpu.memory_space<vmem>>, vector<1x64x64xbf16>
    %126 = vector.shape_cast %125 : vector<1x64x64xbf16> to vector<64x64xbf16>
    %cst_113 = arith.constant dense<0.000000e+00> : vector<632x64xf32>
    %127 = tpu.matmul %124, %126, %cst_113 {dimension_numbers = #tpu.dot_dimension_numbers<[1], [0], [0], [1], [0, 0, 1, 1], [], []>} : vector<632x64xbf16>, vector<64x64xbf16>, vector<632x64xf32> -> vector<632x64xf32>
    %c0_114 = arith.constant 0 : index
    %c0_115 = arith.constant 0 : index
    %128 = vector.load %arg9[%c0_114, %c0_115] : memref<632x64xf32, #tpu.memory_space<vmem>>, vector<632x64xf32>
    %129 = arith.addf %128, %127 : vector<632x64xf32>
    %c0_116 = arith.constant 0 : index
    %c0_117 = arith.constant 0 : index
    %130 = vector.load %arg9[%c0_116, %c0_117] : memref<632x64xf32, #tpu.memory_space<vmem>>, vector<632x64xf32>
    tpu.vector_store %arg9[%c0_116, %c0_117], %129 {strides = array<i32>} : memref<632x64xf32, #tpu.memory_space<vmem>>, vector<632x64xf32>,
    %c40_118 = arith.constant 40 : index
    %c0_119 = arith.constant 0 : index
    %131 = vector.load %arg8[%c40_118, %c0_119] : memref<720x64xbf16, #tpu.memory_space<vmem>>, vector<632x64xbf16>
    %c3_120 = arith.constant 3 : index
    %c0_121 = arith.constant 0 : index
    %c0_122 = arith.constant 0 : index
    %132 = vector.load %arg5[%c3_120, %c0_121, %c0_122] : memref<9x64x64xbf16, #tpu.memory_space<vmem>>, vector<1x64x64xbf16>
    %133 = vector.shape_cast %132 : vector<1x64x64xbf16> to vector<64x64xbf16>
    %cst_123 = arith.constant dense<0.000000e+00> : vector<632x64xf32>
    %134 = tpu.matmul %131, %133, %cst_123 {dimension_numbers = #tpu.dot_dimension_numbers<[1], [0], [0], [1], [0, 0, 1, 1], [], []>} : vector<632x64xbf16>, vector<64x64xbf16>, vector<632x64xf32> -> vector<632x64xf32>
    %c0_124 = arith.constant 0 : index
    %c0_125 = arith.constant 0 : index
    %135 = vector.load %arg9[%c0_124, %c0_125] : memref<632x64xf32, #tpu.memory_space<vmem>>, vector<632x64xf32>
    %136 = arith.addf %135, %134 : vector<632x64xf32>
    %c0_126 = arith.constant 0 : index
    %c0_127 = arith.constant 0 : index
    %137 = vector.load %arg9[%c0_126, %c0_127] : memref<632x64xf32, #tpu.memory_space<vmem>>, vector<632x64xf32>
    tpu.vector_store %arg9[%c0_126, %c0_127], %136 {strides = array<i32>} : memref<632x64xf32, #tpu.memory_space<vmem>>, vector<632x64xf32>,
    %c41 = arith.constant 41 : index
    %c0_128 = arith.constant 0 : index
    %138 = vector.load %arg8[%c41, %c0_128] : memref<720x64xbf16, #tpu.memory_space<vmem>>, vector<632x64xbf16>
    %c4_129 = arith.constant 4 : index
    %c0_130 = arith.constant 0 : index
    %c0_131 = arith.constant 0 : index
    %139 = vector.load %arg5[%c4_129, %c0_130, %c0_131] : memref<9x64x64xbf16, #tpu.memory_space<vmem>>, vector<1x64x64xbf16>
    %140 = vector.shape_cast %139 : vector<1x64x64xbf16> to vector<64x64xbf16>
    %cst_132 = arith.constant dense<0.000000e+00> : vector<632x64xf32>
    %141 = tpu.matmul %138, %140, %cst_132 {dimension_numbers = #tpu.dot_dimension_numbers<[1], [0], [0], [1], [0, 0, 1, 1], [], []>} : vector<632x64xbf16>, vector<64x64xbf16>, vector<632x64xf32> -> vector<632x64xf32>
    %c0_133 = arith.constant 0 : index
    %c0_134 = arith.constant 0 : index
    %142 = vector.load %arg9[%c0_133, %c0_134] : memref<632x64xf32, #tpu.memory_space<vmem>>, vector<632x64xf32>
    %143 = arith.addf %142, %141 : vector<632x64xf32>
    %c0_135 = arith.constant 0 : index
    %c0_136 = arith.constant 0 : index
    %144 = vector.load %arg9[%c0_135, %c0_136] : memref<632x64xf32, #tpu.memory_space<vmem>>, vector<632x64xf32>
    tpu.vector_store %arg9[%c0_135, %c0_136], %143 {strides = array<i32>} : memref<632x64xf32, #tpu.memory_space<vmem>>, vector<632x64xf32>,
    %c42 = arith.constant 42 : index
    %c0_137 = arith.constant 0 : index
    %145 = vector.load %arg8[%c42, %c0_137] : memref<720x64xbf16, #tpu.memory_space<vmem>>, vector<632x64xbf16>
    %c5_138 = arith.constant 5 : index
    %c0_139 = arith.constant 0 : index
    %c0_140 = arith.constant 0 : index
    %146 = vector.load %arg5[%c5_138, %c0_139, %c0_140] : memref<9x64x64xbf16, #tpu.memory_space<vmem>>, vector<1x64x64xbf16>
    %147 = vector.shape_cast %146 : vector<1x64x64xbf16> to vector<64x64xbf16>
    %cst_141 = arith.constant dense<0.000000e+00> : vector<632x64xf32>
    %148 = tpu.matmul %145, %147, %cst_141 {dimension_numbers = #tpu.dot_dimension_numbers<[1], [0], [0], [1], [0, 0, 1, 1], [], []>} : vector<632x64xbf16>, vector<64x64xbf16>, vector<632x64xf32> -> vector<632x64xf32>
    %c0_142 = arith.constant 0 : index
    %c0_143 = arith.constant 0 : index
    %149 = vector.load %arg9[%c0_142, %c0_143] : memref<632x64xf32, #tpu.memory_space<vmem>>, vector<632x64xf32>
    %150 = arith.addf %149, %148 : vector<632x64xf32>
    %c0_144 = arith.constant 0 : index
    %c0_145 = arith.constant 0 : index
    %151 = vector.load %arg9[%c0_144, %c0_145] : memref<632x64xf32, #tpu.memory_space<vmem>>, vector<632x64xf32>
    tpu.vector_store %arg9[%c0_144, %c0_145], %150 {strides = array<i32>} : memref<632x64xf32, #tpu.memory_space<vmem>>, vector<632x64xf32>,
    %c80_146 = arith.constant 80 : index
    %c0_147 = arith.constant 0 : index
    %152 = vector.load %arg8[%c80_146, %c0_147] : memref<720x64xbf16, #tpu.memory_space<vmem>>, vector<632x64xbf16>
    %c6_148 = arith.constant 6 : index
    %c0_149 = arith.constant 0 : index
    %c0_150 = arith.constant 0 : index
    %153 = vector.load %arg5[%c6_148, %c0_149, %c0_150] : memref<9x64x64xbf16, #tpu.memory_space<vmem>>, vector<1x64x64xbf16>
    %154 = vector.shape_cast %153 : vector<1x64x64xbf16> to vector<64x64xbf16>
    %cst_151 = arith.constant dense<0.000000e+00> : vector<632x64xf32>
    %155 = tpu.matmul %152, %154, %cst_151 {dimension_numbers = #tpu.dot_dimension_numbers<[1], [0], [0], [1], [0, 0, 1, 1], [], []>} : vector<632x64xbf16>, vector<64x64xbf16>, vector<632x64xf32> -> vector<632x64xf32>
    %c0_152 = arith.constant 0 : index
    %c0_153 = arith.constant 0 : index
    %156 = vector.load %arg9[%c0_152, %c0_153] : memref<632x64xf32, #tpu.memory_space<vmem>>, vector<632x64xf32>
    %157 = arith.addf %156, %155 : vector<632x64xf32>
    %c0_154 = arith.constant 0 : index
    %c0_155 = arith.constant 0 : index
    %158 = vector.load %arg9[%c0_154, %c0_155] : memref<632x64xf32, #tpu.memory_space<vmem>>, vector<632x64xf32>
    tpu.vector_store %arg9[%c0_154, %c0_155], %157 {strides = array<i32>} : memref<632x64xf32, #tpu.memory_space<vmem>>, vector<632x64xf32>,
    %c81 = arith.constant 81 : index
    %c0_156 = arith.constant 0 : index
    %159 = vector.load %arg8[%c81, %c0_156] : memref<720x64xbf16, #tpu.memory_space<vmem>>, vector<632x64xbf16>
    %c7_157 = arith.constant 7 : index
    %c0_158 = arith.constant 0 : index
    %c0_159 = arith.constant 0 : index
    %160 = vector.load %arg5[%c7_157, %c0_158, %c0_159] : memref<9x64x64xbf16, #tpu.memory_space<vmem>>, vector<1x64x64xbf16>
    %161 = vector.shape_cast %160 : vector<1x64x64xbf16> to vector<64x64xbf16>
    %cst_160 = arith.constant dense<0.000000e+00> : vector<632x64xf32>
    %162 = tpu.matmul %159, %161, %cst_160 {dimension_numbers = #tpu.dot_dimension_numbers<[1], [0], [0], [1], [0, 0, 1, 1], [], []>} : vector<632x64xbf16>, vector<64x64xbf16>, vector<632x64xf32> -> vector<632x64xf32>
    %c0_161 = arith.constant 0 : index
    %c0_162 = arith.constant 0 : index
    %163 = vector.load %arg9[%c0_161, %c0_162] : memref<632x64xf32, #tpu.memory_space<vmem>>, vector<632x64xf32>
    %164 = arith.addf %163, %162 : vector<632x64xf32>
    %c0_163 = arith.constant 0 : index
    %c0_164 = arith.constant 0 : index
    %165 = vector.load %arg9[%c0_163, %c0_164] : memref<632x64xf32, #tpu.memory_space<vmem>>, vector<632x64xf32>
    tpu.vector_store %arg9[%c0_163, %c0_164], %164 {strides = array<i32>} : memref<632x64xf32, #tpu.memory_space<vmem>>, vector<632x64xf32>,
    %c82 = arith.constant 82 : index
    %c0_165 = arith.constant 0 : index
    %166 = vector.load %arg8[%c82, %c0_165] : memref<720x64xbf16, #tpu.memory_space<vmem>>, vector<632x64xbf16>
    %c8_166 = arith.constant 8 : index
    %c0_167 = arith.constant 0 : index
    %c0_168 = arith.constant 0 : index
    %167 = vector.load %arg5[%c8_166, %c0_167, %c0_168] : memref<9x64x64xbf16, #tpu.memory_space<vmem>>, vector<1x64x64xbf16>
    %168 = vector.shape_cast %167 : vector<1x64x64xbf16> to vector<64x64xbf16>
    %cst_169 = arith.constant dense<0.000000e+00> : vector<632x64xf32>
    %169 = tpu.matmul %166, %168, %cst_169 {dimension_numbers = #tpu.dot_dimension_numbers<[1], [0], [0], [1], [0, 0, 1, 1], [], []>} : vector<632x64xbf16>, vector<64x64xbf16>, vector<632x64xf32> -> vector<632x64xf32>
    %c0_170 = arith.constant 0 : index
    %c0_171 = arith.constant 0 : index
    %170 = vector.load %arg9[%c0_170, %c0_171] : memref<632x64xf32, #tpu.memory_space<vmem>>, vector<632x64xf32>
    %171 = arith.addf %170, %169 : vector<632x64xf32>
    %c0_172 = arith.constant 0 : index
    %c0_173 = arith.constant 0 : index
    %172 = vector.load %arg9[%c0_172, %c0_173] : memref<632x64xf32, #tpu.memory_space<vmem>>, vector<632x64xf32>
    tpu.vector_store %arg9[%c0_172, %c0_173], %171 {strides = array<i32>} : memref<632x64xf32, #tpu.memory_space<vmem>>, vector<632x64xf32>,
    %c0_174 = arith.constant 0 : index
    %c0_175 = arith.constant 0 : index
    %173 = vector.load %arg9[%c0_174, %c0_175] : memref<632x64xf32, #tpu.memory_space<vmem>>, vector<632x64xf32>
    %174 = vector.broadcast %111 : vector<1x64xf32> to vector<632x64xf32>
    %175 = arith.addf %173, %174 : vector<632x64xf32>
    %176 = arith.truncf %175 : vector<632x64xf32> to vector<632x64xbf16>
    %177 = vector.extract_strided_slice %176 {offsets = [0, 0], sizes = [32, 64], strides = [1, 1]} : vector<632x64xbf16> to vector<32x64xbf16>
    %c0_176 = arith.constant 0 : index
    %c0_177 = arith.constant 0 : index
    %c0_178 = arith.constant 0 : index
    %c0_179 = arith.constant 0 : index
    %178 = vector.load %arg7[%c0_176, %c0_177, %c0_178, %c0_179] : memref<1x16x32x64xbf16, #tpu.memory_space<vmem>>, vector<1x1x32x64xbf16>
    %179 = vector.shape_cast %178 : vector<1x1x32x64xbf16> to vector<32x64xbf16>
    %180 = vector.shape_cast %177 : vector<32x64xbf16> to vector<1x1x32x64xbf16>
    tpu.vector_store %arg7[%c0_176, %c0_177, %c0_178, %c0_179], %180 {strides = array<i32>} : memref<1x16x32x64xbf16, #tpu.memory_space<vmem>>, vector<1x1x32x64xbf16>,
    %181 = vector.extract_strided_slice %176 {offsets = [40, 0], sizes = [32, 64], strides = [1, 1]} : vector<632x64xbf16> to vector<32x64xbf16>
    %c0_180 = arith.constant 0 : index
    %c1_181 = arith.constant 1 : index
    %c0_182 = arith.constant 0 : index
    %c0_183 = arith.constant 0 : index
    %182 = vector.load %arg7[%c0_180, %c1_181, %c0_182, %c0_183] : memref<1x16x32x64xbf16, #tpu.memory_space<vmem>>, vector<1x1x32x64xbf16>
    %183 = vector.shape_cast %182 : vector<1x1x32x64xbf16> to vector<32x64xbf16>
    %184 = vector.shape_cast %181 : vector<32x64xbf16> to vector<1x1x32x64xbf16>
    tpu.vector_store %arg7[%c0_180, %c1_181, %c0_182, %c0_183], %184 {strides = array<i32>} : memref<1x16x32x64xbf16, #tpu.memory_space<vmem>>, vector<1x1x32x64xbf16>,
    %185 = vector.extract_strided_slice %176 {offsets = [80, 0], sizes = [32, 64], strides = [1, 1]} : vector<632x64xbf16> to vector<32x64xbf16>
    %c0_184 = arith.constant 0 : index
    %c2_185 = arith.constant 2 : index
    %c0_186 = arith.constant 0 : index
    %c0_187 = arith.constant 0 : index
    %186 = vector.load %arg7[%c0_184, %c2_185, %c0_186, %c0_187] : memref<1x16x32x64xbf16, #tpu.memory_space<vmem>>, vector<1x1x32x64xbf16>
    %187 = vector.shape_cast %186 : vector<1x1x32x64xbf16> to vector<32x64xbf16>
    %188 = vector.shape_cast %185 : vector<32x64xbf16> to vector<1x1x32x64xbf16>
    tpu.vector_store %arg7[%c0_184, %c2_185, %c0_186, %c0_187], %188 {strides = array<i32>} : memref<1x16x32x64xbf16, #tpu.memory_space<vmem>>, vector<1x1x32x64xbf16>,
    %189 = vector.extract_strided_slice %176 {offsets = [120, 0], sizes = [32, 64], strides = [1, 1]} : vector<632x64xbf16> to vector<32x64xbf16>
    %c0_188 = arith.constant 0 : index
    %c3_189 = arith.constant 3 : index
    %c0_190 = arith.constant 0 : index
    %c0_191 = arith.constant 0 : index
    %190 = vector.load %arg7[%c0_188, %c3_189, %c0_190, %c0_191] : memref<1x16x32x64xbf16, #tpu.memory_space<vmem>>, vector<1x1x32x64xbf16>
    %191 = vector.shape_cast %190 : vector<1x1x32x64xbf16> to vector<32x64xbf16>
    %192 = vector.shape_cast %189 : vector<32x64xbf16> to vector<1x1x32x64xbf16>
    tpu.vector_store %arg7[%c0_188, %c3_189, %c0_190, %c0_191], %192 {strides = array<i32>} : memref<1x16x32x64xbf16, #tpu.memory_space<vmem>>, vector<1x1x32x64xbf16>,
    %193 = vector.extract_strided_slice %176 {offsets = [160, 0], sizes = [32, 64], strides = [1, 1]} : vector<632x64xbf16> to vector<32x64xbf16>
    %c0_192 = arith.constant 0 : index
    %c4_193 = arith.constant 4 : index
    %c0_194 = arith.constant 0 : index
    %c0_195 = arith.constant 0 : index
    %194 = vector.load %arg7[%c0_192, %c4_193, %c0_194, %c0_195] : memref<1x16x32x64xbf16, #tpu.memory_space<vmem>>, vector<1x1x32x64xbf16>
    %195 = vector.shape_cast %194 : vector<1x1x32x64xbf16> to vector<32x64xbf16>
    %196 = vector.shape_cast %193 : vector<32x64xbf16> to vector<1x1x32x64xbf16>
    tpu.vector_store %arg7[%c0_192, %c4_193, %c0_194, %c0_195], %196 {strides = array<i32>} : memref<1x16x32x64xbf16, #tpu.memory_space<vmem>>, vector<1x1x32x64xbf16>,
    %197 = vector.extract_strided_slice %176 {offsets = [200, 0], sizes = [32, 64], strides = [1, 1]} : vector<632x64xbf16> to vector<32x64xbf16>
    %c0_196 = arith.constant 0 : index
    %c5_197 = arith.constant 5 : index
    %c0_198 = arith.constant 0 : index
    %c0_199 = arith.constant 0 : index
    %198 = vector.load %arg7[%c0_196, %c5_197, %c0_198, %c0_199] : memref<1x16x32x64xbf16, #tpu.memory_space<vmem>>, vector<1x1x32x64xbf16>
    %199 = vector.shape_cast %198 : vector<1x1x32x64xbf16> to vector<32x64xbf16>
    %200 = vector.shape_cast %197 : vector<32x64xbf16> to vector<1x1x32x64xbf16>
    tpu.vector_store %arg7[%c0_196, %c5_197, %c0_198, %c0_199], %200 {strides = array<i32>} : memref<1x16x32x64xbf16, #tpu.memory_space<vmem>>, vector<1x1x32x64xbf16>,
    %201 = vector.extract_strided_slice %176 {offsets = [240, 0], sizes = [32, 64], strides = [1, 1]} : vector<632x64xbf16> to vector<32x64xbf16>
    %c0_200 = arith.constant 0 : index
    %c6_201 = arith.constant 6 : index
    %c0_202 = arith.constant 0 : index
    %c0_203 = arith.constant 0 : index
    %202 = vector.load %arg7[%c0_200, %c6_201, %c0_202, %c0_203] : memref<1x16x32x64xbf16, #tpu.memory_space<vmem>>, vector<1x1x32x64xbf16>
    %203 = vector.shape_cast %202 : vector<1x1x32x64xbf16> to vector<32x64xbf16>
    %204 = vector.shape_cast %201 : vector<32x64xbf16> to vector<1x1x32x64xbf16>
    tpu.vector_store %arg7[%c0_200, %c6_201, %c0_202, %c0_203], %204 {strides = array<i32>} : memref<1x16x32x64xbf16, #tpu.memory_space<vmem>>, vector<1x1x32x64xbf16>,
    %205 = vector.extract_strided_slice %176 {offsets = [280, 0], sizes = [32, 64], strides = [1, 1]} : vector<632x64xbf16> to vector<32x64xbf16>
    %c0_204 = arith.constant 0 : index
    %c7_205 = arith.constant 7 : index
    %c0_206 = arith.constant 0 : index
    %c0_207 = arith.constant 0 : index
    %206 = vector.load %arg7[%c0_204, %c7_205, %c0_206, %c0_207] : memref<1x16x32x64xbf16, #tpu.memory_space<vmem>>, vector<1x1x32x64xbf16>
    %207 = vector.shape_cast %206 : vector<1x1x32x64xbf16> to vector<32x64xbf16>
    %208 = vector.shape_cast %205 : vector<32x64xbf16> to vector<1x1x32x64xbf16>
    tpu.vector_store %arg7[%c0_204, %c7_205, %c0_206, %c0_207], %208 {strides = array<i32>} : memref<1x16x32x64xbf16, #tpu.memory_space<vmem>>, vector<1x1x32x64xbf16>,
    %209 = vector.extract_strided_slice %176 {offsets = [320, 0], sizes = [32, 64], strides = [1, 1]} : vector<632x64xbf16> to vector<32x64xbf16>
    %c0_208 = arith.constant 0 : index
    %c8_209 = arith.constant 8 : index
    %c0_210 = arith.constant 0 : index
    %c0_211 = arith.constant 0 : index
    %210 = vector.load %arg7[%c0_208, %c8_209, %c0_210, %c0_211] : memref<1x16x32x64xbf16, #tpu.memory_space<vmem>>, vector<1x1x32x64xbf16>
    %211 = vector.shape_cast %210 : vector<1x1x32x64xbf16> to vector<32x64xbf16>
    %212 = vector.shape_cast %209 : vector<32x64xbf16> to vector<1x1x32x64xbf16>
    tpu.vector_store %arg7[%c0_208, %c8_209, %c0_210, %c0_211], %212 {strides = array<i32>} : memref<1x16x32x64xbf16, #tpu.memory_space<vmem>>, vector<1x1x32x64xbf16>,
    %213 = vector.extract_strided_slice %176 {offsets = [360, 0], sizes = [32, 64], strides = [1, 1]} : vector<632x64xbf16> to vector<32x64xbf16>
    %c0_212 = arith.constant 0 : index
    %c9_213 = arith.constant 9 : index
    %c0_214 = arith.constant 0 : index
    %c0_215 = arith.constant 0 : index
    %214 = vector.load %arg7[%c0_212, %c9_213, %c0_214, %c0_215] : memref<1x16x32x64xbf16, #tpu.memory_space<vmem>>, vector<1x1x32x64xbf16>
    %215 = vector.shape_cast %214 : vector<1x1x32x64xbf16> to vector<32x64xbf16>
    %216 = vector.shape_cast %213 : vector<32x64xbf16> to vector<1x1x32x64xbf16>
    tpu.vector_store %arg7[%c0_212, %c9_213, %c0_214, %c0_215], %216 {strides = array<i32>} : memref<1x16x32x64xbf16, #tpu.memory_space<vmem>>, vector<1x1x32x64xbf16>,
    %217 = vector.extract_strided_slice %176 {offsets = [400, 0], sizes = [32, 64], strides = [1, 1]} : vector<632x64xbf16> to vector<32x64xbf16>
    %c0_216 = arith.constant 0 : index
    %c10_217 = arith.constant 10 : index
    %c0_218 = arith.constant 0 : index
    %c0_219 = arith.constant 0 : index
    %218 = vector.load %arg7[%c0_216, %c10_217, %c0_218, %c0_219] : memref<1x16x32x64xbf16, #tpu.memory_space<vmem>>, vector<1x1x32x64xbf16>
    %219 = vector.shape_cast %218 : vector<1x1x32x64xbf16> to vector<32x64xbf16>
    %220 = vector.shape_cast %217 : vector<32x64xbf16> to vector<1x1x32x64xbf16>
    tpu.vector_store %arg7[%c0_216, %c10_217, %c0_218, %c0_219], %220 {strides = array<i32>} : memref<1x16x32x64xbf16, #tpu.memory_space<vmem>>, vector<1x1x32x64xbf16>,
    %221 = vector.extract_strided_slice %176 {offsets = [440, 0], sizes = [32, 64], strides = [1, 1]} : vector<632x64xbf16> to vector<32x64xbf16>
    %c0_220 = arith.constant 0 : index
    %c11_221 = arith.constant 11 : index
    %c0_222 = arith.constant 0 : index
    %c0_223 = arith.constant 0 : index
    %222 = vector.load %arg7[%c0_220, %c11_221, %c0_222, %c0_223] : memref<1x16x32x64xbf16, #tpu.memory_space<vmem>>, vector<1x1x32x64xbf16>
    %223 = vector.shape_cast %222 : vector<1x1x32x64xbf16> to vector<32x64xbf16>
    %224 = vector.shape_cast %221 : vector<32x64xbf16> to vector<1x1x32x64xbf16>
    tpu.vector_store %arg7[%c0_220, %c11_221, %c0_222, %c0_223], %224 {strides = array<i32>} : memref<1x16x32x64xbf16, #tpu.memory_space<vmem>>, vector<1x1x32x64xbf16>,
    %225 = vector.extract_strided_slice %176 {offsets = [480, 0], sizes = [32, 64], strides = [1, 1]} : vector<632x64xbf16> to vector<32x64xbf16>
    %c0_224 = arith.constant 0 : index
    %c12_225 = arith.constant 12 : index
    %c0_226 = arith.constant 0 : index
    %c0_227 = arith.constant 0 : index
    %226 = vector.load %arg7[%c0_224, %c12_225, %c0_226, %c0_227] : memref<1x16x32x64xbf16, #tpu.memory_space<vmem>>, vector<1x1x32x64xbf16>
    %227 = vector.shape_cast %226 : vector<1x1x32x64xbf16> to vector<32x64xbf16>
    %228 = vector.shape_cast %225 : vector<32x64xbf16> to vector<1x1x32x64xbf16>
    tpu.vector_store %arg7[%c0_224, %c12_225, %c0_226, %c0_227], %228 {strides = array<i32>} : memref<1x16x32x64xbf16, #tpu.memory_space<vmem>>, vector<1x1x32x64xbf16>,
    %229 = vector.extract_strided_slice %176 {offsets = [520, 0], sizes = [32, 64], strides = [1, 1]} : vector<632x64xbf16> to vector<32x64xbf16>
    %c0_228 = arith.constant 0 : index
    %c13_229 = arith.constant 13 : index
    %c0_230 = arith.constant 0 : index
    %c0_231 = arith.constant 0 : index
    %230 = vector.load %arg7[%c0_228, %c13_229, %c0_230, %c0_231] : memref<1x16x32x64xbf16, #tpu.memory_space<vmem>>, vector<1x1x32x64xbf16>
    %231 = vector.shape_cast %230 : vector<1x1x32x64xbf16> to vector<32x64xbf16>
    %232 = vector.shape_cast %229 : vector<32x64xbf16> to vector<1x1x32x64xbf16>
    tpu.vector_store %arg7[%c0_228, %c13_229, %c0_230, %c0_231], %232 {strides = array<i32>} : memref<1x16x32x64xbf16, #tpu.memory_space<vmem>>, vector<1x1x32x64xbf16>,
    %233 = vector.extract_strided_slice %176 {offsets = [560, 0], sizes = [32, 64], strides = [1, 1]} : vector<632x64xbf16> to vector<32x64xbf16>
    %c0_232 = arith.constant 0 : index
    %c14_233 = arith.constant 14 : index
    %c0_234 = arith.constant 0 : index
    %c0_235 = arith.constant 0 : index
    %234 = vector.load %arg7[%c0_232, %c14_233, %c0_234, %c0_235] : memref<1x16x32x64xbf16, #tpu.memory_space<vmem>>, vector<1x1x32x64xbf16>
    %235 = vector.shape_cast %234 : vector<1x1x32x64xbf16> to vector<32x64xbf16>
    %236 = vector.shape_cast %233 : vector<32x64xbf16> to vector<1x1x32x64xbf16>
    tpu.vector_store %arg7[%c0_232, %c14_233, %c0_234, %c0_235], %236 {strides = array<i32>} : memref<1x16x32x64xbf16, #tpu.memory_space<vmem>>, vector<1x1x32x64xbf16>,
    %237 = vector.extract_strided_slice %176 {offsets = [600, 0], sizes = [32, 64], strides = [1, 1]} : vector<632x64xbf16> to vector<32x64xbf16>
    %c0_236 = arith.constant 0 : index
    %c15_237 = arith.constant 15 : index
    %c0_238 = arith.constant 0 : index
    %c0_239 = arith.constant 0 : index
    %238 = vector.load %arg7[%c0_236, %c15_237, %c0_238, %c0_239] : memref<1x16x32x64xbf16, #tpu.memory_space<vmem>>, vector<1x1x32x64xbf16>
    %239 = vector.shape_cast %238 : vector<1x1x32x64xbf16> to vector<32x64xbf16>
    %240 = vector.shape_cast %237 : vector<32x64xbf16> to vector<1x1x32x64xbf16>
    tpu.vector_store %arg7[%c0_236, %c15_237, %c0_238, %c0_239], %240 {strides = array<i32>} : memref<1x16x32x64xbf16, #tpu.memory_space<vmem>>, vector<1x1x32x64xbf16>,
    return
  }
  func.func @transform_0(%arg0: i32, %arg1: i32) -> (i32, i32, i32, i32) {
    %c0_i32 = arith.constant 0 : i32
    %c0_i32_0 = arith.constant 0 : i32
    %c0_i32_1 = arith.constant 0 : i32
    return %arg0, %arg1, %c0_i32, %c0_i32_0 : i32, i32, i32, i32
  }
  func.func @transform_1(%arg0: i32, %arg1: i32) -> (i32, i32, i32, i32) {
    %c16_i32 = arith.constant 16 : i32
    %0 = arith.muli %arg1, %c16_i32 : i32
    %c1_i32 = arith.constant 1 : i32
    %1 = arith.subi %0, %c1_i32 : i32
    %c0_i32 = arith.constant 0 : i32
    %2 = arith.maxsi %1, %c0_i32 : i32
    %c0_i32_0 = arith.constant 0 : i32
    %c0_i32_1 = arith.constant 0 : i32
    %c0_i32_2 = arith.constant 0 : i32
    return %arg0, %2, %c0_i32_0, %c0_i32_1 : i32, i32, i32, i32
  }
  func.func @transform_2(%arg0: i32, %arg1: i32) -> (i32, i32, i32, i32) {
    %c16_i32 = arith.constant 16 : i32
    %0 = arith.muli %arg1, %c16_i32 : i32
    %c16_i32_0 = arith.constant 16 : i32
    %1 = arith.addi %0, %c16_i32_0 : i32
    %c31_i32 = arith.constant 31 : i32
    %2 = arith.minsi %1, %c31_i32 : i32
    %c0_i32 = arith.constant 0 : i32
    %c0_i32_1 = arith.constant 0 : i32
    %c0_i32_2 = arith.constant 0 : i32
    return %arg0, %2, %c0_i32, %c0_i32_1 : i32, i32, i32, i32
  }
  func.func @transform_3(%arg0: i32, %arg1: i32) -> (i32, i32, i32) {
    %c0_i32 = arith.constant 0 : i32
    %c0_i32_0 = arith.constant 0 : i32
    %c0_i32_1 = arith.constant 0 : i32
    %c0_i32_2 = arith.constant 0 : i32
    return %c0_i32, %c0_i32_0, %c0_i32_1 : i32, i32, i32
  }
  func.func @transform_4(%arg0: i32, %arg1: i32) -> (i32, i32) {
    %c0_i32 = arith.constant 0 : i32
    %c0_i32_0 = arith.constant 0 : i32
    %c0_i32_1 = arith.constant 0 : i32
    return %c0_i32, %c0_i32_0 : i32, i32
  }
  func.func @transform_5(%arg0: i32, %arg1: i32) -> (i32, i32, i32, i32) {
    %c0_i32 = arith.constant 0 : i32
    %c0_i32_0 = arith.constant 0 : i32
    %c0_i32_1 = arith.constant 0 : i32
    return %arg0, %arg1, %c0_i32, %c0_i32_0 : i32, i32, i32, i32
  }
}

</mosaic_0001>

<bundles_post_ra>
// kernel: tpu_custom_call.1
= control target key start
LH: loop header
LB: loop body
LE: loop exit
PB: predicated region body
PF: predicated region fallthrough
CT: control target
= control target key end

     0   :  { %s16704_s0 = inlined_call_operand.hbm [shape: bf16[2,32,32,64], index: 0, kind: input, shape index: {}]   ;;  %s16705_s1 = inlined_call_operand.hbm [shape: bf16[2,32,32,64], index: 1, kind: input, shape index: {}]   ;;  %s16706_s2 = inlined_call_operand.hbm [shape: bf16[2,32,32,64], index: 2, kind: input, shape index: {}]   ;;  %s16707_s3 = inlined_call_operand.hbm [shape: bf16[9,64,64], index: 3, kind: input, shape index: {}]   ;;  %s16708_s4 = inlined_call_operand.vmem [shape: f32[1,64], index: 4, kind: input, shape index: {}]   ;;  %s16709_s5 = inlined_call_operand.hbm [shape: bf16[2,32,32,64], index: 5, kind: output, shape index: {}]  }
   0x1   :  { %16737 = sst [smem:[#allocation60_spill]] %s16704_s0 }
   0x2   :  { %16738 = sst [smem:[#allocation61_spill]] %s16705_s1 }
   0x3   :  { %16739 = sst [smem:[#allocation62_spill]] %s16706_s2 }
   0x4   :  { %16740 = sst [smem:[#allocation63_spill]] %s16707_s3 }
   0x5   :  { %16741 = sst [smem:[#allocation64_spill]] %s16708_s4 }
   0x6   :  { %16742 = sst [smem:[#allocation65_spill]] %s16709_s5 }
   0x7   :  { %10 = vsyncpa [#allocation5], 0 }
   0x8   :  { %12 = vsyncpa [#allocation5 + $0x1], 0 }
   0x9   :  { %13 = vsyncpa [#allocation8], 0 }
   0xa   :  { %15 = vsyncpa [#allocation8 + $0x1], 0 }
   0xb   :  { %16 = vsyncpa [#allocation11], 0 }
   0xc   :  { %17 = vsyncpa [#allocation6], 0 }
   0xd   :  { %19 = vsyncpa [#allocation6 + $0x1], 0  ;;  %s12748_s18 = smov 0   ;;  %s12750_s19 = smov 0  }
   0xe   :  { %s12752_s20 = smov 0   ;;  %s12754_s21 = smov 0  }
   0xf   :  { %s12756_s22 = smov 0   ;;  %s12758_s23 = smov 0  }
  0x10   :  { %s12760_s24 = smov 0   ;;  %s12762_s25 = smov 0  }
  0x11   :  { %s12764_s26 = smov 0   ;;  %s12766_s27 = smov 0  }
  0x12   :  { %s12768_s28 = smov 0   ;;  %s12770_s29 = smov 0  }
  0x13   :  { %s12772_s30 = smov 0   ;;  %s12774_s6 = smov 0  }
  0x14 LB: > { %16743 = sst [smem:[#allocation18_spill]] %s12650_s18  ;;  %s34_s7 = sadd.s32 1, %s12694_s29  ;;  %s12702_s6 = sphi %s12774_s6, %s25_s6   ;;  %s12698_s30 = sphi %s12772_s30, %s16875_s30   ;;  %s12694_s29 = sphi %s12770_s29, %s16874_s29   ;;  %s12690_s28 = sphi %s12768_s28, %s16873_s28   ;;  %s12686_s27 = sphi %s12766_s27, %s16882_s27   ;;  %s12682_s26 = sphi %s12764_s26, %s16871_s26   ;;  %s12678_s25 = sphi %s12762_s25, %s16881_s25   ;;  %s12674_s24 = sphi %s12760_s24, %s16880_s24   ;;  %s12670_s23 = sphi %s12758_s23, %s16869_s23   ;;  %s12666_s22 = sphi %s12756_s22, %s16879_s22   ;;  %s12662_s21 = sphi %s12754_s21, %s16878_s21   ;;  %s12658_s20 = sphi %s12752_s20, %s16877_s20   ;;  %s12654_s19 = sphi %s12750_s19, %s16867_s19   ;;  %s12650_s18 = sphi %s12748_s18, %s16866_s18  }
  0x15   : > { %16744 = sst [smem:[#allocation19_spill]] %s12654_s19  ;;  %s37_s8 = sadd.s32 1, %s12698_s30 }
  0x16   : > { %16745 = sst [smem:[#allocation20_spill]] %s12658_s20  ;;  %p35_p0 = scmp.ge.s32.totalorder %s34_s7, 2 }
  0x17   : > { %16746 = sst [smem:[#allocation21_spill]] %s12670_s23  ;;  %p16721_p1 = scmp.eq.s32.totalorder %s12702_s6, 0 }
  0x18   : > { %16747 = sst [smem:[#allocation22_spill]] %s12682_s26  ;;  %s10310_s9 = sshll.u32 %s12694_s29, 4 }
  0x19   : > { %16748 = sst [smem:[#allocation23_spill]] %s12686_s27  ;;  %s82_s10 = sadd.s32 1, %s12670_s23 }
  0x1a   : > { %16749 = sst [smem:[#allocation24_spill]] %s12690_s28  ;;  %s16884_s7 = smov (%p35_p0, %s34_s7), 0 }
  0x1b   : > { %16750 = sst [smem:[#allocation25_spill]] %s12694_s29  ;;  %s16886_s8 = smov (!%p35_p0, %s37_s8), %s12698_s30 }
  0x1c   : > { %16751 = sst [smem:[#allocation26_spill]] %s12698_s30  ;;  %s42_s11 = ssub.s32 %s12694_s29, %s16884_s7 }
  0x1d   : > { %16752 = sst [smem:[#allocation27_spill]] %s16884_s7  ;;  %s10311_s12 = sadd.s32 4294967295, %s10310_s9 }
  0x1e   : > { %p39_p2 = scmp.ge.s32.totalorder %s16886_s8, 2  ;;  %p71_p3 = scmp.gt.s32.totalorder %s10311_s12, 0 }
  0x1f   : > { %s10312_s13 = sshll.u32 %s16884_s7, 4  ;;  %p89_p4 = scmp.ne.s32.totalorder %s12670_s23, %s12666_s22 }
  0x20   : > { %s16888_s8 = smov (%p39_p2, %s16886_s8), 0  ;;  %s16890_s12 = smov (!%p71_p3, %s10311_s12), 0 }
  0x21   : > { %16753 = sst [smem:[#allocation28_spill]] %s16888_s8  ;;  %s12835_s14 = ssub.s32 %s12698_s30, %s16888_s8 }
  0x22   : > { %16754 = sst [smem:[#allocation29_spill]] %s12835_s14  ;;  %s10313_s15 = sadd.s32 4294967295, %s10312_s13 }
  0x23   : > { %s12838_s16 = sor.u32 %s42_s11, %s12835_s14  ;;  %p75_p5 = scmp.gt.s32.totalorder %s10313_s15, 0 }
  0x24   : > { %p12843_p7 = por %p89_p4, %p16721_p1  ;;  %p95_p8 = scmp.ne.s32.totalorder %s12666_s22, %s12662_s21 }
  0x25   : > { %s16892_s15 = smov (!%p75_p5, %s10313_s15), 0  ;;  %s12849_s8 = sadd.s32 16, %s10310_s9 }
  0x26   : > { %16756 = sst [smem:[#allocation30_spill]] %s12849_s8  ;;  %s78_s7 = ssub.s32 %s16890_s12, %s16892_s15 }
  0x27   : > { %s79_s5 = sor.u32 %s78_s7, %s12835_s14  ;;  %s12853_s11 = sadd.s32 16, %s10312_s13 }
  0x28   : > { %p80_p10 = scmp.eq.s32.totalorder %s79_s5, 0  ;;  %p16720_p12 = scmp.lt.s32.totalorder %s12702_s6, 4 }
  0x29   : > { %s12861_s4 = sshll.u32 %s12698_s30, 7  ;;  %s265_s27 = sand.u32 1, %s12702_s6  }
  0x2a   : > { %s12857_s28 = scalar_select %p80_p10, %s12670_s23, %s82_s10  }
  0x2b   : > { %s267_s9 = sand.u32 1, %s12670_s23   ;;  %s10327_s18 = sshll.u32 %s16890_s12, 2 }
  0x2c   : > { %16757 = sst [smem:[#allocation31_spill]] %s12857_s28  ;;  %s10324_s2 = sshll.u32 %s267_s9, 4 }
  0x2d   : > { %s279_s15 = sadd.s32 %s10327_s18, %s12861_s4  ;;  %s269_s7 = scalar_lea.vmem [#allocation7], %s10324_s2 }
  0x2e   : > { %s10329_s19 = sshll.u32 %s279_s15, 6  ;;  %s282_s13 = sshll.u32 %s269_s7, 4  ;;  %s12871_s13 = int_to_ptr.vmem [resolvable:$true] %s282_s13 }
  0x2f   : > { %s16758_s1 = sld [smem:[#allocation61_spill]]  ;;  %p12877_p13 = pnand %p16720_p12, %p12843_p7 }
  0x30   : > { %s12881_s2 = scalar_lea.sflag [#allocation8], %s265_s27 }
  0x31   : > { %p12428_p2 = pneg %p12877_p13 }
  0x35   : > { %s12869_s20 = scalar_lea.hbm %s16758_s1, %s10329_s19  ;;  %s12431_s10 = scalar_lea.hbm %s16758_s1, 16384 }
  0x36   : > { %s12426_s18 = scalar_lea.hbm %s12869_s20, 256  ;;  %p12432_p5 = scmp.lt.u32.totalorder %s12869_s20, %s16758_s1 }
  0x37   : > { %p12427_p0 = scmp.ne.s32.totalorder %s12869_s20, %s12426_s18  ;;  %p12433_p7 = scmp.lt.u32.totalorder %s12431_s10, %s12426_s18 }
  0x38   : > { %p12435_p11 = scmp.lt.u32.totalorder %s12426_s18, %s12869_s20 }
  0x39   : > { %p12429_p3 = pnand %p12428_p2, %p12427_p0  ;;  %p12434_p10 = por %p12433_p7, %p12432_p5 }
  0x3b   : > { %p12430_p4 = pneg %p12429_p3  ;;  %p12436_p9 = por %p12435_p11, %p12434_p10 }
  0x3d   : > { %p12437_p12 = pnand %p12436_p9, %p12430_p4 }
  0x3f   : > { %12440 = shalt.err (!%p12437_p12)
}
  0x40   : > { %s12441_s27 = scalar_lea.vmem %s12871_s13, 256  ;;  %s12704_s17 = smov [#allocation7]  }
  0x41   : > { %p12442_p0 = scmp.ne.s32.totalorder %s12871_s13, %s12441_s27  ;;  %s12446_s9 = sshll.u32 %s12704_s17, 4  ;;  %s12447_s9 = int_to_ptr.vmem [resolvable:$false] %s12446_s9 }
  0x42   : > { %s12448_s15 = scalar_lea.vmem %s12447_s9, 512  ;;  %p12449_p6 = scmp.lt.s32.totalorder %s12871_s13, %s12447_s9 }
  0x43   : > { %p12444_p3 = pnand %p12442_p0, %p12428_p2  ;;  %p12450_p5 = scmp.lt.s32.totalorder %s12448_s15, %s12441_s27 }
  0x45   : > { %p12445_p1 = pneg %p12444_p3  ;;  %p12451_p7 = por %p12450_p5, %p12449_p6 }
  0x47   : > { %p12452_p11 = pnand %p12451_p7, %p12445_p1 }
  0x49   : > { %12455 = shalt.err (!%p12452_p11)
}
  0x4a   : > { %s16722_s7 = smov 64   ;;  %s16724_s18 = smov 4  }
  0x4b   : > { %12253 = dma.hbm_to_vmem [thread:$0]  (!%p12877_p13), %s12869_s20, 256, %s12871_s13, %s12881_s2, %s16722_s7, %s16722_s7, %s16724_s18  }
  0x4c   : > { %s12913_s19 = sadd.s32 4294967295, %s12702_s6   ;;  %p10316_p1 = scmp.ge.s32.totalorder %s12702_s6, 1 }
  0x4d   : > { %p16726_p6 = scmp.eq.s32.totalorder %s12913_s19, 0  ;;  %p212_p12 = scmp.lt.s32.totalorder %s12702_s6, 5 }
  0x4e   : > { %s12707_s20 = smov [#allocation10]   ;;  %s10309_s21 = sadd.s32 4294967294, %s12702_s6  }
  0x4f   : > { %p12924_p2 = por %p95_p8, %p16726_p6  ;;  %p12928_p4 = pnand %p10316_p1, %p212_p12 }
  0x50   : > { %s224_s13 = sshll.u32 %s12707_s20, 4  ;;  %s46_s12 = sadd.s32 1, %s12682_s26  ;;  %s225_s13 = int_to_ptr.vmem [resolvable:$true] %s224_s13 }
  0x51   : > { %s16760_s8 = scalar_select %p12924_p2, 1, 0 }
  0x52   : > { %s16761_s5 = scalar_select %p12928_p4, 1, 0 }
  0x53   : > { %p12243_p13 = pneg %p12928_p4  ;;  %s16763_s3 = sld [smem:[#allocation63_spill]] }
  0x55   : > { %p12936_p10 = pnand %p12243_p13, %p16726_p6 }
  0x57   : > { %p12458_p0 = pneg %p12936_p10 }
  0x59   : > { %s12456_s17 = scalar_lea.hbm %s16763_s3, 4608 }
  0x5a   : > { %p12457_p8 = scmp.ne.s32.totalorder %s16763_s3, %s12456_s17  ;;  %p12463_p7 = scmp.lt.u32.totalorder %s12456_s17, %s16763_s3 }
  0x5c   : > { %p12459_p3 = pnand %p12458_p0, %p12457_p8 }
  0x5e   : > { %p12460_p5 = pneg %p12459_p3 }
  0x60   : > { %p12465_p11 = pnand %p12463_p7, %p12460_p5 }
  0x62   : > { %12468 = shalt.err (!%p12465_p11)
}
  0x63   : > { %s12469_s18 = scalar_lea.vmem %s225_s13, 4608  ;;  %p12477_p9 = scmp.lt.s32.totalorder %s225_s13, %s225_s13 }
  0x64   : > { %p12470_p1 = scmp.ne.s32.totalorder %s225_s13, %s12469_s18  ;;  %p12478_p6 = scmp.lt.s32.totalorder %s12469_s18, %s12469_s18 }
  0x66   : > { %p12472_p12 = pnand %p12470_p1, %p12458_p0  ;;  %p12479_p2 = por %p12478_p6, %p12477_p9 }
  0x68   : > { %p12473_p13 = pneg %p12472_p12 }
  0x6a   : > { %p12480_p4 = pnand %p12479_p2, %p12473_p13 }
  0x6c   : > { %12483 = shalt.err (!%p12480_p4)
}
  0x6d   : > { %s16764_s14 = smov 4   ;;  %s16765_s27 = smov 64  }
  0x6e   : > { %12246 = dma.hbm_to_vmem [thread:$0]  (!%p12936_p10), %s16763_s3, 4608, %s225_s13, [#allocation11], %s16765_s27, %s16765_s27, %s16764_s14  }
  0x6f   : > { %p16766_p6 = scmp.eq.s32.totalorder %s12838_s16, 0  ;;  %p53_p9 = scmp.ne.s32.totalorder %s12682_s26, %s12678_s25 }
  0x70   : > { %p59_p2 = scmp.ne.s32.totalorder %s12678_s25, %s12674_s24  ;;  %p205_p4 = scmp.eq.s32.totalorder %s10309_s21, 3 }
  0x71   : > { %s12964_s7 = scalar_select %p16766_p6, %s12682_s26, %s46_s12  }
  0x72   : > { %s241_s18 = sand.u32 1, %s12682_s26   ;;  %p16768_p8 = scmp.eq.s32.totalorder %s12702_s6, 0 }
  0x73   : > { %16767 = sst [smem:[#allocation32_spill]] %s12964_s7  ;;  %p16769_p3 = scmp.eq.s32.totalorder %s12913_s19, 0 }
  0x74   : > { %p55_p0 = por %p16768_p8, %p53_p9  ;;  %p16771_p7 = scmp.eq.s32.totalorder %s12913_s19, 3 }
  0x75   : > { %p12975_p5 = por %p16769_p3, %p59_p2  ;;  %p12985_p10 = por %p205_p4, %p59_p2 }
  0x76   : > { %p12981_p11 = por %p16771_p7, %p53_p9  ;;  %s10319_s13 = sshll.u32 %s241_s18, 8 }
  0x77   : > { %s16773_s16 = scalar_select %p12985_p10, 1, 0 }
  0x78   : > { %s16772_s17 = scalar_select %p12981_p11, 1, 0 }
  0x79   : > { %16774 = sst [smem:[#allocation33_spill]] %s16773_s16  ;;  %s10969_s12 = sshll.u32 %s12694_s29, 6 }
  0x7a   : > { %s252_s21 = sadd.s32 %s10969_s12, %s12861_s4  ;;  %s245_s20 = scalar_lea.vmem [#allocation4], %s10319_s13 }
  0x7b   : > { %s255_s9 = sshll.u32 %s245_s20, 4  ;;  %s10323_s15 = sshll.u32 %s252_s21, 6  ;;  %s12991_s9 = int_to_ptr.vmem [resolvable:$true] %s255_s9 }
  0x7c   : > { %s16775_s0 = sld [smem:[#allocation60_spill]]  ;;  %p16776_p1 = scmp.lt.s32.totalorder %s12702_s6, 4 }
  0x7d   : > { %s13004_s13 = scalar_lea.sflag [#allocation5], %s241_s18 }
  0x7e   : > { %p13000_p12 = pnand %p16776_p1, %p55_p0 }
  0x80   : > { %p12486_p6 = pneg %p13000_p12 }
  0x82   : > { %s12996_s30 = scalar_lea.hbm %s16775_s0, %s10323_s15  ;;  %s12489_s21 = scalar_lea.hbm %s16775_s0, 16384 }
  0x83   : > { %s12484_s12 = scalar_lea.hbm %s12996_s30, 4096  ;;  %p12490_p4 = scmp.lt.u32.totalorder %s12996_s30, %s16775_s0 }
  0x84   : > { %p12485_p13 = scmp.ne.s32.totalorder %s12996_s30, %s12484_s12  ;;  %p12491_p8 = scmp.lt.u32.totalorder %s12489_s21, %s12484_s12 }
  0x85   : > { %p12493_p3 = scmp.lt.u32.totalorder %s12484_s12, %s12996_s30 }
  0x86   : > { %p12487_p9 = pnand %p12486_p6, %p12485_p13  ;;  %p12492_p0 = por %p12491_p8, %p12490_p4 }
  0x88   : > { %p12488_p2 = pneg %p12487_p9  ;;  %p12494_p7 = por %p12493_p3, %p12492_p0 }
  0x8a   : > { %p12495_p1 = pnand %p12494_p7, %p12488_p2 }
  0x8c   : > { %12498 = shalt.err (!%p12495_p1)
}
  0x8d   : > { %s12499_s18 = scalar_lea.vmem %s12991_s9, 4096  ;;  %s12708_s1 = smov [#allocation4]  }
  0x8e   : > { %p12500_p13 = scmp.ne.s32.totalorder %s12991_s9, %s12499_s18  ;;  %s12504_s3 = sshll.u32 %s12708_s1, 4  ;;  %s12505_s3 = int_to_ptr.vmem [resolvable:$false] %s12504_s3 }
  0x8f   : > { %s12506_s20 = scalar_lea.vmem %s12505_s3, 8192  ;;  %p12507_p11 = scmp.lt.s32.totalorder %s12991_s9, %s12505_s3 }
  0x90   : > { %p12502_p9 = pnand %p12500_p13, %p12486_p6  ;;  %p12508_p4 = scmp.lt.s32.totalorder %s12506_s20, %s12499_s18 }
  0x92   : > { %p12503_p10 = pneg %p12502_p9  ;;  %p12509_p8 = por %p12508_p4, %p12507_p11 }
  0x94   : > { %p12510_p0 = pnand %p12509_p8, %p12503_p10 }
  0x96   : > { %12513 = shalt.err (!%p12510_p0)
}
  0x97   : > { %s16778_s12 = sld [smem:[#allocation20_spill]]  ;;  %s16779_s21 = sld [smem:[#allocation30_spill]] }
  0x98   : > { %s16780_s15 = sld [smem:[#allocation19_spill]]  ;;  %s16781_s1 = sld [smem:[#allocation18_spill]] }
  0x99   : > { %s16782_s18 = sld [smem:[#allocation29_spill]]  ;;  %p16784_p10 = scmp.lt.s32.totalorder %s12853_s11, 31 }
  0x9a   : > { %12250 = dma.hbm_to_vmem [thread:$0]  (!%p13000_p12), %s12996_s30, 4096, %s12991_s9, %s13004_s13, %s16765_s27, %s16765_s27, %s16764_s14  }
  0x9b   : > { %s16896_s11 = smov (!%p16784_p10, %s12853_s11), 31  ;;  %p16785_p3 = scmp.eq.s32.totalorder %s12702_s6, 0 }
  0x9c   : > { %p16786_p13 = scmp.eq.s32.totalorder %s12913_s19, 0  ;;  %s16788_s23 = sld [smem:[#allocation62_spill]] }
  0x9d   : > { %s118_s7 = sadd.s32 1, %s16778_s12  ;;  %p16783_p11 = scmp.lt.s32.totalorder %s16779_s21, 31 }
  0x9e   : > { %p125_p6 = scmp.ne.s32.totalorder %s16778_s12, %s16780_s15  ;;  %p131_p2 = scmp.ne.s32.totalorder %s16780_s15, %s16781_s1 }
  0x9f   : > { %s16894_s21 = smov (!%p16783_p11, %s16779_s21), 31  ;;  %s294_s20 = sand.u32 1, %s16778_s12  }
  0xa0   : > { %s114_s3 = ssub.s32 %s16894_s21, %s16896_s11  ;;  %p127_p7 = por %p125_p6, %p16785_p3 }
  0xa1   : > { %s115_s0 = sor.u32 %s114_s3, %s16782_s18  ;;  %p13052_p9 = por %p131_p2, %p16786_p13 }
  0xa2   : > { %p116_p1 = scmp.eq.s32.totalorder %s115_s0, 0  ;;  %s10330_s30 = sshll.u32 %s294_s20, 4 }
  0xa3   : > { %s16787_s29 = scalar_select %p13052_p9, 1, 0 }
  0xa4   : > { %s10332_s9 = sshll.u32 %s16894_s21, 2  ;;  %s16898_s12 = smov (!%p116_p1, %s16778_s12), %s118_s7 }
  0xa5   : > { %s306_s13 = sadd.s32 %s10332_s9, %s12861_s4  ;;  %s296_s28 = scalar_lea.vmem [#allocation9], %s10330_s30 }
  0xa6   : > { %s10334_s26 = sshll.u32 %s306_s13, 6  ;;  %s309_s15 = sshll.u32 %s296_s28, 4  ;;  %s13065_s15 = int_to_ptr.vmem [resolvable:$true] %s309_s15 }
  0xa7   : > { %s16789_s16 = smov %s16788_s23  ;;  %s13063_s18 = scalar_lea.hbm %s16788_s23, %s10334_s26 }
  0xa8   : > { %p16790_p12 = scmp.lt.s32.totalorder %s12702_s6, 4  ;;  %s12514_s4 = scalar_lea.hbm %s13063_s18, 256 }
  0xa9   : > { %p12515_p8 = scmp.ne.s32.totalorder %s13063_s18, %s12514_s4  ;;  %s12519_s28 = scalar_lea.hbm %s16789_s16, 16384 }
  0xaa   : > { %p13069_p4 = pnand %p16790_p12, %p127_p7  ;;  %p12520_p6 = scmp.lt.u32.totalorder %s13063_s18, %s16789_s16 }
  0xab   : > { %p12521_p2 = scmp.lt.u32.totalorder %s12519_s28, %s12514_s4  ;;  %p12523_p7 = scmp.lt.u32.totalorder %s12514_s4, %s13063_s18 }
  0xac   : > { %p12516_p0 = pneg %p13069_p4 }
  0xad   : > { %p12522_p3 = por %p12521_p2, %p12520_p6 }
  0xae   : > { %p12517_p11 = pnand %p12516_p0, %p12515_p8 }
  0xaf   : > { %p12524_p1 = por %p12523_p7, %p12522_p3 }
  0xb0   : > { %p12518_p10 = pneg %p12517_p11 }
  0xb2   : > { %p12525_p13 = pnand %p12524_p1, %p12518_p10 }
  0xb4   : > { %12528 = shalt.err (!%p12525_p13)
}
  0xb5   : > { %s12529_s3 = scalar_lea.vmem %s13065_s15, 256  ;;  %s12709_s20 = smov [#allocation9]  }
  0xb6   : > { %p12530_p12 = scmp.ne.s32.totalorder %s13065_s15, %s12529_s3  ;;  %s12534_s30 = sshll.u32 %s12709_s20, 4  ;;  %s12535_s30 = int_to_ptr.vmem [resolvable:$false] %s12534_s30 }
  0xb7   : > { %s12536_s9 = scalar_lea.vmem %s12535_s30, 512  ;;  %p12537_p9 = scmp.lt.s32.totalorder %s13065_s15, %s12535_s30 }
  0xb8   : > { %p12532_p8 = pnand %p12530_p12, %p12516_p0  ;;  %p12538_p6 = scmp.lt.s32.totalorder %s12536_s9, %s12529_s3 }
  0xba   : > { %p12533_p11 = pneg %p12532_p8  ;;  %p12539_p2 = por %p12538_p6, %p12537_p9 }
  0xbc   : > { %p12540_p3 = pnand %p12539_p2, %p12533_p11 }
  0xbe   : > { %12543 = shalt.err (!%p12540_p3)
}
  0xbf   : > { %12256 = dma.hbm_to_vmem [thread:$0]  (!%p13069_p4), %s13063_s18, 256, %s13065_s15, %s12881_s2, %s16765_s27, %s16765_s27, %s16764_s14  }
  0xc0   : > { %p16792_p0 = scmp.ne.s32.totalorder %s16761_s5, 0 }
  0xc2   : > { %321 = sbr.rel (%p16792_p0) target bundleno = 1354 (0x54a), region = 40 }
  0xc9   : > { %s13105_s13 = sand.u32 1, %s12678_s25  }
  0xca   : > { %s10336_s1 = sshll.u32 %s13105_s13, 8  ;;  %s324_s11 = scalar_lea.sflag [#allocation5], %s13105_s13 }
  0xcb   : > { %s13111_s0 = scalar_lea.vmem [#allocation4], %s10336_s1 }
  0xcc   : > { %12629 = dma.done.wait (%p12975_p5), %s324_s11, 4096  }
  0xcd   : > { %12631 = vsyncadd (%p12975_p5), %s324_s11, 4294963200  ;;  %s332_s2 = sand.u32 1, %s12913_s19   ;;  %s334_s5 = sand.u32 1, %s12666_s22  }
  0xce   : > { %s10337_s14 = sshll.u32 %s334_s5, 4  ;;  %s333_s27 = scalar_lea.sflag [#allocation8], %s332_s2 }
  0xcf   : > { %s13119_s15 = scalar_lea.vmem [#allocation7], %s10337_s14  ;;  %p16793_p9 = scmp.ne.s32.totalorder %s16760_s8, 0 }
  0xd1   : > { %12633 = dma.done.wait (%p16793_p9), %s333_s27, 256  }
  0xd2   : > { %12635 = vsyncadd (%p16793_p9), %s333_s27, 4294967040  ;;  %s16794_s18 = sld [smem:[#allocation19_spill]]  ;;  %p16795_p5 = scmp.ne.s32.totalorder %s16787_s29, 0 }
  0xd8   : > { %s343_s4 = sand.u32 1, %s16794_s18  }
  0xd9   : > { %s10338_s23 = sshll.u32 %s343_s4, 4 }
  0xda   : > { %s13126_s10 = scalar_lea.vmem [#allocation9], %s10338_s23 }
  0xdb   : > { %12637 = dma.done.wait (%p16795_p5), %s333_s27, 256  }
  0xdc   : > { %12639 = vsyncadd (%p16795_p5), %s333_s27, 4294967040  ;;  %p16796_p4 = scmp.eq.s32.totalorder %s12913_s19, 0 }
  0xde   : > { %12641 = dma.done.wait (%p16796_p4), [#allocation11], 4608   ;;  %p16797_p10 = pmov %p16796_p4 }
  0xdf   : > { %vm415_vm0 = vsmask.f32 256  ;;  %vm433_vm1 = vcmask 1040384   ;;  %v397_v0 = vld [vmem:[%s13111_s0] sm:$0xf]  ;;  %v12710_v3 = vmov 0  }
  0xe0   : > { %12643 = vsyncadd (%p16797_p10), [#allocation11], 4294962688  ;;  %v398_v1 = vld [vmem:[%s13111_s0 + $0x4] sm:$0xf]  ;;  %v399_v2 = vld [vmem:[%s13111_s0 + $0x8] sm:$0xf]  ;;  %v401_v4 = vmax.bf16 %v12710_v3, %v397_v0 }
  0xe1   : > { %v402_v5 = vmax.bf16 %v12710_v3, %v398_v1  ;;  %v400_v6 = vld [vmem:[%s13111_s0 + $0xc] sm:$0xf]  ;;  %v403_v7 = vmax.bf16 %v12710_v3, %v399_v2  ;;  %v10343_v8 = vld [vmem:[%s13111_s0 + $0x10] sm:$0xf]  ;;  %v10344_v9 = vld [vmem:[%s13111_s0 + $0x14] sm:$0xf] }
  0xe2   : > { %vm494_vm2 = vcmask 519168   ;;  %v404_v10 = vmax.bf16 %v12710_v3, %v400_v6  ;;  %vm450_vm3 = vcmask 523264   ;;  %v458_v11 = vmax.bf16 %v12710_v3, %v10343_v8  ;;  %v10345_v13 = vld [vmem:[%s13111_s0 + $0x18] sm:$0xf]  ;;  %v10346_v14 = vld [vmem:[%s13111_s0 + $0x1c] sm:$0xf]  ;;  %vm13163_vm6 = vmand %vm433_vm1, %vm415_vm0 }
  0xe3   : > { %v459_v12 = vmax.bf16 %v12710_v3, %v10344_v9  ;;  %v10349_v15 = vld [vmem:[%s13111_s0 + $0x20] sm:$0xf]  ;;  %v10341_v16 = vcombine.low %v401_v4, %v402_v5  ;;  %vm448_vm4 = vcmask 523268   ;;  %v460_v17 = vmax.bf16 %v12710_v3, %v10345_v13  ;;  %v10350_v19 = vld [vmem:[%s13111_s0 + $0x24] sm:$0xf]  ;;  %s13416_s29 = scalar_lea.vmem [#allocation12], %s10336_s1 }
  0xe4   : > { %v461_v18 = vmax.bf16 %v12710_v3, %v10346_v14  ;;  %v501_v20 = vmax.bf16 %v12710_v3, %v10349_v15  ;;  %v10351_v21 = vld [vmem:[%s13111_s0 + $0x28] sm:$0xf]  ;;  %v10352_v22 = vld [vmem:[%s13111_s0 + $0x2c] sm:$0xf]  ;;  %v10342_v23 = vcombine.low %v403_v7, %v404_v10  ;;  %vm439_vm5 = vcmask 1043456   ;;  %s16800_s19 = sld [smem:[#allocation23_spill]] }
  0xe5   : > { %v10347_v24 = vcombine.low %v458_v11, %v459_v12  ;;  %v502_v25 = vmax.bf16 %v12710_v3, %v10350_v19  ;;  %v503_v26 = vmax.bf16 %v12710_v3, %v10351_v21  ;;  %v417_v27 = vshrl.u32 %v10341_v16, 16  ;;  %v10355_v31 = vld [vmem:[%s13111_s0 + $0x30] sm:$0xf]  ;;  %v10356_v53 = vld [vmem:[%s13111_s0 + $0x34] sm:$0xf] }
  0xe6   : > { %v420_v28 = vshll.u32 %v10341_v16, 16  ;;  %v10348_v29 = vcombine.low %v460_v17, %v461_v18  ;;  %v504_v30 = vmax.bf16 %v12710_v3, %v10352_v22  ;;  %v424_v32 = vshrl.u32 %v10342_v23, 16  ;;  %v10357_v54 = vld [vmem:[%s13111_s0 + $0x38] sm:$0xf]  ;;  %v10358_v59 = vld [vmem:[%s13111_s0 + $0x3c] sm:$0xf] }
  0xe7   : > { %v427_v33 = vshll.u32 %v10342_v23, 16  ;;  %v473_v34 = vshrl.u32 %v10347_v24, 16  ;;  %v476_v35 = vshll.u32 %v10347_v24, 16  ;;  %v419_v36 = vrot.slane %v417_v27, 7  ;;  %v10361_v9 = vld [vmem:[%s13111_s0 + $0x40] sm:$0xf] }
  0xe8   : > { %v480_v38 = vshrl.u32 %v10348_v29, 16  ;;  %v483_v39 = vshll.u32 %v10348_v29, 16  ;;  %v10353_v40 = vcombine.low %v501_v20, %v502_v25  ;;  %v426_v41 = vrot.slane %v424_v32, 7  ;;  %v10362_v10 = vld [vmem:[%s13111_s0 + $0x44] sm:$0xf] }
  0xe9   : > { %v475_v42 = vrot.slane %v473_v34, 7  ;;  %v10354_v43 = vcombine.low %v503_v26, %v504_v30  ;;  %v552_v44 = vmax.bf16 %v12710_v3, %v10355_v31  ;;  %v422_v45 = vor.u32 %v420_v28, %v419_v36  ;;  %v10363_v19 = vld [vmem:[%s13111_s0 + $0x48] sm:$0xf]  ;;  %v10364_v20 = vld [vmem:[%s13111_s0 + $0x4c] sm:$0xf] }
  0xea   : > { %v482_v46 = vrot.slane %v480_v38, 7  ;;  %v516_v47 = vshrl.u32 %v10353_v40, 16  ;;  %v519_v48 = vshll.u32 %v10353_v40, 16  ;;  %v429_v49 = vor.u32 %v427_v33, %v426_v41  ;;  %v10367_v29 = vld [vmem:[%s13111_s0 + $0x50] sm:$0xf]  ;;  %p10433_p7 = scmp.ne.s32.totalorder %s16800_s19, 0 }
  0xeb   : > { %v436_v50 = vsel %vm13163_vm6, %v426_v41, 0  ;;  %v478_v51 = vor.u32 %v476_v35, %v475_v42  ;;  %v523_v52 = vshrl.u32 %v10354_v43, 16  ;;  %v435_v55 = vsel %vm13163_vm6, 0, %v422_v45  ;;  %v10368_v34 = vld [vmem:[%s13111_s0 + $0x54] sm:$0xf] }
  0xec   : > { %v443_v56 = vrot.slane %v436_v50, 4  ;;  %v485_v57 = vor.u32 %v483_v39, %v482_v46  ;;  %v491_v58 = vsel %vm13163_vm6, %v482_v46, 0  ;;  %v440_v60 = vrot.slane %v435_v55, 4  ;;  %v10369_v40 = vld [vmem:[%s13111_s0 + $0x58] sm:$0xf] }
  0xed   : > { %v430_v61 = vsel %vm415_vm0, %v419_v36, %v429_v49  ;;  %v490_v62 = vsel %vm13163_vm6, 0, %v478_v51  ;;  %495 = vst.msk [vmem:[#allocation2 + $0x38] sm:$0xf] %vm494_vm2, %v491_v58  ;;  %v518_v63 = vrot.slane %v516_v47, 7  ;;  %v525_v2 = vrot.slane %v523_v52, 7 }
  0xee   : > { %v441_v0 = vrot.slane %v430_v61, 4  ;;  %492 = vst.msk [vmem:[#allocation2 + $0x28] sm:$0xff] %vm450_vm3, %v490_v62  ;;  %v486_v1 = vsel %vm415_vm0, %v475_v42, %v485_v57  ;;  %v526_v4 = vshll.u32 %v10354_v43, 16  ;;  %v553_v6 = vmax.bf16 %v12710_v3, %v10356_v53  ;;  %v10370_v45 = vld [vmem:[%s13111_s0 + $0x5c] sm:$0xf] }
  0xef   : > { %449 = vst.msk [vmem:[#allocation2 + $0x10] sm:$0xf0] %vm448_vm4, %v440_v60  ;;  %v521_v5 = vor.u32 %v519_v48, %v518_v63  ;;  %v554_v7 = vmax.bf16 %v12710_v3, %v10357_v54  ;;  %v555_v8 = vmax.bf16 %v12710_v3, %v10358_v59  ;;  %v533_v14 = vsel %vm13163_vm6, %v525_v2, 0  ;;  %v10373_v50 = vld [vmem:[%s13111_s0 + $0x60] sm:$0xf] }
  0xf0   : > { %493 = vst.msk [vmem:[#allocation2 + $0x30] sm:$0xff] %vm450_vm3, %v486_v1  ;;  %v442_v11 = vsel %vm439_vm5, %v440_v60, %v441_v0  ;;  %v444_v12 = vsel %vm439_vm5, %v441_v0, %v443_v56  ;;  %v528_v13 = vor.u32 %v526_v4, %v525_v2  ;;  %v539_v16 = vrot.slane %v533_v14, 4  ;;  %v10374_v51 = vld [vmem:[%s13111_s0 + $0x64] sm:$0xf]  ;;  %v10375_v56 = vld [vmem:[%s13111_s0 + $0x68] sm:$0xf] }
  0xf1   : > { %451 = vst.msk [vmem:[#allocation2 + $0x18] sm:$0xff] %vm450_vm3, %v442_v11  ;;  %452 = vst.msk [vmem:[#allocation2 + $0x20] sm:$0xff] %vm450_vm3, %v444_v12  ;;  %v532_v15 = vsel %vm13163_vm6, 0, %v521_v5  ;;  %v10359_v17 = vcombine.low %v552_v44, %v553_v6  ;;  %v10360_v18 = vcombine.low %v554_v7, %v555_v8  ;;  %v594_v23 = vmax.bf16 %v12710_v3, %v10361_v9  ;;  %v10376_v5 = vld [vmem:[%s13111_s0 + $0x6c] sm:$0xf] }
  0xf2   : > { %v536_v21 = vrot.slane %v532_v15, 4  ;;  %v529_v22 = vsel %vm415_vm0, %v518_v63, %v528_v13  ;;  %v595_v24 = vmax.bf16 %v12710_v3, %v10362_v10  ;;  %v596_v32 = vmax.bf16 %v12710_v3, %v10363_v19  ;;  %v10379_v11 = vld [vmem:[%s13111_s0 + $0x70] sm:$0xf]  ;;  %v10380_v12 = vld [vmem:[%s13111_s0 + $0x74] sm:$0xf] }
  0xf3   : > { %v537_v25 = vrot.slane %v529_v22, 4  ;;  %v567_v26 = vshrl.u32 %v10359_v17, 16  ;;  %v570_v27 = vshll.u32 %v10359_v17, 16  ;;  %v574_v28 = vshrl.u32 %v10360_v18, 16  ;;  %v10381_v17 = vld [vmem:[%s13111_s0 + $0x78] sm:$0xf] }
  0xf4   : > { %544 = vst.msk [vmem:[#allocation2 + $0x38] sm:$0xf0] %vm448_vm4, %v536_v21  ;;  %v577_v30 = vshll.u32 %v10360_v18, 16  ;;  %v10365_v31 = vcombine.low %v594_v23, %v595_v24  ;;  %v597_v33 = vmax.bf16 %v12710_v3, %v10364_v20  ;;  %v645_v44 = vmax.bf16 %v12710_v3, %v10367_v29 }
  0xf5   : > { %v538_v35 = vsel %vm439_vm5, %v536_v21, %v537_v25  ;;  %v540_v36 = vsel %vm439_vm5, %v537_v25, %v539_v16  ;;  %v569_v38 = vrot.slane %v567_v26, 7  ;;  %v576_v39 = vrot.slane %v574_v28, 7  ;;  %v10382_v26 = vld [vmem:[%s13111_s0 + $0x7c] sm:$0xf] }
  0xf6   : > { %545 = vst.msk [vmem:[#allocation2 + $0x40] sm:$0xff] %vm450_vm3, %v538_v35  ;;  %546 = vst.msk [vmem:[#allocation2 + $0x48] sm:$0xff] %vm450_vm3, %v540_v36  ;;  %v609_v41 = vshrl.u32 %v10365_v31, 16  ;;  %v612_v42 = vshll.u32 %v10365_v31, 16  ;;  %v10366_v43 = vcombine.low %v596_v32, %v597_v33  ;;  %v646_v49 = vmax.bf16 %v12710_v3, %v10368_v34  ;;  %v10385_v31 = vld [vmem:[%s13111_s0 + $0x80] sm:$0xf] }
  0xf7   : > { %v572_v46 = vor.u32 %v570_v27, %v569_v38  ;;  %v579_v47 = vor.u32 %v577_v30, %v576_v39  ;;  %v585_v48 = vsel %vm13163_vm6, %v576_v39, 0  ;;  %v647_v55 = vmax.bf16 %v12710_v3, %v10369_v40  ;;  %v10386_v32 = vld [vmem:[%s13111_s0 + $0x84] sm:$0xf] }
  0xf8   : > { %588 = vst.msk [vmem:[#allocation2 + $0x60] sm:$0xf] %vm494_vm2, %v585_v48  ;;  %v611_v52 = vrot.slane %v609_v41, 7  ;;  %v616_v53 = vshrl.u32 %v10366_v43, 16  ;;  %v619_v54 = vshll.u32 %v10366_v43, 16  ;;  %v10371_v59 = vcombine.low %v645_v44, %v646_v49 }
  0xf9   : > { %v584_v57 = vsel %vm13163_vm6, 0, %v572_v46  ;;  %v580_v58 = vsel %vm415_vm0, %v569_v38, %v579_v47  ;;  %v648_v60 = vmax.bf16 %v12710_v3, %v10370_v45  ;;  %v687_v63 = vmax.bf16 %v12710_v3, %v10373_v50  ;;  %v10387_v46 = vld [vmem:[%s13111_s0 + $0x88] sm:$0xf]  ;;  %v10388_v47 = vld [vmem:[%s13111_s0 + $0x8c] sm:$0xf] }
  0xfa   : > { %586 = vst.msk [vmem:[#allocation2 + $0x50] sm:$0xff] %vm450_vm3, %v584_v57  ;;  %587 = vst.msk [vmem:[#allocation2 + $0x58] sm:$0xff] %vm450_vm3, %v580_v58  ;;  %v614_v61 = vor.u32 %v612_v42, %v611_v52  ;;  %v618_v62 = vrot.slane %v616_v53, 7  ;;  %v688_v0 = vmax.bf16 %v12710_v3, %v10374_v51  ;;  %v660_v1 = vshrl.u32 %v10371_v59, 16 }
  0xfb   : > { %v663_v2 = vshll.u32 %v10371_v59, 16  ;;  %v10372_v4 = vcombine.low %v647_v55, %v648_v60  ;;  %v689_v6 = vmax.bf16 %v12710_v3, %v10375_v56  ;;  %v690_v25 = vmax.bf16 %v12710_v3, %v10376_v5  ;;  %v10391_v60 = vld [vmem:[%s13111_s0 + $0x90] sm:$0xf] }
  0xfc   : > { %v625_v7 = vsel %vm13163_vm6, 0, %v614_v61  ;;  %v621_v8 = vor.u32 %v619_v54, %v618_v62  ;;  %v626_v9 = vsel %vm13163_vm6, %v618_v62, 0  ;;  %v10377_v10 = vcombine.low %v687_v63, %v688_v0 }
  0xfd   : > { %v629_v13 = vrot.slane %v625_v7, 4  ;;  %v632_v14 = vrot.slane %v626_v9, 4  ;;  %v662_v15 = vrot.slane %v660_v1, 7  ;;  %v667_v16 = vshrl.u32 %v10372_v4, 16  ;;  %v10393_v7 = vld [vmem:[%s13111_s0 + $0x98] sm:$0xf] }
  0xfe   : > { %v622_v18 = vsel %vm415_vm0, %v611_v52, %v621_v8  ;;  %v670_v19 = vshll.u32 %v10372_v4, 16  ;;  %v702_v20 = vshrl.u32 %v10377_v10, 16  ;;  %v705_v21 = vshll.u32 %v10377_v10, 16 }
  0xff   : > { %637 = vst.msk [vmem:[#allocation2 + $0x60] sm:$0xf0] %vm448_vm4, %v629_v13  ;;  %v630_v22 = vrot.slane %v622_v18, 4  ;;  %v665_v23 = vor.u32 %v663_v2, %v662_v15  ;;  %v669_v24 = vrot.slane %v667_v16, 7  ;;  %v738_v28 = vmax.bf16 %v12710_v3, %v10379_v11 }
 0x100   : > { %v704_v27 = vrot.slane %v702_v20, 7  ;;  %v739_v29 = vmax.bf16 %v12710_v3, %v10380_v12  ;;  %v740_v30 = vmax.bf16 %v12710_v3, %v10381_v17  ;;  %v10378_v40 = vcombine.low %v689_v6, %v690_v25  ;;  %v10392_v6 = vld [vmem:[%s13111_s0 + $0x94] sm:$0xf]  ;;  %v10394_v12 = vld [vmem:[%s13111_s0 + $0x9c] sm:$0xf] }
 0x101   : > { %v631_v33 = vsel %vm439_vm5, %v629_v13, %v630_v22  ;;  %v633_v34 = vsel %vm439_vm5, %v630_v22, %v632_v14  ;;  %v677_v35 = vsel %vm13163_vm6, 0, %v665_v23  ;;  %v672_v36 = vor.u32 %v670_v19, %v669_v24  ;;  %v10397_v25 = vld [vmem:[%s13111_s0 + $0xa0] sm:$0xf] }
 0x102   : > { %638 = vst.msk [vmem:[#allocation2 + $0x68] sm:$0xff] %vm450_vm3, %v631_v33  ;;  %639 = vst.msk [vmem:[#allocation2 + $0x70] sm:$0xff] %vm450_vm3, %v633_v34  ;;  %v678_v38 = vsel %vm13163_vm6, %v669_v24, 0  ;;  %v707_v39 = vor.u32 %v705_v21, %v704_v27  ;;  %v10383_v41 = vcombine.low %v738_v28, %v739_v29  ;;  %v741_v43 = vmax.bf16 %v12710_v3, %v10382_v26  ;;  %v10398_v26 = vld [vmem:[%s13111_s0 + $0xa4] sm:$0xf] }
 0x103   : > { %679 = vst.msk [vmem:[#allocation2 + $0x78] sm:$0xff] %vm450_vm3, %v677_v35  ;;  %v673_v42 = vsel %vm415_vm0, %v662_v15, %v672_v36  ;;  %v780_v44 = vmax.bf16 %v12710_v3, %v10385_v31  ;;  %v781_v45 = vmax.bf16 %v12710_v3, %v10386_v32  ;;  %v709_v49 = vshrl.u32 %v10378_v40, 16  ;;  %v10399_v31 = vld [vmem:[%s13111_s0 + $0xa8] sm:$0xf]  ;;  %v10400_v36 = vld [vmem:[%s13111_s0 + $0xac] sm:$0xf] }
 0x104   : > { %681 = vst.msk [vmem:[#allocation2 + $0x88] sm:$0xf] %vm494_vm2, %v678_v38  ;;  %v718_v48 = vsel %vm13163_vm6, 0, %v707_v39  ;;  %v712_v50 = vshll.u32 %v10378_v40, 16  ;;  %v753_v51 = vshrl.u32 %v10383_v41, 16  ;;  %v756_v53 = vshll.u32 %v10383_v41, 16 }
 0x105   : > { %680 = vst.msk [vmem:[#allocation2 + $0x80] sm:$0xff] %vm450_vm3, %v673_v42  ;;  %v722_v52 = vrot.slane %v718_v48, 4  ;;  %v10384_v54 = vcombine.low %v740_v30, %v741_v43  ;;  %v10389_v55 = vcombine.low %v780_v44, %v781_v45  ;;  %v711_v56 = vrot.slane %v709_v49, 7  ;;  %v10403_v42 = vld [vmem:[%s13111_s0 + $0xb0] sm:$0xf] }
 0x106   : > { %v755_v57 = vrot.slane %v753_v51, 7  ;;  %v782_v58 = vmax.bf16 %v12710_v3, %v10387_v46  ;;  %v783_v59 = vmax.bf16 %v12710_v3, %v10388_v47  ;;  %v831_v11 = vmax.bf16 %v12710_v3, %v10391_v60  ;;  %v10404_v43 = vld [vmem:[%s13111_s0 + $0xb4] sm:$0xf] }
 0x107   : > { %730 = vst.msk [vmem:[#allocation2 + $0x88] sm:$0xf0] %vm448_vm4, %v722_v52  ;;  %v760_v61 = vshrl.u32 %v10384_v54, 16  ;;  %v763_v62 = vshll.u32 %v10384_v54, 16  ;;  %v795_v63 = vshrl.u32 %v10389_v55, 16  ;;  %v798_v0 = vshll.u32 %v10389_v55, 16 }
 0x108   : > { %v714_v1 = vor.u32 %v712_v50, %v711_v56  ;;  %v719_v2 = vsel %vm13163_vm6, %v711_v56, 0  ;;  %v758_v4 = vor.u32 %v756_v53, %v755_v57  ;;  %v10390_v5 = vcombine.low %v782_v58, %v783_v59  ;;  %v10405_v56 = vld [vmem:[%s13111_s0 + $0xb8] sm:$0xf] }
 0x109   : > { %v725_v8 = vrot.slane %v719_v2, 4  ;;  %v762_v9 = vrot.slane %v760_v61, 7  ;;  %v797_v10 = vrot.slane %v795_v63, 7  ;;  %v832_v22 = vmax.bf16 %v12710_v3, %v10392_v6  ;;  %v10409_v2 = vld [vmem:[%s13111_s0 + $0xc0] sm:$0xf] }
 0x10a   : > { %v715_v13 = vsel %vm415_vm0, %v704_v27, %v714_v1  ;;  %v770_v14 = vsel %vm13163_vm6, 0, %v758_v4  ;;  %v802_v15 = vshrl.u32 %v10390_v5, 16  ;;  %v805_v16 = vshll.u32 %v10390_v5, 16  ;;  %v10406_v1 = vld [vmem:[%s13111_s0 + $0xbc] sm:$0xf] }
 0x10b   : > { %v723_v17 = vrot.slane %v715_v13, 4  ;;  %772 = vst.msk [vmem:[#allocation2 + $0xa0] sm:$0xff] %vm450_vm3, %v770_v14  ;;  %v765_v18 = vor.u32 %v763_v62, %v762_v9  ;;  %v771_v19 = vsel %vm13163_vm6, %v762_v9, 0  ;;  %v800_v20 = vor.u32 %v798_v0, %v797_v10  ;;  %v10411_v9 = vld [vmem:[%s13111_s0 + $0xc8] sm:$0xf] }
 0x10c   : > { %774 = vst.msk [vmem:[#allocation2 + $0xb0] sm:$0xf] %vm494_vm2, %v771_v19  ;;  %v804_v21 = vrot.slane %v802_v15, 7  ;;  %v833_v23 = vmax.bf16 %v12710_v3, %v10393_v7  ;;  %v834_v24 = vmax.bf16 %v12710_v3, %v10394_v12  ;;  %v10395_v35 = vcombine.low %v831_v11, %v832_v22  ;;  %v10412_v14 = vld [vmem:[%s13111_s0 + $0xcc] sm:$0xf] }
 0x10d   : > { %v724_v27 = vsel %vm439_vm5, %v722_v52, %v723_v17  ;;  %v726_v28 = vsel %vm439_vm5, %v723_v17, %v725_v8  ;;  %v766_v29 = vsel %vm415_vm0, %v755_v57, %v765_v18  ;;  %v811_v30 = vsel %vm13163_vm6, 0, %v800_v20  ;;  %v10410_v8 = vld [vmem:[%s13111_s0 + $0xc4] sm:$0xf] }
 0x10e   : > { %731 = vst.msk [vmem:[#allocation2 + $0x90] sm:$0xff] %vm450_vm3, %v724_v27  ;;  %732 = vst.msk [vmem:[#allocation2 + $0x98] sm:$0xff] %vm450_vm3, %v726_v28  ;;  %v815_v32 = vrot.slane %v811_v30, 4  ;;  %v807_v33 = vor.u32 %v805_v16, %v804_v21  ;;  %v812_v34 = vsel %vm13163_vm6, %v804_v21, 0  ;;  %v10396_v39 = vcombine.low %v833_v23, %v834_v24  ;;  %v10415_v27 = vld [vmem:[%s13111_s0 + $0xd0] sm:$0xf] }
 0x10f   : > { %773 = vst.msk [vmem:[#allocation2 + $0xa8] sm:$0xff] %vm450_vm3, %v766_v29  ;;  %v818_v38 = vrot.slane %v812_v34, 4  ;;  %v873_v40 = vmax.bf16 %v12710_v3, %v10397_v25  ;;  %v874_v41 = vmax.bf16 %v12710_v3, %v10398_v26  ;;  %v846_v45 = vshrl.u32 %v10395_v35, 16 }
 0x110   : > { %823 = vst.msk [vmem:[#allocation2 + $0xb0] sm:$0xf0] %vm448_vm4, %v815_v32  ;;  %v808_v44 = vsel %vm415_vm0, %v797_v10, %v807_v33  ;;  %v849_v46 = vshll.u32 %v10395_v35, 16  ;;  %v875_v47 = vmax.bf16 %v12710_v3, %v10399_v31  ;;  %v853_v49 = vshrl.u32 %v10396_v39, 16 }
 0x111   : > { %v816_v48 = vrot.slane %v808_v44, 4  ;;  %v856_v50 = vshll.u32 %v10396_v39, 16  ;;  %v10401_v51 = vcombine.low %v873_v40, %v874_v41  ;;  %v848_v52 = vrot.slane %v846_v45, 7 }
 0x112   : > { %v876_v53 = vmax.bf16 %v12710_v3, %v10400_v36  ;;  %v924_v54 = vmax.bf16 %v12710_v3, %v10403_v42  ;;  %v925_v55 = vmax.bf16 %v12710_v3, %v10404_v43  ;;  %v855_v59 = vrot.slane %v853_v49, 7  ;;  %v10418_v43 = vld [vmem:[%s13111_s0 + $0xdc] sm:$0xf] }
 0x113   : > { %v817_v57 = vsel %vm439_vm5, %v815_v32, %v816_v48  ;;  %v819_v58 = vsel %vm439_vm5, %v816_v48, %v818_v38  ;;  %v888_v60 = vshrl.u32 %v10401_v51, 16  ;;  %v851_v61 = vor.u32 %v849_v46, %v848_v52  ;;  %v10416_v32 = vld [vmem:[%s13111_s0 + $0xd4] sm:$0xf]  ;;  %v10417_v38 = vld [vmem:[%s13111_s0 + $0xd8] sm:$0xf] }
 0x114   : > { %824 = vst.msk [vmem:[#allocation2 + $0xb8] sm:$0xff] %vm450_vm3, %v817_v57  ;;  %825 = vst.msk [vmem:[#allocation2 + $0xc0] sm:$0xff] %vm450_vm3, %v819_v58  ;;  %v891_v62 = vshll.u32 %v10401_v51, 16  ;;  %v10402_v63 = vcombine.low %v875_v47, %v876_v53  ;;  %v10407_v0 = vcombine.low %v924_v54, %v925_v55  ;;  %v858_v4 = vor.u32 %v856_v50, %v855_v59  ;;  %v10421_v48 = vld [vmem:[%s13111_s0 + $0xe0] sm:$0xf] }
 0x115   : > { %v864_v5 = vsel %vm13163_vm6, %v855_v59, 0  ;;  %v890_v6 = vrot.slane %v888_v60, 7  ;;  %v926_v7 = vmax.bf16 %v12710_v3, %v10405_v56  ;;  %v863_v10 = vsel %vm13163_vm6, 0, %v851_v61  ;;  %v10422_v53 = vld [vmem:[%s13111_s0 + $0xe4] sm:$0xf] }
 0x116   : > { %867 = vst.msk [vmem:[#allocation2 + $0xd8] sm:$0xf] %vm494_vm2, %v864_v5  ;;  %v895_v11 = vshrl.u32 %v10402_v63, 16  ;;  %v898_v12 = vshll.u32 %v10402_v63, 16  ;;  %v939_v13 = vshrl.u32 %v10407_v0, 16  ;;  %v859_v15 = vsel %vm415_vm0, %v848_v52, %v858_v4 }
 0x117   : > { %865 = vst.msk [vmem:[#allocation2 + $0xc8] sm:$0xff] %vm450_vm3, %v863_v10  ;;  %v893_v16 = vor.u32 %v891_v62, %v890_v6  ;;  %v942_v17 = vshll.u32 %v10407_v0, 16  ;;  %v927_v18 = vmax.bf16 %v12710_v3, %v10406_v1  ;;  %866 = vst.msk [vmem:[#allocation2 + $0xd0] sm:$0xff] %vm450_vm3, %v859_v15  ;;  %v966_v21 = vmax.bf16 %v12710_v3, %v10409_v2  ;;  %v10423_v54 = vld [vmem:[%s13111_s0 + $0xe8] sm:$0xf] }
 0x118   : > { %v897_v19 = vrot.slane %v895_v11, 7  ;;  %v941_v20 = vrot.slane %v939_v13, 7  ;;  %v967_v22 = vmax.bf16 %v12710_v3, %v10410_v8  ;;  %v968_v25 = vmax.bf16 %v12710_v3, %v10411_v9  ;;  %v10424_v2 = vld [vmem:[%s13111_s0 + $0xec] sm:$0xf] }
 0x119   : > { %v904_v23 = vsel %vm13163_vm6, 0, %v893_v16  ;;  %v10408_v24 = vcombine.low %v926_v7, %v927_v18  ;;  %v969_v26 = vmax.bf16 %v12710_v3, %v10412_v14  ;;  %v1017_v42 = vmax.bf16 %v12710_v3, %v10415_v27  ;;  %v10429_v27 = vld [vmem:[%s13111_s0 + $0xf8] sm:$0xf] }
 0x11a   : > { %v908_v28 = vrot.slane %v904_v23, 4  ;;  %v900_v29 = vor.u32 %v898_v12, %v897_v19  ;;  %v905_v30 = vsel %vm13163_vm6, %v897_v19, 0  ;;  %v944_v31 = vor.u32 %v942_v17, %v941_v20  ;;  %v10427_v17 = vld [vmem:[%s13111_s0 + $0xf0] sm:$0xf] }
 0x11b   : > { %v911_v33 = vrot.slane %v905_v30, 4  ;;  %v946_v34 = vshrl.u32 %v10408_v24, 16  ;;  %v949_v35 = vshll.u32 %v10408_v24, 16  ;;  %v10413_v36 = vcombine.low %v966_v21, %v967_v22 }
 0x11c   : > { %916 = vst.msk [vmem:[#allocation2 + $0xd8] sm:$0xf0] %vm448_vm4, %v908_v28  ;;  %v901_v39 = vsel %vm415_vm0, %v890_v6, %v900_v29  ;;  %v956_v40 = vsel %vm13163_vm6, 0, %v944_v31  ;;  %v10414_v41 = vcombine.low %v968_v25, %v969_v26  ;;  %v1018_v51 = vmax.bf16 %v12710_v3, %v10416_v32  ;;  %v10428_v26 = vld [vmem:[%s13111_s0 + $0xf4] sm:$0xf] }
 0x11d   : > { %v909_v44 = vrot.slane %v901_v39, 4  ;;  %958 = vst.msk [vmem:[#allocation2 + $0xf0] sm:$0xff] %vm450_vm3, %v956_v40  ;;  %v948_v45 = vrot.slane %v946_v34, 7  ;;  %v981_v46 = vshrl.u32 %v10413_v36, 16  ;;  %v984_v47 = vshll.u32 %v10413_v36, 16 }
 0x11e   : > { %v988_v49 = vshrl.u32 %v10414_v41, 16  ;;  %v991_v50 = vshll.u32 %v10414_v41, 16  ;;  %v1019_v52 = vmax.bf16 %v12710_v3, %v10417_v38  ;;  %v10419_v61 = vcombine.low %v1017_v42, %v1018_v51  ;;  %v10430_v32 = vld [vmem:[%s13111_s0 + $0xfc] sm:$0xf] }
 0x11f   : > { %v910_v55 = vsel %vm439_vm5, %v908_v28, %v909_v44  ;;  %v912_v56 = vsel %vm439_vm5, %v909_v44, %v911_v33  ;;  %v951_v57 = vor.u32 %v949_v35, %v948_v45  ;;  %v957_v58 = vsel %vm13163_vm6, %v948_v45, 0 }
 0x120   : > { %917 = vst.msk [vmem:[#allocation2 + $0xe0] sm:$0xff] %vm450_vm3, %v910_v55  ;;  %918 = vst.msk [vmem:[#allocation2 + $0xe8] sm:$0xff] %vm450_vm3, %v912_v56  ;;  %v983_v59 = vrot.slane %v981_v46, 7  ;;  %v990_v60 = vrot.slane %v988_v49, 7  ;;  %v1020_v62 = vmax.bf16 %v12710_v3, %v10418_v43  ;;  %v1059_v0 = vmax.bf16 %v12710_v3, %v10421_v48 }
 0x121   : > { %960 = vst.msk [vmem:[#allocation2 + $0x100] sm:$0xf] %vm494_vm2, %v957_v58  ;;  %v952_v63 = vsel %vm415_vm0, %v941_v20, %v951_v57  ;;  %v1060_v1 = vmax.bf16 %v12710_v3, %v10422_v53  ;;  %v1061_v4 = vmax.bf16 %v12710_v3, %v10423_v54  ;;  %v1032_v8 = vshrl.u32 %v10419_v61, 16 }
 0x122   : > { %959 = vst.msk [vmem:[#allocation2 + $0xf8] sm:$0xff] %vm450_vm3, %v952_v63  ;;  %v986_v5 = vor.u32 %v984_v47, %v983_v59  ;;  %v993_v6 = vor.u32 %v991_v50, %v990_v60  ;;  %v998_v7 = vsel %vm13163_vm6, %v990_v60, 0  ;;  %v1035_v10 = vshll.u32 %v10419_v61, 16 }
 0x123   : > { %v1004_v9 = vrot.slane %v998_v7, 4  ;;  %v10420_v11 = vcombine.low %v1019_v52, %v1020_v62  ;;  %v10425_v12 = vcombine.low %v1059_v0, %v1060_v1  ;;  %v1034_v15 = vrot.slane %v1032_v8, 7 }
 0x124   : > { %v997_v13 = vsel %vm13163_vm6, 0, %v986_v5  ;;  %v994_v14 = vsel %vm415_vm0, %v983_v59, %v993_v6  ;;  %v1062_v16 = vmax.bf16 %v12710_v3, %v10424_v2  ;;  %v1110_v31 = vmax.bf16 %v12710_v3, %v10427_v17 }
 0x125   : > { %v1001_v18 = vrot.slane %v997_v13, 4  ;;  %v1002_v19 = vrot.slane %v994_v14, 4  ;;  %v1039_v20 = vshrl.u32 %v10420_v11, 16  ;;  %v1042_v21 = vshll.u32 %v10420_v11, 16 }
 0x126   : > { %v1037_v22 = vor.u32 %v1035_v10, %v1034_v15  ;;  %v1074_v23 = vshrl.u32 %v10425_v12, 16  ;;  %v1077_v24 = vshll.u32 %v10425_v12, 16  ;;  %v10426_v25 = vcombine.low %v1061_v4, %v1062_v16 }
 0x127   : > { %1009 = vst.msk [vmem:[#allocation2 + $0x100] sm:$0xf0] %vm448_vm4, %v1001_v18  ;;  %v1003_v28 = vsel %vm439_vm5, %v1001_v18, %v1002_v19  ;;  %v1005_v29 = vsel %vm439_vm5, %v1002_v19, %v1004_v9  ;;  %v1041_v30 = vrot.slane %v1039_v20, 7  ;;  %v1111_v40 = vmax.bf16 %v12710_v3, %v10428_v26 }
 0x128   : > { %1010 = vst.msk [vmem:[#allocation2 + $0x108] sm:$0xff] %vm450_vm3, %v1003_v28  ;;  %1011 = vst.msk [vmem:[#allocation2 + $0x110] sm:$0xff] %vm450_vm3, %v1005_v29  ;;  %v1049_v33 = vsel %vm13163_vm6, 0, %v1037_v22  ;;  %v1076_v34 = vrot.slane %v1074_v23, 7  ;;  %v1081_v35 = vshrl.u32 %v10426_v25, 16  ;;  %v1084_v36 = vshll.u32 %v10426_v25, 16 }
 0x129   : > { %1051 = vst.msk [vmem:[#allocation2 + $0x118] sm:$0xff] %vm450_vm3, %v1049_v33  ;;  %v1044_v38 = vor.u32 %v1042_v21, %v1041_v30  ;;  %v1050_v39 = vsel %vm13163_vm6, %v1041_v30, 0  ;;  %v1112_v41 = vmax.bf16 %v12710_v3, %v10429_v27  ;;  %v1113_v44 = vmax.bf16 %v12710_v3, %v10430_v32 }
 0x12a   : > { %1053 = vst.msk [vmem:[#allocation2 + $0x128] sm:$0xf] %vm494_vm2, %v1050_v39  ;;  %v1079_v42 = vor.u32 %v1077_v24, %v1076_v34  ;;  %v1083_v43 = vrot.slane %v1081_v35, 7  ;;  %v10431_v46 = vcombine.low %v1110_v31, %v1111_v40  ;;  %v12711_v4 = vmov (!%p10433_p7), 0  }
 0x12b   : > { %v1045_v45 = vsel %vm415_vm0, %v1034_v15, %v1044_v38  ;;  %v10432_v50 = vcombine.low %v1112_v41, %v1113_v44  ;;  %1151 = vst.msk [vmem:[#allocation2] sm:$0xff] (!%p10433_p7), %vm450_vm3, %v12711_v4  ;;  %1152 = vst.msk [vmem:[#allocation2 + $0x8] sm:$0xff] (!%p10433_p7), %vm450_vm3, %v12711_v4 }
 0x12c   : > { %1052 = vst.msk [vmem:[#allocation2 + $0x120] sm:$0xff] %vm450_vm3, %v1045_v45  ;;  %v1090_v47 = vsel %vm13163_vm6, 0, %v1079_v42  ;;  %v1086_v48 = vor.u32 %v1084_v36, %v1083_v43  ;;  %v1091_v49 = vsel %vm13163_vm6, %v1083_v43, 0  ;;  %v1125_v53 = vshrl.u32 %v10431_v46, 16 }
 0x12d   : > { %v1094_v51 = vrot.slane %v1090_v47, 4  ;;  %v1097_v52 = vrot.slane %v1091_v49, 4  ;;  %v1128_v54 = vshll.u32 %v10431_v46, 16  ;;  %v1132_v3 = vshrl.u32 %v10432_v50, 16  ;;  %1153 = vst.msk [vmem:[#allocation2 + $0x10] sm:$0xf] (!%p10433_p7), %vm494_vm2, %v12711_v4 }
 0x12e   : > { %v1087_v55 = vsel %vm415_vm0, %v1076_v34, %v1086_v48  ;;  %v1135_v56 = vshll.u32 %v10432_v50, 16  ;;  %v1127_v58 = vrot.slane %v1125_v53, 7  ;;  %1150 = sbr.rel (%p10433_p7) target bundleno = 309 (0x135), region = 60 }
 0x12f   : > { %1102 = vst.msk [vmem:[#allocation2 + $0x128] sm:$0xf0] %vm448_vm4, %v1094_v51  ;;  %v1095_v57 = vrot.slane %v1087_v55, 4  ;;  %v1134_v59 = vrot.slane %v1132_v3, 7 }
 0x130   : > { %v1130_v62 = vor.u32 %v1128_v54, %v1127_v58 }
 0x131   : > { %v1096_v60 = vsel %vm439_vm5, %v1094_v51, %v1095_v57  ;;  %v1098_v61 = vsel %vm439_vm5, %v1095_v57, %v1097_v52  ;;  %v1137_v63 = vor.u32 %v1135_v56, %v1134_v59  ;;  %v1143_v0 = vsel %vm13163_vm6, %v1134_v59, 0 }
 0x132   : > { %1103 = vst.msk [vmem:[#allocation2 + $0x130] sm:$0xff] %vm450_vm3, %v1096_v60  ;;  %1104 = vst.msk [vmem:[#allocation2 + $0x138] sm:$0xff] %vm450_vm3, %v1098_v61  ;;  %v1142_v1 = vsel %vm13163_vm6, 0, %v1130_v62 }
 0x133   : > { %1146 = vst.msk [vmem:[#allocation2 + $0x150] sm:$0xf] %vm494_vm2, %v1143_v0  ;;  %v1138_v2 = vsel %vm415_vm0, %v1127_v58, %v1137_v63 }
 0x134   : > { %1144 = vst.msk [vmem:[#allocation2 + $0x140] sm:$0xff] %vm450_vm3, %v1142_v1  ;;  %1145 = vst.msk [vmem:[#allocation2 + $0x148] sm:$0xff] %vm450_vm3, %v1138_v2 }
 0x135 PF: > { %s16801_s8 = sld [smem:[#allocation23_spill]] }
 0x13b   : > { %p10434_p1 = scmp.le.s32.totalorder %s16801_s8, 0 }
 0x13c   : > { %v1158_v5 = vld [vmem:[%s13119_s15] sm:$0xf] (!%p10434_p1)  ;;  %v1159_v6 = vld [vmem:[%s13119_s15 + $0x4] sm:$0xf] (!%p10434_p1)  ;;  %v12712_v7 = vmov (!%p10434_p1), 0  }
 0x13d   : > { %1157 = sbr.rel (%p10434_p1) target bundleno = 330 (0x14a), region = 64  ;;  %v1162_v8 = vmax.bf16 (!%p10434_p1), %v12712_v7, %v1158_v5  ;;  %v1163_v9 = vmax.bf16 (!%p10434_p1), %v12712_v7, %v1159_v6  ;;  %v1160_v10 = vld [vmem:[%s13119_s15 + $0x8] sm:$0xf] (!%p10434_p1)  ;;  %v1161_v11 = vld [vmem:[%s13119_s15 + $0xc] sm:$0xf] (!%p10434_p1) }
 0x13e   : > { %v1164_v12 = vmax.bf16 (!%p10434_p1), %v12712_v7, %v1160_v10  ;;  %v1165_v13 = vmax.bf16 (!%p10434_p1), %v12712_v7, %v1161_v11 }
 0x13f   : > { %v10435_v14 = vcombine.low (!%p10434_p1), %v1162_v8, %v1163_v9 }
 0x140   : > { %v10436_v15 = vcombine.low (!%p10434_p1), %v1164_v12, %v1165_v13 }
 0x141   : > { %v1177_v16 = vshrl.u32 (!%p10434_p1), %v10435_v14, 16  ;;  %v1180_v17 = vshll.u32 (!%p10434_p1), %v10435_v14, 16 }
 0x142   : > { %v1184_v18 = vshrl.u32 (!%p10434_p1), %v10436_v15, 16  ;;  %v1187_v19 = vshll.u32 (!%p10434_p1), %v10436_v15, 16 }
 0x143   : > { %v1179_v20 = vrot.slane (!%p10434_p1), %v1177_v16, 7 }
 0x144   : > { %v1186_v21 = vrot.slane %v1184_v18, 7 }
 0x145   : > { %v1182_v22 = vor.u32 %v1180_v17, %v1179_v20 }
 0x146   : > { %v1189_v23 = vor.u32 %v1187_v19, %v1186_v21  ;;  %v1195_v24 = vsel %vm13163_vm6, %v1186_v21, 0 }
 0x147   : > { %v1194_v25 = vsel %vm13163_vm6, 0, %v1182_v22  ;;  %1198 = vst.msk [vmem:[#allocation2 + $0x10] sm:$0xf] %vm494_vm2, %v1195_v24 }
 0x148   : > { %1196 = vst.msk [vmem:[#allocation2] sm:$0xff] %vm450_vm3, %v1194_v25  ;;  %v1190_v26 = vsel %vm415_vm0, %v1179_v20, %v1189_v23 }
 0x149   : > { %1197 = vst.msk [vmem:[#allocation2 + $0x8] sm:$0xff] %vm450_vm3, %v1190_v26 }
 0x14a PF: > { %s16802_s26 = sld [smem:[#allocation23_spill]] }
 0x150   : > { %p10437_p13 = scmp.ne.s32.totalorder %s16802_s26, 1 }
 0x151   : > { %v12713_v27 = vmov (!%p10437_p13), 0  }
 0x152   : > { %1202 = sbr.rel (%p10437_p13) target bundleno = 345 (0x159), region = 68  ;;  %1203 = vst.msk [vmem:[#allocation2 + $0x150] sm:$0xf0] (!%p10437_p13), %vm448_vm4, %v12713_v27 }
 0x153   : > { %1204 = vst.msk [vmem:[#allocation2 + $0x158] sm:$0xff] (!%p10437_p13), %vm450_vm3, %v12713_v27  ;;  %1205 = vst.msk [vmem:[#allocation2 + $0x160] sm:$0xff] (!%p10437_p13), %vm450_vm3, %v12713_v27 }
 0x159 PF: > { %s16803_s28 = sld [smem:[#allocation23_spill]] }
 0x15f   : > { %p10438_p12 = scmp.ge.s32.totalorder %s16803_s28, 1 }
 0x160   : > { %v1210_v28 = vld [vmem:[%s13126_s10] sm:$0xf] (!%p10438_p12)  ;;  %v1211_v29 = vld [vmem:[%s13126_s10 + $0x4] sm:$0xf] (!%p10438_p12)  ;;  %v12714_v30 = vmov (!%p10438_p12), 0  }
 0x161   : > { %1209 = sbr.rel (%p10438_p12) target bundleno = 369 (0x171), region = 72  ;;  %v1214_v31 = vmax.bf16 (!%p10438_p12), %v12714_v30, %v1210_v28  ;;  %v1215_v32 = vmax.bf16 (!%p10438_p12), %v12714_v30, %v1211_v29  ;;  %v1212_v33 = vld [vmem:[%s13126_s10 + $0x8] sm:$0xf] (!%p10438_p12)  ;;  %v1213_v34 = vld [vmem:[%s13126_s10 + $0xc] sm:$0xf] (!%p10438_p12) }
 0x162   : > { %v1216_v35 = vmax.bf16 (!%p10438_p12), %v12714_v30, %v1212_v33  ;;  %v1217_v36 = vmax.bf16 (!%p10438_p12), %v12714_v30, %v1213_v34 }
 0x163   : > { %v10439_v38 = vcombine.low (!%p10438_p12), %v1214_v31, %v1215_v32 }
 0x164   : > { %v10440_v39 = vcombine.low (!%p10438_p12), %v1216_v35, %v1217_v36 }
 0x165   : > { %v1229_v40 = vshrl.u32 (!%p10438_p12), %v10439_v38, 16  ;;  %v1232_v41 = vshll.u32 (!%p10438_p12), %v10439_v38, 16 }
 0x166   : > { %v1236_v42 = vshrl.u32 (!%p10438_p12), %v10440_v39, 16  ;;  %v1239_v43 = vshll.u32 (!%p10438_p12), %v10440_v39, 16 }
 0x167   : > { %v1231_v44 = vrot.slane (!%p10438_p12), %v1229_v40, 7 }
 0x168   : > { %v1238_v45 = vrot.slane %v1236_v42, 7 }
 0x169   : > { %v1234_v46 = vor.u32 %v1232_v41, %v1231_v44 }
 0x16a   : > { %v1241_v47 = vor.u32 %v1239_v43, %v1238_v45  ;;  %v1246_v48 = vsel %vm13163_vm6, %v1238_v45, 0 }
 0x16b   : > { %v1245_v49 = vsel %vm13163_vm6, 0, %v1234_v46  ;;  %v1252_v50 = vrot.slane %v1246_v48, 4 }
 0x16c   : > { %v1249_v51 = vrot.slane %v1245_v49, 4  ;;  %v1242_v52 = vsel %vm415_vm0, %v1231_v44, %v1241_v47 }
 0x16d   : > { %v1250_v53 = vrot.slane %v1242_v52, 4 }
 0x16e   : > { %1257 = vst.msk [vmem:[#allocation2 + $0x150] sm:$0xf0] %vm448_vm4, %v1249_v51 }
 0x16f   : > { %v1251_v54 = vsel %vm439_vm5, %v1249_v51, %v1250_v53  ;;  %v1253_v55 = vsel %vm439_vm5, %v1250_v53, %v1252_v50 }
 0x170   : > { %1258 = vst.msk [vmem:[#allocation2 + $0x158] sm:$0xff] %vm450_vm3, %v1251_v54  ;;  %1259 = vst.msk [vmem:[#allocation2 + $0x160] sm:$0xff] %vm450_vm3, %v1253_v55 }
 0x171 PF: > { %v12387_v3 = vld [vmem:[#allocation10] sm:$0xff]   ;;  %v12388_v56 = vld [vmem:[#allocation10 + $0x8] sm:$0xff]   ;;  %v12389_v37 = vld [vmem:[#allocation10 + $0x10] sm:$0xff]   ;;  %vm3075_vm7 = vcmask 1046528   ;;  %vm1933_vm8 = vsmask.f32 7424 }
 0x172   : > { %12223 = vmatprep.subr.bf16.mxu1 %v12387_v3  ;;  %11431 = vmatprep.subr.bf16.mxu0 %v12387_v3  ;;  %v13454_v57 = vld [vmem:[#allocation2 + $0xa0] sm:$0xff]  ;;  %v13459_v59 = vld [vmem:[#allocation2 + $0x8] sm:$0xff]  ;;  %v12390_v63 = vld [vmem:[#allocation10 + $0x18] sm:$0xff]   ;;  %vm4839_vm9 = vsmask.f32 3328  ;;  %vm6028_vm10 = vcmask 1042432  }
 0x173   : > { %12227 = vmatpush3.bf16.msra.mxu1 %v12387_v3  ;;  %11432 = vmatpush3.bf16.msra.mxu0 %v12387_v3  ;;  %v1261_v58 = vld [vmem:[#allocation2] sm:$0xff]  ;;  %v1942_v62 = vshll.u32 %v13459_v59, 16  ;;  %v13462_v0 = vld [vmem:[#allocation2 + $0x10] sm:$0xff]  ;;  %v1946_v2 = vshrl.u32 %v13459_v59, 16  ;;  %v13465_v4 = vld [vmem:[#allocation2 + $0x18] sm:$0xff]  ;;  %v16736_v12 = vrot.slane %v13459_v59, 1 }
 0x174   : > { %12224 = vmatprep.subr.bf16.mxu1 %v12388_v56  ;;  %11433 = vmatprep.subr.bf16.mxu0 %v12388_v56  ;;  %v1935_v60 = vshrl.u32 %v1261_v58, 16  ;;  %v1937_v61 = vshll.u32 %v1261_v58, 16  ;;  %v13467_v6 = vld [vmem:[#allocation2 + $0x20] sm:$0xff]  ;;  %v1950_v8 = vshll.u32 %v13462_v0, 16  ;;  %v1954_v9 = vshrl.u32 %v13462_v0, 16  ;;  %v13478_v20 = vld [vmem:[#allocation2 + $0x28] sm:$0xff] }
 0x175   : > { %11479 = vmatprep.mubr.msk.bf16.mxu1 %vm450_vm3, %v13454_v57  ;;  %11439 = vmatprep.mubr.msk.bf16.mxu0 %vm450_vm3, %v1261_v58  ;;  %v1944_v5 = vrot.slane %v1942_v62, 1  ;;  %v1958_v10 = vshll.u32 %v13465_v4, 16  ;;  %v1962_v13 = vshrl.u32 %v13465_v4, 16  ;;  %v1966_v14 = vshll.u32 %v13467_v6, 16  ;;  %v12391_v15 = vld [vmem:[#allocation10 + $0x20] sm:$0xff]   ;;  %v13486_v28 = vld [vmem:[#allocation2 + $0xa8] sm:$0xff] }
 0x176   : > { %v1939_v1 = vrot.slane %v1937_v61, 1  ;;  %v12392_v16 = vld [vmem:[#allocation10 + $0x40] sm:$0xff]   ;;  %v1952_v18 = vrot.slane %v1950_v8, 1  ;;  %v3079_v22 = vrot.slane %v13462_v0, 1  ;;  %v1970_v23 = vshrl.u32 %v13467_v6, 16  ;;  %v13494_v32 = vld [vmem:[#allocation2 + $0xb0] sm:$0xff] }
 0x177   : > { %12228 = vmatpush3.bf16.msra.mxu1 %v12388_v56  ;;  %11434 = vmatpush3.bf16.msra.mxu0 %v12388_v56  ;;  %v1948_v11 = vor.u32 %v1946_v2, %v1944_v5  ;;  %v1960_v19 = vrot.slane %v1958_v10, 1  ;;  %v1968_v21 = vrot.slane %v1966_v14, 1  ;;  %v1974_v27 = vshll.u32 %v13478_v20, 16  ;;  %v12393_v33 = vld [vmem:[#allocation10 + $0x28] sm:$0xff]   ;;  %v13496_v34 = vld [vmem:[#allocation2 + $0x30] sm:$0xff]  ;;  %v13505_v41 = vld [vmem:[#allocation2 + $0x38] sm:$0xff] }
 0x178   : > { %12225 = vmatprep.subr.bf16.mxu1 %v12389_v37  ;;  %11435 = vmatprep.subr.bf16.mxu0 %v12389_v37  ;;  %v1940_v7 = vor.u32 %v1939_v1, %v1935_v60  ;;  %v1956_v25 = vor.u32 %v1954_v9, %v1952_v18  ;;  %v13491_v29 = vsel %vm3075_vm7, %v16736_v12, %v3079_v22  ;;  %v3081_v31 = vrot.slane %v13465_v4, 1  ;;  %v12394_v40 = vld [vmem:[#allocation10 + $0x48] sm:$0xff]   ;;  %v13523_v49 = vld [vmem:[#allocation2 + $0x40] sm:$0xff]  ;;  %v12395_v54 = vld [vmem:[#allocation10 + $0x30] sm:$0xff]   ;;  %s16857_s3 = sld [smem:[#allocation64_spill]]  ;;  %s16858_s9 = sld [smem:[#allocation23_spill]] }
 0x179   : > { %v13483_v24 = vsel %vm1933_vm8, %v1948_v11, %v1952_v18  ;;  %v1964_v26 = vor.u32 %v1962_v13, %v1960_v19  ;;  %v1972_v30 = vor.u32 %v1970_v23, %v1968_v21  ;;  %v1976_v38 = vrot.slane %v1974_v27, 1  ;;  %v12396_v3 = vld [vmem:[#allocation10 + $0x50] sm:$0xff]   ;;  %v13539_v61 = vld [vmem:[#allocation2 + $0x48] sm:$0xff]  ;;  %v13549_v8 = vld [vmem:[#allocation2 + $0xc0] sm:$0xff]  ;;  %s16859_s1 = sld [smem:[#allocation24_spill]]  ;;  %s10159_s14 = sshll.u32 %s13416_s29, 4  ;;  %s16622_s14 = int_to_ptr.vmem [resolvable:$true] %s10159_s14 }
 0x17a   : > { %v13476_v17 = vsel %vm1933_vm8, %v1940_v7, %v1944_v5  ;;  %v13499_v35 = vsel %vm1933_vm8, %v1956_v25, %v1960_v19  ;;  %v1978_v39 = vshrl.u32 %v13478_v20, 16  ;;  %v13508_v42 = vsel %vm3075_vm7, %v3079_v22, %v3081_v31  ;;  %v13551_v9 = vld [vmem:[#allocation2 + $0x50] sm:$0xff]  ;;  %v12397_v10 = vld [vmem:[#allocation10 + $0x38] sm:$0xff]   ;;  %v13567_v22 = vld [vmem:[#allocation2 + $0x60] sm:$0xff]  ;;  %s16860_s18 = sld [smem:[#allocation65_spill]]  ;;  %s10143_s10 = scalar_lea.sflag [#allocation6], %s13105_s13 }
 0x17b   : > { %12229 = vmatpush3.bf16.msra.mxu1 %v12389_v37  ;;  %11436 = vmatpush3.bf16.msra.mxu0 %v12389_v37  ;;  %v13502_v36 = vsel %vm1933_vm8, %v1964_v26, %v1968_v21  ;;  %v1982_v43 = vshll.u32 %v13496_v34, 16  ;;  %v3083_v44 = vrot.slane %v13467_v6, 1  ;;  %v13517_v45 = vsel %vm1933_vm8, %v1972_v30, %v1976_v38  ;;  %v13565_v21 = vld [vmem:[#allocation2 + $0x58] sm:$0xff]  ;;  %v13577_v26 = vld [vmem:[#allocation10 + $0x60] sm:$0xff]   ;;  %v13666_v12 = vld [vmem:[#allocation2 + $0x90] sm:$0xff]  ;;  %s12544_s19 = scalar_lea.vmem %s16622_s14, 4096 }
 0x17c   : > { %12226 = vmatprep.subr.bf16.mxu1 %v12390_v63  ;;  %11437 = vmatprep.subr.bf16.mxu0 %v12390_v63  ;;  %v1980_v46 = vor.u32 %v1978_v39, %v1976_v38  ;;  %v1986_v47 = vshrl.u32 %v13496_v34, 16  ;;  %v1990_v48 = vshll.u32 %v13505_v41, 16  ;;  %v3085_v52 = vrot.slane %v13478_v20, 1  ;;  %v13579_v27 = vld [vmem:[#allocation10 + $0x80] sm:$0xff]   ;;  %p12545_p8 = scmp.ne.s32.totalorder %s16622_s14, %s12544_s19  ;;  %p16862_p11 = scmp.ne.s32.totalorder %s16772_s17, 0 }
 0x17d   : > { %v1984_v50 = vrot.slane %v1982_v43, 1  ;;  %v13526_v51 = vsel %vm3075_vm7, %v3081_v31, %v3083_v44  ;;  %v1994_v53 = vshrl.u32 %v13505_v41, 16  ;;  %v1998_v60 = vshll.u32 %v13523_v49, 16  ;;  %v13590_v43 = vld [vmem:[#allocation2 + $0xc8] sm:$0xff]  ;;  %s12715_s8 = smov [#allocation12]  }
 0x17e   : > { %v1992_v55 = vrot.slane %v1990_v48, 1  ;;  %v13536_v58 = vsel %vm3075_vm7, %v3083_v44, %v3085_v52  ;;  %v2002_v5 = vshrl.u32 %v13523_v49, 16  ;;  %v2006_v7 = vshll.u32 %v13539_v61, 16  ;;  %v13597_v48 = vld [vmem:[#allocation2 + $0xd0] sm:$0xff]  ;;  %s11034_s11 = sshll.u32 %s16858_s9, 6  ;;  %p12546_p6 = pnand %p12545_p8, %p16862_p11 }
 0x17f   : > { %12230 = vmatpush3.bf16.msra.mxu1 %v12390_v63  ;;  %11438 = vmatpush3.bf16.msra.mxu0 %v12390_v63  ;;  %v13533_v56 = vsel %vm1933_vm8, %v1980_v46, %v1984_v50  ;;  %v1988_v37 = vor.u32 %v1986_v47, %v1984_v50  ;;  %v3087_v63 = vrot.slane %v13496_v34, 1  ;;  %v2000_v2 = vrot.slane %v1998_v60, 1  ;;  %v13599_v50 = vld [vmem:[#allocation2 + $0x70] sm:$0xff]  ;;  %s10965_s0 = sshll.u32 %s16859_s1, 7  ;;  %s12548_s26 = sshll.u32 %s12715_s8, 4  ;;  %s12549_s26 = int_to_ptr.vmem [resolvable:$false] %s12548_s26 }
 0x180   : > { %11519 = vmatprep.subr.bf16.mxu1 %v12391_v15  ;;  %11607 = vmatprep.subr.bf16.mxu0 %v12392_v16  ;;  %v1996_v62 = vor.u32 %v1994_v53, %v1992_v55  ;;  %v3089_v13 = vrot.slane %v13505_v41, 1  ;;  %v2010_v14 = vshrl.u32 %v13539_v61, 16  ;;  %v2008_v19 = vrot.slane %v2006_v7, 1  ;;  %s10156_s2 = sadd.s32 %s11034_s11, %s10965_s0  ;;  %s16861_s4 = smov %s16860_s18 }
 0x181   : > { %v13545_v1 = vsel %vm1933_vm8, %v1988_v37, %v1992_v55  ;;  %v13554_v11 = vsel %vm3075_vm7, %v3085_v52, %v3087_v63  ;;  %v2004_v18 = vor.u32 %v2002_v5, %v2000_v2  ;;  %v2014_v25 = vshll.u32 %v13551_v9, 16  ;;  %s10966_s5 = sshll.u32 %s10156_s2, 6  ;;  %p12547_p2 = pneg %p12546_p6 }
 0x182   : > { %11480 = vmatmul.mubr.msk.bf16.vlgmr.msra.gmra.mrb[0].mxu1 %vm450_vm3, %v13486_v28  ;;  %11440 = vmatmul.mubr.msk.bf16.vlgmr.msra.gmra.mrb[0].mxu0 %vm450_vm3, %v13459_v59  ;;  %v13570_v23 = vsel %vm3075_vm7, %v3087_v63, %v3089_v13  ;;  %v2012_v30 = vor.u32 %v2010_v14, %v2008_v19  ;;  %v3091_v31 = vrot.slane %v13523_v49, 1  ;;  %v2018_v39 = vshrl.u32 %v13551_v9, 16  ;;  %v13610_v63 = vld [vmem:[#allocation2 + $0x78] sm:$0xff]  ;;  %v13617_v14 = vld [vmem:[#allocation2 + $0x80] sm:$0xff]  ;;  %s16620_s23 = scalar_lea.hbm %s16860_s18, %s10966_s5  ;;  %s12550_s28 = scalar_lea.vmem %s12549_s26, 8192 }
 0x183   : > { %11520 = vmatpush3.bf16.msra.mxu1 %v12391_v15  ;;  %11483 = vmatprep.mubr.msk.bf16.mxu1 %vm450_vm3, %v13494_v32  ;;  %v12398_v15 = vld [vmem:[#allocation10 + $0x58] sm:$0xff]   ;;  %v2016_v38 = vrot.slane %v2014_v25, 1  ;;  %v2026_v46 = vshrl.u32 %v13565_v21, 16  ;;  %v2030_v47 = vshll.u32 %v13567_v22, 16  ;;  %v3095_v37 = vrot.slane %v13551_v9, 1  ;;  %p12551_p3 = scmp.lt.s32.totalorder %s16622_s14, %s12549_s26  ;;  %p12552_p0 = scmp.lt.s32.totalorder %s12550_s28, %s12544_s19 }
 0x184   : > { %11608 = vmatpush3.bf16.msra.mxu0 %v12392_v16  ;;  %11443 = vmatprep.mubr.msk.bf16.mxu0 %vm450_vm3, %v13462_v0  ;;  %v13542_v0 = vld [vmem:[#allocation2 + $0xb8] sm:$0xff]  ;;  %v13559_v16 = vsel %vm1933_vm8, %v1996_v62, %v2000_v2  ;;  %v13593_v44 = vsel %vm3075_vm7, %v3089_v13, %v3091_v31  ;;  %v2034_v60 = vshrl.u32 %v13567_v22, 16  ;;  %v3097_v7 = vrot.slane %v13565_v21, 1 }
 0x185   : > { %11521 = vmatprep.subr.bf16.mxu1 %v12393_v33  ;;  %11609 = vmatprep.subr.bf16.mxu0 %v12394_v40  ;;  %v13602_v52 = vsel %vm1933_vm8, %v2012_v30, %v2016_v38  ;;  %v2020_v53 = vor.u32 %v2018_v39, %v2016_v38  ;;  %v2050_v38 = vshrl.u32 %v13599_v50, 16  ;;  %p12553_p9 = por %p12552_p0, %p12551_p3 }
 0x186   : > { %v13633_v30 = vsel %vm3075_vm7, %v3095_v37, %v3097_v7 }
 0x187   : > { %11522 = vmatpush3.bf16.msra.mxu1 %v12393_v33  ;;  %v13585_v33 = vld [vmem:[#allocation2 + $0x68] sm:$0xff]  ;;  %p12554_p5 = pnand %p12553_p9, %p12547_p2 }
 0x188   : > { %11610 = vmatpush3.bf16.msra.mxu0 %v12394_v40  ;;  %11523 = vmatprep.subr.bf16.mxu1 %v12395_v54  ;;  %v2022_v40 = vshll.u32 %v13565_v21, 16  ;;  %v2038_v62 = vshll.u32 %v13585_v33, 16  ;;  %v2042_v13 = vshrl.u32 %v13585_v33, 16 }
 0x189   : > { %11611 = vmatprep.subr.bf16.mxu0 %v12396_v3 }
 0x18a   : > { %11484 = vmatmul.mubr.msk.bf16.gmra.mrb[4].mxu1 %vm450_vm3, %v13542_v0  ;;  %11444 = vmatmul.mubr.msk.bf16.gmra.mrb[4].mxu0 %vm450_vm3, %v13465_v4  ;;  %v13582_v4 = vsel %vm1933_vm8, %v2004_v18, %v2008_v19  ;;  %v2040_v19 = vrot.slane %v2038_v62, 1 }
 0x18b   : > { %11487 = vmatprep.mubr.msk.bf16.mxu1 %vm450_vm3, %v13549_v8  ;;  %11447 = vmatprep.mubr.msk.bf16.mxu0 %vm450_vm3, %v13467_v6  ;;  %v3093_v6 = vrot.slane %v13539_v61, 1 }
 0x18c   : > { %11524 = vmatpush3.bf16.msra.mxu1 %v12395_v54  ;;  %11612 = vmatpush3.bf16.msra.mxu0 %v12396_v3  ;;  %v2024_v54 = vrot.slane %v2022_v40, 1  ;;  %v2032_v3 = vrot.slane %v2030_v47, 1 }
 0x18d   : > { %11525 = vmatprep.subr.bf16.mxu1 %v12397_v10  ;;  %11613 = vmatprep.subr.bf16.mxu0 %v12398_v15  ;;  %v13605_v55 = vsel %vm3075_vm7, %v3091_v31, %v3093_v6  ;;  %v13622_v18 = vsel %vm3075_vm7, %v3093_v6, %v3095_v37  ;;  %v3099_v31 = vrot.slane %v13567_v22, 1  ;;  %v2054_v6 = vshll.u32 %v13610_v63, 16  ;;  %v13653_v37 = vld [vmem:[#allocation2 + $0xd8] sm:$0xff] }
 0x18e   : > { %v13613_v2 = vsel %vm1933_vm8, %v2020_v53, %v2024_v54  ;;  %v2028_v5 = vor.u32 %v2026_v46, %v2024_v54  ;;  %v13645_v46 = vld [vmem:[#allocation2 + $0x88] sm:$0xff]  ;;  %v3101_v53 = vrot.slane %v13585_v33, 1  ;;  %v2058_v54 = vshrl.u32 %v13610_v63, 16 }
 0x18f   : > { %v13648_v47 = vsel %vm3075_vm7, %v3097_v7, %v3099_v31  ;;  %v2056_v62 = vrot.slane %v2054_v6, 1  ;;  %v13675_v6 = vld [vmem:[#allocation2 + $0x98] sm:$0xff] }
 0x190   : > { %11526 = vmatpush3.bf16.msra.mxu1 %v12397_v10  ;;  %11614 = vmatpush3.bf16.msra.mxu0 %v12398_v15  ;;  %v2036_v10 = vor.u32 %v2034_v60, %v2032_v3  ;;  %v2046_v15 = vshll.u32 %v13599_v50, 16  ;;  %v13630_v25 = vsel %vm1933_vm8, %v2028_v5, %v2032_v3  ;;  %16805 = vst [vmem:[#allocation35_spill] sm:$0xff] %v13648_v47  ;;  %v2062_v3 = vshll.u32 %v13617_v14, 16 }
 0x191   : > { %11695 = vmatprep.subr.bf16.mxu1 %v13577_v26  ;;  %11783 = vmatprep.subr.bf16.mxu0 %v13579_v27  ;;  %v3103_v5 = vrot.slane %v13599_v50, 1  ;;  %v13662_v7 = vsel %vm3075_vm7, %v3099_v31, %v3101_v53 }
 0x192   : > { %11488 = vmatmul.mubr.msk.bf16.gmra.mrb[8].mxu1 %vm450_vm3, %v13590_v43  ;;  %11448 = vmatmul.mubr.msk.bf16.gmra.mrb[8].mxu0 %vm450_vm3, %v13478_v20  ;;  %v13642_v39 = vsel %vm1933_vm8, %v2036_v10, %v2040_v19  ;;  %v2044_v20 = vor.u32 %v2042_v13, %v2040_v19  ;;  %v2048_v40 = vrot.slane %v2046_v15, 1  ;;  %v13659_v13 = vld [vmem:[#allocation2 + $0xe0] sm:$0xff]  ;;  %16807 = vst [vmem:[#allocation37_spill] sm:$0xff] %v13662_v7  ;;  %v2064_v10 = vrot.slane %v2062_v3, 1 }
 0x193   : > { %11491 = vmatprep.mubr.msk.bf16.mxu1 %vm450_vm3, %v13597_v48  ;;  %11451 = vmatprep.mubr.msk.bf16.mxu0 %vm450_vm3, %v13496_v34  ;;  %16804 = vst [vmem:[#allocation34_spill] sm:$0xff] %v13642_v39  ;;  %v2066_v19 = vshrl.u32 %v13617_v14, 16  ;;  %v2070_v15 = vshll.u32 %v13645_v46, 16  ;;  %v2074_v3 = vshrl.u32 %v13645_v46, 16  ;;  %v2078_v7 = vshll.u32 %v13666_v12, 16 }
 0x194   : > { %v13656_v34 = vsel %vm1933_vm8, %v2044_v20, %v2048_v40  ;;  %v2052_v60 = vor.u32 %v2050_v38, %v2048_v40  ;;  %v2060_v20 = vor.u32 %v2058_v54, %v2056_v62  ;;  %v13672_v38 = vsel %vm3075_vm7, %v3101_v53, %v3103_v5 }
 0x195   : > { %16806 = vst [vmem:[#allocation36_spill] sm:$0xff] %v13656_v34  ;;  %16809 = vst [vmem:[#allocation39_spill] sm:$0xff] %v13672_v38  ;;  %v3105_v40 = vrot.slane %v13610_v63, 1  ;;  %v2068_v31 = vor.u32 %v2066_v19, %v2064_v10  ;;  %v2072_v34 = vrot.slane %v2070_v15, 1  ;;  %v3107_v54 = vrot.slane %v13617_v14, 1 }
 0x196   : > { %v13669_v39 = vsel %vm1933_vm8, %v2052_v60, %v2056_v62  ;;  %v13680_v47 = vsel %vm1933_vm8, %v2060_v20, %v2064_v10  ;;  %v2082_v53 = vshrl.u32 %v13666_v12, 16  ;;  %v2080_v15 = vrot.slane %v2078_v7, 1 }
 0x197   : > { %16808 = vst [vmem:[#allocation38_spill] sm:$0xff] %v13669_v39  ;;  %16810 = vst [vmem:[#allocation40_spill] sm:$0xff] %v13680_v47  ;;  %v13683_v60 = vsel %vm3075_vm7, %v3103_v5, %v3105_v40  ;;  %v13692_v62 = vsel %vm1933_vm8, %v2068_v31, %v2072_v34  ;;  %v2076_v19 = vor.u32 %v2074_v3, %v2072_v34  ;;  %v2086_v10 = vshll.u32 %v13675_v6, 16 }
 0x198   : > { %16811 = vst [vmem:[#allocation41_spill] sm:$0xff] %v13683_v60  ;;  %16812 = vst [vmem:[#allocation42_spill] sm:$0xff] %v13692_v62  ;;  %v13700_v5 = vsel %vm3075_vm7, %v3105_v40, %v3107_v54  ;;  %v3109_v20 = vrot.slane %v13645_v46, 1  ;;  %v2094_v31 = vshll.u32 %v13454_v57, 16  ;;  %v2084_v7 = vor.u32 %v2082_v53, %v2080_v15 }
 0x199   : > { %16813 = vst [vmem:[#allocation43_spill] sm:$0xff] %v13700_v5  ;;  %v13706_v34 = vsel %vm1933_vm8, %v2076_v19, %v2080_v15  ;;  %v2088_v3 = vrot.slane %v2086_v10, 1  ;;  %v3111_v62 = vrot.slane %v13666_v12, 1  ;;  %v2098_v40 = vshrl.u32 %v13454_v57, 16  ;;  %v13721_v19 = vld [vmem:[#allocation2 + $0xe8] sm:$0xff] }
 0x19a   : > { %11492 = vmatmul.mubr.msk.bf16.gmra.mrb[12].mxu1 %vm450_vm3, %v13653_v37  ;;  %11452 = vmatmul.mubr.msk.bf16.gmra.mrb[12].mxu0 %vm450_vm3, %v13505_v41  ;;  %v2090_v41 = vshrl.u32 %v13675_v6, 16  ;;  %16814 = vst [vmem:[#allocation44_spill] sm:$0xff] %v13706_v34  ;;  %v13710_v47 = vsel %vm3075_vm7, %v3107_v54, %v3109_v20  ;;  %v2102_v5 = vshll.u32 %v13486_v28, 16  ;;  %v3113_v53 = vrot.slane %v13675_v6, 1  ;;  %v13725_v34 = vld [vmem:[#allocation2 + $0xf0] sm:$0xff] }
 0x19b   : > { %11495 = vmatprep.mubr.msk.bf16.mxu1 %vm450_vm3, %v13659_v13  ;;  %11455 = vmatprep.mubr.msk.bf16.mxu0 %vm450_vm3, %v13523_v49  ;;  %16815 = vst [vmem:[#allocation45_spill] sm:$0xff] %v13710_v47  ;;  %v2096_v49 = vrot.slane %v2094_v31, 1  ;;  %v13715_v60 = vsel %vm1933_vm8, %v2084_v7, %v2088_v3  ;;  %v13718_v38 = vsel %vm3075_vm7, %v3109_v20, %v3111_v62  ;;  %v2106_v54 = vshrl.u32 %v13486_v28, 16 }
 0x19c   : > { %v2092_v39 = vor.u32 %v2090_v41, %v2088_v3  ;;  %v2104_v10 = vrot.slane %v2102_v5, 1  ;;  %v2110_v31 = vshll.u32 %v13494_v32, 16  ;;  %v13731_v41 = vsel %vm3075_vm7, %v3111_v62, %v3113_v53 }
 0x19d   : > { %v2100_v15 = vor.u32 %v2098_v40, %v2096_v49  ;;  %v3115_v20 = vrot.slane %v13454_v57, 1  ;;  %v2118_v62 = vshll.u32 %v13542_v0, 16 }
 0x19e   : > { %v13728_v47 = vsel %vm1933_vm8, %v2092_v39, %v2096_v49  ;;  %v2108_v3 = vor.u32 %v2106_v54, %v2104_v10  ;;  %v2112_v40 = vrot.slane %v2110_v31, 1  ;;  %v2114_v39 = vshrl.u32 %v13494_v32, 16 }
 0x19f   : > { %v13735_v7 = vsel %vm1933_vm8, %v2100_v15, %v2104_v10  ;;  %v13742_v5 = vsel %vm3075_vm7, %v3113_v53, %v3115_v20  ;;  %v3117_v49 = vrot.slane %v13486_v28, 1  ;;  %v2126_v53 = vshll.u32 %v13549_v8, 16 }
 0x1a0   : > { %16816 = vst [vmem:[#allocation46_spill] sm:$0xff] %v13735_v7  ;;  %16817 = vst [vmem:[#allocation47_spill] sm:$0xff] %v13742_v5  ;;  %v13751_v57 = vsel %vm1933_vm8, %v2108_v3, %v2112_v40  ;;  %v2116_v15 = vor.u32 %v2114_v39, %v2112_v40  ;;  %v2120_v10 = vrot.slane %v2118_v62, 1  ;;  %v13763_v3 = vld [vmem:[#allocation2 + $0xf8] sm:$0xff]  ;;  %v2138_v39 = vshrl.u32 %v13590_v43, 16 }
 0x1a1   : > { %16818 = vst [vmem:[#allocation48_spill] sm:$0xff] %v13751_v57  ;;  %v13757_v54 = vsel %vm3075_vm7, %v3115_v20, %v3117_v49  ;;  %v2128_v31 = vrot.slane %v2126_v53, 1  ;;  %v13765_v57 = vld [vmem:[#allocation2 + $0x100] sm:$0xff]  ;;  %v2130_v20 = vshrl.u32 %v13549_v8, 16  ;;  %v2142_v62 = vshll.u32 %v13597_v48, 16 }
 0x1a2   : > { %11496 = vmatmul.mubr.msk.bf16.gmra.mrb[16].mxu1 %vm450_vm3, %v13721_v19  ;;  %11456 = vmatmul.mubr.msk.bf16.gmra.mrb[16].mxu0 %vm450_vm3, %v13539_v61  ;;  %v2122_v61 = vshrl.u32 %v13542_v0, 16  ;;  %v13760_v7 = vsel %vm1933_vm8, %v2116_v15, %v2120_v10 }
 0x1a3   : > { %11499 = vmatprep.mubr.msk.bf16.mxu1 %vm450_vm3, %v13725_v34  ;;  %11459 = vmatprep.mubr.msk.bf16.mxu0 %vm450_vm3, %v13551_v9  ;;  %16819 = vst [vmem:[#allocation49_spill] sm:$0xff] %v13760_v7  ;;  %v3119_v9 = vrot.slane %v13494_v32, 1  ;;  %v2134_v32 = vshll.u32 %v13590_v43, 16  ;;  %v2144_v53 = vrot.slane %v2142_v62, 1  ;;  %v13793_v7 = vld [vmem:[#allocation2 + $0x108] sm:$0xff] }
 0x1a4   : > { %v2124_v5 = vor.u32 %v2122_v61, %v2120_v10 }
 0x1a5   : > { %v13771_v40 = vsel %vm3075_vm7, %v3117_v49, %v3119_v9  ;;  %v2132_v49 = vor.u32 %v2130_v20, %v2128_v31  ;;  %v2136_v61 = vrot.slane %v2134_v32, 1  ;;  %v3125_v20 = vrot.slane %v13590_v43, 1 }
 0x1a6   : > { %v13768_v28 = vsel %vm1933_vm8, %v2124_v5, %v2128_v31  ;;  %v3121_v5 = vrot.slane %v13542_v0, 1  ;;  %v2154_v32 = vshrl.u32 %v13653_v37, 16 }
 0x1a7   : > { %16820 = vst [vmem:[#allocation50_spill] sm:$0xff] %v13768_v28  ;;  %v13790_v15 = vsel %vm1933_vm8, %v2132_v49, %v2136_v61  ;;  %v2140_v10 = vor.u32 %v2138_v39, %v2136_v61  ;;  %v3123_v28 = vrot.slane %v13549_v8, 1  ;;  %v2150_v8 = vshll.u32 %v13653_v37, 16 }
 0x1a8   : > { %16821 = vst [vmem:[#allocation51_spill] sm:$0xff] %v13790_v15  ;;  %v13823_v15 = vld [vmem:[#allocation2 + $0x118] sm:$0xff] }
 0x1a9   : > { %v13798_v0 = vsel %vm1933_vm8, %v2140_v10, %v2144_v53  ;;  %v13801_v31 = vsel %vm3075_vm7, %v3121_v5, %v3123_v28  ;;  %v2152_v62 = vrot.slane %v2150_v8, 1  ;;  %v2170_v8 = vshrl.u32 %v13721_v19, 16 }
 0x1aa   : > { %11500 = vmatmul.mubr.msk.bf16.gmra.mrb[20].mxu1 %vm450_vm3, %v13763_v3  ;;  %11460 = vmatmul.mubr.msk.bf16.gmra.mrb[20].mxu0 %vm450_vm3, %v13565_v21  ;;  %v13787_v21 = vsel %vm3075_vm7, %v3119_v9, %v3121_v5  ;;  %16822 = vst [vmem:[#allocation52_spill] sm:$0xff] %v13798_v0  ;;  %v2146_v9 = vshrl.u32 %v13597_v48, 16  ;;  %v2158_v5 = vshll.u32 %v13659_v13, 16  ;;  %v3127_v0 = vrot.slane %v13597_v48, 1 }
 0x1ab   : > { %11503 = vmatprep.mubr.msk.bf16.mxu1 %vm450_vm3, %v13765_v57  ;;  %11463 = vmatprep.mubr.msk.bf16.mxu0 %vm450_vm3, %v13567_v22  ;;  %v13795_v22 = vld [vmem:[#allocation2 + $0x110] sm:$0xff]  ;;  %v2156_v10 = vor.u32 %v2154_v32, %v2152_v62  ;;  %v2166_v48 = vshll.u32 %v13721_v19, 16 }
 0x1ac   : > { %v2148_v39 = vor.u32 %v2146_v9, %v2144_v53  ;;  %v2160_v49 = vrot.slane %v2158_v5, 1  ;;  %v13831_v53 = vsel %vm3075_vm7, %v3125_v20, %v3127_v0  ;;  %v3129_v9 = vrot.slane %v13653_v37, 1 }
 0x1ad   : > { %16825 = vst [vmem:[#allocation55_spill] sm:$0xff] %v13831_v53  ;;  %v2168_v5 = vrot.slane %v2166_v48, 1  ;;  %v3133_v48 = vrot.slane %v13721_v19, 1  ;;  %v16830_v19 = vrot.slane %v13459_v59, 1  ;;  %v3137_v59 = vrot.slane %v13763_v3, 1 }
 0x1ae   : > { %v13820_v61 = vsel %vm1933_vm8, %v2148_v39, %v2152_v62  ;;  %v13828_v43 = vsel %vm1933_vm8, %v2156_v10, %v2160_v49 }
 0x1af   : > { %16823 = vst [vmem:[#allocation53_spill] sm:$0xff] %v13820_v61  ;;  %16824 = vst [vmem:[#allocation54_spill] sm:$0xff] %v13828_v43  ;;  %v2172_v10 = vor.u32 %v2170_v8, %v2168_v5  ;;  %v3131_v43 = vrot.slane %v13659_v13, 1  ;;  %v13853_v61 = vld [vmem:[#allocation2 + $0x128] sm:$0xff]  ;;  %v2190_v8 = vshll.u32 %v13765_v57, 16 }
 0x1b2   : > { %11504 = vmatmul.mubr.msk.bf16.gmra.mrb[24].mxu1 %vm450_vm3, %v13793_v7  ;;  %11464 = vmatmul.mubr.msk.bf16.gmra.mrb[24].mxu0 %vm450_vm3, %v13585_v33  ;;  %v13817_v33 = vsel %vm3075_vm7, %v3123_v28, %v3125_v20  ;;  %v2162_v28 = vshrl.u32 %v13659_v13, 16  ;;  %v2174_v20 = vshll.u32 %v13725_v34, 16  ;;  %v2182_v13 = vshll.u32 %v13763_v3, 16 }
 0x1b3   : > { %11507 = vmatprep.mubr.msk.bf16.mxu1 %vm450_vm3, %v13795_v22  ;;  %11467 = vmatprep.mubr.msk.bf16.mxu0 %vm450_vm3, %v13599_v50  ;;  %v13825_v50 = vld [vmem:[#allocation2 + $0x120] sm:$0xff] }
 0x1b4   : > { %v2164_v32 = vor.u32 %v2162_v28, %v2160_v49  ;;  %v2176_v39 = vrot.slane %v2174_v20, 1  ;;  %v13861_v49 = vsel %vm3075_vm7, %v3129_v9, %v3131_v43  ;;  %v2986_v28 = vld [vmem:[#allocation2] sm:$0xfe] }
 0x1b5   : > { %16829 = vst [vmem:[#allocation59_spill] sm:$0xff] %v13861_v49  ;;  %v3076_v20 = vrot.slane %v2986_v28, 1  ;;  %v3135_v49 = vrot.slane %v13725_v34, 1  ;;  %v2206_v28 = vshll.u32 %v13795_v22, 16 }
 0x1b6   : > { %v13850_v62 = vsel %vm1933_vm8, %v2164_v32, %v2168_v5  ;;  %v13858_v37 = vsel %vm1933_vm8, %v2172_v10, %v2176_v39  ;;  %v2184_v5 = vrot.slane %v2182_v13, 1  ;;  %v2192_v10 = vrot.slane %v2190_v8, 1 }
 0x1b7   : > { %16827 = vst [vmem:[#allocation57_spill] sm:$0xff] %v13850_v62  ;;  %16828 = vst [vmem:[#allocation58_spill] sm:$0xff] %v13858_v37 }
 0x1ba   : > { %11508 = vmatmul.mubr.msk.bf16.gmra.mrb[28].mxu1 %vm450_vm3, %v13823_v15  ;;  %11468 = vmatmul.mubr.msk.bf16.gmra.mrb[28].mxu0 %vm450_vm3, %v13610_v63  ;;  %v13847_v63 = vsel %vm3075_vm7, %v3127_v0, %v3129_v9  ;;  %v2178_v0 = vshrl.u32 %v13725_v34, 16  ;;  %v2186_v9 = vshrl.u32 %v13763_v3, 16  ;;  %v2198_v34 = vshll.u32 %v13793_v7, 16 }
 0x1bb   : > { %11511 = vmatprep.mubr.msk.bf16.mxu1 %vm450_vm3, %v13825_v50  ;;  %11471 = vmatprep.mubr.msk.bf16.mxu0 %vm450_vm3, %v13617_v14  ;;  %16826 = vst [vmem:[#allocation56_spill] sm:$0xff] %v13847_v63  ;;  %v13855_v14 = vld [vmem:[#allocation2 + $0x130] sm:$0xff]  ;;  %v3078_v63 = vsel %vm3075_vm7, %v3076_v20, %v16830_v19  ;;  %v12401_v20 = vld [vmem:[#allocation10 + $0x68] sm:$0xff]   ;;  %v3143_v19 = vrot.slane %v13795_v22, 1 }
 0x1bc   : > { %v2180_v32 = vor.u32 %v2178_v0, %v2176_v39  ;;  %v2188_v62 = vor.u32 %v2186_v9, %v2184_v5  ;;  %v13890_v39 = vsel %vm3075_vm7, %v3133_v48, %v3135_v49  ;;  %v2200_v13 = vrot.slane %v2198_v34, 1 }
 0x1be   : > { %v13880_v37 = vsel %vm1933_vm8, %v2180_v32, %v2184_v5  ;;  %v13887_v53 = vsel %vm1933_vm8, %v2188_v62, %v2192_v10  ;;  %v2202_v62 = vshrl.u32 %v13793_v7, 16  ;;  %v12402_v32 = vld [vmem:[#allocation10 + $0x88] sm:$0xff]   ;;  %v2210_v5 = vshrl.u32 %v13795_v22, 16 }
 0x1bf   : > { %v2230_v22 = vshll.u32 %v13853_v61, 16 }
 0x1c0   : > { %v2204_v8 = vor.u32 %v2202_v62, %v2200_v13  ;;  %v12406_v62 = vld [vmem:[#allocation10 + $0x98] sm:$0xff]  }
 0x1c2   : > { %11512 = vmatmul.mubr.msk.bf16.gmra.mrb[32].mxu1 %vm450_vm3, %v13853_v61  ;;  %11472 = vmatmul.mubr.msk.bf16.gmra.mrb[32].mxu0 %vm450_vm3, %v13645_v46  ;;  %v13877_v46 = vsel %vm3075_vm7, %v3131_v43, %v3133_v48  ;;  %v2194_v43 = vshrl.u32 %v13765_v57, 16  ;;  %v13904_v48 = vsel %vm3075_vm7, %v3135_v49, %v3137_v59  ;;  %v12403_v49 = vld [vmem:[#allocation10 + $0x70] sm:$0xff]  }
 0x1c3   : > { %11515 = vmatprep.mubr.msk.bf16.mxu1 %vm450_vm3, %v13855_v14  ;;  %11475 = vmatprep.mubr.msk.bf16.mxu0 %vm450_vm3, %v13666_v12  ;;  %v1300_v12 = vld [vmem:[#allocation2 + $0x138] sm:$0xf] }
 0x1c4   : > { %v2196_v0 = vor.u32 %v2194_v43, %v2192_v10 }
 0x1c6   : > { %v13907_v9 = vsel %vm1933_vm8, %v2196_v0, %v2200_v13  ;;  %v2226_v0 = vshrl.u32 %v13825_v50, 16  ;;  %v2232_v13 = vrot.slane %v2230_v22, 1  ;;  %v14127_v22 = vld [vmem:[#allocation2 + $0x18] sm:$0xff] }
 0x1ca   : > { %11516 = vmatmul.mubr.msk.bf16.gmra.mrb[36].mxu1 %vm450_vm3, %v1300_v12  ;;  %11476 = vmatmul.mubr.msk.bf16.gmra.mrb[36].mxu0 %vm450_vm3, %v13675_v6  ;;  %v2208_v6 = vrot.slane %v2206_v28, 1 }
 0x1cb   : > { %11527 = vmatprep.mubr.msk.bf16.mxu1 %vm450_vm3, %v13476_v17  ;;  %11615 = vmatprep.mubr.msk.bf16.mxu0 %vm450_vm3, %v3078_v63  ;;  %v3139_v17 = vrot.slane %v13765_v57, 1  ;;  %v2214_v57 = vshll.u32 %v13823_v15, 16 }
 0x1cc   : > { %v13911_v63 = vsel %vm1933_vm8, %v2204_v8, %v2208_v6  ;;  %v2212_v12 = vor.u32 %v2210_v5, %v2208_v6  ;;  %v2234_v6 = vshrl.u32 %v13853_v61, 16  ;;  %v16844_v5 = vld [vmem:[#allocation46_spill] sm:$0xff] }
 0x1cd   : > { %v13914_v3 = vsel %vm3075_vm7, %v3137_v59, %v3139_v17  ;;  %v2216_v10 = vrot.slane %v2214_v57, 1  ;;  %v12405_v59 = vld [vmem:[#allocation10 + $0x78] sm:$0xff]   ;;  %v16842_v57 = vld [vmem:[#allocation44_spill] sm:$0xff] }
 0x1cf   : > { %v13936_v34 = vsel %vm1933_vm8, %v2212_v12, %v2216_v10 }
 0x1d2   : > { %11528 = vmatmul.mubr.msk.bf16.vlgmr.msra.gmra.mrb[40].mxu1 %vm450_vm3, %v13483_v24  ;;  %11616 = vmatmul.mubr.msk.bf16.vlgmr.msra.gmra.mrb[40].mxu0 %vm450_vm3, %v13491_v29  ;;  %v12404_v24 = vld [vmem:[#allocation10 + $0x90] sm:$0xff]   ;;  %v3141_v29 = vrot.slane %v13793_v7, 1 }
 0x1d3   : > { %11696 = vmatpush3.bf16.msra.mxu1 %v13577_v26  ;;  %11531 = vmatprep.mubr.msk.bf16.mxu1 %vm450_vm3, %v13499_v35  ;;  %v2218_v26 = vshrl.u32 %v13823_v15, 16  ;;  %v2222_v35 = vshll.u32 %v13825_v50, 16 }
 0x1d4   : > { %11784 = vmatpush3.bf16.msra.mxu0 %v13579_v27  ;;  %11619 = vmatprep.mubr.msk.bf16.mxu0 %vm450_vm3, %v13508_v42  ;;  %v13933_v27 = vsel %vm3075_vm7, %v3139_v17, %v3141_v29  ;;  %v13939_v7 = vsel %vm3075_vm7, %v3141_v29, %v3143_v19  ;;  %v2236_v17 = vor.u32 %v2234_v6, %v2232_v13  ;;  %v16855_v29 = vld [vmem:[#allocation57_spill] sm:$0xff] }
 0x1d5   : > { %11697 = vmatprep.subr.bf16.mxu1 %v12401_v20  ;;  %11785 = vmatprep.subr.bf16.mxu0 %v12402_v32  ;;  %v2220_v42 = vor.u32 %v2218_v26, %v2216_v10  ;;  %v2224_v43 = vrot.slane %v2222_v35, 1  ;;  %v16853_v10 = vld [vmem:[#allocation54_spill] sm:$0xff]  ;;  %v2242_v35 = vshrl.u32 %v13855_v14, 16 }
 0x1d7   : > { %11698 = vmatpush3.bf16.msra.mxu1 %v12401_v20  ;;  %v13942_v28 = vsel %vm1933_vm8, %v2220_v42, %v2224_v43  ;;  %v2228_v8 = vor.u32 %v2226_v0, %v2224_v43  ;;  %v3024_v43 = vld [vmem:[#allocation2 + $0x130] sm:$0xff] }
 0x1d8   : > { %11786 = vmatpush3.bf16.msra.mxu0 %v12402_v32  ;;  %11699 = vmatprep.subr.bf16.mxu1 %v12403_v49 }
 0x1d9   : > { %11787 = vmatprep.subr.bf16.mxu0 %v12404_v24  ;;  %v13964_v32 = vsel %vm1933_vm8, %v2228_v8, %v2232_v13 }
 0x1da   : > { %11532 = vmatmul.mubr.msk.bf16.gmra.mrb[44].mxu1 %vm450_vm3, %v13502_v36  ;;  %11620 = vmatmul.mubr.msk.bf16.gmra.mrb[44].mxu0 %vm450_vm3, %v13526_v51  ;;  %v3145_v36 = vrot.slane %v13823_v15, 1  ;;  %v2238_v51 = vshll.u32 %v13855_v14, 16  ;;  %v4789_v14 = vld [vmem:[#allocation2 + $0x10] sm:$0xf0] }
 0x1db   : > { %11535 = vmatprep.mubr.msk.bf16.mxu1 %vm450_vm3, %v13517_v45  ;;  %11623 = vmatprep.mubr.msk.bf16.mxu0 %vm450_vm3, %v13536_v58  ;;  %v3147_v45 = vrot.slane %v13825_v50, 1  ;;  %v4841_v0 = vshrl.u32 %v4789_v14, 16  ;;  %v4844_v13 = vshll.u32 %v4789_v14, 16 }
 0x1dc   : > { %11700 = vmatpush3.bf16.msra.mxu1 %v12403_v49  ;;  %11788 = vmatpush3.bf16.msra.mxu0 %v12404_v24  ;;  %v13959_v58 = vsel %vm3075_vm7, %v3143_v19, %v3145_v36  ;;  %v13961_v20 = vrot.slane %v2238_v51, 1  ;;  %v16843_v49 = vld [vmem:[#allocation47_spill] sm:$0xff]  ;;  %v16845_v24 = vld [vmem:[#allocation48_spill] sm:$0xff] }
 0x1dd   : > { %11701 = vmatprep.subr.bf16.mxu1 %v12405_v59  ;;  %11789 = vmatprep.subr.bf16.mxu0 %v12406_v62  ;;  %v13969_v15 = vsel %vm3075_vm7, %v3145_v36, %v3147_v45  ;;  %v4852_v36 = vshll.u32 %v14127_v22, 16 }
 0x1de   : > { %v13973_v61 = vsel %vm1933_vm8, %v2236_v17, %v13961_v20  ;;  %v2244_v50 = vor.u32 %v2242_v35, %v13961_v20  ;;  %v14178_v35 = vld [vmem:[#allocation2 + $0x38] sm:$0xff] }
 0x1e0   : > { %11702 = vmatpush3.bf16.msra.mxu1 %v12405_v59  ;;  %11790 = vmatpush3.bf16.msra.mxu0 %v12406_v62  ;;  %v3151_v59 = vrot.slane %v3024_v43, 1  ;;  %v4888_v43 = vshll.u32 %v14178_v35, 16 }
 0x1e2   : > { %11536 = vmatmul.mubr.msk.bf16.gmra.mrb[48].mxu1 %vm450_vm3, %v13533_v56  ;;  %11624 = vmatmul.mubr.msk.bf16.gmra.mrb[48].mxu0 %vm450_vm3, %v13554_v11  ;;  %v13995_v56 = vld [vmem:[#allocation10 + $0xa0] sm:$0xff]  }
 0x1e3   : > { %11539 = vmatprep.mubr.msk.bf16.mxu1 %vm450_vm3, %v13545_v1  ;;  %11627 = vmatprep.mubr.msk.bf16.mxu0 %vm450_vm3, %v13570_v23  ;;  %v16831_v1 = vld [vmem:[#allocation35_spill] sm:$0xff]  ;;  %v14006_v11 = vld [vmem:[#allocation10 + $0xc0] sm:$0xff]   ;;  %v16833_v23 = vld [vmem:[#allocation37_spill] sm:$0xff] }
 0x1e4   : > { %11871 = vmatprep.subr.bf16.mxu1 %v13995_v56  ;;  %11959 = vmatprep.subr.bf16.mxu0 %v14006_v11 }
 0x1ea   : > { %11540 = vmatmul.mubr.msk.bf16.gmra.mrb[52].mxu1 %vm450_vm3, %v13559_v16  ;;  %11628 = vmatmul.mubr.msk.bf16.gmra.mrb[52].mxu0 %vm450_vm3, %v13593_v44  ;;  %v16832_v16 = vld [vmem:[#allocation34_spill] sm:$0xff]  ;;  %v16835_v44 = vld [vmem:[#allocation39_spill] sm:$0xff] }
 0x1eb   : > { %11543 = vmatprep.mubr.msk.bf16.mxu1 %vm450_vm3, %v13582_v4  ;;  %11631 = vmatprep.mubr.msk.bf16.mxu0 %vm450_vm3, %v13605_v55  ;;  %v16834_v4 = vld [vmem:[#allocation36_spill] sm:$0xff]  ;;  %v16837_v55 = vld [vmem:[#allocation41_spill] sm:$0xff] }
 0x1f2   : > { %11544 = vmatmul.mubr.msk.bf16.gmra.mrb[56].mxu1 %vm450_vm3, %v13602_v52  ;;  %11632 = vmatmul.mubr.msk.bf16.gmra.mrb[56].mxu0 %vm450_vm3, %v13622_v18  ;;  %v16836_v52 = vld [vmem:[#allocation38_spill] sm:$0xff]  ;;  %v16839_v18 = vld [vmem:[#allocation43_spill] sm:$0xff] }
 0x1f3   : > { %11547 = vmatprep.mubr.msk.bf16.mxu1 %vm450_vm3, %v13613_v2  ;;  %11635 = vmatprep.mubr.msk.bf16.mxu0 %vm450_vm3, %v13633_v30  ;;  %v16838_v2 = vld [vmem:[#allocation40_spill] sm:$0xff]  ;;  %v16841_v30 = vld [vmem:[#allocation45_spill] sm:$0xff] }
 0x1fa   : > { %11548 = vmatmul.mubr.msk.bf16.gmra.mrb[60].mxu1 %vm450_vm3, %v13630_v25  ;;  %11636 = vmatmul.mubr.msk.bf16.gmra.mrb[60].mxu0 %vm450_vm3, %v16831_v1  ;;  %v16840_v25 = vld [vmem:[#allocation42_spill] sm:$0xff] }
 0x1fb   : > { %11551 = vmatprep.mubr.msk.bf16.mxu1 %vm450_vm3, %v16832_v16  ;;  %11639 = vmatprep.mubr.msk.bf16.mxu0 %vm450_vm3, %v16833_v23  ;;  %v4843_v23 = vrot.slane %v4841_v0, 4 }
 0x202   : > { %11552 = vmatmul.mubr.msk.bf16.gmra.mrb[64].mxu1 %vm450_vm3, %v16834_v4  ;;  %11640 = vmatmul.mubr.msk.bf16.gmra.mrb[64].mxu0 %vm450_vm3, %v16835_v44  ;;  %v4846_v4 = vrot.slane %v4844_v13, 5 }
 0x203   : > { %11555 = vmatprep.mubr.msk.bf16.mxu1 %vm450_vm3, %v16836_v52  ;;  %11643 = vmatprep.mubr.msk.bf16.mxu0 %vm450_vm3, %v16837_v55  ;;  %v4854_v52 = vrot.slane %v4852_v36, 5  ;;  %v3888_v55 = vld [vmem:[#allocation2 + $0x10] sm:$0xf0] }
 0x20a   : > { %11556 = vmatmul.mubr.msk.bf16.gmra.mrb[68].mxu1 %vm450_vm3, %v16838_v2  ;;  %11644 = vmatmul.mubr.msk.bf16.gmra.mrb[68].mxu0 %vm450_vm3, %v16839_v18  ;;  %v14148_v18 = vld [vmem:[#allocation2 + $0x20] sm:$0xff] }
 0x20b   : > { %11559 = vmatprep.mubr.msk.bf16.mxu1 %vm450_vm3, %v16840_v25  ;;  %11647 = vmatprep.mubr.msk.bf16.mxu0 %vm450_vm3, %v16841_v30  ;;  %v4858_v25 = vshrl.u32 %v14148_v18, 16  ;;  %v4861_v30 = vshll.u32 %v14148_v18, 16 }
 0x212   : > { %11560 = vmatmul.mubr.msk.bf16.gmra.mrb[72].mxu1 %vm450_vm3, %v16842_v57  ;;  %11648 = vmatmul.mubr.msk.bf16.gmra.mrb[72].mxu0 %vm450_vm3, %v13718_v38  ;;  %v16846_v38 = vld [vmem:[#allocation49_spill] sm:$0xff]  ;;  %v3977_v57 = vrot.slane %v3888_v55, 4 }
 0x213   : > { %11563 = vmatprep.mubr.msk.bf16.mxu1 %vm450_vm3, %v13715_v60  ;;  %11651 = vmatprep.mubr.msk.bf16.mxu0 %vm450_vm3, %v13731_v41  ;;  %v16848_v60 = vld [vmem:[#allocation51_spill] sm:$0xff]  ;;  %v16849_v41 = vld [vmem:[#allocation52_spill] sm:$0xff] }
 0x21a   : > { %11564 = vmatmul.mubr.msk.bf16.gmra.mrb[76].mxu1 %vm450_vm3, %v13728_v47  ;;  %11652 = vmatmul.mubr.msk.bf16.gmra.mrb[76].mxu0 %vm450_vm3, %v16843_v49  ;;  %v16847_v47 = vld [vmem:[#allocation50_spill] sm:$0xff]  ;;  %v3978_v49 = vrot.slane %v14127_v22, 4 }
 0x21b   : > { %11567 = vmatprep.mubr.msk.bf16.mxu1 %vm450_vm3, %v16844_v5  ;;  %11655 = vmatprep.mubr.msk.bf16.mxu0 %vm450_vm3, %v13757_v54  ;;  %v16850_v54 = vld [vmem:[#allocation55_spill] sm:$0xff] }
 0x21c   : > { %v14155_v5 = vld [vmem:[#allocation2 + $0x28] sm:$0xff] }
 0x222   : > { %11568 = vmatmul.mubr.msk.bf16.gmra.mrb[80].mxu1 %vm450_vm3, %v16845_v24  ;;  %11656 = vmatmul.mubr.msk.bf16.gmra.mrb[80].mxu0 %vm450_vm3, %v13771_v40  ;;  %v16851_v40 = vld [vmem:[#allocation53_spill] sm:$0xff] }
 0x223   : > { %11571 = vmatprep.mubr.msk.bf16.mxu1 %vm450_vm3, %v16846_v38  ;;  %11659 = vmatprep.mubr.msk.bf16.mxu0 %vm450_vm3, %v13787_v21  ;;  %v16852_v21 = vld [vmem:[#allocation56_spill] sm:$0xff] }
 0x22a   : > { %11572 = vmatmul.mubr.msk.bf16.gmra.mrb[84].mxu1 %vm450_vm3, %v16847_v47  ;;  %11660 = vmatmul.mubr.msk.bf16.gmra.mrb[84].mxu0 %vm450_vm3, %v13801_v31  ;;  %v16854_v31 = vld [vmem:[#allocation59_spill] sm:$0xff] }
 0x22b   : > { %11575 = vmatprep.mubr.msk.bf16.mxu1 %vm450_vm3, %v16848_v60  ;;  %11663 = vmatprep.mubr.msk.bf16.mxu0 %vm450_vm3, %v13817_v33  ;;  %v16856_v33 = vld [vmem:[#allocation58_spill] sm:$0xff]  ;;  %v4867_v60 = vshrl.u32 %v14155_v5, 16 }
 0x232   : > { %11576 = vmatmul.mubr.msk.bf16.gmra.mrb[88].mxu1 %vm450_vm3, %v16849_v41  ;;  %11664 = vmatmul.mubr.msk.bf16.gmra.mrb[88].mxu0 %vm450_vm3, %v16850_v54  ;;  %v4870_v41 = vshll.u32 %v14155_v5, 16 }
 0x233   : > { %11579 = vmatprep.mubr.msk.bf16.mxu1 %vm450_vm3, %v16851_v40  ;;  %11667 = vmatprep.mubr.msk.bf16.mxu0 %vm450_vm3, %v16852_v21 }
 0x23a   : > { %11580 = vmatmul.mubr.msk.bf16.gmra.mrb[92].mxu1 %vm450_vm3, %v16853_v10  ;;  %11668 = vmatmul.mubr.msk.bf16.gmra.mrb[92].mxu0 %vm450_vm3, %v16854_v31 }
 0x23b   : > { %11583 = vmatprep.mubr.msk.bf16.mxu1 %vm450_vm3, %v16855_v29  ;;  %11671 = vmatprep.mubr.msk.bf16.mxu0 %vm450_vm3, %v13877_v46  ;;  %v3023_v46 = vld [vmem:[#allocation2 + $0x128] sm:$0xff]  ;;  %v4860_v29 = vrot.slane %v4858_v25, 4 }
 0x242   : > { %11584 = vmatmul.mubr.msk.bf16.gmra.mrb[96].mxu1 %vm450_vm3, %v16856_v33  ;;  %11672 = vmatmul.mubr.msk.bf16.gmra.mrb[96].mxu0 %vm450_vm3, %v13890_v39  ;;  %v4863_v33 = vrot.slane %v4861_v30, 5 }
 0x243   : > { %11587 = vmatprep.mubr.msk.bf16.mxu1 %vm450_vm3, %v13880_v37  ;;  %11675 = vmatprep.mubr.msk.bf16.mxu0 %vm450_vm3, %v13904_v48  ;;  %v3149_v37 = vrot.slane %v3023_v46, 1 }
 0x245   : > { %v3150_v42 = vsel %vm3075_vm7, %v3147_v45, %v3149_v37 }
 0x24a   : > { %11588 = vmatmul.mubr.msk.bf16.gmra.mrb[100].mxu1 %vm450_vm3, %v13887_v53  ;;  %11676 = vmatmul.mubr.msk.bf16.gmra.mrb[100].mxu0 %vm450_vm3, %v13914_v3  ;;  %v14101_v53 = vld [vmem:[#allocation2 + $0x138] sm:$0x1f] }
 0x24b   : > { %11591 = vmatprep.mubr.msk.bf16.mxu1 %vm450_vm3, %v13907_v9  ;;  %11679 = vmatprep.mubr.msk.bf16.mxu0 %vm450_vm3, %v13933_v27  ;;  %v2246_v12 = vshll.u32 %v14101_v53, 16  ;;  %v2250_v2 = vshrl.u32 %v14101_v53, 16 }
 0x252   : > { %11592 = vmatmul.mubr.msk.bf16.gmra.mrb[104].mxu1 %vm450_vm3, %v13911_v63  ;;  %11680 = vmatmul.mubr.msk.bf16.gmra.mrb[104].mxu0 %vm450_vm3, %v13939_v7  ;;  %v2248_v7 = vrot.slane %v2246_v12, 1 }
 0x253   : > { %11595 = vmatprep.mubr.msk.bf16.mxu1 %vm450_vm3, %v13936_v34  ;;  %11683 = vmatprep.mubr.msk.bf16.mxu0 %vm450_vm3, %v13959_v58  ;;  %v14114_v34 = vld [vmem:[#allocation2 + $0x138] sm:$0x1f] }
 0x254   : > { %v3153_v62 = vrot.slane %v14114_v34, 1  ;;  %v2249_v20 = vsel %vm1933_vm8, %v2244_v50, %v2248_v7  ;;  %v2252_v40 = vor.u32 %v2250_v2, %v2248_v7 }
 0x255   : > { %v11481_v39 = vpop.f32.mrb[0].mxu1  ;;  %v11441_v48 = vpop.f32.mrb[0].mxu0 }
 0x256   : > { %1847 = vst.msk [vmem:[#allocation3 + $0x150] sm:$0xff] %vm450_vm3, %v11481_v39  ;;  %v1647_v9 = vpop.f32.mrb[1].mxu1  ;;  %1807 = vst.msk [vmem:[#allocation3 + $0x10] sm:$0xff] %vm450_vm3, %v11441_v48  ;;  %v1487_v63 = vpop.f32.mrb[1].mxu0  ;;  %v4869_v48 = vrot.slane %v4867_v60, 4 }
 0x257   : > { %1845 = vst.msk [vmem:[#allocation3 + $0x140] sm:$0xff] %vm450_vm3, %v1647_v9  ;;  %v11482_v3 = vpop.f32.mrb[2].mxu1  ;;  %1805 = vst.msk [vmem:[#allocation3] sm:$0xff] %vm450_vm3, %v1487_v63  ;;  %v11442_v26 = vpop.f32.mrb[2].mxu0  ;;  %v4872_v9 = vrot.slane %v4870_v41, 5  ;;  %v14173_v63 = vld [vmem:[#allocation2 + $0x30] sm:$0xff] }
 0x258   : > { %1848 = vst.msk [vmem:[#allocation3 + $0x158] sm:$0xff] %vm450_vm3, %v11482_v3  ;;  %v1650_v19 = vpop.f32.mrb[3].mxu1  ;;  %1808 = vst.msk [vmem:[#allocation3 + $0x18] sm:$0xff] %vm450_vm3, %v11442_v26  ;;  %v1490_v27 = vpop.f32.mrb[3].mxu0  ;;  %v3980_v3 = vrot.slane %v14148_v18, 4  ;;  %v4864_v26 = vor.u32 %v4863_v33, %v4860_v29  ;;  %v4876_v12 = vshrl.u32 %v14173_v63, 16 }
 0x259   : > { %1846 = vst.msk [vmem:[#allocation3 + $0x148] sm:$0xff] %vm450_vm3, %v1650_v19  ;;  %1806 = vst.msk [vmem:[#allocation3 + $0x8] sm:$0xff] %vm450_vm3, %v1490_v27  ;;  %v4879_v19 = vshll.u32 %v14173_v63, 16  ;;  %v3982_v27 = vrot.slane %v14155_v5, 4  ;;  %v4873_v50 = vor.u32 %v4872_v9, %v4869_v48  ;;  %v12411_v18 = vld [vmem:[#allocation10 + $0xb0] sm:$0xff]   ;;  %v12413_v29 = vld [vmem:[#allocation10 + $0xb8] sm:$0xff]  }
 0x25a   : > { %11596 = vmatmul.mubr.msk.bf16.gmra.mrb[108].mxu1 %vm450_vm3, %v13942_v28  ;;  %11684 = vmatmul.mubr.msk.bf16.gmra.mrb[108].mxu0 %vm450_vm3, %v13969_v15  ;;  %v4849_v28 = vshrl.u32 %v14127_v22, 16  ;;  %v3154_v15 = vsel %vm3075_vm7, %v3151_v59, %v3153_v62  ;;  %v3981_v22 = vsel %vm439_vm5, %v3978_v49, %v3980_v3  ;;  %v12414_v33 = vld [vmem:[#allocation10 + $0xd8] sm:$0xff]  }
 0x25b   : > { %11599 = vmatprep.mubr.msk.bf16.mxu1 %vm450_vm3, %v13964_v32  ;;  %11687 = vmatprep.mubr.msk.bf16.mxu0 %vm450_vm3, %v3150_v42  ;;  %v3152_v32 = vsel %vm3075_vm7, %v3149_v37, %v3151_v59  ;;  %v3979_v37 = vsel %vm439_vm5, %v3977_v57, %v3978_v49  ;;  %v4885_v42 = vshrl.u32 %v14178_v35, 16  ;;  %v4881_v36 = vrot.slane %v4879_v19, 5  ;;  %v12412_v57 = vld [vmem:[#allocation10 + $0xd0] sm:$0xff]  }
 0x25c   : > { %v4851_v44 = vrot.slane %v4849_v28, 4  ;;  %v4878_v28 = vrot.slane %v4876_v12, 4 }
 0x25d   : > { %v11485_v6 = vpop.f32.mrb[4].mxu1  ;;  %v11445_v51 = vpop.f32.mrb[4].mxu0 }
 0x25e   : > { %1851 = vst.msk [vmem:[#allocation3 + $0x170] sm:$0xff] %vm450_vm3, %v11485_v6  ;;  %v1663_v8 = vpop.f32.mrb[5].mxu1  ;;  %1811 = vst.msk [vmem:[#allocation3 + $0x30] sm:$0xff] %vm450_vm3, %v11445_v51  ;;  %v1503_v45 = vpop.f32.mrb[5].mxu0  ;;  %v4855_v24 = vor.u32 %v4854_v52, %v4851_v44  ;;  %v3986_v52 = vrot.slane %v14178_v35, 4 }
 0x25f   : > { %1849 = vst.msk [vmem:[#allocation3 + $0x160] sm:$0xff] %vm450_vm3, %v1663_v8  ;;  %v11486_v58 = vpop.f32.mrb[6].mxu1  ;;  %1809 = vst.msk [vmem:[#allocation3 + $0x20] sm:$0xff] %vm450_vm3, %v1503_v45  ;;  %v11446_v17 = vpop.f32.mrb[6].mxu0  ;;  %v3983_v8 = vsel %vm439_vm5, %v3980_v3, %v3982_v27  ;;  %v4887_v45 = vrot.slane %v4885_v42, 4 }
 0x260   : > { %1852 = vst.msk [vmem:[#allocation3 + $0x178] sm:$0xff] %vm450_vm3, %v11486_v58  ;;  %v1666_v1 = vpop.f32.mrb[7].mxu1  ;;  %1812 = vst.msk [vmem:[#allocation3 + $0x38] sm:$0xff] %vm450_vm3, %v11446_v17  ;;  %v1506_v16 = vpop.f32.mrb[7].mxu0  ;;  %v4865_v13 = vsel %vm4839_vm9, %v4855_v24, %v4864_v26  ;;  %v4890_v58 = vrot.slane %v4888_v43, 5  ;;  %v4874_v17 = vsel %vm4839_vm9, %v4864_v26, %v4873_v50 }
 0x261   : > { %1850 = vst.msk [vmem:[#allocation3 + $0x168] sm:$0xff] %vm450_vm3, %v1666_v1  ;;  %1810 = vst.msk [vmem:[#allocation3 + $0x28] sm:$0xff] %vm450_vm3, %v1506_v16  ;;  %v3984_v1 = vrot.slane %v14173_v63, 4  ;;  %v4882_v16 = vor.u32 %v4881_v36, %v4878_v28 }
 0x262   : > { %11600 = vmatmul.mubr.msk.bf16.gmra.mrb[112].mxu1 %vm450_vm3, %v13973_v61  ;;  %11688 = vmatmul.mubr.msk.bf16.gmra.mrb[112].mxu0 %vm450_vm3, %v3152_v32  ;;  %v4847_v61 = vor.u32 %v4846_v4, %v4843_v23  ;;  %v12410_v32 = vld [vmem:[#allocation10 + $0xc8] sm:$0xff]   ;;  %v14211_v55 = vor.u32 %v4890_v58, %v4887_v45 }
 0x263   : > { %11603 = vmatprep.mubr.msk.bf16.mxu1 %vm450_vm3, %v2249_v20  ;;  %11691 = vmatprep.mubr.msk.bf16.mxu0 %vm450_vm3, %v3154_v15  ;;  %v12409_v20 = vld [vmem:[#allocation10 + $0xa8] sm:$0xff]   ;;  %v14199_v15 = vld [vmem:[#allocation2 + $0x40] sm:$0xff] }
 0x264   : > { %v4856_v39 = vsel %vm4839_vm9, %v4847_v61, %v4855_v24  ;;  %v14204_v23 = vld [vmem:[#allocation2 + $0x48] sm:$0xff]  ;;  %v4894_v4 = vshrl.u32 %v14199_v15, 16  ;;  %v4897_v44 = vshll.u32 %v14199_v15, 16  ;;  %v3985_v61 = vsel %vm439_vm5, %v3982_v27, %v3984_v1 }
 0x265   : > { %v11489_v38 = vpop.f32.mrb[8].mxu1  ;;  %v11449_v47 = vpop.f32.mrb[8].mxu0  ;;  %v4906_v2 = vshll.u32 %v14204_v23, 16  ;;  %v3990_v63 = vrot.slane %v14204_v23, 4  ;;  %v14266_v45 = vld [vmem:[#allocation2 + $0x68] sm:$0xff] }
 0x266   : > { %1855 = vst.msk [vmem:[#allocation3 + $0x190] sm:$0xff] %vm450_vm3, %v11489_v38  ;;  %v1679_v54 = vpop.f32.mrb[9].mxu1  ;;  %1815 = vst.msk [vmem:[#allocation3 + $0x50] sm:$0xff] %vm450_vm3, %v11449_v47  ;;  %v1519_v21 = vpop.f32.mrb[9].mxu0  ;;  %v4883_v38 = vsel %vm4839_vm9, %v4873_v50, %v4882_v16  ;;  %v4896_v47 = vrot.slane %v4894_v4, 4  ;;  %v4899_v60 = vrot.slane %v4897_v44, 5 }
 0x267   : > { %1853 = vst.msk [vmem:[#allocation3 + $0x180] sm:$0xff] %vm450_vm3, %v1679_v54  ;;  %v11490_v10 = vpop.f32.mrb[10].mxu1  ;;  %1813 = vst.msk [vmem:[#allocation3 + $0x40] sm:$0xff] %vm450_vm3, %v1519_v21  ;;  %v11450_v31 = vpop.f32.mrb[10].mxu0  ;;  %v4892_v21 = vsel %vm4839_vm9, %v4882_v16, %v14211_v55 }
 0x268   : > { %1856 = vst.msk [vmem:[#allocation3 + $0x198] sm:$0xff] %vm450_vm3, %v11490_v10  ;;  %v1682_v46 = vpop.f32.mrb[11].mxu1  ;;  %1816 = vst.msk [vmem:[#allocation3 + $0x58] sm:$0xff] %vm450_vm3, %v11450_v31  ;;  %v1522_v53 = vpop.f32.mrb[11].mxu0  ;;  %v4908_v31 = vrot.slane %v4906_v2, 5 }
 0x269   : > { %1854 = vst.msk [vmem:[#allocation3 + $0x188] sm:$0xff] %vm450_vm3, %v1682_v46  ;;  %1814 = vst.msk [vmem:[#allocation3 + $0x48] sm:$0xff] %vm450_vm3, %v1522_v53  ;;  %v14232_v46 = vld [vmem:[#allocation2 + $0x50] sm:$0xff]  ;;  %v3988_v53 = vrot.slane %v14199_v15, 4  ;;  %v4939_v15 = vshrl.u32 %v14266_v45, 16 }
 0x26a   : > { %11604 = vmatmul.mubr.msk.bf16.gmra.mrb[116].mxu1 %vm450_vm3, %v2252_v40  ;;  %11692 = vmatmul.mubr.msk.bf16.gmra.mrb[116].mxu0 %vm450_vm3, %v3153_v62  ;;  %v3987_v40 = vsel %vm439_vm5, %v3984_v1, %v3986_v52  ;;  %v4912_v48 = vshrl.u32 %v14232_v46, 16  ;;  %v4915_v9 = vshll.u32 %v14232_v46, 16  ;;  %v4942_v1 = vshll.u32 %v14266_v45, 16 }
 0x26b   : > { %11703 = vmatprep.mubr.msk.bf16.mxu1 %vm450_vm3, %v3979_v37  ;;  %11791 = vmatprep.mubr.msk.bf16.mxu0 %vm450_vm3, %v4856_v39  ;;  %v4900_v37 = vor.u32 %v4899_v60, %v4896_v47  ;;  %v14237_v39 = vld [vmem:[#allocation2 + $0x58] sm:$0xff] }
 0x26c   : > { %v4921_v26 = vshrl.u32 %v14237_v39, 16  ;;  %v4924_v12 = vshll.u32 %v14237_v39, 16  ;;  %v14292_v60 = vld [vmem:[#allocation2 + $0x78] sm:$0xff] }
 0x26d   : > { %v11493_v34 = vpop.f32.mrb[12].mxu1  ;;  %v11453_v14 = vpop.f32.mrb[12].mxu0 }
 0x26e   : > { %1859 = vst.msk [vmem:[#allocation3 + $0x1b0] sm:$0xff] %vm450_vm3, %v11493_v34  ;;  %v1695_v7 = vpop.f32.mrb[13].mxu1  ;;  %1819 = vst.msk [vmem:[#allocation3 + $0x70] sm:$0xff] %vm450_vm3, %v11453_v14  ;;  %v1535_v59 = vpop.f32.mrb[13].mxu0  ;;  %v3989_v14 = vsel %vm439_vm5, %v3986_v52, %v3988_v53  ;;  %v4923_v28 = vrot.slane %v4921_v26, 4  ;;  %v4926_v36 = vrot.slane %v4924_v12, 5 }
 0x26f   : > { %1857 = vst.msk [vmem:[#allocation3 + $0x1a0] sm:$0xff] %vm450_vm3, %v1695_v7  ;;  %v11494_v62 = vpop.f32.mrb[14].mxu1  ;;  %1817 = vst.msk [vmem:[#allocation3 + $0x60] sm:$0xff] %vm450_vm3, %v1535_v59  ;;  %v11454_v0 = vpop.f32.mrb[14].mxu0  ;;  %v4901_v7 = vsel %vm4839_vm9, %v14211_v55, %v4900_v37  ;;  %v4914_v59 = vrot.slane %v4912_v48, 4 }
 0x270   : > { %1860 = vst.msk [vmem:[#allocation3 + $0x1b8] sm:$0xff] %vm450_vm3, %v11494_v62  ;;  %v1698_v6 = vpop.f32.mrb[15].mxu1  ;;  %1820 = vst.msk [vmem:[#allocation3 + $0x78] sm:$0xff] %vm450_vm3, %v11454_v0  ;;  %v1538_v51 = vpop.f32.mrb[15].mxu0  ;;  %v4917_v62 = vrot.slane %v4915_v9, 5 }
 0x271   : > { %1858 = vst.msk [vmem:[#allocation3 + $0x1a8] sm:$0xff] %vm450_vm3, %v1698_v6  ;;  %1818 = vst.msk [vmem:[#allocation3 + $0x68] sm:$0xff] %vm450_vm3, %v1538_v51  ;;  %v14261_v6 = vld [vmem:[#allocation2 + $0x60] sm:$0xff]  ;;  %v3992_v51 = vrot.slane %v14232_v46, 4 }
 0x272   : > { %11704 = vmatmul.mubr.msk.bf16.vlgmr.msra.gmra.mrb[120].mxu1 %vm450_vm3, %v3981_v22  ;;  %11792 = vmatmul.mubr.msk.bf16.vlgmr.msra.gmra.mrb[120].mxu0 %vm450_vm3, %v4865_v13  ;;  %v3991_v13 = vsel %vm439_vm5, %v3988_v53, %v3990_v63  ;;  %v4930_v58 = vshrl.u32 %v14261_v6, 16 }
 0x273   : > { %11872 = vmatpush3.bf16.msra.mxu1 %v13995_v56  ;;  %11707 = vmatprep.mubr.msk.bf16.mxu1 %vm450_vm3, %v3983_v8  ;;  %v4903_v56 = vshrl.u32 %v14204_v23, 16  ;;  %v4918_v8 = vor.u32 %v4917_v62, %v4914_v59  ;;  %v3993_v55 = vsel %vm439_vm5, %v3990_v63, %v3992_v51 }
 0x274   : > { %11960 = vmatpush3.bf16.msra.mxu0 %v14006_v11  ;;  %11795 = vmatprep.mubr.msk.bf16.mxu0 %vm450_vm3, %v4874_v17  ;;  %v4933_v17 = vshll.u32 %v14261_v6, 16 }
 0x275   : > { %v11497_v25 = vpop.f32.mrb[16].mxu1  ;;  %v11457_v30 = vpop.f32.mrb[16].mxu0  ;;  %11873 = vmatprep.subr.bf16.mxu1 %v12409_v20  ;;  %11961 = vmatprep.subr.bf16.mxu0 %v12410_v32  ;;  %v4905_v10 = vrot.slane %v4903_v56, 4 }
 0x276   : > { %1863 = vst.msk [vmem:[#allocation3 + $0x1d0] sm:$0xff] %vm450_vm3, %v11497_v25  ;;  %v1711_v49 = vpop.f32.mrb[17].mxu1  ;;  %1823 = vst.msk [vmem:[#allocation3 + $0x90] sm:$0xff] %vm450_vm3, %v11457_v30  ;;  %v1551_v11 = vpop.f32.mrb[17].mxu0  ;;  %v4935_v25 = vrot.slane %v4933_v17, 5 }
 0x277   : > { %1861 = vst.msk [vmem:[#allocation3 + $0x1c0] sm:$0xff] %vm450_vm3, %v1711_v49  ;;  %v11498_v5 = vpop.f32.mrb[18].mxu1  ;;  %1821 = vst.msk [vmem:[#allocation3 + $0x80] sm:$0xff] %vm450_vm3, %v1551_v11  ;;  %v11458_v24 = vpop.f32.mrb[18].mxu0  ;;  %11874 = vmatpush3.bf16.msra.mxu1 %v12409_v20  ;;  %v4909_v3 = vor.u32 %v4908_v31, %v4905_v10  ;;  %v3994_v20 = vrot.slane %v14237_v39, 4  ;;  %v4957_v10 = vshrl.u32 %v14292_v60, 16 }
 0x278   : > { %1864 = vst.msk [vmem:[#allocation3 + $0x1d8] sm:$0xff] %vm450_vm3, %v11498_v5  ;;  %v1714_v41 = vpop.f32.mrb[19].mxu1  ;;  %1824 = vst.msk [vmem:[#allocation3 + $0x98] sm:$0xff] %vm450_vm3, %v11458_v24  ;;  %v1554_v54 = vpop.f32.mrb[19].mxu0  ;;  %11962 = vmatpush3.bf16.msra.mxu0 %v12410_v32  ;;  %11875 = vmatprep.subr.bf16.mxu1 %v12411_v18  ;;  %v4927_v32 = vor.u32 %v4926_v36, %v4923_v28  ;;  %v4941_v5 = vrot.slane %v4939_v15, 4  ;;  %v14287_v24 = vld [vmem:[#allocation2 + $0x70] sm:$0xff] }
 0x279   : > { %1862 = vst.msk [vmem:[#allocation3 + $0x1c8] sm:$0xff] %vm450_vm3, %v1714_v41  ;;  %1822 = vst.msk [vmem:[#allocation3 + $0x88] sm:$0xff] %vm450_vm3, %v1554_v54  ;;  %11963 = vmatprep.subr.bf16.mxu0 %v12412_v57  ;;  %v4910_v35 = vsel %vm4839_vm9, %v4900_v37, %v4909_v3  ;;  %v4919_v2 = vsel %vm4839_vm9, %v4909_v3, %v4918_v8  ;;  %v3995_v49 = vsel %vm439_vm5, %v3992_v51, %v3994_v20 }
 0x27a   : > { %11708 = vmatmul.mubr.msk.bf16.gmra.mrb[124].mxu1 %vm450_vm3, %v3985_v61  ;;  %11796 = vmatmul.mubr.msk.bf16.gmra.mrb[124].mxu0 %vm450_vm3, %v4883_v38  ;;  %v4928_v11 = vsel %vm4839_vm9, %v4918_v8, %v4927_v32  ;;  %v4944_v61 = vrot.slane %v4942_v1, 5  ;;  %v3996_v38 = vrot.slane %v14261_v6, 4  ;;  %v4948_v41 = vshrl.u32 %v14287_v24, 16  ;;  %v12415_v6 = vld [vmem:[#allocation10 + $0xe0] sm:$0xff]  }
 0x27b   : > { %11711 = vmatprep.mubr.msk.bf16.mxu1 %vm450_vm3, %v3987_v40  ;;  %11799 = vmatprep.mubr.msk.bf16.mxu0 %vm450_vm3, %v4892_v21  ;;  %v4951_v54 = vshll.u32 %v14287_v24, 16  ;;  %v3998_v40 = vrot.slane %v14266_v45, 4  ;;  %v4960_v31 = vshll.u32 %v14292_v60, 16 }
 0x27c   : > { %11876 = vmatpush3.bf16.msra.mxu1 %v12411_v18  ;;  %11964 = vmatpush3.bf16.msra.mxu0 %v12412_v57  ;;  %v4932_v18 = vrot.slane %v4930_v58, 4  ;;  %v4945_v21 = vor.u32 %v4944_v61, %v4941_v5  ;;  %v3997_v39 = vsel %vm439_vm5, %v3994_v20, %v3996_v38  ;;  %v4950_v63 = vrot.slane %v4948_v41, 4 }
 0x27d   : > { %v11501_v19 = vpop.f32.mrb[20].mxu1  ;;  %v11461_v27 = vpop.f32.mrb[20].mxu0  ;;  %11877 = vmatprep.subr.bf16.mxu1 %v12413_v29  ;;  %11965 = vmatprep.subr.bf16.mxu0 %v12414_v33  ;;  %v4953_v3 = vrot.slane %v4951_v54, 5 }
 0x27e   : > { %1867 = vst.msk [vmem:[#allocation3 + $0x1f0] sm:$0xff] %vm450_vm3, %v11501_v19  ;;  %v1727_v42 = vpop.f32.mrb[21].mxu1  ;;  %1827 = vst.msk [vmem:[#allocation3 + $0xb0] sm:$0xff] %vm450_vm3, %v11461_v27  ;;  %v1567_v43 = vpop.f32.mrb[21].mxu0  ;;  %v4936_v47 = vor.u32 %v4935_v25, %v4932_v18  ;;  %v3999_v19 = vsel %vm439_vm5, %v3996_v38, %v3998_v40  ;;  %v14342_v18 = vld [vmem:[#allocation2 + $0x98] sm:$0xff]  ;;  %v12416_v38 = vld [vmem:[#allocation10 + $0x100] sm:$0xff]  }
 0x27f   : > { %1865 = vst.msk [vmem:[#allocation3 + $0x1e0] sm:$0xff] %vm450_vm3, %v1727_v42  ;;  %v11502_v34 = vpop.f32.mrb[22].mxu1  ;;  %1825 = vst.msk [vmem:[#allocation3 + $0xa0] sm:$0xff] %vm450_vm3, %v1567_v43  ;;  %v11462_v50 = vpop.f32.mrb[22].mxu0  ;;  %v4959_v42 = vrot.slane %v4957_v10, 4  ;;  %v4962_v43 = vrot.slane %v4960_v31, 5 }
 0x280   : > { %1868 = vst.msk [vmem:[#allocation3 + $0x1f8] sm:$0xff] %vm450_vm3, %v11502_v34  ;;  %v1730_v22 = vpop.f32.mrb[23].mxu1  ;;  %1828 = vst.msk [vmem:[#allocation3 + $0xb8] sm:$0xff] %vm450_vm3, %v11462_v50  ;;  %v1570_v0 = vpop.f32.mrb[23].mxu0  ;;  %11878 = vmatpush3.bf16.msra.mxu1 %v12413_v29  ;;  %11966 = vmatpush3.bf16.msra.mxu0 %v12414_v33  ;;  %v4937_v9 = vsel %vm4839_vm9, %v4927_v32, %v4936_v47  ;;  %v4946_v27 = vsel %vm4839_vm9, %v4936_v47, %v4945_v21  ;;  %v14313_v34 = vld [vmem:[#allocation2 + $0x80] sm:$0xff]  ;;  %v4996_v5 = vshll.u32 %v14342_v18, 16 }
 0x281   : > { %1866 = vst.msk [vmem:[#allocation3 + $0x1e8] sm:$0xff] %vm450_vm3, %v1730_v22  ;;  %1826 = vst.msk [vmem:[#allocation3 + $0xa8] sm:$0xff] %vm450_vm3, %v1570_v0  ;;  %v4954_v50 = vor.u32 %v4953_v3, %v4950_v63  ;;  %v4966_v59 = vshrl.u32 %v14313_v34, 16  ;;  %v4969_v62 = vshll.u32 %v14313_v34, 16  ;;  %v4002_v22 = vrot.slane %v14292_v60, 4  ;;  %12047 = vmatprep.subr.bf16.mxu1 %v12415_v6  ;;  %12135 = vmatprep.subr.bf16.mxu0 %v12416_v38  ;;  %v14361_v63 = vld [vmem:[#allocation2 + $0xa0] sm:$0xff] }
 0x282   : > { %11712 = vmatmul.mubr.msk.bf16.gmra.mrb[128].mxu1 %vm450_vm3, %v3989_v14  ;;  %11800 = vmatmul.mubr.msk.bf16.gmra.mrb[128].mxu0 %vm450_vm3, %v4901_v7  ;;  %v4000_v14 = vrot.slane %v14287_v24, 4  ;;  %v14318_v7 = vld [vmem:[#allocation2 + $0x88] sm:$0xff]  ;;  %v4963_v0 = vor.u32 %v4962_v43, %v4959_v42 }
 0x283   : > { %11715 = vmatprep.mubr.msk.bf16.mxu1 %vm450_vm3, %v3991_v13  ;;  %11803 = vmatprep.mubr.msk.bf16.mxu0 %vm450_vm3, %v4910_v35  ;;  %v4975_v13 = vshrl.u32 %v14318_v7, 16  ;;  %v4978_v35 = vshll.u32 %v14318_v7, 16  ;;  %v4955_v20 = vsel %vm4839_vm9, %v4945_v21, %v4954_v50  ;;  %v4968_v32 = vrot.slane %v4966_v59, 4  ;;  %v2753_v38 = vld [vmem:[#allocation3 + $0x20] sm:$0xff] }
 0x284   : > { %v4001_v58 = vsel %vm439_vm5, %v3998_v40, %v4000_v14  ;;  %v4971_v15 = vrot.slane %v4969_v62, 5  ;;  %v2749_v62 = vld [vmem:[#allocation3] sm:$0xff] }
 0x285   : > { %v11505_v16 = vpop.f32.mrb[24].mxu1  ;;  %v11465_v23 = vpop.f32.mrb[24].mxu0 }
 0x286   : > { %1871 = vst.msk [vmem:[#allocation3 + $0x210] sm:$0xff] %vm450_vm3, %v11505_v16  ;;  %v1743_v4 = vpop.f32.mrb[25].mxu1  ;;  %1831 = vst.msk [vmem:[#allocation3 + $0xd0] sm:$0xff] %vm450_vm3, %v11465_v23  ;;  %v1583_v44 = vpop.f32.mrb[25].mxu0  ;;  %v4003_v23 = vsel %vm439_vm5, %v4000_v14, %v4002_v22  ;;  %v2751_v14 = vld [vmem:[#allocation3 + $0x10] sm:$0xff] }
 0x287   : > { %1869 = vst.msk [vmem:[#allocation3 + $0x200] sm:$0xff] %vm450_vm3, %v1743_v4  ;;  %v11506_v52 = vpop.f32.mrb[26].mxu1  ;;  %1829 = vst.msk [vmem:[#allocation3 + $0xc0] sm:$0xff] %vm450_vm3, %v1583_v44  ;;  %v11466_v56 = vpop.f32.mrb[26].mxu0  ;;  %v4964_v4 = vsel %vm4839_vm9, %v4954_v50, %v4963_v0  ;;  %v4977_v44 = vrot.slane %v4975_v13, 4 }
 0x288   : > { %1872 = vst.msk [vmem:[#allocation3 + $0x218] sm:$0xff] %vm450_vm3, %v11506_v52  ;;  %v1746_v30 = vpop.f32.mrb[27].mxu1  ;;  %1832 = vst.msk [vmem:[#allocation3 + $0xd8] sm:$0xff] %vm450_vm3, %v11466_v56  ;;  %v1586_v57 = vpop.f32.mrb[27].mxu0  ;;  %v4980_v52 = vrot.slane %v4978_v35, 5  ;;  %v4004_v56 = vrot.slane %v14313_v34, 4 }
 0x289   : > { %1870 = vst.msk [vmem:[#allocation3 + $0x208] sm:$0xff] %vm450_vm3, %v1746_v30  ;;  %1830 = vst.msk [vmem:[#allocation3 + $0xc8] sm:$0xff] %vm450_vm3, %v1586_v57  ;;  %v4006_v57 = vrot.slane %v14318_v7, 4 }
 0x28a   : > { %11716 = vmatmul.mubr.msk.bf16.gmra.mrb[132].mxu1 %vm450_vm3, %v3993_v55  ;;  %11804 = vmatmul.mubr.msk.bf16.gmra.mrb[132].mxu0 %vm450_vm3, %v4919_v2  ;;  %v3904_v55 = vld [vmem:[#allocation2 + $0x90] sm:$0xff]  ;;  %v4972_v2 = vor.u32 %v4971_v15, %v4968_v32  ;;  %v4005_v54 = vsel %vm439_vm5, %v4002_v22, %v4004_v56 }
 0x28b   : > { %11719 = vmatprep.mubr.msk.bf16.mxu1 %vm450_vm3, %v3995_v49  ;;  %11807 = vmatprep.mubr.msk.bf16.mxu0 %vm450_vm3, %v4928_v11  ;;  %v4984_v25 = vshrl.u32 %v3904_v55, 16  ;;  %v4987_v30 = vshll.u32 %v3904_v55, 16  ;;  %v4981_v49 = vor.u32 %v4980_v52, %v4977_v44  ;;  %v4993_v11 = vshrl.u32 %v14342_v18, 16  ;;  %v14389_v52 = vld [vmem:[#allocation2 + $0xb8] sm:$0xff] }
 0x28c   : > { %v4973_v21 = vsel %vm4839_vm9, %v4963_v0, %v4972_v2  ;;  %v4012_v44 = vrot.slane %v14361_v63, 4 }
 0x28d   : > { %v11509_v29 = vpop.f32.mrb[28].mxu1  ;;  %v11469_v33 = vpop.f32.mrb[28].mxu0  ;;  %v4986_v10 = vrot.slane %v4984_v25, 4  ;;  %v4989_v31 = vrot.slane %v4987_v30, 5  ;;  %v5032_v25 = vshll.u32 %v14389_v52, 16 }
 0x28e   : > { %1875 = vst.msk [vmem:[#allocation3 + $0x230] sm:$0xff] %vm450_vm3, %v11509_v29  ;;  %v1759_v46 = vpop.f32.mrb[29].mxu1  ;;  %1835 = vst.msk [vmem:[#allocation3 + $0xf0] sm:$0xff] %vm450_vm3, %v11469_v33  ;;  %v1599_v53 = vpop.f32.mrb[29].mxu0 }
 0x28f   : > { %1873 = vst.msk [vmem:[#allocation3 + $0x220] sm:$0xff] %vm450_vm3, %v1759_v46  ;;  %v11510_v37 = vpop.f32.mrb[30].mxu1  ;;  %1833 = vst.msk [vmem:[#allocation3 + $0xe0] sm:$0xff] %vm450_vm3, %v1599_v53  ;;  %v11470_v48 = vpop.f32.mrb[30].mxu0  ;;  %v4007_v46 = vsel %vm439_vm5, %v4004_v56, %v4006_v57  ;;  %v4982_v53 = vsel %vm4839_vm9, %v4972_v2, %v4981_v49  ;;  %v4990_v3 = vor.u32 %v4989_v31, %v4986_v10  ;;  %v2756_v31 = vld [vmem:[#allocation3 + $0x38] sm:$0xff] }
 0x290   : > { %1876 = vst.msk [vmem:[#allocation3 + $0x238] sm:$0xff] %vm450_vm3, %v11510_v37  ;;  %v1762_v26 = vpop.f32.mrb[31].mxu1  ;;  %1836 = vst.msk [vmem:[#allocation3 + $0xf8] sm:$0xff] %vm450_vm3, %v11470_v48  ;;  %v1602_v12 = vpop.f32.mrb[31].mxu0  ;;  %v4995_v37 = vrot.slane %v4993_v11, 4  ;;  %v4008_v48 = vrot.slane %v3904_v55, 4 }
 0x291   : > { %1874 = vst.msk [vmem:[#allocation3 + $0x228] sm:$0xff] %vm450_vm3, %v1762_v26  ;;  %1834 = vst.msk [vmem:[#allocation3 + $0xe8] sm:$0xff] %vm450_vm3, %v1602_v12  ;;  %v14365_v26 = vld [vmem:[#allocation2 + $0xa8] sm:$0xff]  ;;  %v5002_v12 = vshrl.u32 %v14361_v63, 16  ;;  %v2755_v11 = vld [vmem:[#allocation3 + $0x30] sm:$0xff] }
 0x292   : > { %11720 = vmatmul.mubr.msk.bf16.gmra.mrb[136].mxu1 %vm450_vm3, %v3997_v39  ;;  %11808 = vmatmul.mubr.msk.bf16.gmra.mrb[136].mxu0 %vm450_vm3, %v4937_v9  ;;  %v4998_v39 = vrot.slane %v4996_v5, 5  ;;  %v4010_v9 = vrot.slane %v14342_v18, 4  ;;  %v5011_v42 = vshrl.u32 %v14365_v26, 16  ;;  %v5014_v43 = vshll.u32 %v14365_v26, 16 }
 0x293   : > { %11723 = vmatprep.mubr.msk.bf16.mxu1 %vm450_vm3, %v3999_v19  ;;  %11811 = vmatprep.mubr.msk.bf16.mxu0 %vm450_vm3, %v4946_v27  ;;  %v5005_v19 = vshll.u32 %v14361_v63, 16  ;;  %v4009_v22 = vsel %vm439_vm5, %v4006_v57, %v4008_v48  ;;  %v5029_v18 = vshrl.u32 %v14389_v52, 16  ;;  %v4014_v30 = vrot.slane %v14365_v26, 4  ;;  %v2754_v63 = vld [vmem:[#allocation3 + $0x28] sm:$0xff] }
 0x294   : > { %v4999_v27 = vor.u32 %v4998_v39, %v4995_v37  ;;  %v4011_v13 = vsel %vm439_vm5, %v4008_v48, %v4010_v9 }
 0x295   : > { %v11513_v28 = vpop.f32.mrb[32].mxu1  ;;  %v11473_v36 = vpop.f32.mrb[32].mxu0 }
 0x296   : > { %1879 = vst.msk [vmem:[#allocation3 + $0x250] sm:$0xff] %vm450_vm3, %v11513_v28  ;;  %v1775_v51 = vpop.f32.mrb[33].mxu1  ;;  %1839 = vst.msk [vmem:[#allocation3 + $0x110] sm:$0xff] %vm450_vm3, %v11473_v36  ;;  %v1615_v8 = vpop.f32.mrb[33].mxu0  ;;  %v2752_v36 = vld [vmem:[#allocation3 + $0x18] sm:$0xff]  ;;  %v5000_v15 = vsel %vm4839_vm9, %v4990_v3, %v4999_v27 }
 0x297   : > { %1877 = vst.msk [vmem:[#allocation3 + $0x240] sm:$0xff] %vm450_vm3, %v1775_v51  ;;  %v11514_v45 = vpop.f32.mrb[34].mxu1  ;;  %1837 = vst.msk [vmem:[#allocation3 + $0x100] sm:$0xff] %vm450_vm3, %v1615_v8  ;;  %v11474_v17 = vpop.f32.mrb[34].mxu0  ;;  %v4991_v51 = vsel %vm4839_vm9, %v4981_v49, %v4990_v3  ;;  %v5004_v8 = vrot.slane %v5002_v12, 4  ;;  %v4015_v12 = vsel %vm439_vm5, %v4012_v44, %v4014_v30 }
 0x298   : > { %1880 = vst.msk [vmem:[#allocation3 + $0x258] sm:$0xff] %vm450_vm3, %v11514_v45  ;;  %v1778_v1 = vpop.f32.mrb[35].mxu1  ;;  %1840 = vst.msk [vmem:[#allocation3 + $0x118] sm:$0xff] %vm450_vm3, %v11474_v17  ;;  %v1618_v16 = vpop.f32.mrb[35].mxu0  ;;  %v5007_v45 = vrot.slane %v5005_v19, 5 }
 0x299   : > { %1878 = vst.msk [vmem:[#allocation3 + $0x248] sm:$0xff] %vm450_vm3, %v1778_v1  ;;  %1838 = vst.msk [vmem:[#allocation3 + $0x108] sm:$0xff] %vm450_vm3, %v1618_v16  ;;  %v5013_v1 = vrot.slane %v5011_v42, 4  ;;  %v5016_v16 = vrot.slane %v5014_v43, 5 }
 0x29a   : > { %11724 = vmatmul.mubr.msk.bf16.gmra.mrb[140].mxu1 %vm450_vm3, %v4001_v58  ;;  %11812 = vmatmul.mubr.msk.bf16.gmra.mrb[140].mxu0 %vm450_vm3, %v4955_v20  ;;  %v2750_v20 = vld [vmem:[#allocation3 + $0x8] sm:$0xff]  ;;  %v5008_v2 = vor.u32 %v5007_v45, %v5004_v8  ;;  %v2759_v8 = vld [vmem:[#allocation3 + $0x50] sm:$0xff] }
 0x29b   : > { %11727 = vmatprep.mubr.msk.bf16.mxu1 %vm450_vm3, %v4003_v23  ;;  %11815 = vmatprep.mubr.msk.bf16.mxu0 %vm450_vm3, %v4964_v4  ;;  %v14383_v4 = vld [vmem:[#allocation2 + $0xb0] sm:$0xff]  ;;  %v14399_v57 = vor.u32 %v5016_v16, %v5013_v1 }
 0x29c   : > { %v5020_v55 = vshrl.u32 %v14383_v4, 16  ;;  %v5023_v56 = vshll.u32 %v14383_v4, 16 }
 0x29d   : > { %v11517_v61 = vpop.f32.mrb[36].mxu1  ;;  %v11477_v24 = vpop.f32.mrb[36].mxu0  ;;  %v5018_v19 = vsel %vm4839_vm9, %v5008_v2, %v14399_v57 }
 0x29e   : > { %1883 = vst.msk [vmem:[#allocation3 + $0x270] sm:$0xff] %vm450_vm3, %v11517_v61  ;;  %v1791_v47 = vpop.f32.mrb[37].mxu1  ;;  %1843 = vst.msk [vmem:[#allocation3 + $0x130] sm:$0xff] %vm450_vm3, %v11477_v24  ;;  %v1631_v60 = vpop.f32.mrb[37].mxu0 }
 0x29f   : > { %1881 = vst.msk [vmem:[#allocation3 + $0x260] sm:$0xff] %vm450_vm3, %v1791_v47  ;;  %v11518_v41 = vpop.f32.mrb[38].mxu1  ;;  %1841 = vst.msk [vmem:[#allocation3 + $0x120] sm:$0xff] %vm450_vm3, %v1631_v60  ;;  %v11478_v40 = vpop.f32.mrb[38].mxu0  ;;  %v4013_v47 = vsel %vm439_vm5, %v4010_v9, %v4012_v44 }
 0x2a0   : > { %v1794_v29 = vpop.f32.mrb[39].mxu1  ;;  %1844 = vst.msk [vmem:[#allocation3 + $0x138] sm:$0xff] %vm450_vm3, %v11478_v40  ;;  %v1634_v33 = vpop.f32.mrb[39].mxu0  ;;  %v5022_v41 = vrot.slane %v5020_v55, 4  ;;  %v2760_v55 = vld [vmem:[#allocation3 + $0x58] sm:$0xff] }
 0x2a1   : > { %1882 = vst.msk [vmem:[#allocation3 + $0x268] sm:$0xff] %vm450_vm3, %v1794_v29  ;;  %1842 = vst.msk [vmem:[#allocation3 + $0x128] sm:$0xff] %vm450_vm3, %v1634_v33  ;;  %v5009_v33 = vsel %vm4839_vm9, %v4999_v27, %v5008_v2 }
 0x2a2   : > { %11728 = vmatmul.mubr.msk.bf16.gmra.mrb[144].mxu1 %vm450_vm3, %v4005_v54  ;;  %11816 = vmatmul.mubr.msk.bf16.gmra.mrb[144].mxu0 %vm450_vm3, %v4973_v21  ;;  %v5025_v54 = vrot.slane %v5023_v56, 5 }
 0x2a3   : > { %11731 = vmatprep.mubr.msk.bf16.mxu1 %vm450_vm3, %v4007_v46  ;;  %11819 = vmatprep.mubr.msk.bf16.mxu0 %vm450_vm3, %v4982_v53  ;;  %v5031_v46 = vrot.slane %v5029_v18, 4  ;;  %v5034_v53 = vrot.slane %v5032_v25, 5 }
 0x2a5   : > { %v11529_v34 = vpop.f32.mrb[40].mxu1  ;;  %v11617_v50 = vpop.f32.mrb[40].mxu0 }
 0x2a6   : > { %v2830_v7 = vadd.f32 %v11529_v34, %v2751_v14  ;;  %v2431_v59 = vpop.f32.mrb[41].mxu1  ;;  %v14372_v0 = vpop.f32.mrb[41].mxu0 }
 0x2a7   : > { %v2828_v35 = vadd.f32 %v2749_v62, %v2431_v59  ;;  %v11530_v28 = vpop.f32.mrb[42].mxu1  ;;  %v14375_v6 = vpop.f32.mrb[42].mxu0  ;;  %v14426_v59 = vld [vmem:[#allocation2 + $0xc0] sm:$0xff]  ;;  %v5026_v62 = vor.u32 %v5025_v54, %v5022_v41 }
 0x2a8   : > { %2909 = vst.msk [vmem:[#allocation3 + $0x10] sm:$0xff] %vm450_vm3, %v2830_v7  ;;  %v2831_v58 = vadd.f32 %v11530_v28, %v2752_v36  ;;  %v2434_v17 = vpop.f32.mrb[43].mxu1  ;;  %v14379_v32 = vpop.f32.mrb[43].mxu0  ;;  %v4018_v7 = vrot.slane %v14389_v52, 4  ;;  %v5041_v28 = vshll.u32 %v14426_v59, 16 }
 0x2a9   : > { %2907 = vst.msk [vmem:[#allocation3] sm:$0xff] %vm450_vm3, %v2828_v35  ;;  %v2829_v23 = vadd.f32 %v2750_v20, %v2434_v17  ;;  %v5038_v35 = vshrl.u32 %v14426_v59, 16  ;;  %v2757_v20 = vld [vmem:[#allocation3 + $0x40] sm:$0xff]  ;;  %v5027_v16 = vsel %vm4839_vm9, %v14399_v57, %v5026_v62 }
 0x2aa   : > { %2910 = vst.msk [vmem:[#allocation3 + $0x18] sm:$0xff] %vm450_vm3, %v2831_v58  ;;  %11732 = vmatmul.mubr.msk.bf16.gmra.mrb[148].mxu1 %vm450_vm3, %v4009_v22  ;;  %11820 = vmatmul.mubr.msk.bf16.gmra.mrb[148].mxu0 %vm450_vm3, %v4991_v51  ;;  %v5043_v18 = vrot.slane %v5041_v28, 5 }
 0x2ab   : > { %2908 = vst.msk [vmem:[#allocation3 + $0x8] sm:$0xff] %vm450_vm3, %v2829_v23  ;;  %11735 = vmatprep.mubr.msk.bf16.mxu1 %vm450_vm3, %v4011_v13  ;;  %11823 = vmatprep.mubr.msk.bf16.mxu0 %vm450_vm3, %v5000_v15  ;;  %v14435_v13 = vor.u32 %v5034_v53, %v5031_v46  ;;  %v5040_v2 = vrot.slane %v5038_v35, 4 }
 0x2ad   : > { %v11533_v49 = vpop.f32.mrb[44].mxu1  ;;  %v14401_v5 = vpop.f32.mrb[44].mxu0  ;;  %v5036_v26 = vsel %vm4839_vm9, %v5026_v62, %v14435_v13 }
 0x2ae   : > { %v2834_v61 = vadd.f32 %v11533_v49, %v2755_v11  ;;  %v2447_v24 = vpop.f32.mrb[45].mxu1  ;;  %v14404_v60 = vpop.f32.mrb[45].mxu0 }
 0x2af   : > { %v3653_v40 = vld [vmem:[#allocation3 + $0x10] sm:$0xff]  ;;  %v2832_v21 = vadd.f32 %v2753_v38, %v2447_v24  ;;  %v11534_v10 = vpop.f32.mrb[46].mxu1  ;;  %v14406_v29 = vpop.f32.mrb[46].mxu0 }
 0x2b0   : > { %2913 = vst.msk [vmem:[#allocation3 + $0x30] sm:$0xff] %vm450_vm3, %v2834_v61  ;;  %v3732_v37 = vadd.f32 %v11617_v50, %v3653_v40  ;;  %v3651_v39 = vld [vmem:[#allocation3] sm:$0xff]  ;;  %v2835_v48 = vadd.f32 %v11534_v10, %v2756_v31  ;;  %v2450_v9 = vpop.f32.mrb[47].mxu1  ;;  %v14410_v3 = vpop.f32.mrb[47].mxu0  ;;  %v4016_v50 = vrot.slane %v14383_v4, 4  ;;  %v2758_v61 = vld [vmem:[#allocation3 + $0x48] sm:$0xff] }
 0x2b1   : > { %2911 = vst.msk [vmem:[#allocation3 + $0x20] sm:$0xff] %vm450_vm3, %v2832_v21  ;;  %v3730_v27 = vadd.f32 %v3651_v39, %v14372_v0  ;;  %v3654_v42 = vld [vmem:[#allocation3 + $0x18] sm:$0xff]  ;;  %v2833_v43 = vadd.f32 %v2754_v63, %v2450_v9  ;;  %v14433_v0 = vld [vmem:[#allocation2 + $0xc8] sm:$0xff]  ;;  %v14465_v40 = vld [vmem:[#allocation2 + $0xd0] sm:$0xff]  ;;  %v4020_v10 = vrot.slane %v14426_v59, 4 }
 0x2b2   : > { %3811 = vst.msk [vmem:[#allocation3 + $0x10] sm:$0xff] %vm450_vm3, %v3732_v37  ;;  %2914 = vst.msk [vmem:[#allocation3 + $0x38] sm:$0xff] %vm450_vm3, %v2835_v48  ;;  %v3733_v34 = vadd.f32 %v14375_v6, %v3654_v42  ;;  %v3652_v14 = vld [vmem:[#allocation3 + $0x8] sm:$0xff]  ;;  %11736 = vmatmul.mubr.msk.bf16.gmra.mrb[152].mxu1 %vm450_vm3, %v4013_v47  ;;  %11824 = vmatmul.mubr.msk.bf16.gmra.mrb[152].mxu0 %vm450_vm3, %v5009_v33  ;;  %v5047_v36 = vshrl.u32 %v14433_v0, 16  ;;  %v5050_v6 = vshll.u32 %v14433_v0, 16  ;;  %v14473_v31 = vld [vmem:[#allocation2 + $0xd8] sm:$0xff] }
 0x2b3   : > { %3809 = vst.msk [vmem:[#allocation3] sm:$0xff] %vm450_vm3, %v3730_v27  ;;  %2912 = vst.msk [vmem:[#allocation3 + $0x28] sm:$0xff] %vm450_vm3, %v2833_v43  ;;  %v3731_v22 = vadd.f32 %v3652_v14, %v14379_v32  ;;  %11739 = vmatprep.mubr.msk.bf16.mxu1 %vm450_vm3, %v4015_v12  ;;  %11827 = vmatprep.mubr.msk.bf16.mxu0 %vm450_vm3, %v5018_v19  ;;  %v4017_v32 = vsel %vm439_vm5, %v4014_v30, %v4016_v50  ;;  %v5059_v33 = vshll.u32 %v14465_v40, 16  ;;  %v2763_v63 = vld [vmem:[#allocation3 + $0x70] sm:$0xff]  ;;  %v2761_v27 = vld [vmem:[#allocation3 + $0x60] sm:$0xff] }
 0x2b4   : > { %3812 = vst.msk [vmem:[#allocation3 + $0x18] sm:$0xff] %vm450_vm3, %v3733_v34  ;;  %v4019_v1 = vsel %vm439_vm5, %v4016_v50, %v4018_v7  ;;  %v5049_v24 = vrot.slane %v5047_v36, 4  ;;  %v5052_v38 = vrot.slane %v5050_v6, 5  ;;  %v5065_v53 = vshrl.u32 %v14473_v31, 16 }
 0x2b5   : > { %3810 = vst.msk [vmem:[#allocation3 + $0x8] sm:$0xff] %vm450_vm3, %v3731_v22  ;;  %v11537_v51 = vpop.f32.mrb[48].mxu1  ;;  %v14443_v45 = vpop.f32.mrb[48].mxu0  ;;  %v5068_v37 = vshll.u32 %v14473_v31, 16  ;;  %v4022_v39 = vrot.slane %v14433_v0, 4  ;;  %v4021_v42 = vsel %vm439_vm5, %v4018_v7, %v4020_v10  ;;  %v5061_v14 = vrot.slane %v5059_v33, 5 }
 0x2b6   : > { %v2838_v58 = vadd.f32 %v11537_v51, %v2759_v8  ;;  %v2463_v17 = vpop.f32.mrb[49].mxu1  ;;  %v14448_v15 = vpop.f32.mrb[49].mxu0  ;;  %v14486_v48 = vor.u32 %v5052_v38, %v5049_v24  ;;  %v2764_v22 = vld [vmem:[#allocation3 + $0x78] sm:$0xff]  ;;  %v5067_v36 = vrot.slane %v5065_v53, 4 }
 0x2b7   : > { %v3657_v23 = vld [vmem:[#allocation3 + $0x30] sm:$0xff]  ;;  %v2836_v4 = vadd.f32 %v2757_v20, %v2463_v17  ;;  %v11538_v44 = vpop.f32.mrb[50].mxu1  ;;  %v14455_v56 = vpop.f32.mrb[50].mxu0  ;;  %v5070_v6 = vrot.slane %v5068_v37, 5  ;;  %v4023_v20 = vsel %vm439_vm5, %v4020_v10, %v4022_v39  ;;  %v2768_v33 = vld [vmem:[#allocation3 + $0x98] sm:$0xff] }
 0x2b8   : > { %2917 = vst.msk [vmem:[#allocation3 + $0x50] sm:$0xff] %vm450_vm3, %v2838_v58  ;;  %v3736_v25 = vadd.f32 %v14401_v5, %v3657_v23  ;;  %v3655_v30 = vld [vmem:[#allocation3 + $0x20] sm:$0xff]  ;;  %v2839_v49 = vadd.f32 %v11538_v44, %v2760_v55  ;;  %v2466_v11 = vpop.f32.mrb[51].mxu1  ;;  %v14461_v57 = vpop.f32.mrb[51].mxu0  ;;  %v2762_v58 = vld [vmem:[#allocation3 + $0x68] sm:$0xff]  ;;  %v4026_v44 = vrot.slane %v14473_v31, 4 }
 0x2b9   : > { %2915 = vst.msk [vmem:[#allocation3 + $0x40] sm:$0xff] %vm450_vm3, %v2836_v4  ;;  %v3734_v47 = vadd.f32 %v3655_v30, %v14404_v60  ;;  %v3658_v41 = vld [vmem:[#allocation3 + $0x38] sm:$0xff]  ;;  %v2837_v54 = vadd.f32 %v2758_v61, %v2466_v11  ;;  %v5056_v60 = vshrl.u32 %v14465_v40, 16  ;;  %v4024_v4 = vrot.slane %v14465_v40, 4  ;;  %v2767_v61 = vld [vmem:[#allocation3 + $0x90] sm:$0xff] }
 0x2ba   : > { %3815 = vst.msk [vmem:[#allocation3 + $0x30] sm:$0xff] %vm450_vm3, %v3736_v25  ;;  %2918 = vst.msk [vmem:[#allocation3 + $0x58] sm:$0xff] %vm450_vm3, %v2839_v49  ;;  %v3737_v5 = vadd.f32 %v14406_v29, %v3658_v41  ;;  %v3656_v21 = vld [vmem:[#allocation3 + $0x28] sm:$0xff]  ;;  %11740 = vmatmul.mubr.msk.bf16.gmra.mrb[156].mxu1 %vm450_vm3, %v4017_v32  ;;  %11828 = vmatmul.mubr.msk.bf16.gmra.mrb[156].mxu0 %vm450_vm3, %v5027_v16  ;;  %v5044_v29 = vor.u32 %v5043_v18, %v5040_v2  ;;  %v14518_v55 = vld [vmem:[#allocation2 + $0xe0] sm:$0xff] }
 0x2bb   : > { %3813 = vst.msk [vmem:[#allocation3 + $0x20] sm:$0xff] %vm450_vm3, %v3734_v47  ;;  %2916 = vst.msk [vmem:[#allocation3 + $0x48] sm:$0xff] %vm450_vm3, %v2837_v54  ;;  %v3735_v46 = vadd.f32 %v3656_v21, %v14410_v3  ;;  %11743 = vmatprep.mubr.msk.bf16.mxu1 %vm450_vm3, %v4019_v1  ;;  %11831 = vmatprep.mubr.msk.bf16.mxu0 %vm450_vm3, %v5036_v26  ;;  %v5058_v34 = vrot.slane %v5056_v60, 4  ;;  %v14527_v2 = vor.u32 %v5070_v6, %v5067_v36  ;;  %v2765_v47 = vld [vmem:[#allocation3 + $0x80] sm:$0xff] }
 0x2bc   : > { %3816 = vst.msk [vmem:[#allocation3 + $0x38] sm:$0xff] %vm450_vm3, %v3737_v5  ;;  %v5045_v28 = vsel %vm4839_vm9, %v14435_v13, %v5044_v29  ;;  %v5054_v32 = vsel %vm4839_vm9, %v5044_v29, %v14486_v48  ;;  %v5074_v18 = vshrl.u32 %v14518_v55, 16  ;;  %v5077_v25 = vshll.u32 %v14518_v55, 16 }
 0x2bd   : > { %3814 = vst.msk [vmem:[#allocation3 + $0x28] sm:$0xff] %vm450_vm3, %v3735_v46  ;;  %v11541_v9 = vpop.f32.mrb[52].mxu1  ;;  %v14489_v3 = vpop.f32.mrb[52].mxu0  ;;  %v4025_v41 = vsel %vm439_vm5, %v4022_v39, %v4024_v4  ;;  %v4027_v40 = vsel %vm439_vm5, %v4024_v4, %v4026_v44 }
 0x2be   : > { %v2842_v12 = vadd.f32 %v11541_v9, %v2763_v63  ;;  %v2479_v19 = vpop.f32.mrb[53].mxu1  ;;  %v14494_v43 = vpop.f32.mrb[53].mxu0  ;;  %v5076_v29 = vrot.slane %v5074_v18, 4  ;;  %v5079_v53 = vrot.slane %v5077_v25, 5 }
 0x2bf   : > { %v3661_v50 = vld [vmem:[#allocation3 + $0x50] sm:$0xff]  ;;  %v2840_v59 = vadd.f32 %v2761_v27, %v2479_v19  ;;  %v11542_v62 = vpop.f32.mrb[54].mxu1  ;;  %v14496_v35 = vpop.f32.mrb[54].mxu0 }
 0x2c0   : > { %2921 = vst.msk [vmem:[#allocation3 + $0x70] sm:$0xff] %vm450_vm3, %v2842_v12  ;;  %v3740_v52 = vadd.f32 %v14443_v45, %v3661_v50  ;;  %v3659_v7 = vld [vmem:[#allocation3 + $0x40] sm:$0xff]  ;;  %v2843_v51 = vadd.f32 %v11542_v62, %v2764_v22  ;;  %v2482_v8 = vpop.f32.mrb[55].mxu1  ;;  %v14502_v17 = vpop.f32.mrb[55].mxu0  ;;  %v2766_v12 = vld [vmem:[#allocation3 + $0x88] sm:$0xff]  ;;  %v4028_v62 = vrot.slane %v14518_v55, 4 }
 0x2c1   : > { %2919 = vst.msk [vmem:[#allocation3 + $0x60] sm:$0xff] %vm450_vm3, %v2840_v59  ;;  %v3738_v13 = vadd.f32 %v3659_v7, %v14448_v15  ;;  %v3662_v1 = vld [vmem:[#allocation3 + $0x58] sm:$0xff]  ;;  %v2841_v16 = vadd.f32 %v2762_v58, %v2482_v8  ;;  %v5062_v15 = vor.u32 %v5061_v14, %v5058_v34  ;;  %v14557_v50 = vld [vmem:[#allocation2 + $0xf0] sm:$0xff]  ;;  %v14565_v22 = vld [vmem:[#allocation2 + $0xf8] sm:$0xff] }
 0x2c2   : > { %3819 = vst.msk [vmem:[#allocation3 + $0x50] sm:$0xff] %vm450_vm3, %v3740_v52  ;;  %2922 = vst.msk [vmem:[#allocation3 + $0x78] sm:$0xff] %vm450_vm3, %v2843_v51  ;;  %v3741_v45 = vadd.f32 %v14455_v56, %v3662_v1  ;;  %v3660_v23 = vld [vmem:[#allocation3 + $0x48] sm:$0xff]  ;;  %11744 = vmatmul.mubr.msk.bf16.gmra.mrb[160].mxu1 %vm450_vm3, %v4021_v42  ;;  %11832 = vmatmul.mubr.msk.bf16.gmra.mrb[160].mxu0 %vm450_vm3, %v5045_v28  ;;  %v14525_v56 = vld [vmem:[#allocation2 + $0xe8] sm:$0xff]  ;;  %v5095_v28 = vshll.u32 %v14557_v50, 16  ;;  %v5101_v6 = vshrl.u32 %v14565_v22, 16 }
 0x2c3   : > { %3817 = vst.msk [vmem:[#allocation3 + $0x40] sm:$0xff] %vm450_vm3, %v3738_v13  ;;  %2920 = vst.msk [vmem:[#allocation3 + $0x68] sm:$0xff] %vm450_vm3, %v2841_v16  ;;  %v3739_v26 = vadd.f32 %v3660_v23, %v14461_v57  ;;  %11747 = vmatprep.mubr.msk.bf16.mxu1 %vm450_vm3, %v4023_v20  ;;  %11835 = vmatprep.mubr.msk.bf16.mxu0 %vm450_vm3, %v5054_v32  ;;  %v5083_v30 = vshrl.u32 %v14525_v56, 16  ;;  %v5086_v49 = vshll.u32 %v14525_v56, 16  ;;  %v5104_v52 = vshll.u32 %v14565_v22, 16  ;;  %v2771_v58 = vld [vmem:[#allocation3 + $0xb0] sm:$0xff] }
 0x2c4   : > { %3820 = vst.msk [vmem:[#allocation3 + $0x58] sm:$0xff] %vm450_vm3, %v3741_v45  ;;  %v5063_v5 = vsel %vm4839_vm9, %v14486_v48, %v5062_v15  ;;  %v5072_v0 = vsel %vm4839_vm9, %v5062_v15, %v14527_v2  ;;  %v4030_v7 = vrot.slane %v14525_v56, 4  ;;  %v2769_v13 = vld [vmem:[#allocation3 + $0xa0] sm:$0xff]  ;;  %v4029_v1 = vsel %vm439_vm5, %v4026_v44, %v4028_v62 }
 0x2c5   : > { %3818 = vst.msk [vmem:[#allocation3 + $0x48] sm:$0xff] %vm450_vm3, %v3739_v26  ;;  %v11545_v11 = vpop.f32.mrb[56].mxu1  ;;  %v14535_v57 = vpop.f32.mrb[56].mxu0  ;;  %v5085_v19 = vrot.slane %v5083_v30, 4  ;;  %v5088_v27 = vrot.slane %v5086_v49, 5  ;;  %v5097_v23 = vrot.slane %v5095_v28, 5 }
 0x2c6   : > { %v2846_v24 = vadd.f32 %v11545_v11, %v2767_v61  ;;  %v2495_v38 = vpop.f32.mrb[57].mxu1  ;;  %v14540_v54 = vpop.f32.mrb[57].mxu0  ;;  %v2772_v26 = vld [vmem:[#allocation3 + $0xb8] sm:$0xff]  ;;  %v5103_v30 = vrot.slane %v5101_v6, 4  ;;  %v5106_v49 = vrot.slane %v5104_v52, 5 }
 0x2c7   : > { %v3665_v21 = vld [vmem:[#allocation3 + $0x70] sm:$0xff]  ;;  %v2844_v10 = vadd.f32 %v2765_v47, %v2495_v38  ;;  %v11546_v60 = vpop.f32.mrb[58].mxu1  ;;  %v14547_v46 = vpop.f32.mrb[58].mxu0  ;;  %v14578_v51 = vor.u32 %v5088_v27, %v5085_v19  ;;  %v4031_v47 = vsel %vm439_vm5, %v4028_v62, %v4030_v7  ;;  %v2776_v28 = vld [vmem:[#allocation3 + $0xd8] sm:$0xff] }
 0x2c8   : > { %2925 = vst.msk [vmem:[#allocation3 + $0x90] sm:$0xff] %vm450_vm3, %v2846_v24  ;;  %v3744_v37 = vadd.f32 %v14489_v3, %v3665_v21  ;;  %v3663_v39 = vld [vmem:[#allocation3 + $0x60] sm:$0xff]  ;;  %v2847_v9 = vadd.f32 %v11546_v60, %v2768_v33  ;;  %v2498_v63 = vpop.f32.mrb[59].mxu1  ;;  %v14553_v48 = vpop.f32.mrb[59].mxu0  ;;  %v2770_v24 = vld [vmem:[#allocation3 + $0xa8] sm:$0xff]  ;;  %v4034_v60 = vrot.slane %v14565_v22, 4 }
 0x2c9   : > { %2923 = vst.msk [vmem:[#allocation3 + $0x80] sm:$0xff] %vm450_vm3, %v2844_v10  ;;  %v3742_v42 = vadd.f32 %v3663_v39, %v14494_v43  ;;  %v3666_v34 = vld [vmem:[#allocation3 + $0x78] sm:$0xff]  ;;  %v2845_v14 = vadd.f32 %v2766_v12, %v2498_v63  ;;  %v5092_v43 = vshrl.u32 %v14557_v50, 16  ;;  %v4032_v10 = vrot.slane %v14557_v50, 4  ;;  %v2775_v12 = vld [vmem:[#allocation3 + $0xd0] sm:$0xff] }
 0x2ca   : > { %3823 = vst.msk [vmem:[#allocation3 + $0x70] sm:$0xff] %vm450_vm3, %v3744_v37  ;;  %2926 = vst.msk [vmem:[#allocation3 + $0x98] sm:$0xff] %vm450_vm3, %v2847_v9  ;;  %v3745_v3 = vadd.f32 %v14496_v35, %v3666_v34  ;;  %v3664_v59 = vld [vmem:[#allocation3 + $0x68] sm:$0xff]  ;;  %11748 = vmatmul.mubr.msk.bf16.gmra.mrb[164].mxu1 %vm450_vm3, %v4025_v41  ;;  %11836 = vmatmul.mubr.msk.bf16.gmra.mrb[164].mxu0 %vm450_vm3, %v5063_v5  ;;  %v5080_v35 = vor.u32 %v5079_v53, %v5076_v29  ;;  %v14610_v33 = vld [vmem:[#allocation2 + $0x100] sm:$0xff] }
 0x2cb   : > { %3821 = vst.msk [vmem:[#allocation3 + $0x60] sm:$0xff] %vm450_vm3, %v3742_v42  ;;  %2924 = vst.msk [vmem:[#allocation3 + $0x88] sm:$0xff] %vm450_vm3, %v2845_v14  ;;  %v3743_v36 = vadd.f32 %v3664_v59, %v14502_v17  ;;  %11751 = vmatprep.mubr.msk.bf16.mxu1 %vm450_vm3, %v4027_v40  ;;  %11839 = vmatprep.mubr.msk.bf16.mxu0 %vm450_vm3, %v5072_v0  ;;  %v5094_v45 = vrot.slane %v5092_v43, 4  ;;  %v14619_v29 = vor.u32 %v5106_v49, %v5103_v30  ;;  %v2773_v42 = vld [vmem:[#allocation3 + $0xc0] sm:$0xff] }
 0x2cc   : > { %3824 = vst.msk [vmem:[#allocation3 + $0x78] sm:$0xff] %vm450_vm3, %v3745_v3  ;;  %v5081_v25 = vsel %vm4839_vm9, %v14527_v2, %v5080_v35  ;;  %v5090_v41 = vsel %vm4839_vm9, %v5080_v35, %v14578_v51  ;;  %v5110_v53 = vshrl.u32 %v14610_v33, 16  ;;  %v5113_v37 = vshll.u32 %v14610_v33, 16 }
 0x2cd   : > { %3822 = vst.msk [vmem:[#allocation3 + $0x68] sm:$0xff] %vm450_vm3, %v3743_v36  ;;  %v11549_v8 = vpop.f32.mrb[60].mxu1  ;;  %v14581_v17 = vpop.f32.mrb[60].mxu0  ;;  %v4033_v34 = vsel %vm439_vm5, %v4030_v7, %v4032_v10  ;;  %v4035_v50 = vsel %vm439_vm5, %v4032_v10, %v4034_v60 }
 0x2ce   : > { %v2850_v20 = vadd.f32 %v11549_v8, %v2771_v58  ;;  %v2511_v32 = vpop.f32.mrb[61].mxu1  ;;  %v14586_v16 = vpop.f32.mrb[61].mxu0  ;;  %v5112_v35 = vrot.slane %v5110_v53, 4  ;;  %v5115_v6 = vrot.slane %v5113_v37, 5 }
 0x2cf   : > { %v3669_v4 = vld [vmem:[#allocation3 + $0x90] sm:$0xff]  ;;  %v2848_v55 = vadd.f32 %v2769_v13, %v2511_v32  ;;  %v11550_v15 = vpop.f32.mrb[62].mxu1  ;;  %v14588_v18 = vpop.f32.mrb[62].mxu0 }
 0x2d0   : > { %2929 = vst.msk [vmem:[#allocation3 + $0xb0] sm:$0xff] %vm450_vm3, %v2850_v20  ;;  %v3748_v31 = vadd.f32 %v14535_v57, %v3669_v4  ;;  %v3667_v44 = vld [vmem:[#allocation3 + $0x80] sm:$0xff]  ;;  %v2851_v11 = vadd.f32 %v11550_v15, %v2772_v26  ;;  %v2514_v61 = vpop.f32.mrb[63].mxu1  ;;  %v14594_v38 = vpop.f32.mrb[63].mxu0  ;;  %v2774_v20 = vld [vmem:[#allocation3 + $0xc8] sm:$0xff]  ;;  %v4036_v15 = vrot.slane %v14610_v33, 4 }
 0x2d1   : > { %2927 = vst.msk [vmem:[#allocation3 + $0xa0] sm:$0xff] %vm450_vm3, %v2848_v55  ;;  %v3746_v2 = vadd.f32 %v3667_v44, %v14540_v54  ;;  %v3670_v40 = vld [vmem:[#allocation3 + $0x98] sm:$0xff]  ;;  %v2849_v5 = vadd.f32 %v2770_v24, %v2514_v61  ;;  %v5098_v54 = vor.u32 %v5097_v23, %v5094_v45  ;;  %v14649_v4 = vld [vmem:[#allocation2 + $0x110] sm:$0xff]  ;;  %v14657_v26 = vld [vmem:[#allocation2 + $0x118] sm:$0xff] }
 0x2d2   : > { %3827 = vst.msk [vmem:[#allocation3 + $0x90] sm:$0xff] %vm450_vm3, %v3748_v31  ;;  %2930 = vst.msk [vmem:[#allocation3 + $0xb8] sm:$0xff] %vm450_vm3, %v2851_v11  ;;  %v3749_v57 = vadd.f32 %v14547_v46, %v3670_v40  ;;  %v3668_v21 = vld [vmem:[#allocation3 + $0x88] sm:$0xff]  ;;  %11752 = vmatmul.mubr.msk.bf16.gmra.mrb[168].mxu1 %vm450_vm3, %v4029_v1  ;;  %11840 = vmatmul.mubr.msk.bf16.gmra.mrb[168].mxu0 %vm450_vm3, %v5081_v25  ;;  %v14617_v46 = vld [vmem:[#allocation2 + $0x108] sm:$0xff]  ;;  %v5131_v25 = vshll.u32 %v14649_v4, 16  ;;  %v5137_v49 = vshrl.u32 %v14657_v26, 16 }
 0x2d3   : > { %3825 = vst.msk [vmem:[#allocation3 + $0x80] sm:$0xff] %vm450_vm3, %v3746_v2  ;;  %2928 = vst.msk [vmem:[#allocation3 + $0xa8] sm:$0xff] %vm450_vm3, %v2849_v5  ;;  %v3747_v0 = vadd.f32 %v3668_v21, %v14553_v48  ;;  %11755 = vmatprep.mubr.msk.bf16.mxu1 %vm450_vm3, %v4031_v47  ;;  %11843 = vmatprep.mubr.msk.bf16.mxu0 %vm450_vm3, %v5090_v41  ;;  %v5119_v39 = vshrl.u32 %v14617_v46, 16  ;;  %v5122_v9 = vshll.u32 %v14617_v46, 16  ;;  %v5140_v31 = vshll.u32 %v14657_v26, 16  ;;  %v2779_v24 = vld [vmem:[#allocation3 + $0xf0] sm:$0xff] }
 0x2d4   : > { %3828 = vst.msk [vmem:[#allocation3 + $0x98] sm:$0xff] %vm450_vm3, %v3749_v57  ;;  %v5099_v3 = vsel %vm4839_vm9, %v14578_v51, %v5098_v54  ;;  %v5108_v56 = vsel %vm4839_vm9, %v5098_v54, %v14619_v29  ;;  %v4038_v44 = vrot.slane %v14617_v46, 4  ;;  %v2777_v2 = vld [vmem:[#allocation3 + $0xe0] sm:$0xff]  ;;  %v4037_v40 = vsel %vm439_vm5, %v4034_v60, %v4036_v15 }
 0x2d5   : > { %3826 = vst.msk [vmem:[#allocation3 + $0x88] sm:$0xff] %vm450_vm3, %v3747_v0  ;;  %v11553_v63 = vpop.f32.mrb[64].mxu1  ;;  %v14627_v48 = vpop.f32.mrb[64].mxu0  ;;  %v5121_v32 = vrot.slane %v5119_v39, 4  ;;  %v5124_v13 = vrot.slane %v5122_v9, 5  ;;  %v5133_v21 = vrot.slane %v5131_v25, 5 }
 0x2d6   : > { %v2854_v19 = vadd.f32 %v11553_v63, %v2775_v12  ;;  %v2527_v27 = vpop.f32.mrb[65].mxu1  ;;  %v14632_v14 = vpop.f32.mrb[65].mxu0  ;;  %v2780_v0 = vld [vmem:[#allocation3 + $0xf8] sm:$0xff]  ;;  %v5139_v39 = vrot.slane %v5137_v49, 4  ;;  %v5142_v9 = vrot.slane %v5140_v31, 5 }
 0x2d7   : > { %v3673_v59 = vld [vmem:[#allocation3 + $0xb0] sm:$0xff]  ;;  %v2852_v62 = vadd.f32 %v2773_v42, %v2527_v27  ;;  %v11554_v43 = vpop.f32.mrb[66].mxu1  ;;  %v14639_v36 = vpop.f32.mrb[66].mxu0  ;;  %v14670_v11 = vor.u32 %v5124_v13, %v5121_v32  ;;  %v4039_v42 = vsel %vm439_vm5, %v4036_v15, %v4038_v44  ;;  %v2784_v25 = vld [vmem:[#allocation3 + $0x118] sm:$0xff] }
 0x2d8   : > { %2933 = vst.msk [vmem:[#allocation3 + $0xd0] sm:$0xff] %vm450_vm3, %v2854_v19  ;;  %v3752_v52 = vadd.f32 %v14581_v17, %v3673_v59  ;;  %v3671_v7 = vld [vmem:[#allocation3 + $0xa0] sm:$0xff]  ;;  %v2855_v8 = vadd.f32 %v11554_v43, %v2776_v28  ;;  %v2530_v58 = vpop.f32.mrb[67].mxu1  ;;  %v14645_v51 = vpop.f32.mrb[67].mxu0  ;;  %v2778_v19 = vld [vmem:[#allocation3 + $0xe8] sm:$0xff]  ;;  %v4042_v43 = vrot.slane %v14657_v26, 4 }
 0x2d9   : > { %2931 = vst.msk [vmem:[#allocation3 + $0xc0] sm:$0xff] %vm450_vm3, %v2852_v62  ;;  %v3750_v1 = vadd.f32 %v3671_v7, %v14586_v16  ;;  %v3674_v45 = vld [vmem:[#allocation3 + $0xb8] sm:$0xff]  ;;  %v2853_v23 = vadd.f32 %v2774_v20, %v2530_v58  ;;  %v5128_v16 = vshrl.u32 %v14649_v4, 16  ;;  %v4040_v62 = vrot.slane %v14649_v4, 4  ;;  %v2783_v20 = vld [vmem:[#allocation3 + $0x110] sm:$0xff] }
 0x2da   : > { %3831 = vst.msk [vmem:[#allocation3 + $0xb0] sm:$0xff] %vm450_vm3, %v3752_v52  ;;  %2934 = vst.msk [vmem:[#allocation3 + $0xd8] sm:$0xff] %vm450_vm3, %v2855_v8  ;;  %v3753_v17 = vadd.f32 %v14588_v18, %v3674_v45  ;;  %v3672_v55 = vld [vmem:[#allocation3 + $0xa8] sm:$0xff]  ;;  %11756 = vmatmul.mubr.msk.bf16.gmra.mrb[172].mxu1 %vm450_vm3, %v4033_v34  ;;  %11844 = vmatmul.mubr.msk.bf16.gmra.mrb[172].mxu0 %vm450_vm3, %v5099_v3  ;;  %v5116_v18 = vor.u32 %v5115_v6, %v5112_v35  ;;  %v14702_v28 = vld [vmem:[#allocation2 + $0x120] sm:$0xff] }
 0x2db   : > { %3829 = vst.msk [vmem:[#allocation3 + $0xa0] sm:$0xff] %vm450_vm3, %v3750_v1  ;;  %2932 = vst.msk [vmem:[#allocation3 + $0xc8] sm:$0xff] %vm450_vm3, %v2853_v23  ;;  %v3751_v30 = vadd.f32 %v3672_v55, %v14594_v38  ;;  %11759 = vmatprep.mubr.msk.bf16.mxu1 %vm450_vm3, %v4035_v50  ;;  %11847 = vmatprep.mubr.msk.bf16.mxu0 %vm450_vm3, %v5108_v56  ;;  %v5130_v57 = vrot.slane %v5128_v16, 4  ;;  %v14711_v35 = vor.u32 %v5142_v9, %v5139_v39  ;;  %v2781_v1 = vld [vmem:[#allocation3 + $0x100] sm:$0xff] }
 0x2dc   : > { %3832 = vst.msk [vmem:[#allocation3 + $0xb8] sm:$0xff] %vm450_vm3, %v3753_v17  ;;  %v5117_v37 = vsel %vm4839_vm9, %v14619_v29, %v5116_v18  ;;  %v5126_v34 = vsel %vm4839_vm9, %v5116_v18, %v14670_v11  ;;  %v5146_v6 = vshrl.u32 %v14702_v28, 16  ;;  %v5149_v52 = vshll.u32 %v14702_v28, 16 }
 0x2dd   : > { %3830 = vst.msk [vmem:[#allocation3 + $0xa8] sm:$0xff] %vm450_vm3, %v3751_v30  ;;  %v11557_v61 = vpop.f32.mrb[68].mxu1  ;;  %v14673_v38 = vpop.f32.mrb[68].mxu0  ;;  %v4041_v45 = vsel %vm439_vm5, %v4038_v44, %v4040_v62  ;;  %v4043_v4 = vsel %vm439_vm5, %v4040_v62, %v4042_v43 }
 0x2de   : > { %v2858_v47 = vadd.f32 %v11557_v61, %v2779_v24  ;;  %v2543_v41 = vpop.f32.mrb[69].mxu1  ;;  %v14678_v5 = vpop.f32.mrb[69].mxu0  ;;  %v5148_v18 = vrot.slane %v5146_v6, 4  ;;  %v5151_v49 = vrot.slane %v5149_v52, 5 }
 0x2df   : > { %v3677_v10 = vld [vmem:[#allocation3 + $0xd0] sm:$0xff]  ;;  %v2856_v33 = vadd.f32 %v2777_v2, %v2543_v41  ;;  %v11558_v54 = vpop.f32.mrb[70].mxu1  ;;  %v14680_v53 = vpop.f32.mrb[70].mxu0 }
 0x2e0   : > { %2937 = vst.msk [vmem:[#allocation3 + $0xf0] sm:$0xff] %vm450_vm3, %v2858_v47  ;;  %v3756_v22 = vadd.f32 %v14627_v48, %v3677_v10  ;;  %v3675_v60 = vld [vmem:[#allocation3 + $0xc0] sm:$0xff]  ;;  %v2859_v63 = vadd.f32 %v11558_v54, %v2780_v0  ;;  %v2546_v12 = vpop.f32.mrb[71].mxu1  ;;  %v14686_v27 = vpop.f32.mrb[71].mxu0  ;;  %v2782_v47 = vld [vmem:[#allocation3 + $0x108] sm:$0xff]  ;;  %v4044_v54 = vrot.slane %v14702_v28, 4 }
 0x2e1   : > { %2935 = vst.msk [vmem:[#allocation3 + $0xe0] sm:$0xff] %vm450_vm3, %v2856_v33  ;;  %v3754_v29 = vadd.f32 %v3675_v60, %v14632_v14  ;;  %v3678_v50 = vld [vmem:[#allocation3 + $0xd8] sm:$0xff]  ;;  %v2857_v3 = vadd.f32 %v2778_v19, %v2546_v12  ;;  %v5134_v14 = vor.u32 %v5133_v21, %v5130_v57  ;;  %v14741_v10 = vld [vmem:[#allocation2 + $0x130] sm:$0xff]  ;;  %v14749_v0 = vld [vmem:[#allocation2 + $0x138] sm:$0xff] }
 0x2e2   : > { %3835 = vst.msk [vmem:[#allocation3 + $0xd0] sm:$0xff] %vm450_vm3, %v3756_v22  ;;  %2938 = vst.msk [vmem:[#allocation3 + $0xf8] sm:$0xff] %vm450_vm3, %v2859_v63  ;;  %v3757_v48 = vadd.f32 %v14639_v36, %v3678_v50  ;;  %v3676_v59 = vld [vmem:[#allocation3 + $0xc8] sm:$0xff]  ;;  %11760 = vmatmul.mubr.msk.bf16.gmra.mrb[176].mxu1 %vm450_vm3, %v4037_v40  ;;  %11848 = vmatmul.mubr.msk.bf16.gmra.mrb[176].mxu0 %vm450_vm3, %v5117_v37  ;;  %v14709_v36 = vld [vmem:[#allocation2 + $0x128] sm:$0xff]  ;;  %v5167_v37 = vshll.u32 %v14741_v10, 16  ;;  %v5173_v9 = vshrl.u32 %v14749_v0, 16 }
 0x2e3   : > { %3833 = vst.msk [vmem:[#allocation3 + $0xc0] sm:$0xff] %vm450_vm3, %v3754_v29  ;;  %2936 = vst.msk [vmem:[#allocation3 + $0xe8] sm:$0xff] %vm450_vm3, %v2857_v3  ;;  %v3755_v56 = vadd.f32 %v3676_v59, %v14645_v51  ;;  %11763 = vmatprep.mubr.msk.bf16.mxu1 %vm450_vm3, %v4039_v42  ;;  %11851 = vmatprep.mubr.msk.bf16.mxu0 %vm450_vm3, %v5126_v34  ;;  %v5155_v7 = vshrl.u32 %v14709_v36, 16  ;;  %v5158_v8 = vshll.u32 %v14709_v36, 16  ;;  %v5176_v22 = vshll.u32 %v14749_v0, 16  ;;  %v2787_v19 = vld [vmem:[#allocation3 + $0x130] sm:$0xff] }
 0x2e4   : > { %3836 = vst.msk [vmem:[#allocation3 + $0xd8] sm:$0xff] %vm450_vm3, %v3757_v48  ;;  %v5135_v17 = vsel %vm4839_vm9, %v14670_v11, %v5134_v14  ;;  %v5144_v46 = vsel %vm4839_vm9, %v5134_v14, %v14711_v35  ;;  %v4046_v60 = vrot.slane %v14709_v36, 4  ;;  %v2785_v29 = vld [vmem:[#allocation3 + $0x120] sm:$0xff]  ;;  %v4045_v50 = vsel %vm439_vm5, %v4042_v43, %v4044_v54 }
 0x2e5   : > { %3834 = vst.msk [vmem:[#allocation3 + $0xc8] sm:$0xff] %vm450_vm3, %v3755_v56  ;;  %v11561_v58 = vpop.f32.mrb[72].mxu1  ;;  %v14719_v51 = vpop.f32.mrb[72].mxu0  ;;  %v5157_v41 = vrot.slane %v5155_v7, 4  ;;  %v5160_v2 = vrot.slane %v5158_v8, 5  ;;  %v5169_v59 = vrot.slane %v5167_v37, 5 }
 0x2e6   : > { %v2862_v32 = vadd.f32 %v11561_v58, %v2783_v20  ;;  %v2559_v13 = vpop.f32.mrb[73].mxu1  ;;  %v14724_v23 = vpop.f32.mrb[73].mxu0  ;;  %v2788_v56 = vld [vmem:[#allocation3 + $0x138] sm:$0xff]  ;;  %v5175_v7 = vrot.slane %v5173_v9, 4  ;;  %v5178_v8 = vrot.slane %v5176_v22, 5 }
 0x2e7   : > { %v3681_v55 = vld [vmem:[#allocation3 + $0xf0] sm:$0xff]  ;;  %v2860_v15 = vadd.f32 %v2781_v1, %v2559_v13  ;;  %v11562_v16 = vpop.f32.mrb[74].mxu1  ;;  %v14731_v30 = vpop.f32.mrb[74].mxu0  ;;  %v14762_v63 = vor.u32 %v5160_v2, %v5157_v41  ;;  %v4047_v1 = vsel %vm439_vm5, %v4044_v54, %v4046_v60  ;;  %v2792_v37 = vld [vmem:[#allocation3 + $0x158] sm:$0xff] }
 0x2e8   : > { %2941 = vst.msk [vmem:[#allocation3 + $0x110] sm:$0xff] %vm450_vm3, %v2862_v32  ;;  %v3760_v31 = vadd.f32 %v14673_v38, %v3681_v55  ;;  %v3679_v44 = vld [vmem:[#allocation3 + $0xe0] sm:$0xff]  ;;  %v2863_v61 = vadd.f32 %v11562_v16, %v2784_v25  ;;  %v2562_v24 = vpop.f32.mrb[75].mxu1  ;;  %v14737_v11 = vpop.f32.mrb[75].mxu0  ;;  %v2786_v32 = vld [vmem:[#allocation3 + $0x128] sm:$0xff]  ;;  %v4050_v16 = vrot.slane %v14749_v0, 4 }
 0x2e9   : > { %2939 = vst.msk [vmem:[#allocation3 + $0x100] sm:$0xff] %vm450_vm3, %v2860_v15  ;;  %v3758_v40 = vadd.f32 %v3679_v44, %v14678_v5  ;;  %v3682_v57 = vld [vmem:[#allocation3 + $0xf8] sm:$0xff]  ;;  %v2861_v21 = vadd.f32 %v2782_v47, %v2562_v24  ;;  %v5164_v5 = vshrl.u32 %v14741_v10, 16  ;;  %v4048_v15 = vrot.slane %v14741_v10, 4  ;;  %v2791_v47 = vld [vmem:[#allocation3 + $0x150] sm:$0xff] }
 0x2ea   : > { %3839 = vst.msk [vmem:[#allocation3 + $0xf0] sm:$0xff] %vm450_vm3, %v3760_v31  ;;  %2942 = vst.msk [vmem:[#allocation3 + $0x118] sm:$0xff] %vm450_vm3, %v2863_v61  ;;  %v3761_v38 = vadd.f32 %v14680_v53, %v3682_v57  ;;  %v3680_v33 = vld [vmem:[#allocation3 + $0xe8] sm:$0xff]  ;;  %11764 = vmatmul.mubr.msk.bf16.gmra.mrb[180].mxu1 %vm450_vm3, %v4041_v45  ;;  %11852 = vmatmul.mubr.msk.bf16.gmra.mrb[180].mxu0 %vm450_vm3, %v5135_v17  ;;  %v5152_v53 = vor.u32 %v5151_v49, %v5148_v18  ;;  %v14794_v25 = vld [vmem:[#allocation2 + $0x140] sm:$0xff] }
 0x2eb   : > { %3837 = vst.msk [vmem:[#allocation3 + $0xe0] sm:$0xff] %vm450_vm3, %v3758_v40  ;;  %2940 = vst.msk [vmem:[#allocation3 + $0x108] sm:$0xff] %vm450_vm3, %v2861_v21  ;;  %v3759_v39 = vadd.f32 %v3680_v33, %v14686_v27  ;;  %11767 = vmatprep.mubr.msk.bf16.mxu1 %vm450_vm3, %v4043_v4  ;;  %11855 = vmatprep.mubr.msk.bf16.mxu0 %vm450_vm3, %v5144_v46  ;;  %v5166_v48 = vrot.slane %v5164_v5, 4  ;;  %v14803_v18 = vor.u32 %v5178_v8, %v5175_v7  ;;  %v2789_v40 = vld [vmem:[#allocation3 + $0x140] sm:$0xff]  ;;  %v2795_v8 = vld [vmem:[#allocation3 + $0x170] sm:$0xff] }
 0x2ec   : > { %3840 = vst.msk [vmem:[#allocation3 + $0xf8] sm:$0xff] %vm450_vm3, %v3761_v38  ;;  %v5153_v52 = vsel %vm4839_vm9, %v14711_v35, %v5152_v53  ;;  %v5162_v45 = vsel %vm4839_vm9, %v5152_v53, %v14762_v63  ;;  %v5182_v49 = vshrl.u32 %v14794_v25, 16  ;;  %v5185_v31 = vshll.u32 %v14794_v25, 16 }
 0x2ed   : > { %3838 = vst.msk [vmem:[#allocation3 + $0xe8] sm:$0xff] %vm450_vm3, %v3759_v39  ;;  %v11565_v12 = vpop.f32.mrb[76].mxu1  ;;  %v14765_v27 = vpop.f32.mrb[76].mxu0  ;;  %v4049_v57 = vsel %vm439_vm5, %v4046_v60, %v4048_v15  ;;  %v4051_v10 = vsel %vm439_vm5, %v4048_v15, %v4050_v16 }
 0x2ee   : > { %v2866_v42 = vadd.f32 %v11565_v12, %v2787_v19  ;;  %v2575_v34 = vpop.f32.mrb[77].mxu1  ;;  %v14770_v3 = vpop.f32.mrb[77].mxu0  ;;  %v5184_v53 = vrot.slane %v5182_v49, 4  ;;  %v5187_v9 = vrot.slane %v5185_v31, 5  ;;  %v2794_v49 = vld [vmem:[#allocation3 + $0x168] sm:$0xff] }
 0x2ef   : > { %v3685_v62 = vld [vmem:[#allocation3 + $0x110] sm:$0xff]  ;;  %v2864_v28 = vadd.f32 %v2785_v29, %v2575_v34  ;;  %v11566_v14 = vpop.f32.mrb[78].mxu1  ;;  %v14772_v6 = vpop.f32.mrb[78].mxu0 }
 0x2f0   : > { %2945 = vst.msk [vmem:[#allocation3 + $0x130] sm:$0xff] %vm450_vm3, %v2866_v42  ;;  %v3764_v26 = vadd.f32 %v14719_v51, %v3685_v62  ;;  %v3683_v43 = vld [vmem:[#allocation3 + $0x100] sm:$0xff]  ;;  %v2867_v58 = vadd.f32 %v11566_v14, %v2788_v56  ;;  %v2578_v20 = vpop.f32.mrb[79].mxu1  ;;  %v14778_v13 = vpop.f32.mrb[79].mxu0  ;;  %v2790_v42 = vld [vmem:[#allocation3 + $0x148] sm:$0xff]  ;;  %v5188_v14 = vor.u32 %v5187_v9, %v5184_v53 }
 0x2f1   : > { %2943 = vst.msk [vmem:[#allocation3 + $0x120] sm:$0xff] %vm450_vm3, %v2864_v28  ;;  %v3762_v35 = vadd.f32 %v3683_v43, %v14724_v23  ;;  %v3686_v4 = vld [vmem:[#allocation3 + $0x118] sm:$0xff]  ;;  %v2865_v17 = vadd.f32 %v2786_v32, %v2578_v20  ;;  %v5170_v23 = vor.u32 %v5169_v59, %v5166_v48  ;;  %v2793_v20 = vld [vmem:[#allocation3 + $0x160] sm:$0xff] }
 0x2f2   : > { %3843 = vst.msk [vmem:[#allocation3 + $0x110] sm:$0xff] %vm450_vm3, %v3764_v26  ;;  %2946 = vst.msk [vmem:[#allocation3 + $0x138] sm:$0xff] %vm450_vm3, %v2867_v58  ;;  %v3765_v51 = vadd.f32 %v14731_v30, %v3686_v4  ;;  %v3684_v55 = vld [vmem:[#allocation3 + $0x108] sm:$0xff]  ;;  %11768 = vmatmul.mubr.msk.bf16.gmra.mrb[184].mxu1 %vm450_vm3, %v4045_v50  ;;  %11856 = vmatmul.mubr.msk.bf16.gmra.mrb[184].mxu0 %vm450_vm3, %v5153_v52  ;;  %v14801_v30 = vld [vmem:[#allocation2 + $0x148] sm:$0xff] }
 0x2f3   : > { %3841 = vst.msk [vmem:[#allocation3 + $0x100] sm:$0xff] %vm450_vm3, %v3762_v35  ;;  %2944 = vst.msk [vmem:[#allocation3 + $0x128] sm:$0xff] %vm450_vm3, %v2865_v17  ;;  %v3763_v46 = vadd.f32 %v3684_v55, %v14737_v11  ;;  %11771 = vmatprep.mubr.msk.bf16.mxu1 %vm450_vm3, %v4047_v1  ;;  %11859 = vmatprep.mubr.msk.bf16.mxu0 %vm450_vm3, %v5162_v45  ;;  %v5191_v44 = vshrl.u32 %v14801_v30, 16  ;;  %v5194_v61 = vshll.u32 %v14801_v30, 16  ;;  %v4054_v56 = vrot.slane %v14801_v30, 4  ;;  %v2796_v35 = vld [vmem:[#allocation3 + $0x178] sm:$0xff] }
 0x2f4   : > { %3844 = vst.msk [vmem:[#allocation3 + $0x118] sm:$0xff] %vm450_vm3, %v3765_v51  ;;  %v5171_v38 = vsel %vm4839_vm9, %v14762_v63, %v5170_v23  ;;  %v5180_v36 = vsel %vm4839_vm9, %v5170_v23, %v14803_v18  ;;  %v4829_v52 = vld [vmem:[#allocation2 + $0x150] sm:$0x1]  ;;  %v5189_v51 = vsel %vm4839_vm9, %v14803_v18, %v5188_v14 }
 0x2f5   : > { %3842 = vst.msk [vmem:[#allocation3 + $0x108] sm:$0xff] %vm450_vm3, %v3763_v46  ;;  %v11569_v24 = vpop.f32.mrb[80].mxu1  ;;  %v14811_v11 = vpop.f32.mrb[80].mxu0  ;;  %v5193_v34 = vrot.slane %v5191_v44, 4  ;;  %v5196_v29 = vrot.slane %v5194_v61, 5  ;;  %v5200_v55 = vshll.u32 %v4829_v52, 16 }
 0x2f6   : > { %v2870_v41 = vadd.f32 %v11569_v24, %v2791_v47  ;;  %v2591_v2 = vpop.f32.mrb[81].mxu1  ;;  %v14816_v21 = vpop.f32.mrb[81].mxu0  ;;  %v5937_v24 = vld [vmem:[#allocation2 + $0x10] sm:$0xe0]  ;;  %v14867_v47 = vld [vmem:[#allocation2 + $0x18] sm:$0xff] }
 0x2f7   : > { %v3689_v33 = vld [vmem:[#allocation3 + $0x130] sm:$0xff]  ;;  %v2868_v54 = vadd.f32 %v2789_v40, %v2591_v2  ;;  %v11570_v5 = vpop.f32.mrb[82].mxu1  ;;  %v14823_v39 = vpop.f32.mrb[82].mxu0  ;;  %v5202_v40 = vrot.slane %v5200_v55, 5 }
 0x2f8   : > { %2949 = vst.msk [vmem:[#allocation3 + $0x150] sm:$0xff] %vm450_vm3, %v2870_v41  ;;  %v3768_v22 = vadd.f32 %v14765_v27, %v3689_v33  ;;  %v3687_v60 = vld [vmem:[#allocation3 + $0x120] sm:$0xff]  ;;  %v2871_v12 = vadd.f32 %v11570_v5, %v2792_v37  ;;  %v2594_v19 = vpop.f32.mrb[83].mxu1  ;;  %v14829_v63 = vpop.f32.mrb[83].mxu0 }
 0x2f9   : > { %2947 = vst.msk [vmem:[#allocation3 + $0x140] sm:$0xff] %vm450_vm3, %v2868_v54  ;;  %v3766_v50 = vadd.f32 %v3687_v60, %v14770_v3  ;;  %v3690_v48 = vld [vmem:[#allocation3 + $0x138] sm:$0xff]  ;;  %v2869_v59 = vadd.f32 %v2790_v42, %v2594_v19  ;;  %v4052_v3 = vrot.slane %v14794_v25, 4  ;;  %v2797_v37 = vld [vmem:[#allocation3 + $0x180] sm:$0xff] }
 0x2fa   : > { %3847 = vst.msk [vmem:[#allocation3 + $0x130] sm:$0xff] %vm450_vm3, %v3768_v22  ;;  %2950 = vst.msk [vmem:[#allocation3 + $0x158] sm:$0xff] %vm450_vm3, %v2871_v12  ;;  %v3769_v27 = vadd.f32 %v14772_v6, %v3690_v48  ;;  %v3688_v62 = vld [vmem:[#allocation3 + $0x128] sm:$0xff]  ;;  %11772 = vmatmul.mubr.msk.bf16.gmra.mrb[188].mxu1 %vm450_vm3, %v4049_v57  ;;  %11860 = vmatmul.mubr.msk.bf16.gmra.mrb[188].mxu0 %vm450_vm3, %v5171_v38  ;;  %v14846_v6 = vor.u32 %v5196_v29, %v5193_v34  ;;  %v6029_v57 = vrot.slane %v5937_v24, 5  ;;  %v2799_v38 = vld [vmem:[#allocation3 + $0x190] sm:$0xff] }
 0x2fb   : > { %3845 = vst.msk [vmem:[#allocation3 + $0x120] sm:$0xff] %vm450_vm3, %v3766_v50  ;;  %2948 = vst.msk [vmem:[#allocation3 + $0x148] sm:$0xff] %vm450_vm3, %v2869_v59  ;;  %v3767_v28 = vadd.f32 %v3688_v62, %v14778_v13  ;;  %11775 = vmatprep.mubr.msk.bf16.mxu1 %vm450_vm3, %v4051_v10  ;;  %11863 = vmatprep.mubr.msk.bf16.mxu0 %vm450_vm3, %v5180_v36  ;;  %v4053_v4 = vsel %vm439_vm5, %v4050_v16, %v4052_v3  ;;  %v2800_v22 = vld [vmem:[#allocation3 + $0x198] sm:$0xff]  ;;  %v2798_v29 = vld [vmem:[#allocation3 + $0x188] sm:$0xff] }
 0x2fc   : > { %3848 = vst.msk [vmem:[#allocation3 + $0x138] sm:$0xff] %vm450_vm3, %v3769_v27  ;;  %v4055_v0 = vsel %vm439_vm5, %v4052_v3, %v4054_v56  ;;  %v5198_v16 = vsel %vm4839_vm9, %v5188_v14, %v14846_v6  ;;  %v5203_v12 = vsel %vm4839_vm9, %v14846_v6, %v5202_v40  ;;  %v5939_v59 = vld [vmem:[#allocation2 + $0x20] sm:$0xff]  ;;  %v14888_v3 = vld [vmem:[#allocation2 + $0x28] sm:$0xff] }
 0x2fd   : > { %3846 = vst.msk [vmem:[#allocation3 + $0x128] sm:$0xff] %vm450_vm3, %v3767_v28  ;;  %v11573_v7 = vpop.f32.mrb[84].mxu1  ;;  %v11661_v26 = vpop.f32.mrb[84].mxu0  ;;  %v12418_v24 = vld [vmem:[#allocation10 + $0x108] sm:$0xff]  }
 0x2fe   : > { %v2874_v43 = vadd.f32 %v11573_v7, %v2795_v8  ;;  %v2607_v58 = vpop.f32.mrb[85].mxu1  ;;  %v14849_v32 = vpop.f32.mrb[85].mxu0  ;;  %v6032_v7 = vrot.slane %v5939_v59, 5  ;;  %v6034_v8 = vrot.slane %v14888_v3, 5 }
 0x2ff   : > { %v3693_v13 = vld [vmem:[#allocation3 + $0x150] sm:$0xff]  ;;  %v2872_v1 = vadd.f32 %v2793_v20, %v2607_v58  ;;  %v11574_v45 = vpop.f32.mrb[86].mxu1  ;;  %v14854_v17 = vpop.f32.mrb[86].mxu0  ;;  %v2801_v20 = vld [vmem:[#allocation3 + $0x1a0] sm:$0xff] }
 0x300   : > { %2953 = vst.msk [vmem:[#allocation3 + $0x170] sm:$0xff] %vm450_vm3, %v2874_v43  ;;  %v3772_v15 = vadd.f32 %v14811_v11, %v3693_v13  ;;  %v3691_v25 = vld [vmem:[#allocation3 + $0x140] sm:$0xff]  ;;  %v2875_v23 = vadd.f32 %v11574_v45, %v2796_v35  ;;  %v2610_v46 = vpop.f32.mrb[87].mxu1  ;;  %v3512_v31 = vpop.f32.mrb[87].mxu0  ;;  %v2804_v35 = vld [vmem:[#allocation3 + $0x1b8] sm:$0xff] }
 0x301   : > { %2951 = vst.msk [vmem:[#allocation3 + $0x160] sm:$0xff] %vm450_vm3, %v2872_v1  ;;  %v3770_v18 = vadd.f32 %v3691_v25, %v14816_v21  ;;  %v3694_v44 = vld [vmem:[#allocation3 + $0x158] sm:$0xff]  ;;  %v2873_v61 = vadd.f32 %v2794_v49, %v2610_v46  ;;  %v6030_v21 = vrot.slane %v14867_v47, 5  ;;  %v6035_v49 = vsel %vm6028_vm10, %v6032_v7, %v6034_v8 }
 0x302   : > { %3851 = vst.msk [vmem:[#allocation3 + $0x150] sm:$0xff] %vm450_vm3, %v3772_v15  ;;  %2954 = vst.msk [vmem:[#allocation3 + $0x178] sm:$0xff] %vm450_vm3, %v2875_v23  ;;  %v3773_v11 = vadd.f32 %v14823_v39, %v3694_v44  ;;  %v3692_v41 = vld [vmem:[#allocation3 + $0x148] sm:$0xff]  ;;  %11776 = vmatmul.mubr.msk.bf16.gmra.mrb[192].mxu1 %vm450_vm3, %v4053_v4  ;;  %11864 = vmatmul.mubr.msk.bf16.gmra.mrb[192].mxu0 %vm450_vm3, %v5189_v51 }
 0x303   : > { %3849 = vst.msk [vmem:[#allocation3 + $0x140] sm:$0xff] %vm450_vm3, %v3770_v18  ;;  %2952 = vst.msk [vmem:[#allocation3 + $0x168] sm:$0xff] %vm450_vm3, %v2873_v61  ;;  %v3771_v2 = vadd.f32 %v3692_v41, %v14829_v63  ;;  %11779 = vmatprep.mubr.msk.bf16.mxu1 %vm450_vm3, %v4055_v0  ;;  %11867 = vmatprep.mubr.msk.bf16.mxu0 %vm450_vm3, %v5198_v16  ;;  %v6031_v48 = vsel %vm6028_vm10, %v6029_v57, %v6030_v21  ;;  %v2802_v4 = vld [vmem:[#allocation3 + $0x1a8] sm:$0xff]  ;;  %v14918_v0 = vld [vmem:[#allocation2 + $0x38] sm:$0xff] }
 0x304   : > { %3852 = vst.msk [vmem:[#allocation3 + $0x158] sm:$0xff] %vm450_vm3, %v3773_v11  ;;  %v12417_v61 = vld [vmem:[#allocation10 + $0xe8] sm:$0xff]   ;;  %v12424_v57 = vld [vmem:[#allocation10 + $0x100] sm:$0xff]  }
 0x305   : > { %3850 = vst.msk [vmem:[#allocation3 + $0x148] sm:$0xff] %vm450_vm3, %v3771_v2  ;;  %v11577_v10 = vpop.f32.mrb[88].mxu1  ;;  %v11665_v33 = vpop.f32.mrb[88].mxu0  ;;  %v12423_v2 = vld [vmem:[#allocation10 + $0xe0] sm:$0xff]  }
 0x306   : > { %v2878_v54 = vadd.f32 %v11577_v10, %v2799_v38  ;;  %v2623_v5 = vpop.f32.mrb[89].mxu1  ;;  %v3525_v39 = vpop.f32.mrb[89].mxu0  ;;  %v12419_v10 = vld [vmem:[#allocation10 + $0xf0] sm:$0xff]  }
 0x307   : > { %v3697_v36 = vld [vmem:[#allocation3 + $0x170] sm:$0xff]  ;;  %v2876_v53 = vadd.f32 %v2797_v37, %v2623_v5  ;;  %v11578_v9 = vpop.f32.mrb[90].mxu1  ;;  %v11666_v60 = vpop.f32.mrb[90].mxu0  ;;  %v12420_v5 = vld [vmem:[#allocation10 + $0x110] sm:$0xff]  }
 0x308   : > { %2957 = vst.msk [vmem:[#allocation3 + $0x190] sm:$0xff] %vm450_vm3, %v2878_v54  ;;  %v3776_v19 = vadd.f32 %v11661_v26, %v3697_v36  ;;  %v3695_v42 = vld [vmem:[#allocation3 + $0x160] sm:$0xff]  ;;  %v2879_v63 = vadd.f32 %v11578_v9, %v2800_v22  ;;  %v2626_v34 = vpop.f32.mrb[91].mxu1  ;;  %v3528_v50 = vpop.f32.mrb[91].mxu0 }
 0x309   : > { %2955 = vst.msk [vmem:[#allocation3 + $0x180] sm:$0xff] %vm450_vm3, %v2876_v53  ;;  %v3774_v27 = vadd.f32 %v3695_v42, %v14849_v32  ;;  %v3698_v62 = vld [vmem:[#allocation3 + $0x178] sm:$0xff]  ;;  %v2877_v28 = vadd.f32 %v2798_v29, %v2626_v34  ;;  %v2805_v36 = vld [vmem:[#allocation3 + $0x1c0] sm:$0xff] }
 0x30a   : > { %3855 = vst.msk [vmem:[#allocation3 + $0x170] sm:$0xff] %vm450_vm3, %v3776_v19  ;;  %2958 = vst.msk [vmem:[#allocation3 + $0x198] sm:$0xff] %vm450_vm3, %v2879_v63  ;;  %v3777_v14 = vadd.f32 %v14854_v17, %v3698_v62  ;;  %v3696_v6 = vld [vmem:[#allocation3 + $0x168] sm:$0xff]  ;;  %11780 = vmatmul.mubr.msk.bf16.gmra.mrb[196].mxu1 %vm450_vm3, %v4054_v56  ;;  %11868 = vmatmul.mubr.msk.bf16.gmra.mrb[196].mxu0 %vm450_vm3, %v5203_v12  ;;  %v2803_v56 = vld [vmem:[#allocation3 + $0x1b0] sm:$0xff]  ;;  %v6033_v17 = vsel %vm6028_vm10, %v6030_v21, %v6032_v7  ;;  %v6038_v21 = vrot.slane %v14918_v0, 5 }
 0x30b   : > { %3853 = vst.msk [vmem:[#allocation3 + $0x160] sm:$0xff] %vm450_vm3, %v3774_v27  ;;  %2956 = vst.msk [vmem:[#allocation3 + $0x188] sm:$0xff] %vm450_vm3, %v2877_v28  ;;  %v3775_v52 = vadd.f32 %v3696_v6, %v3512_v31  ;;  %11879 = vmatprep.mubr.msk.bf16.mxu1 %vm450_vm3, %v6031_v48  ;;  %11967 = vmatprep.mubr.msk.bf16.mxu0 %vm450_vm3, %v14888_v3  ;;  %v5941_v31 = vld [vmem:[#allocation2 + $0x30] sm:$0xff]  ;;  %v2808_v12 = vld [vmem:[#allocation3 + $0x1d8] sm:$0xff] }
 0x30c   : > { %3856 = vst.msk [vmem:[#allocation3 + $0x178] sm:$0xff] %vm450_vm3, %v3777_v14  ;;  %v6036_v40 = vrot.slane %v5941_v31, 5  ;;  %v2806_v19 = vld [vmem:[#allocation3 + $0x1c8] sm:$0xff]  ;;  %v5943_v62 = vld [vmem:[#allocation2 + $0x40] sm:$0xff]  ;;  %v14949_v28 = vld [vmem:[#allocation2 + $0x48] sm:$0xff] }
 0x30d   : > { %3854 = vst.msk [vmem:[#allocation3 + $0x168] sm:$0xff] %vm450_vm3, %v3775_v52  ;;  %v11581_v30 = vpop.f32.mrb[92].mxu1  ;;  %v14905_v26 = vpop.f32.mrb[92].mxu0  ;;  %v12421_v52 = vld [vmem:[#allocation10 + $0xf8] sm:$0xff]  }
 0x30e   : > { %v2882_v43 = vadd.f32 %v11581_v30, %v2803_v56  ;;  %v2639_v58 = vpop.f32.mrb[93].mxu1  ;;  %v14907_v32 = vpop.f32.mrb[93].mxu0  ;;  %v6037_v42 = vsel %vm6028_vm10, %v6034_v8, %v6036_v40  ;;  %v6039_v27 = vsel %vm6028_vm10, %v6036_v40, %v6038_v21  ;;  %v12422_v7 = vld [vmem:[#allocation10 + $0x118] sm:$0xff]  }
 0x30f   : > { %v3701_v13 = vld [vmem:[#allocation3 + $0x190] sm:$0xff]  ;;  %v2880_v1 = vadd.f32 %v2801_v20, %v2639_v58  ;;  %v11582_v45 = vpop.f32.mrb[94].mxu1  ;;  %v14910_v51 = vpop.f32.mrb[94].mxu0 }
 0x310   : > { %2961 = vst.msk [vmem:[#allocation3 + $0x1b0] sm:$0xff] %vm450_vm3, %v2882_v43  ;;  %v3780_v55 = vadd.f32 %v11665_v33, %v3701_v13  ;;  %v3699_v15 = vld [vmem:[#allocation3 + $0x180] sm:$0xff]  ;;  %v2883_v25 = vadd.f32 %v11582_v45, %v2804_v35  ;;  %v2642_v23 = vpop.f32.mrb[95].mxu1  ;;  %v14913_v46 = vpop.f32.mrb[95].mxu0  ;;  %v2807_v33 = vld [vmem:[#allocation3 + $0x1d0] sm:$0xff]  ;;  %v6042_v43 = vrot.slane %v14949_v28, 5 }
 0x311   : > { %2959 = vst.msk [vmem:[#allocation3 + $0x1a0] sm:$0xff] %vm450_vm3, %v2880_v1  ;;  %v3778_v16 = vadd.f32 %v3699_v15, %v3525_v39  ;;  %v3702_v18 = vld [vmem:[#allocation3 + $0x198] sm:$0xff]  ;;  %v2881_v44 = vadd.f32 %v2802_v4, %v2642_v23  ;;  %v2811_v20 = vld [vmem:[#allocation3 + $0x1f0] sm:$0xff]  ;;  %v2809_v45 = vld [vmem:[#allocation3 + $0x1e0] sm:$0xff] }
 0x312   : > { %3859 = vst.msk [vmem:[#allocation3 + $0x190] sm:$0xff] %vm450_vm3, %v3780_v55  ;;  %2962 = vst.msk [vmem:[#allocation3 + $0x1b8] sm:$0xff] %vm450_vm3, %v2883_v25  ;;  %v3781_v47 = vadd.f32 %v11666_v60, %v3702_v18  ;;  %v3700_v11 = vld [vmem:[#allocation3 + $0x188] sm:$0xff]  ;;  %11880 = vmatmul.mubr.msk.bf16.vlgmr.msra.gmra.mrb[200].mxu1 %vm450_vm3, %v6033_v17  ;;  %11968 = vmatmul.mubr.msk.bf16.vlgmr.msra.gmra.mrb[200].mxu0 %vm450_vm3, %v5941_v31  ;;  %v2812_v55 = vld [vmem:[#allocation3 + $0x1f8] sm:$0xff] }
 0x313   : > { %3857 = vst.msk [vmem:[#allocation3 + $0x180] sm:$0xff] %vm450_vm3, %v3778_v16  ;;  %2960 = vst.msk [vmem:[#allocation3 + $0x1a8] sm:$0xff] %vm450_vm3, %v2881_v44  ;;  %v3779_v41 = vadd.f32 %v3700_v11, %v3528_v50  ;;  %12048 = vmatpush3.bf16.msra.mxu1 %v12423_v2  ;;  %11883 = vmatprep.mubr.msk.bf16.mxu1 %vm450_vm3, %v6035_v49  ;;  %v2810_v16 = vld [vmem:[#allocation3 + $0x1e8] sm:$0xff]  ;;  %v14975_v11 = vld [vmem:[#allocation2 + $0x58] sm:$0xff] }
 0x314   : > { %3860 = vst.msk [vmem:[#allocation3 + $0x198] sm:$0xff] %vm450_vm3, %v3781_v47  ;;  %12136 = vmatpush3.bf16.msra.mxu0 %v12424_v57  ;;  %11971 = vmatprep.mubr.msk.bf16.mxu0 %vm450_vm3, %v14918_v0 }
 0x315   : > { %3858 = vst.msk [vmem:[#allocation3 + $0x188] sm:$0xff] %vm450_vm3, %v3779_v41  ;;  %v11585_v38 = vpop.f32.mrb[96].mxu1  ;;  %v14933_v54 = vpop.f32.mrb[96].mxu0  ;;  %12049 = vmatprep.subr.bf16.mxu1 %v12417_v61  ;;  %12137 = vmatprep.subr.bf16.mxu0 %v12418_v24 }
 0x316   : > { %v2886_v37 = vadd.f32 %v11585_v38, %v2807_v33  ;;  %v2655_v39 = vpop.f32.mrb[97].mxu1  ;;  %v14935_v53 = vpop.f32.mrb[97].mxu0  ;;  %v2815_v38 = vld [vmem:[#allocation3 + $0x210] sm:$0xff] }
 0x317   : > { %v3705_v9 = vld [vmem:[#allocation3 + $0x1b0] sm:$0xff]  ;;  %v2884_v22 = vadd.f32 %v2805_v36, %v2655_v39  ;;  %v11586_v60 = vpop.f32.mrb[98].mxu1  ;;  %v14940_v63 = vpop.f32.mrb[98].mxu0  ;;  %12050 = vmatpush3.bf16.msra.mxu1 %v12417_v61  ;;  %v5945_v61 = vld [vmem:[#allocation2 + $0x50] sm:$0xff] }
 0x318   : > { %2965 = vst.msk [vmem:[#allocation3 + $0x1d0] sm:$0xff] %vm450_vm3, %v2886_v37  ;;  %v3784_v34 = vadd.f32 %v14905_v26, %v3705_v9  ;;  %v3703_v29 = vld [vmem:[#allocation3 + $0x1a0] sm:$0xff]  ;;  %v2887_v50 = vadd.f32 %v11586_v60, %v2808_v12  ;;  %v2658_v48 = vpop.f32.mrb[99].mxu1  ;;  %v14944_v59 = vpop.f32.mrb[99].mxu0  ;;  %12138 = vmatpush3.bf16.msra.mxu0 %v12418_v24  ;;  %12051 = vmatprep.subr.bf16.mxu1 %v12419_v10  ;;  %v6040_v26 = vrot.slane %v5943_v62, 5  ;;  %v6044_v57 = vrot.slane %v5945_v61, 5 }
 0x319   : > { %2963 = vst.msk [vmem:[#allocation3 + $0x1c0] sm:$0xff] %vm450_vm3, %v2884_v22  ;;  %v3782_v3 = vadd.f32 %v3703_v29, %v14907_v32  ;;  %v3706_v14 = vld [vmem:[#allocation3 + $0x1b8] sm:$0xff]  ;;  %v2885_v6 = vadd.f32 %v2806_v19, %v2658_v48  ;;  %12139 = vmatprep.subr.bf16.mxu0 %v12420_v5  ;;  %v2813_v37 = vld [vmem:[#allocation3 + $0x200] sm:$0xff]  ;;  %v2814_v29 = vld [vmem:[#allocation3 + $0x208] sm:$0xff] }
 0x31a   : > { %3863 = vst.msk [vmem:[#allocation3 + $0x1b0] sm:$0xff] %vm450_vm3, %v3784_v34  ;;  %2966 = vst.msk [vmem:[#allocation3 + $0x1d8] sm:$0xff] %vm450_vm3, %v2887_v50  ;;  %v3785_v8 = vadd.f32 %v14910_v51, %v3706_v14  ;;  %v3704_v30 = vld [vmem:[#allocation3 + $0x1a8] sm:$0xff]  ;;  %11884 = vmatmul.mubr.msk.bf16.gmra.mrb[204].mxu1 %vm450_vm3, %v6037_v42  ;;  %11972 = vmatmul.mubr.msk.bf16.gmra.mrb[204].mxu0 %vm450_vm3, %v5943_v62  ;;  %v6041_v15 = vsel %vm6028_vm10, %v6038_v21, %v6040_v26  ;;  %v6046_v21 = vrot.slane %v14975_v11, 5  ;;  %v2816_v22 = vld [vmem:[#allocation3 + $0x218] sm:$0xff] }
 0x31b   : > { %3861 = vst.msk [vmem:[#allocation3 + $0x1a0] sm:$0xff] %vm450_vm3, %v3782_v3  ;;  %2964 = vst.msk [vmem:[#allocation3 + $0x1c8] sm:$0xff] %vm450_vm3, %v2885_v6  ;;  %v3783_v56 = vadd.f32 %v3704_v30, %v14913_v46  ;;  %11887 = vmatprep.mubr.msk.bf16.mxu1 %vm450_vm3, %v6039_v27  ;;  %11975 = vmatprep.mubr.msk.bf16.mxu0 %vm450_vm3, %v14949_v28  ;;  %v6043_v44 = vsel %vm6028_vm10, %v6040_v26, %v6042_v43  ;;  %v14995_v3 = vld [vmem:[#allocation2 + $0x68] sm:$0xff] }
 0x31c   : > { %3864 = vst.msk [vmem:[#allocation3 + $0x1b8] sm:$0xff] %vm450_vm3, %v3785_v8  ;;  %12052 = vmatpush3.bf16.msra.mxu1 %v12419_v10  ;;  %12140 = vmatpush3.bf16.msra.mxu0 %v12420_v5  ;;  %v6045_v60 = vsel %vm6028_vm10, %v6042_v43, %v6044_v57  ;;  %v6047_v48 = vsel %vm6028_vm10, %v6044_v57, %v6046_v21  ;;  %v6050_v8 = vrot.slane %v14995_v3, 5 }
 0x31d   : > { %3862 = vst.msk [vmem:[#allocation3 + $0x1a8] sm:$0xff] %vm450_vm3, %v3783_v56  ;;  %v11589_v58 = vpop.f32.mrb[100].mxu1  ;;  %v11677_v32 = vpop.f32.mrb[100].mxu0  ;;  %12053 = vmatprep.subr.bf16.mxu1 %v12421_v52  ;;  %12141 = vmatprep.subr.bf16.mxu0 %v12422_v7  ;;  %v2819_v56 = vld [vmem:[#allocation3 + $0x230] sm:$0xff] }
 0x31e   : > { %v2890_v13 = vadd.f32 %v11589_v58, %v2811_v20  ;;  %v2671_v1 = vpop.f32.mrb[101].mxu1  ;;  %v3573_v35 = vpop.f32.mrb[101].mxu0  ;;  %v2817_v20 = vld [vmem:[#allocation3 + $0x220] sm:$0xff] }
 0x31f   : > { %v3709_v4 = vld [vmem:[#allocation3 + $0x1d0] sm:$0xff]  ;;  %v2888_v17 = vadd.f32 %v2809_v45, %v2671_v1  ;;  %v11590_v51 = vpop.f32.mrb[102].mxu1  ;;  %v11678_v25 = vpop.f32.mrb[102].mxu0 }
 0x320   : > { %2969 = vst.msk [vmem:[#allocation3 + $0x1f0] sm:$0xff] %vm450_vm3, %v2890_v13  ;;  %v3788_v23 = vadd.f32 %v14933_v54, %v3709_v4  ;;  %v3707_v46 = vld [vmem:[#allocation3 + $0x1c0] sm:$0xff]  ;;  %v2891_v49 = vadd.f32 %v11590_v51, %v2812_v55  ;;  %v2674_v31 = vpop.f32.mrb[103].mxu1  ;;  %v3576_v18 = vpop.f32.mrb[103].mxu0  ;;  %12054 = vmatpush3.bf16.msra.mxu1 %v12421_v52  ;;  %12142 = vmatpush3.bf16.msra.mxu0 %v12422_v7 }
 0x321   : > { %2967 = vst.msk [vmem:[#allocation3 + $0x1e0] sm:$0xff] %vm450_vm3, %v2888_v17  ;;  %v3786_v0 = vadd.f32 %v3707_v46, %v14935_v53  ;;  %v3710_v24 = vld [vmem:[#allocation3 + $0x1d8] sm:$0xff]  ;;  %v2889_v47 = vadd.f32 %v2810_v16, %v2674_v31  ;;  %v5949_v31 = vld [vmem:[#allocation2 + $0x70] sm:$0xff] }
 0x322   : > { %3867 = vst.msk [vmem:[#allocation3 + $0x1d0] sm:$0xff] %vm450_vm3, %v3788_v23  ;;  %2970 = vst.msk [vmem:[#allocation3 + $0x1f8] sm:$0xff] %vm450_vm3, %v2891_v49  ;;  %v3789_v41 = vadd.f32 %v14940_v63, %v3710_v24  ;;  %v3708_v2 = vld [vmem:[#allocation3 + $0x1c8] sm:$0xff]  ;;  %11888 = vmatmul.mubr.msk.bf16.gmra.mrb[208].mxu1 %vm450_vm3, %v6041_v15  ;;  %11976 = vmatmul.mubr.msk.bf16.gmra.mrb[208].mxu0 %vm450_vm3, %v5945_v61  ;;  %v15013_v61 = vld [vmem:[#allocation2 + $0x78] sm:$0xff] }
 0x323   : > { %3865 = vst.msk [vmem:[#allocation3 + $0x1c0] sm:$0xff] %vm450_vm3, %v3786_v0  ;;  %2968 = vst.msk [vmem:[#allocation3 + $0x1e8] sm:$0xff] %vm450_vm3, %v2889_v47  ;;  %v3787_v40 = vadd.f32 %v3708_v2, %v14944_v59  ;;  %11891 = vmatprep.mubr.msk.bf16.mxu1 %vm450_vm3, %v6043_v44  ;;  %11979 = vmatprep.mubr.msk.bf16.mxu0 %vm450_vm3, %v14975_v11  ;;  %v5947_v59 = vld [vmem:[#allocation2 + $0x60] sm:$0xff]  ;;  %v2818_v23 = vld [vmem:[#allocation3 + $0x228] sm:$0xff]  ;;  %v6052_v11 = vrot.slane %v5949_v31, 5 }
 0x324   : > { %3868 = vst.msk [vmem:[#allocation3 + $0x1d8] sm:$0xff] %vm450_vm3, %v3789_v41  ;;  %v6048_v7 = vrot.slane %v5947_v59, 5  ;;  %v6054_v41 = vrot.slane %v15013_v61, 5 }
 0x325   : > { %3866 = vst.msk [vmem:[#allocation3 + $0x1c8] sm:$0xff] %vm450_vm3, %v3787_v40  ;;  %v11593_v10 = vpop.f32.mrb[104].mxu1  ;;  %v11681_v33 = vpop.f32.mrb[104].mxu0  ;;  %v2823_v40 = vld [vmem:[#allocation3 + $0x250] sm:$0xff] }
 0x326   : > { %v2894_v54 = vadd.f32 %v11593_v10, %v2815_v38  ;;  %v2687_v5 = vpop.f32.mrb[105].mxu1  ;;  %v3589_v39 = vpop.f32.mrb[105].mxu0  ;;  %v6049_v4 = vsel %vm6028_vm10, %v6046_v21, %v6048_v7  ;;  %v6051_v49 = vsel %vm6028_vm10, %v6048_v7, %v6050_v8  ;;  %v2821_v38 = vld [vmem:[#allocation3 + $0x240] sm:$0xff] }
 0x327   : > { %v3713_v36 = vld [vmem:[#allocation3 + $0x1f0] sm:$0xff]  ;;  %v2892_v53 = vadd.f32 %v2813_v37, %v2687_v5  ;;  %v11594_v9 = vpop.f32.mrb[106].mxu1  ;;  %v11682_v12 = vpop.f32.mrb[106].mxu0 }
 0x328   : > { %2973 = vst.msk [vmem:[#allocation3 + $0x210] sm:$0xff] %vm450_vm3, %v2894_v54  ;;  %v3792_v19 = vadd.f32 %v11677_v32, %v3713_v36  ;;  %v3711_v42 = vld [vmem:[#allocation3 + $0x1e0] sm:$0xff]  ;;  %v2895_v63 = vadd.f32 %v11594_v9, %v2816_v22  ;;  %v2690_v34 = vpop.f32.mrb[107].mxu1  ;;  %v3592_v50 = vpop.f32.mrb[107].mxu0  ;;  %v6053_v36 = vsel %vm6028_vm10, %v6050_v8, %v6052_v11 }
 0x329   : > { %2971 = vst.msk [vmem:[#allocation3 + $0x200] sm:$0xff] %vm450_vm3, %v2892_v53  ;;  %v3790_v27 = vadd.f32 %v3711_v42, %v3573_v35  ;;  %v3714_v62 = vld [vmem:[#allocation3 + $0x1f8] sm:$0xff]  ;;  %v2893_v28 = vadd.f32 %v2814_v29, %v2690_v34 }
 0x32a   : > { %3871 = vst.msk [vmem:[#allocation3 + $0x1f0] sm:$0xff] %vm450_vm3, %v3792_v19  ;;  %2974 = vst.msk [vmem:[#allocation3 + $0x218] sm:$0xff] %vm450_vm3, %v2895_v63  ;;  %v3793_v14 = vadd.f32 %v11678_v25, %v3714_v62  ;;  %v3712_v6 = vld [vmem:[#allocation3 + $0x1e8] sm:$0xff]  ;;  %11892 = vmatmul.mubr.msk.bf16.gmra.mrb[212].mxu1 %vm450_vm3, %v6045_v60  ;;  %11980 = vmatmul.mubr.msk.bf16.gmra.mrb[212].mxu0 %vm450_vm3, %v5947_v59  ;;  %v2820_v35 = vld [vmem:[#allocation3 + $0x238] sm:$0xff]  ;;  %v6055_v63 = vsel %vm6028_vm10, %v6052_v11, %v6054_v41 }
 0x32b   : > { %3869 = vst.msk [vmem:[#allocation3 + $0x1e0] sm:$0xff] %vm450_vm3, %v3790_v27  ;;  %2972 = vst.msk [vmem:[#allocation3 + $0x208] sm:$0xff] %vm450_vm3, %v2893_v28  ;;  %v3791_v52 = vadd.f32 %v3712_v6, %v3576_v18  ;;  %11895 = vmatprep.mubr.msk.bf16.mxu1 %vm450_vm3, %v6047_v48  ;;  %11983 = vmatprep.mubr.msk.bf16.mxu0 %vm450_vm3, %v14995_v3  ;;  %v2822_v19 = vld [vmem:[#allocation3 + $0x248] sm:$0xff]  ;;  %v5951_v34 = vld [vmem:[#allocation2 + $0x80] sm:$0xff] }
 0x32c   : > { %3872 = vst.msk [vmem:[#allocation3 + $0x1f8] sm:$0xff] %vm450_vm3, %v3793_v14  ;;  %v15031_v59 = vld [vmem:[#allocation2 + $0x88] sm:$0xff]  ;;  %v6056_v3 = vrot.slane %v5951_v34, 5 }
 0x32d   : > { %3870 = vst.msk [vmem:[#allocation3 + $0x1e8] sm:$0xff] %vm450_vm3, %v3791_v52  ;;  %v11597_v30 = vpop.f32.mrb[108].mxu1  ;;  %v11685_v26 = vpop.f32.mrb[108].mxu0  ;;  %v6058_v14 = vrot.slane %v15031_v59, 5  ;;  %v2827_v52 = vld [vmem:[#allocation3 + $0x270] sm:$0xff] }
 0x32e   : > { %v2898_v43 = vadd.f32 %v11597_v30, %v2819_v56  ;;  %v2703_v58 = vpop.f32.mrb[109].mxu1  ;;  %v3605_v32 = vpop.f32.mrb[109].mxu0  ;;  %v2825_v56 = vld [vmem:[#allocation3 + $0x260] sm:$0xff] }
 0x32f   : > { %v3717_v13 = vld [vmem:[#allocation3 + $0x210] sm:$0xff]  ;;  %v2896_v1 = vadd.f32 %v2817_v20, %v2703_v58  ;;  %v11598_v45 = vpop.f32.mrb[110].mxu1  ;;  %v11686_v17 = vpop.f32.mrb[110].mxu0 }
 0x330   : > { %2977 = vst.msk [vmem:[#allocation3 + $0x230] sm:$0xff] %vm450_vm3, %v2898_v43  ;;  %v3796_v51 = vadd.f32 %v11681_v33, %v3717_v13  ;;  %v3715_v55 = vld [vmem:[#allocation3 + $0x200] sm:$0xff]  ;;  %v2899_v15 = vadd.f32 %v11598_v45, %v2820_v35  ;;  %v2706_v25 = vpop.f32.mrb[111].mxu1  ;;  %v3608_v46 = vpop.f32.mrb[111].mxu0 }
 0x331   : > { %2975 = vst.msk [vmem:[#allocation3 + $0x220] sm:$0xff] %vm450_vm3, %v2896_v1  ;;  %v3794_v16 = vadd.f32 %v3715_v55, %v3589_v39  ;;  %v3718_v18 = vld [vmem:[#allocation3 + $0x218] sm:$0xff]  ;;  %v2897_v44 = vadd.f32 %v2818_v23, %v2706_v25  ;;  %v5953_v55 = vld [vmem:[#allocation2 + $0x90] sm:$0xff] }
 0x332   : > { %3875 = vst.msk [vmem:[#allocation3 + $0x210] sm:$0xff] %vm450_vm3, %v3796_v51  ;;  %2978 = vst.msk [vmem:[#allocation3 + $0x238] sm:$0xff] %vm450_vm3, %v2899_v15  ;;  %v3797_v0 = vadd.f32 %v11682_v12, %v3718_v18  ;;  %v3716_v24 = vld [vmem:[#allocation3 + $0x208] sm:$0xff]  ;;  %11896 = vmatmul.mubr.msk.bf16.gmra.mrb[216].mxu1 %vm450_vm3, %v6049_v4  ;;  %11984 = vmatmul.mubr.msk.bf16.gmra.mrb[216].mxu0 %vm450_vm3, %v5949_v31  ;;  %v2824_v39 = vld [vmem:[#allocation3 + $0x258] sm:$0xff]  ;;  %v6059_v51 = vsel %vm6028_vm10, %v6056_v3, %v6058_v14  ;;  %v6060_v18 = vrot.slane %v5953_v55, 5 }
 0x333   : > { %3873 = vst.msk [vmem:[#allocation3 + $0x200] sm:$0xff] %vm450_vm3, %v3794_v16  ;;  %2976 = vst.msk [vmem:[#allocation3 + $0x228] sm:$0xff] %vm450_vm3, %v2897_v44  ;;  %v3795_v47 = vadd.f32 %v3716_v24, %v3592_v50  ;;  %11899 = vmatprep.mubr.msk.bf16.mxu1 %vm450_vm3, %v6051_v49  ;;  %11987 = vmatprep.mubr.msk.bf16.mxu0 %vm450_vm3, %v15013_v61  ;;  %v2826_v4 = vld [vmem:[#allocation3 + $0x268] sm:$0xff] }
 0x334   : > { %3876 = vst.msk [vmem:[#allocation3 + $0x218] sm:$0xff] %vm450_vm3, %v3797_v0  ;;  %v4554_v0 = vld [vmem:[#allocation3 + $0x10] sm:$0xff] }
 0x335   : > { %3874 = vst.msk [vmem:[#allocation3 + $0x208] sm:$0xff] %vm450_vm3, %v3795_v47  ;;  %v11601_v2 = vpop.f32.mrb[112].mxu1  ;;  %v11689_v57 = vpop.f32.mrb[112].mxu0 }
 0x336   : > { %v2902_v21 = vadd.f32 %v11601_v2, %v2823_v40  ;;  %v2719_v10 = vpop.f32.mrb[113].mxu1  ;;  %v3621_v33 = vpop.f32.mrb[113].mxu0 }
 0x337   : > { %v3721_v54 = vld [vmem:[#allocation3 + $0x230] sm:$0xff]  ;;  %v2900_v5 = vadd.f32 %v2821_v38, %v2719_v10  ;;  %v11602_v37 = vpop.f32.mrb[114].mxu1  ;;  %v11690_v53 = vpop.f32.mrb[114].mxu0  ;;  %v4555_v10 = vld [vmem:[#allocation3 + $0x18] sm:$0xff]  ;;  %v6061_v38 = vsel %vm6028_vm10, %v6058_v14, %v6060_v18 }
 0x338   : > { %2981 = vst.msk [vmem:[#allocation3 + $0x250] sm:$0xff] %vm450_vm3, %v2902_v21  ;;  %v3800_v9 = vadd.f32 %v11685_v26, %v3721_v54  ;;  %v3719_v22 = vld [vmem:[#allocation3 + $0x220] sm:$0xff]  ;;  %v2903_v60 = vadd.f32 %v11602_v37, %v2824_v39  ;;  %v2722_v12 = vpop.f32.mrb[115].mxu1  ;;  %v3624_v42 = vpop.f32.mrb[115].mxu0 }
 0x339   : > { %2979 = vst.msk [vmem:[#allocation3 + $0x240] sm:$0xff] %vm450_vm3, %v2900_v5  ;;  %v3798_v29 = vadd.f32 %v3719_v22, %v3605_v32  ;;  %v3722_v50 = vld [vmem:[#allocation3 + $0x238] sm:$0xff]  ;;  %v2901_v48 = vadd.f32 %v2822_v19, %v2722_v12  ;;  %v6057_v32 = vsel %vm6028_vm10, %v6054_v41, %v6056_v3  ;;  %v4552_v41 = vld [vmem:[#allocation3] sm:$0xff] }
 0x33a   : > { %3879 = vst.msk [vmem:[#allocation3 + $0x230] sm:$0xff] %vm450_vm3, %v3800_v9  ;;  %2982 = vst.msk [vmem:[#allocation3 + $0x258] sm:$0xff] %vm450_vm3, %v2903_v60  ;;  %v3801_v27 = vadd.f32 %v11686_v17, %v3722_v50  ;;  %v3720_v62 = vld [vmem:[#allocation3 + $0x228] sm:$0xff]  ;;  %11900 = vmatmul.mubr.msk.bf16.gmra.mrb[220].mxu1 %vm450_vm3, %v6053_v36  ;;  %11988 = vmatmul.mubr.msk.bf16.gmra.mrb[220].mxu0 %vm450_vm3, %v5951_v34  ;;  %v5955_v22 = vld [vmem:[#allocation2 + $0xa0] sm:$0xff] }
 0x33b   : > { %3877 = vst.msk [vmem:[#allocation3 + $0x220] sm:$0xff] %vm450_vm3, %v3798_v29  ;;  %2980 = vst.msk [vmem:[#allocation3 + $0x248] sm:$0xff] %vm450_vm3, %v2901_v48  ;;  %v3799_v28 = vadd.f32 %v3720_v62, %v3608_v46  ;;  %11903 = vmatprep.mubr.msk.bf16.mxu1 %vm450_vm3, %v6055_v63  ;;  %11991 = vmatprep.mubr.msk.bf16.mxu0 %vm450_vm3, %v15031_v59  ;;  %v15049_v46 = vld [vmem:[#allocation2 + $0x98] sm:$0xff]  ;;  %v4553_v36 = vld [vmem:[#allocation3 + $0x8] sm:$0xff]  ;;  %v6064_v34 = vrot.slane %v5955_v22, 5 }
 0x33c   : > { %3880 = vst.msk [vmem:[#allocation3 + $0x238] sm:$0xff] %vm450_vm3, %v3801_v27  ;;  %v6062_v44 = vrot.slane %v15049_v46, 5  ;;  %v15066_v19 = vld [vmem:[#allocation2 + $0xa8] sm:$0xff]  ;;  %v4558_v48 = vld [vmem:[#allocation3 + $0x30] sm:$0xff] }
 0x33d   : > { %3878 = vst.msk [vmem:[#allocation3 + $0x228] sm:$0xff] %vm450_vm3, %v3799_v28  ;;  %v11605_v6 = vpop.f32.mrb[116].mxu1  ;;  %v11693_v7 = vpop.f32.mrb[116].mxu0  ;;  %v6066_v29 = vrot.slane %v15066_v19, 5  ;;  %v4556_v28 = vld [vmem:[#allocation3 + $0x20] sm:$0xff] }
 0x33e   : > { %v2906_v8 = vadd.f32 %v11605_v6, %v2827_v52  ;;  %v2735_v30 = vpop.f32.mrb[117].mxu1  ;;  %v3637_v26 = vpop.f32.mrb[117].mxu0  ;;  %v6063_v9 = vsel %vm6028_vm10, %v6060_v18, %v6062_v44 }
 0x33f   : > { %v3725_v43 = vld [vmem:[#allocation3 + $0x250] sm:$0xff]  ;;  %v2904_v58 = vadd.f32 %v2825_v56, %v2735_v30  ;;  %v11606_v20 = vpop.f32.mrb[118].mxu1  ;;  %v11694_v13 = vpop.f32.mrb[118].mxu0 }
 0x340   : > { %2985 = vst.msk [vmem:[#allocation3 + $0x270] sm:$0xff] %vm450_vm3, %v2906_v8  ;;  %v3804_v1 = vadd.f32 %v11689_v57, %v3725_v43  ;;  %v3723_v45 = vld [vmem:[#allocation3 + $0x240] sm:$0xff]  ;;  %v2738_v35 = vpop.f32.mrb[119].mxu1  ;;  %v3640_v17 = vpop.f32.mrb[119].mxu0  ;;  %v6065_v8 = vsel %vm6028_vm10, %v6062_v44, %v6064_v34  ;;  %v4557_v20 = vld [vmem:[#allocation3 + $0x28] sm:$0xff]  ;;  %v6067_v13 = vsel %vm6028_vm10, %v6064_v34, %v6066_v29 }
 0x341   : > { %2983 = vst.msk [vmem:[#allocation3 + $0x260] sm:$0xff] %vm450_vm3, %v2904_v58  ;;  %v3802_v15 = vadd.f32 %v3723_v45, %v3621_v33  ;;  %v3726_v25 = vld [vmem:[#allocation3 + $0x258] sm:$0xff]  ;;  %v2905_v23 = vadd.f32 %v2826_v4, %v2738_v35  ;;  %v4560_v44 = vld [vmem:[#allocation3 + $0x40] sm:$0xff] }
 0x342   : > { %3883 = vst.msk [vmem:[#allocation3 + $0x250] sm:$0xff] %vm450_vm3, %v3804_v1  ;;  %v3805_v49 = vadd.f32 %v11690_v53, %v3726_v25  ;;  %v3724_v31 = vld [vmem:[#allocation3 + $0x248] sm:$0xff]  ;;  %11904 = vmatmul.mubr.msk.bf16.gmra.mrb[224].mxu1 %vm450_vm3, %v6057_v32  ;;  %11992 = vmatmul.mubr.msk.bf16.gmra.mrb[224].mxu0 %vm450_vm3, %v5953_v55 }
 0x343   : > { %3881 = vst.msk [vmem:[#allocation3 + $0x240] sm:$0xff] %vm450_vm3, %v3802_v15  ;;  %2984 = vst.msk [vmem:[#allocation3 + $0x268] sm:$0xff] %vm450_vm3, %v2905_v23  ;;  %v3803_v16 = vadd.f32 %v3724_v31, %v3624_v42  ;;  %11907 = vmatprep.mubr.msk.bf16.mxu1 %vm450_vm3, %v6059_v51  ;;  %11995 = vmatprep.mubr.msk.bf16.mxu0 %vm450_vm3, %v15049_v46  ;;  %v5957_v1 = vld [vmem:[#allocation2 + $0xb0] sm:$0xff] }
 0x344   : > { %3884 = vst.msk [vmem:[#allocation3 + $0x258] sm:$0xff] %vm450_vm3, %v3805_v49  ;;  %v6068_v25 = vrot.slane %v5957_v1, 5  ;;  %v4562_v49 = vld [vmem:[#allocation3 + $0x50] sm:$0xff] }
 0x345   : > { %3882 = vst.msk [vmem:[#allocation3 + $0x248] sm:$0xff] %vm450_vm3, %v3803_v16  ;;  %v11705_v61 = vpop.f32.mrb[120].mxu1  ;;  %v11793_v24 = vpop.f32.mrb[120].mxu0 }
 0x346   : > { %v4633_v47 = vadd.f32 %v11705_v61, %v4554_v0  ;;  %v4234_v11 = vpop.f32.mrb[121].mxu1  ;;  %v5382_v2 = vpop.f32.mrb[121].mxu0 }
 0x347   : > { %v3729_v40 = vld [vmem:[#allocation3 + $0x270] sm:$0xff]  ;;  %v4631_v57 = vadd.f32 %v4552_v41, %v4234_v11  ;;  %v11706_v21 = vpop.f32.mrb[122].mxu1  ;;  %v11794_v33 = vpop.f32.mrb[122].mxu0  ;;  %v4563_v11 = vld [vmem:[#allocation3 + $0x58] sm:$0xff]  ;;  %v6069_v41 = vsel %vm6028_vm10, %v6066_v29, %v6068_v25 }
 0x348   : > { %v3808_v54 = vadd.f32 %v11693_v7, %v3729_v40  ;;  %4712 = vst.msk [vmem:[#allocation3 + $0x10] sm:$0xff] %vm450_vm3, %v4633_v47  ;;  %v3727_v5 = vld [vmem:[#allocation3 + $0x260] sm:$0xff]  ;;  %v4634_v37 = vadd.f32 %v11706_v21, %v4555_v10  ;;  %v4237_v39 = vpop.f32.mrb[123].mxu1  ;;  %v5385_v53 = vpop.f32.mrb[123].mxu0  ;;  %v4559_v7 = vld [vmem:[#allocation3 + $0x38] sm:$0xff] }
 0x349   : > { %v3806_v60 = vadd.f32 %v3727_v5, %v3637_v26  ;;  %4710 = vst.msk [vmem:[#allocation3] sm:$0xff] %vm450_vm3, %v4631_v57  ;;  %v4632_v12 = vadd.f32 %v4553_v36, %v4237_v39  ;;  %v5959_v5 = vld [vmem:[#allocation2 + $0xc0] sm:$0xff] }
 0x34a   : > { %3887 = vst.msk [vmem:[#allocation3 + $0x270] sm:$0xff] %vm450_vm3, %v3808_v54  ;;  %4713 = vst.msk [vmem:[#allocation3 + $0x18] sm:$0xff] %vm450_vm3, %v4634_v37  ;;  %v3728_v42 = vld [vmem:[#allocation3 + $0x268] sm:$0xff]  ;;  %11908 = vmatmul.mubr.msk.bf16.gmra.mrb[228].mxu1 %vm450_vm3, %v6061_v38  ;;  %11996 = vmatmul.mubr.msk.bf16.gmra.mrb[228].mxu0 %vm450_vm3, %v5955_v22 }
 0x34b   : > { %3885 = vst.msk [vmem:[#allocation3 + $0x260] sm:$0xff] %vm450_vm3, %v3806_v60  ;;  %v3807_v63 = vadd.f32 %v3728_v42, %v3640_v17  ;;  %4711 = vst.msk [vmem:[#allocation3 + $0x8] sm:$0xff] %vm450_vm3, %v4632_v12  ;;  %11911 = vmatprep.mubr.msk.bf16.mxu1 %vm450_vm3, %v6063_v9  ;;  %11999 = vmatprep.mubr.msk.bf16.mxu0 %vm450_vm3, %v15066_v19  ;;  %v15083_v17 = vld [vmem:[#allocation2 + $0xb8] sm:$0xff]  ;;  %v4561_v38 = vld [vmem:[#allocation3 + $0x48] sm:$0xff]  ;;  %v6072_v12 = vrot.slane %v5959_v5, 5 }
 0x34c   : > { %v6070_v23 = vrot.slane %v15083_v17, 5 }
 0x34d   : > { %3886 = vst.msk [vmem:[#allocation3 + $0x268] sm:$0xff] %vm450_vm3, %v3807_v63  ;;  %v11709_v50 = vpop.f32.mrb[124].mxu1  ;;  %v11797_v59 = vpop.f32.mrb[124].mxu0  ;;  %v4566_v63 = vld [vmem:[#allocation3 + $0x70] sm:$0xff] }
 0x34e   : > { %v4637_v27 = vadd.f32 %v11709_v50, %v4558_v48  ;;  %v4250_v62 = vpop.f32.mrb[125].mxu1  ;;  %v5398_v3 = vpop.f32.mrb[125].mxu0  ;;  %v6071_v54 = vsel %vm6028_vm10, %v6068_v25, %v6070_v23  ;;  %v4564_v48 = vld [vmem:[#allocation3 + $0x60] sm:$0xff] }
 0x34f   : > { %v5702_v14 = vld [vmem:[#allocation3 + $0x10] sm:$0xff]  ;;  %v4635_v6 = vadd.f32 %v4556_v28, %v4250_v62  ;;  %v11710_v52 = vpop.f32.mrb[126].mxu1  ;;  %v11798_v30 = vpop.f32.mrb[126].mxu0 }
 0x350   : > { %4716 = vst.msk [vmem:[#allocation3 + $0x30] sm:$0xff] %vm450_vm3, %v4637_v27  ;;  %v5781_v56 = vadd.f32 %v11793_v24, %v5702_v14  ;;  %v5700_v26 = vld [vmem:[#allocation3] sm:$0xff]  ;;  %v4638_v43 = vadd.f32 %v11710_v52, %v4559_v7  ;;  %v4253_v58 = vpop.f32.mrb[127].mxu1  ;;  %v5401_v32 = vpop.f32.mrb[127].mxu0  ;;  %v6073_v14 = vsel %vm6028_vm10, %v6070_v23, %v6072_v12 }
 0x351   : > { %4714 = vst.msk [vmem:[#allocation3 + $0x20] sm:$0xff] %vm450_vm3, %v4635_v6  ;;  %v5779_v45 = vadd.f32 %v5700_v26, %v5382_v2  ;;  %v5703_v35 = vld [vmem:[#allocation3 + $0x18] sm:$0xff]  ;;  %v4636_v4 = vadd.f32 %v4557_v20, %v4253_v58  ;;  %v5961_v58 = vld [vmem:[#allocation2 + $0xd0] sm:$0xff] }
 0x352   : > { %5860 = vst.msk [vmem:[#allocation3 + $0x10] sm:$0xff] %vm450_vm3, %v5781_v56  ;;  %4717 = vst.msk [vmem:[#allocation3 + $0x38] sm:$0xff] %vm450_vm3, %v4638_v43  ;;  %v5782_v51 = vadd.f32 %v11794_v33, %v5703_v35  ;;  %v5701_v55 = vld [vmem:[#allocation3 + $0x8] sm:$0xff]  ;;  %11912 = vmatmul.mubr.msk.bf16.gmra.mrb[232].mxu1 %vm450_vm3, %v6065_v8  ;;  %12000 = vmatmul.mubr.msk.bf16.gmra.mrb[232].mxu0 %vm450_vm3, %v5957_v1  ;;  %v15119_v1 = vld [vmem:[#allocation2 + $0xd8] sm:$0xff] }
 0x353   : > { %5858 = vst.msk [vmem:[#allocation3] sm:$0xff] %vm450_vm3, %v5779_v45  ;;  %4715 = vst.msk [vmem:[#allocation3 + $0x28] sm:$0xff] %vm450_vm3, %v4636_v4  ;;  %v5780_v15 = vadd.f32 %v5701_v55, %v5385_v53  ;;  %11915 = vmatprep.mubr.msk.bf16.mxu1 %vm450_vm3, %v6067_v13  ;;  %12003 = vmatprep.mubr.msk.bf16.mxu0 %vm450_vm3, %v15083_v17  ;;  %v15101_v53 = vld [vmem:[#allocation2 + $0xc8] sm:$0xff]  ;;  %v4565_v56 = vld [vmem:[#allocation3 + $0x68] sm:$0xff]  ;;  %v6076_v17 = vrot.slane %v5961_v58, 5 }
 0x354   : > { %5861 = vst.msk [vmem:[#allocation3 + $0x18] sm:$0xff] %vm450_vm3, %v5782_v51  ;;  %v6074_v19 = vrot.slane %v15101_v53, 5  ;;  %v6078_v51 = vrot.slane %v15119_v1, 5 }
 0x355   : > { %5859 = vst.msk [vmem:[#allocation3 + $0x8] sm:$0xff] %vm450_vm3, %v5780_v15  ;;  %v11713_v46 = vpop.f32.mrb[128].mxu1  ;;  %v11801_v31 = vpop.f32.mrb[128].mxu0  ;;  %v4570_v15 = vld [vmem:[#allocation3 + $0x90] sm:$0xff] }
 0x356   : > { %v4641_v16 = vadd.f32 %v11713_v46, %v4562_v49  ;;  %v4266_v18 = vpop.f32.mrb[129].mxu1  ;;  %v5414_v61 = vpop.f32.mrb[129].mxu0  ;;  %v6075_v43 = vsel %vm6028_vm10, %v6072_v12, %v6074_v19  ;;  %v4568_v49 = vld [vmem:[#allocation3 + $0x80] sm:$0xff] }
 0x357   : > { %v5706_v0 = vld [vmem:[#allocation3 + $0x30] sm:$0xff]  ;;  %v4639_v24 = vadd.f32 %v4560_v44, %v4266_v18  ;;  %v11714_v47 = vpop.f32.mrb[130].mxu1  ;;  %v11802_v2 = vpop.f32.mrb[130].mxu0 }
 0x358   : > { %4720 = vst.msk [vmem:[#allocation3 + $0x50] sm:$0xff] %vm450_vm3, %v4641_v16  ;;  %v5785_v40 = vadd.f32 %v11797_v59, %v5706_v0  ;;  %v5704_v57 = vld [vmem:[#allocation3 + $0x20] sm:$0xff]  ;;  %v4642_v21 = vadd.f32 %v11714_v47, %v4563_v11  ;;  %v4269_v10 = vpop.f32.mrb[131].mxu1  ;;  %v5417_v33 = vpop.f32.mrb[131].mxu0  ;;  %v6077_v0 = vsel %vm6028_vm10, %v6074_v19, %v6076_v17 }
 0x359   : > { %4718 = vst.msk [vmem:[#allocation3 + $0x40] sm:$0xff] %vm450_vm3, %v4639_v24  ;;  %v5783_v37 = vadd.f32 %v5704_v57, %v5398_v3  ;;  %v5707_v39 = vld [vmem:[#allocation3 + $0x38] sm:$0xff]  ;;  %v4640_v36 = vadd.f32 %v4561_v38, %v4269_v10 }
 0x35a   : > { %5864 = vst.msk [vmem:[#allocation3 + $0x30] sm:$0xff] %vm450_vm3, %v5785_v40  ;;  %4721 = vst.msk [vmem:[#allocation3 + $0x58] sm:$0xff] %vm450_vm3, %v4642_v21  ;;  %v5786_v9 = vadd.f32 %v11798_v30, %v5707_v39  ;;  %v5705_v22 = vld [vmem:[#allocation3 + $0x28] sm:$0xff]  ;;  %11916 = vmatmul.mubr.msk.bf16.gmra.mrb[236].mxu1 %vm450_vm3, %v6069_v41  ;;  %12004 = vmatmul.mubr.msk.bf16.gmra.mrb[236].mxu0 %vm450_vm3, %v5959_v5  ;;  %v4567_v3 = vld [vmem:[#allocation3 + $0x78] sm:$0xff]  ;;  %v6079_v21 = vsel %vm6028_vm10, %v6076_v17, %v6078_v51 }
 0x35b   : > { %5862 = vst.msk [vmem:[#allocation3 + $0x20] sm:$0xff] %vm450_vm3, %v5783_v37  ;;  %4719 = vst.msk [vmem:[#allocation3 + $0x48] sm:$0xff] %vm450_vm3, %v4640_v36  ;;  %v5784_v60 = vadd.f32 %v5705_v22, %v5401_v32  ;;  %11919 = vmatprep.mubr.msk.bf16.mxu1 %vm450_vm3, %v6071_v54  ;;  %12007 = vmatprep.mubr.msk.bf16.mxu0 %vm450_vm3, %v15101_v53  ;;  %v4569_v40 = vld [vmem:[#allocation3 + $0x88] sm:$0xff]  ;;  %v5963_v10 = vld [vmem:[#allocation2 + $0xe0] sm:$0xff] }
 0x35c   : > { %5865 = vst.msk [vmem:[#allocation3 + $0x38] sm:$0xff] %vm450_vm3, %v5786_v9  ;;  %v15137_v5 = vld [vmem:[#allocation2 + $0xe8] sm:$0xff]  ;;  %v6080_v53 = vrot.slane %v5963_v10, 5 }
 0x35d   : > { %5863 = vst.msk [vmem:[#allocation3 + $0x28] sm:$0xff] %vm450_vm3, %v5784_v60  ;;  %v11717_v42 = vpop.f32.mrb[132].mxu1  ;;  %v11805_v34 = vpop.f32.mrb[132].mxu0  ;;  %v6082_v9 = vrot.slane %v15137_v5, 5  ;;  %v4574_v60 = vld [vmem:[#allocation3 + $0xb0] sm:$0xff] }
 0x35e   : > { %v4645_v29 = vadd.f32 %v11717_v42, %v4566_v63  ;;  %v4282_v50 = vpop.f32.mrb[133].mxu1  ;;  %v5430_v59 = vpop.f32.mrb[133].mxu0  ;;  %v4572_v63 = vld [vmem:[#allocation3 + $0xa0] sm:$0xff] }
 0x35f   : > { %v5710_v27 = vld [vmem:[#allocation3 + $0x50] sm:$0xff]  ;;  %v4643_v62 = vadd.f32 %v4564_v48, %v4282_v50  ;;  %v11718_v28 = vpop.f32.mrb[134].mxu1  ;;  %v11806_v6 = vpop.f32.mrb[134].mxu0 }
 0x360   : > { %4724 = vst.msk [vmem:[#allocation3 + $0x70] sm:$0xff] %vm450_vm3, %v4645_v29  ;;  %v5789_v52 = vadd.f32 %v11801_v31, %v5710_v27  ;;  %v5708_v7 = vld [vmem:[#allocation3 + $0x40] sm:$0xff]  ;;  %v4646_v8 = vadd.f32 %v11718_v28, %v4567_v3  ;;  %v4285_v30 = vpop.f32.mrb[135].mxu1  ;;  %v5433_v26 = vpop.f32.mrb[135].mxu0  ;;  %v6081_v27 = vsel %vm6028_vm10, %v6078_v51, %v6080_v53 }
 0x361   : > { %4722 = vst.msk [vmem:[#allocation3 + $0x60] sm:$0xff] %vm450_vm3, %v4643_v62  ;;  %v5787_v20 = vadd.f32 %v5708_v7, %v5414_v61  ;;  %v5711_v32 = vld [vmem:[#allocation3 + $0x58] sm:$0xff]  ;;  %v4644_v13 = vadd.f32 %v4565_v56, %v4285_v30  ;;  %v5965_v30 = vld [vmem:[#allocation2 + $0xf0] sm:$0xff] }
 0x362   : > { %5868 = vst.msk [vmem:[#allocation3 + $0x50] sm:$0xff] %vm450_vm3, %v5789_v52  ;;  %4725 = vst.msk [vmem:[#allocation3 + $0x78] sm:$0xff] %vm450_vm3, %v4646_v8  ;;  %v5790_v45 = vadd.f32 %v11802_v2, %v5711_v32  ;;  %v5709_v35 = vld [vmem:[#allocation3 + $0x48] sm:$0xff]  ;;  %11920 = vmatmul.mubr.msk.bf16.gmra.mrb[240].mxu1 %vm450_vm3, %v6073_v14  ;;  %12008 = vmatmul.mubr.msk.bf16.gmra.mrb[240].mxu0 %vm450_vm3, %v5961_v58  ;;  %v4571_v61 = vld [vmem:[#allocation3 + $0x98] sm:$0xff]  ;;  %v6083_v8 = vsel %vm6028_vm10, %v6080_v53, %v6082_v9 }
 0x363   : > { %5866 = vst.msk [vmem:[#allocation3 + $0x40] sm:$0xff] %vm450_vm3, %v5787_v20  ;;  %4723 = vst.msk [vmem:[#allocation3 + $0x68] sm:$0xff] %vm450_vm3, %v4644_v13  ;;  %v5788_v4 = vadd.f32 %v5709_v35, %v5417_v33  ;;  %11923 = vmatprep.mubr.msk.bf16.mxu1 %vm450_vm3, %v6075_v43  ;;  %12011 = vmatprep.mubr.msk.bf16.mxu0 %vm450_vm3, %v15119_v1  ;;  %v4573_v52 = vld [vmem:[#allocation3 + $0xa8] sm:$0xff]  ;;  %v15155_v58 = vld [vmem:[#allocation2 + $0xf8] sm:$0xff]  ;;  %v6084_v1 = vrot.slane %v5965_v30, 5 }
 0x364   : > { %5869 = vst.msk [vmem:[#allocation3 + $0x58] sm:$0xff] %vm450_vm3, %v5790_v45  ;;  %v6086_v45 = vrot.slane %v15155_v58, 5 }
 0x365   : > { %5867 = vst.msk [vmem:[#allocation3 + $0x48] sm:$0xff] %vm450_vm3, %v5788_v4  ;;  %v11721_v55 = vpop.f32.mrb[136].mxu1  ;;  %v11809_v25 = vpop.f32.mrb[136].mxu0  ;;  %v4578_v4 = vld [vmem:[#allocation3 + $0xd0] sm:$0xff] }
 0x366   : > { %v4649_v23 = vadd.f32 %v11721_v55, %v4570_v15  ;;  %v4298_v46 = vpop.f32.mrb[137].mxu1  ;;  %v5446_v31 = vpop.f32.mrb[137].mxu0  ;;  %v4576_v15 = vld [vmem:[#allocation3 + $0xc0] sm:$0xff] }
 0x367   : > { %v5714_v16 = vld [vmem:[#allocation3 + $0x70] sm:$0xff]  ;;  %v4647_v18 = vadd.f32 %v4568_v49, %v4298_v46  ;;  %v11722_v44 = vpop.f32.mrb[138].mxu1  ;;  %v11810_v24 = vpop.f32.mrb[138].mxu0 }
 0x368   : > { %4728 = vst.msk [vmem:[#allocation3 + $0x90] sm:$0xff] %vm450_vm3, %v4649_v23  ;;  %v5793_v47 = vadd.f32 %v11805_v34, %v5714_v16  ;;  %v5712_v11 = vld [vmem:[#allocation3 + $0x60] sm:$0xff]  ;;  %v4650_v41 = vadd.f32 %v11722_v44, %v4571_v61  ;;  %v4301_v2 = vpop.f32.mrb[139].mxu1  ;;  %v5449_v57 = vpop.f32.mrb[139].mxu0  ;;  %v6085_v16 = vsel %vm6028_vm10, %v6082_v9, %v6084_v1 }
 0x369   : > { %4726 = vst.msk [vmem:[#allocation3 + $0x80] sm:$0xff] %vm450_vm3, %v4647_v18  ;;  %v5791_v38 = vadd.f32 %v5712_v11, %v5430_v59  ;;  %v5715_v33 = vld [vmem:[#allocation3 + $0x78] sm:$0xff]  ;;  %v4648_v54 = vadd.f32 %v4569_v40, %v4301_v2  ;;  %v6087_v2 = vsel %vm6028_vm10, %v6084_v1, %v6086_v45 }
 0x36a   : > { %5872 = vst.msk [vmem:[#allocation3 + $0x70] sm:$0xff] %vm450_vm3, %v5793_v47  ;;  %4729 = vst.msk [vmem:[#allocation3 + $0x98] sm:$0xff] %vm450_vm3, %v4650_v41  ;;  %v5794_v37 = vadd.f32 %v11806_v6, %v5715_v33  ;;  %v5713_v39 = vld [vmem:[#allocation3 + $0x68] sm:$0xff]  ;;  %11924 = vmatmul.mubr.msk.bf16.gmra.mrb[244].mxu1 %vm450_vm3, %v6077_v0  ;;  %12012 = vmatmul.mubr.msk.bf16.gmra.mrb[244].mxu0 %vm450_vm3, %v5963_v10  ;;  %v4575_v59 = vld [vmem:[#allocation3 + $0xb8] sm:$0xff] }
 0x36b   : > { %5870 = vst.msk [vmem:[#allocation3 + $0x60] sm:$0xff] %vm450_vm3, %v5791_v38  ;;  %4727 = vst.msk [vmem:[#allocation3 + $0x88] sm:$0xff] %vm450_vm3, %v4648_v54  ;;  %v5792_v36 = vadd.f32 %v5713_v39, %v5433_v26  ;;  %11927 = vmatprep.mubr.msk.bf16.mxu1 %vm450_vm3, %v6079_v21  ;;  %12015 = vmatprep.mubr.msk.bf16.mxu0 %vm450_vm3, %v15137_v5  ;;  %v4577_v47 = vld [vmem:[#allocation3 + $0xc8] sm:$0xff]  ;;  %v5967_v41 = vld [vmem:[#allocation2 + $0x100] sm:$0xff] }
 0x36c   : > { %5873 = vst.msk [vmem:[#allocation3 + $0x78] sm:$0xff] %vm450_vm3, %v5794_v37  ;;  %v15173_v10 = vld [vmem:[#allocation2 + $0x108] sm:$0xff]  ;;  %v6088_v5 = vrot.slane %v5967_v41, 5 }
 0x36d   : > { %5871 = vst.msk [vmem:[#allocation3 + $0x68] sm:$0xff] %vm450_vm3, %v5792_v36  ;;  %v11725_v22 = vpop.f32.mrb[140].mxu1  ;;  %v11813_v12 = vpop.f32.mrb[140].mxu0  ;;  %v6090_v37 = vrot.slane %v15173_v10, 5  ;;  %v4582_v36 = vld [vmem:[#allocation3 + $0xf0] sm:$0xff] }
 0x36e   : > { %v4653_v19 = vadd.f32 %v11725_v22, %v4574_v60  ;;  %v4314_v42 = vpop.f32.mrb[141].mxu1  ;;  %v5462_v34 = vpop.f32.mrb[141].mxu0  ;;  %v4580_v60 = vld [vmem:[#allocation3 + $0xe0] sm:$0xff] }
 0x36f   : > { %v5718_v29 = vld [vmem:[#allocation3 + $0x90] sm:$0xff]  ;;  %v4651_v50 = vadd.f32 %v4572_v63, %v4314_v42  ;;  %v11726_v48 = vpop.f32.mrb[142].mxu1  ;;  %v11814_v62 = vpop.f32.mrb[142].mxu0 }
 0x370   : > { %4732 = vst.msk [vmem:[#allocation3 + $0xb0] sm:$0xff] %vm450_vm3, %v4653_v19  ;;  %v5797_v28 = vadd.f32 %v11809_v25, %v5718_v29  ;;  %v5716_v3 = vld [vmem:[#allocation3 + $0x80] sm:$0xff]  ;;  %v4654_v14 = vadd.f32 %v11726_v48, %v4575_v59  ;;  %v4317_v6 = vpop.f32.mrb[143].mxu1  ;;  %v5465_v7 = vpop.f32.mrb[143].mxu0  ;;  %v6089_v29 = vsel %vm6028_vm10, %v6086_v45, %v6088_v5 }
 0x371   : > { %4730 = vst.msk [vmem:[#allocation3 + $0xa0] sm:$0xff] %vm450_vm3, %v4651_v50  ;;  %v5795_v56 = vadd.f32 %v5716_v3, %v5446_v31  ;;  %v5719_v26 = vld [vmem:[#allocation3 + $0x98] sm:$0xff]  ;;  %v4652_v43 = vadd.f32 %v4573_v52, %v4317_v6  ;;  %v6091_v6 = vsel %vm6028_vm10, %v6088_v5, %v6090_v37 }
 0x372   : > { %5876 = vst.msk [vmem:[#allocation3 + $0x90] sm:$0xff] %vm450_vm3, %v5797_v28  ;;  %4733 = vst.msk [vmem:[#allocation3 + $0xb8] sm:$0xff] %vm450_vm3, %v4654_v14  ;;  %v5798_v20 = vadd.f32 %v11810_v24, %v5719_v26  ;;  %v5717_v32 = vld [vmem:[#allocation3 + $0x88] sm:$0xff]  ;;  %11928 = vmatmul.mubr.msk.bf16.gmra.mrb[248].mxu1 %vm450_vm3, %v6081_v27  ;;  %12016 = vmatmul.mubr.msk.bf16.gmra.mrb[248].mxu0 %vm450_vm3, %v5965_v30  ;;  %v4579_v31 = vld [vmem:[#allocation3 + $0xd8] sm:$0xff] }
 0x373   : > { %5874 = vst.msk [vmem:[#allocation3 + $0x80] sm:$0xff] %vm450_vm3, %v5795_v56  ;;  %4731 = vst.msk [vmem:[#allocation3 + $0xa8] sm:$0xff] %vm450_vm3, %v4652_v43  ;;  %v5796_v13 = vadd.f32 %v5717_v32, %v5449_v57  ;;  %11931 = vmatprep.mubr.msk.bf16.mxu1 %vm450_vm3, %v6083_v8  ;;  %12019 = vmatprep.mubr.msk.bf16.mxu0 %vm450_vm3, %v15155_v58  ;;  %v4581_v28 = vld [vmem:[#allocation3 + $0xe8] sm:$0xff]  ;;  %v15191_v30 = vld [vmem:[#allocation2 + $0x118] sm:$0xff] }
 0x374   : > { %5877 = vst.msk [vmem:[#allocation3 + $0x98] sm:$0xff] %vm450_vm3, %v5798_v20  ;;  %v5969_v14 = vld [vmem:[#allocation2 + $0x110] sm:$0xff]  ;;  %v6094_v20 = vrot.slane %v15191_v30, 5 }
 0x375   : > { %5875 = vst.msk [vmem:[#allocation3 + $0x88] sm:$0xff] %vm450_vm3, %v5796_v13  ;;  %v11729_v35 = vpop.f32.mrb[144].mxu1  ;;  %v11817_v17 = vpop.f32.mrb[144].mxu0  ;;  %v6092_v58 = vrot.slane %v5969_v14, 5  ;;  %v4586_v13 = vld [vmem:[#allocation3 + $0x110] sm:$0xff] }
 0x376   : > { %v4657_v51 = vadd.f32 %v11729_v35, %v4578_v4  ;;  %v4330_v55 = vpop.f32.mrb[145].mxu1  ;;  %v5478_v25 = vpop.f32.mrb[145].mxu0  ;;  %v4584_v4 = vld [vmem:[#allocation3 + $0x100] sm:$0xff] }
 0x377   : > { %v5722_v23 = vld [vmem:[#allocation3 + $0xb0] sm:$0xff]  ;;  %v4655_v46 = vadd.f32 %v4576_v15, %v4330_v55  ;;  %v11730_v49 = vpop.f32.mrb[146].mxu1  ;;  %v11818_v18 = vpop.f32.mrb[146].mxu0 }
 0x378   : > { %4736 = vst.msk [vmem:[#allocation3 + $0xd0] sm:$0xff] %vm450_vm3, %v4657_v51  ;;  %v5801_v44 = vadd.f32 %v11813_v12, %v5722_v23  ;;  %v5720_v61 = vld [vmem:[#allocation3 + $0xa0] sm:$0xff]  ;;  %v4658_v0 = vadd.f32 %v11730_v49, %v4579_v31  ;;  %v4333_v24 = vpop.f32.mrb[147].mxu1  ;;  %v5481_v11 = vpop.f32.mrb[147].mxu0  ;;  %v6093_v23 = vsel %vm6028_vm10, %v6090_v37, %v6092_v58 }
 0x379   : > { %4734 = vst.msk [vmem:[#allocation3 + $0xc0] sm:$0xff] %vm450_vm3, %v4655_v46  ;;  %v5799_v40 = vadd.f32 %v5720_v61, %v5462_v34  ;;  %v5723_v57 = vld [vmem:[#allocation3 + $0xb8] sm:$0xff]  ;;  %v4656_v21 = vadd.f32 %v4577_v47, %v4333_v24  ;;  %v6095_v24 = vsel %vm6028_vm10, %v6092_v58, %v6094_v20 }
 0x37a   : > { %5880 = vst.msk [vmem:[#allocation3 + $0xb0] sm:$0xff] %vm450_vm3, %v5801_v44  ;;  %4737 = vst.msk [vmem:[#allocation3 + $0xd8] sm:$0xff] %vm450_vm3, %v4658_v0  ;;  %v5802_v38 = vadd.f32 %v11814_v62, %v5723_v57  ;;  %v5721_v33 = vld [vmem:[#allocation3 + $0xa8] sm:$0xff]  ;;  %11932 = vmatmul.mubr.msk.bf16.gmra.mrb[252].mxu1 %vm450_vm3, %v6085_v16  ;;  %12020 = vmatmul.mubr.msk.bf16.gmra.mrb[252].mxu0 %vm450_vm3, %v5967_v41  ;;  %v4583_v34 = vld [vmem:[#allocation3 + $0xf8] sm:$0xff] }
 0x37b   : > { %5878 = vst.msk [vmem:[#allocation3 + $0xa0] sm:$0xff] %vm450_vm3, %v5799_v40  ;;  %4735 = vst.msk [vmem:[#allocation3 + $0xc8] sm:$0xff] %vm450_vm3, %v4656_v21  ;;  %v5800_v54 = vadd.f32 %v5721_v33, %v5465_v7  ;;  %11935 = vmatprep.mubr.msk.bf16.mxu1 %vm450_vm3, %v6087_v2  ;;  %12023 = vmatprep.mubr.msk.bf16.mxu0 %vm450_vm3, %v15173_v10  ;;  %v4585_v44 = vld [vmem:[#allocation3 + $0x108] sm:$0xff]  ;;  %v5971_v0 = vld [vmem:[#allocation2 + $0x120] sm:$0xff] }
 0x37c   : > { %5881 = vst.msk [vmem:[#allocation3 + $0xb8] sm:$0xff] %vm450_vm3, %v5802_v38  ;;  %v15209_v2 = vld [vmem:[#allocation2 + $0x128] sm:$0xff]  ;;  %v6096_v10 = vrot.slane %v5971_v0, 5 }
 0x37d   : > { %5879 = vst.msk [vmem:[#allocation3 + $0xa8] sm:$0xff] %vm450_vm3, %v5800_v54  ;;  %v11733_v39 = vpop.f32.mrb[148].mxu1  ;;  %v11821_v53 = vpop.f32.mrb[148].mxu0  ;;  %v6098_v38 = vrot.slane %v15209_v2, 5  ;;  %v4590_v54 = vld [vmem:[#allocation3 + $0x130] sm:$0xff] }
 0x37e   : > { %v4661_v9 = vadd.f32 %v11733_v39, %v4582_v36  ;;  %v4346_v22 = vpop.f32.mrb[149].mxu1  ;;  %v5494_v12 = vpop.f32.mrb[149].mxu0  ;;  %v4588_v36 = vld [vmem:[#allocation3 + $0x120] sm:$0xff] }
 0x37f   : > { %v5726_v19 = vld [vmem:[#allocation3 + $0xd0] sm:$0xff]  ;;  %v4659_v42 = vadd.f32 %v4580_v60, %v4346_v22  ;;  %v11734_v63 = vpop.f32.mrb[150].mxu1  ;;  %v11822_v50 = vpop.f32.mrb[150].mxu0 }
 0x380   : > { %4740 = vst.msk [vmem:[#allocation3 + $0xf0] sm:$0xff] %vm450_vm3, %v4661_v9  ;;  %v5805_v48 = vadd.f32 %v11817_v17, %v5726_v19  ;;  %v5724_v59 = vld [vmem:[#allocation3 + $0xc0] sm:$0xff]  ;;  %v4662_v27 = vadd.f32 %v11734_v63, %v4583_v34  ;;  %v4349_v62 = vpop.f32.mrb[151].mxu1  ;;  %v5497_v3 = vpop.f32.mrb[151].mxu0  ;;  %v6097_v19 = vsel %vm6028_vm10, %v6094_v20, %v6096_v10 }
 0x381   : > { %4738 = vst.msk [vmem:[#allocation3 + $0xe0] sm:$0xff] %vm450_vm3, %v4659_v42  ;;  %v5803_v52 = vadd.f32 %v5724_v59, %v5478_v25  ;;  %v5727_v7 = vld [vmem:[#allocation3 + $0xd8] sm:$0xff]  ;;  %v4660_v8 = vadd.f32 %v4581_v28, %v4349_v62  ;;  %v6099_v62 = vsel %vm6028_vm10, %v6096_v10, %v6098_v38  ;;  %v15267_v10 = vld [vmem:[#allocation2 + $0x30] sm:$0xff] }
 0x382   : > { %5884 = vst.msk [vmem:[#allocation3 + $0xd0] sm:$0xff] %vm450_vm3, %v5805_v48  ;;  %4741 = vst.msk [vmem:[#allocation3 + $0xf8] sm:$0xff] %vm450_vm3, %v4662_v27  ;;  %v5806_v56 = vadd.f32 %v11818_v18, %v5727_v7  ;;  %v5725_v26 = vld [vmem:[#allocation3 + $0xc8] sm:$0xff]  ;;  %11936 = vmatmul.mubr.msk.bf16.gmra.mrb[0].mxu1 %vm450_vm3, %v6089_v29  ;;  %12024 = vmatmul.mubr.msk.bf16.gmra.mrb[0].mxu0 %vm450_vm3, %v5969_v14  ;;  %v4587_v25 = vld [vmem:[#allocation3 + $0x118] sm:$0xff] }
 0x383   : > { %5882 = vst.msk [vmem:[#allocation3 + $0xc0] sm:$0xff] %vm450_vm3, %v5803_v52  ;;  %4739 = vst.msk [vmem:[#allocation3 + $0xe8] sm:$0xff] %vm450_vm3, %v4660_v8  ;;  %v5804_v43 = vadd.f32 %v5725_v26, %v5481_v11  ;;  %11939 = vmatprep.mubr.msk.bf16.mxu1 %vm450_vm3, %v6091_v6  ;;  %12027 = vmatprep.mubr.msk.bf16.mxu0 %vm450_vm3, %v15191_v30  ;;  %v4589_v48 = vld [vmem:[#allocation3 + $0x128] sm:$0xff]  ;;  %v15227_v6 = vld [vmem:[#allocation2 + $0x138] sm:$0xff] }
 0x384   : > { %5885 = vst.msk [vmem:[#allocation3 + $0xd8] sm:$0xff] %vm450_vm3, %v5806_v56  ;;  %v5973_v27 = vld [vmem:[#allocation2 + $0x130] sm:$0xff]  ;;  %v6102_v56 = vrot.slane %v15227_v6, 5 }
 0x385   : > { %5883 = vst.msk [vmem:[#allocation3 + $0xc8] sm:$0xff] %vm450_vm3, %v5804_v43  ;;  %v11737_v32 = vpop.f32.mrb[152].mxu1  ;;  %v11825_v1 = vpop.f32.mrb[152].mxu0  ;;  %v6100_v30 = vrot.slane %v5973_v27, 5  ;;  %v4594_v43 = vld [vmem:[#allocation3 + $0x150] sm:$0xff] }
 0x386   : > { %v4665_v45 = vadd.f32 %v11737_v32, %v4586_v13  ;;  %v4362_v35 = vpop.f32.mrb[153].mxu1  ;;  %v5510_v17 = vpop.f32.mrb[153].mxu0  ;;  %v4592_v13 = vld [vmem:[#allocation3 + $0x140] sm:$0xff] }
 0x387   : > { %v5730_v51 = vld [vmem:[#allocation3 + $0xf0] sm:$0xff]  ;;  %v4663_v55 = vadd.f32 %v4584_v4, %v4362_v35  ;;  %v11738_v15 = vpop.f32.mrb[154].mxu1  ;;  %v11826_v46 = vpop.f32.mrb[154].mxu0 }
 0x388   : > { %4744 = vst.msk [vmem:[#allocation3 + $0x110] sm:$0xff] %vm450_vm3, %v4665_v45  ;;  %v5809_v49 = vadd.f32 %v11821_v53, %v5730_v51  ;;  %v5728_v31 = vld [vmem:[#allocation3 + $0xe0] sm:$0xff]  ;;  %v4666_v16 = vadd.f32 %v11738_v15, %v4587_v25  ;;  %v4365_v18 = vpop.f32.mrb[155].mxu1  ;;  %v5513_v61 = vpop.f32.mrb[155].mxu0  ;;  %v6101_v51 = vsel %vm6028_vm10, %v6098_v38, %v6100_v30  ;;  %v5975_v15 = vld [vmem:[#allocation2 + $0x140] sm:$0xff] }
 0x389   : > { %4742 = vst.msk [vmem:[#allocation3 + $0x100] sm:$0xff] %vm450_vm3, %v4663_v55  ;;  %v5807_v47 = vadd.f32 %v5728_v31, %v5494_v12  ;;  %v5731_v11 = vld [vmem:[#allocation3 + $0xf8] sm:$0xff]  ;;  %v4664_v41 = vadd.f32 %v4585_v44, %v4365_v18  ;;  %v4593_v31 = vld [vmem:[#allocation3 + $0x148] sm:$0xff]  ;;  %v6103_v18 = vsel %vm6028_vm10, %v6100_v30, %v6102_v56  ;;  %v15250_v44 = vld [vmem:[#allocation2 + $0x28] sm:$0xff] }
 0x38a   : > { %5888 = vst.msk [vmem:[#allocation3 + $0xf0] sm:$0xff] %vm450_vm3, %v5809_v49  ;;  %4745 = vst.msk [vmem:[#allocation3 + $0x118] sm:$0xff] %vm450_vm3, %v4666_v16  ;;  %v5810_v40 = vadd.f32 %v11822_v50, %v5731_v11  ;;  %v5729_v57 = vld [vmem:[#allocation3 + $0xe8] sm:$0xff]  ;;  %11940 = vmatmul.mubr.msk.bf16.gmra.mrb[4].mxu1 %vm450_vm3, %v6093_v23  ;;  %12028 = vmatmul.mubr.msk.bf16.gmra.mrb[4].mxu0 %vm450_vm3, %v5971_v0  ;;  %v4591_v12 = vld [vmem:[#allocation3 + $0x138] sm:$0xff] }
 0x38b   : > { %5886 = vst.msk [vmem:[#allocation3 + $0xe0] sm:$0xff] %vm450_vm3, %v5807_v47  ;;  %4743 = vst.msk [vmem:[#allocation3 + $0x108] sm:$0xff] %vm450_vm3, %v4664_v41  ;;  %v5808_v21 = vadd.f32 %v5729_v57, %v5497_v3  ;;  %11943 = vmatprep.mubr.msk.bf16.mxu1 %vm450_vm3, %v6095_v24  ;;  %12031 = vmatprep.mubr.msk.bf16.mxu0 %vm450_vm3, %v15209_v2  ;;  %v15253_v47 = vld [vmem:[#allocation2 + $0x148] sm:$0xff]  ;;  %v6104_v2 = vrot.slane %v5975_v15, 5  ;;  %v7677_v57 = vshll.u32 %v15250_v44, 16 }
 0x38c   : > { %5889 = vst.msk [vmem:[#allocation3 + $0xf8] sm:$0xff] %vm450_vm3, %v5810_v40  ;;  %v8726_v30 = vld [vmem:[#allocation2 + $0x28] sm:$0xfe] }
 0x38d   : > { %5887 = vst.msk [vmem:[#allocation3 + $0xe8] sm:$0xff] %vm450_vm3, %v5808_v21  ;;  %v11741_v33 = vpop.f32.mrb[156].mxu1  ;;  %v11829_v5 = vpop.f32.mrb[156].mxu0  ;;  %v6106_v21 = vrot.slane %v15253_v47, 5 }
 0x38e   : > { %v4669_v37 = vadd.f32 %v11741_v33, %v4590_v54  ;;  %v4378_v39 = vpop.f32.mrb[157].mxu1  ;;  %v5526_v53 = vpop.f32.mrb[157].mxu0  ;;  %v4598_v33 = vld [vmem:[#allocation3 + $0x170] sm:$0xff]  ;;  %v4596_v54 = vld [vmem:[#allocation3 + $0x160] sm:$0xff] }
 0x38f   : > { %v5734_v9 = vld [vmem:[#allocation3 + $0x110] sm:$0xff]  ;;  %v4667_v22 = vadd.f32 %v4588_v36, %v4378_v39  ;;  %v11742_v60 = vpop.f32.mrb[158].mxu1  ;;  %v11830_v42 = vpop.f32.mrb[158].mxu0  ;;  %v4599_v36 = vld [vmem:[#allocation3 + $0x178] sm:$0xff] }
 0x390   : > { %4748 = vst.msk [vmem:[#allocation3 + $0x130] sm:$0xff] %vm450_vm3, %v4669_v37  ;;  %v5813_v63 = vadd.f32 %v11825_v1, %v5734_v9  ;;  %v5732_v34 = vld [vmem:[#allocation3 + $0x100] sm:$0xff]  ;;  %v4670_v29 = vadd.f32 %v11742_v60, %v4591_v12  ;;  %v4381_v50 = vpop.f32.mrb[159].mxu1  ;;  %v5529_v59 = vpop.f32.mrb[159].mxu0  ;;  %v6105_v9 = vsel %vm6028_vm10, %v6102_v56, %v6104_v2  ;;  %v6880_v60 = vld [vmem:[#allocation2 + $0x150] sm:$0xff] }
 0x391   : > { %4746 = vst.msk [vmem:[#allocation3 + $0x120] sm:$0xff] %vm450_vm3, %v4667_v22  ;;  %v5811_v28 = vadd.f32 %v5732_v34, %v5510_v17  ;;  %v5735_v3 = vld [vmem:[#allocation3 + $0x118] sm:$0xff]  ;;  %v4668_v14 = vadd.f32 %v4589_v48, %v4381_v50  ;;  %v7675_v34 = vshrl.u32 %v15250_v44, 16  ;;  %v7682_v50 = vshll.u32 %v15267_v10, 16 }
 0x392   : > { %5892 = vst.msk [vmem:[#allocation3 + $0x110] sm:$0xff] %vm450_vm3, %v5813_v63  ;;  %4749 = vst.msk [vmem:[#allocation3 + $0x138] sm:$0xff] %vm450_vm3, %v4670_v29  ;;  %v5814_v52 = vadd.f32 %v11826_v46, %v5735_v3  ;;  %v5733_v7 = vld [vmem:[#allocation3 + $0x108] sm:$0xff]  ;;  %11944 = vmatmul.mubr.msk.bf16.gmra.mrb[8].mxu1 %vm450_vm3, %v6097_v19  ;;  %12032 = vmatmul.mubr.msk.bf16.gmra.mrb[8].mxu0 %vm450_vm3, %v5973_v27  ;;  %v4595_v17 = vld [vmem:[#allocation3 + $0x158] sm:$0xff]  ;;  %v7679_v29 = vrot.slane %v7677_v57, 1 }
 0x393   : > { %5890 = vst.msk [vmem:[#allocation3 + $0x100] sm:$0xff] %vm450_vm3, %v5811_v28  ;;  %4747 = vst.msk [vmem:[#allocation3 + $0x128] sm:$0xff] %vm450_vm3, %v4668_v14  ;;  %v5812_v8 = vadd.f32 %v5733_v7, %v5513_v61  ;;  %11947 = vmatprep.mubr.msk.bf16.mxu1 %vm450_vm3, %v6099_v62  ;;  %12035 = vmatprep.mubr.msk.bf16.mxu0 %vm450_vm3, %v15227_v6  ;;  %v5977_v3 = vld [vmem:[#allocation2 + $0x150] sm:$0x1]  ;;  %v6107_v14 = vsel %vm6028_vm10, %v6104_v2, %v6106_v21  ;;  %v6881_v6 = vld [vmem:[#allocation2 + $0x158] sm:$0xff] }
 0x394   : > { %5893 = vst.msk [vmem:[#allocation3 + $0x118] sm:$0xff] %vm450_vm3, %v5814_v52 }
 0x395   : > { %5891 = vst.msk [vmem:[#allocation3 + $0x108] sm:$0xff] %vm450_vm3, %v5812_v8  ;;  %v11745_v26 = vpop.f32.mrb[160].mxu1  ;;  %v11833_v58 = vpop.f32.mrb[160].mxu0 }
 0x396   : > { %v4673_v20 = vadd.f32 %v11745_v26, %v4594_v43  ;;  %v4394_v32 = vpop.f32.mrb[161].mxu1  ;;  %v15241_v1 = vpop.f32.mrb[161].mxu0 }
 0x397   : > { %v5738_v45 = vld [vmem:[#allocation3 + $0x130] sm:$0xff]  ;;  %v4671_v35 = vadd.f32 %v4592_v13, %v4394_v32  ;;  %v11746_v4 = vpop.f32.mrb[162].mxu1  ;;  %v15244_v55 = vpop.f32.mrb[162].mxu0  ;;  %v7680_v32 = vor.u32 %v7679_v29, %v7675_v34  ;;  %v7684_v13 = vrot.slane %v7682_v50, 1  ;;  %v15341_v34 = vld [vmem:[#allocation2 + $0x50] sm:$0xff] }
 0x398   : > { %4752 = vst.msk [vmem:[#allocation3 + $0x150] sm:$0xff] %vm450_vm3, %v4673_v20  ;;  %v5817_v25 = vadd.f32 %v11829_v5, %v5738_v45  ;;  %v5736_v23 = vld [vmem:[#allocation3 + $0x120] sm:$0xff]  ;;  %v4674_v46 = vadd.f32 %v11746_v4, %v4595_v17  ;;  %v4397_v49 = vpop.f32.mrb[163].mxu1  ;;  %v15247_v16 = vpop.f32.mrb[163].mxu0  ;;  %v15297_v20 = vld [vmem:[#allocation2 + $0x38] sm:$0xff]  ;;  %v8815_v45 = vrot.slane %v8726_v30, 1 }
 0x399   : > { %4750 = vst.msk [vmem:[#allocation3 + $0x140] sm:$0xff] %vm450_vm3, %v4671_v35  ;;  %v5815_v61 = vadd.f32 %v5736_v23, %v5526_v53  ;;  %v5739_v0 = vld [vmem:[#allocation3 + $0x138] sm:$0xff]  ;;  %v4672_v24 = vadd.f32 %v4593_v31, %v4397_v49  ;;  %v4597_v53 = vld [vmem:[#allocation3 + $0x168] sm:$0xff]  ;;  %v8816_v35 = vrot.slane %v15267_v10, 1  ;;  %v4602_v17 = vld [vmem:[#allocation3 + $0x190] sm:$0xff]  ;;  %v7686_v49 = vshrl.u32 %v15267_v10, 16 }
 0x39a   : > { %5896 = vst.msk [vmem:[#allocation3 + $0x130] sm:$0xff] %vm450_vm3, %v5817_v25  ;;  %4753 = vst.msk [vmem:[#allocation3 + $0x158] sm:$0xff] %vm450_vm3, %v4674_v46  ;;  %v5818_v11 = vadd.f32 %v11830_v42, %v5739_v0  ;;  %v5737_v41 = vld [vmem:[#allocation3 + $0x128] sm:$0xff]  ;;  %11948 = vmatmul.mubr.msk.bf16.gmra.mrb[12].mxu1 %vm450_vm3, %v6101_v51  ;;  %12036 = vmatmul.mubr.msk.bf16.gmra.mrb[12].mxu0 %vm450_vm3, %v5975_v15  ;;  %v4600_v25 = vld [vmem:[#allocation3 + $0x180] sm:$0xff]  ;;  %v7690_v31 = vshll.u32 %v15297_v20, 16 }
 0x39b   : > { %5894 = vst.msk [vmem:[#allocation3 + $0x120] sm:$0xff] %vm450_vm3, %v5815_v61  ;;  %4751 = vst.msk [vmem:[#allocation3 + $0x148] sm:$0xff] %vm450_vm3, %v4672_v24  ;;  %v5816_v40 = vadd.f32 %v5737_v41, %v5529_v59  ;;  %11951 = vmatprep.mubr.msk.bf16.mxu1 %vm450_vm3, %v6103_v18  ;;  %12039 = vmatprep.mubr.msk.bf16.mxu0 %vm450_vm3, %v15253_v47  ;;  %v4603_v23 = vld [vmem:[#allocation3 + $0x198] sm:$0xff]  ;;  %v7685_v24 = vsel %vm1933_vm8, %v7680_v32, %v7684_v13  ;;  %v7694_v47 = vshrl.u32 %v15297_v20, 16 }
 0x39c   : > { %5897 = vst.msk [vmem:[#allocation3 + $0x138] sm:$0xff] %vm450_vm3, %v5818_v11  ;;  %v6882_v11 = vld [vmem:[#allocation2 + $0x160] sm:$0xf] }
 0x39d   : > { %5895 = vst.msk [vmem:[#allocation3 + $0x128] sm:$0xff] %vm450_vm3, %v5816_v40  ;;  %v11749_v38 = vpop.f32.mrb[164].mxu1  ;;  %v15270_v5 = vpop.f32.mrb[164].mxu0 }
 0x39e   : > { %v4677_v37 = vadd.f32 %v11749_v38, %v4598_v33  ;;  %v4410_v39 = vpop.f32.mrb[165].mxu1  ;;  %v15273_v22 = vpop.f32.mrb[165].mxu0  ;;  %v4601_v33 = vld [vmem:[#allocation3 + $0x188] sm:$0xff] }
 0x39f   : > { %v5742_v12 = vld [vmem:[#allocation3 + $0x150] sm:$0xff]  ;;  %v4675_v19 = vadd.f32 %v4596_v54, %v4410_v39  ;;  %v11750_v42 = vpop.f32.mrb[166].mxu1  ;;  %v15275_v63 = vpop.f32.mrb[166].mxu0 }
 0x3a0   : > { %4756 = vst.msk [vmem:[#allocation3 + $0x170] sm:$0xff] %vm450_vm3, %v4677_v37  ;;  %v5821_v48 = vadd.f32 %v11833_v58, %v5742_v12  ;;  %v5740_v59 = vld [vmem:[#allocation3 + $0x140] sm:$0xff]  ;;  %v4678_v27 = vadd.f32 %v11750_v42, %v4599_v36  ;;  %v4413_v62 = vpop.f32.mrb[167].mxu1  ;;  %v15280_v28 = vpop.f32.mrb[167].mxu0  ;;  %v6108_v58 = vrot.slane %v5977_v3, 5 }
 0x3a1   : > { %4754 = vst.msk [vmem:[#allocation3 + $0x160] sm:$0xff] %vm450_vm3, %v4675_v19  ;;  %v5819_v52 = vadd.f32 %v5740_v59, %v15241_v1  ;;  %v5743_v7 = vld [vmem:[#allocation3 + $0x158] sm:$0xff]  ;;  %v4676_v8 = vadd.f32 %v4597_v53, %v4413_v62  ;;  %v15332_v12 = vld [vmem:[#allocation2 + $0x48] sm:$0xff]  ;;  %v8818_v19 = vrot.slane %v15297_v20, 1  ;;  %v7714_v20 = vshll.u32 %v15341_v34, 16 }
 0x3a2   : > { %5900 = vst.msk [vmem:[#allocation3 + $0x150] sm:$0xff] %vm450_vm3, %v5821_v48  ;;  %4757 = vst.msk [vmem:[#allocation3 + $0x178] sm:$0xff] %vm450_vm3, %v4678_v27  ;;  %v5822_v56 = vadd.f32 %v15244_v55, %v5743_v7  ;;  %v5741_v26 = vld [vmem:[#allocation3 + $0x148] sm:$0xff]  ;;  %11952 = vmatmul.mubr.msk.bf16.gmra.mrb[16].mxu1 %vm450_vm3, %v6105_v9  ;;  %12040 = vmatmul.mubr.msk.bf16.gmra.mrb[16].mxu0 %vm450_vm3, %v6880_v60  ;;  %v15300_v1 = vld [vmem:[#allocation2 + $0x40] sm:$0xff]  ;;  %v6109_v61 = vsel %vm6028_vm10, %v6106_v21, %v6108_v58  ;;  %v7692_v60 = vrot.slane %v7690_v31, 1 }
 0x3a3   : > { %5898 = vst.msk [vmem:[#allocation3 + $0x140] sm:$0xff] %vm450_vm3, %v5819_v52  ;;  %4755 = vst.msk [vmem:[#allocation3 + $0x168] sm:$0xff] %vm450_vm3, %v4676_v8  ;;  %v5820_v43 = vadd.f32 %v5741_v26, %v15247_v16  ;;  %11955 = vmatprep.mubr.msk.bf16.mxu1 %vm450_vm3, %v6107_v14  ;;  %12043 = vmatprep.mubr.msk.bf16.mxu0 %vm450_vm3, %v6881_v6  ;;  %v7698_v41 = vshll.u32 %v15300_v1, 16  ;;  %v8817_v21 = vsel %vm3075_vm7, %v8815_v45, %v8816_v35  ;;  %v4606_v48 = vld [vmem:[#allocation3 + $0x1b0] sm:$0xff]  ;;  %v4604_v3 = vld [vmem:[#allocation3 + $0x1a0] sm:$0xff] }
 0x3a4   : > { %5901 = vst.msk [vmem:[#allocation3 + $0x158] sm:$0xff] %vm450_vm3, %v5822_v56  ;;  %v7688_v9 = vor.u32 %v7686_v49, %v7684_v13  ;;  %v7696_v42 = vor.u32 %v7694_v47, %v7692_v60  ;;  %v8820_v29 = vrot.slane %v15300_v1, 1  ;;  %v7706_v27 = vshll.u32 %v15332_v12, 16  ;;  %v4607_v56 = vld [vmem:[#allocation3 + $0x1b8] sm:$0xff] }
 0x3a5   : > { %5899 = vst.msk [vmem:[#allocation3 + $0x148] sm:$0xff] %vm450_vm3, %v5820_v43  ;;  %v11753_v4 = vpop.f32.mrb[168].mxu1  ;;  %v15304_v51 = vpop.f32.mrb[168].mxu0  ;;  %v7702_v52 = vshrl.u32 %v15300_v1, 16  ;;  %v8819_v43 = vsel %vm3075_vm7, %v8816_v35, %v8818_v19  ;;  %v7710_v58 = vshrl.u32 %v15332_v12, 16 }
 0x3a6   : > { %v4681_v55 = vadd.f32 %v11753_v4, %v4602_v17  ;;  %v4426_v15 = vpop.f32.mrb[169].mxu1  ;;  %v15306_v46 = vpop.f32.mrb[169].mxu0  ;;  %v7693_v14 = vsel %vm1933_vm8, %v7688_v9, %v7692_v60  ;;  %v4605_v17 = vld [vmem:[#allocation3 + $0x1a8] sm:$0xff]  ;;  %v8821_v10 = vsel %vm3075_vm7, %v8818_v19, %v8820_v29  ;;  %v7708_v49 = vrot.slane %v7706_v27, 1 }
 0x3a7   : > { %v5746_v16 = vld [vmem:[#allocation3 + $0x170] sm:$0xff]  ;;  %v4679_v18 = vadd.f32 %v4600_v25, %v4426_v15  ;;  %v11754_v44 = vpop.f32.mrb[170].mxu1  ;;  %v15313_v0 = vpop.f32.mrb[170].mxu0 }
 0x3a8   : > { %4760 = vst.msk [vmem:[#allocation3 + $0x190] sm:$0xff] %vm450_vm3, %v4681_v55  ;;  %v5825_v2 = vadd.f32 %v15270_v5, %v5746_v16  ;;  %v5744_v40 = vld [vmem:[#allocation3 + $0x160] sm:$0xff]  ;;  %v4682_v57 = vadd.f32 %v11754_v44, %v4603_v23  ;;  %v4429_v38 = vpop.f32.mrb[171].mxu1  ;;  %v15319_v54 = vpop.f32.mrb[171].mxu0  ;;  %v7716_v44 = vrot.slane %v7714_v20, 1 }
 0x3a9   : > { %4758 = vst.msk [vmem:[#allocation3 + $0x180] sm:$0xff] %vm450_vm3, %v4679_v18  ;;  %v5823_v37 = vadd.f32 %v5744_v40, %v15273_v22  ;;  %v5747_v39 = vld [vmem:[#allocation3 + $0x178] sm:$0xff]  ;;  %v4680_v36 = vadd.f32 %v4601_v33, %v4429_v38  ;;  %v7712_v18 = vor.u32 %v7710_v58, %v7708_v49  ;;  %v4608_v33 = vld [vmem:[#allocation3 + $0x1c0] sm:$0xff] }
 0x3aa   : > { %5904 = vst.msk [vmem:[#allocation3 + $0x170] sm:$0xff] %vm450_vm3, %v5825_v2  ;;  %4761 = vst.msk [vmem:[#allocation3 + $0x198] sm:$0xff] %vm450_vm3, %v4682_v57  ;;  %v5826_v5 = vadd.f32 %v15275_v63, %v5747_v39  ;;  %v5745_v53 = vld [vmem:[#allocation3 + $0x168] sm:$0xff]  ;;  %11956 = vmatmul.mubr.msk.bf16.gmra.mrb[20].mxu1 %vm450_vm3, %v6109_v61  ;;  %12044 = vmatmul.mubr.msk.bf16.gmra.mrb[20].mxu0 %vm450_vm3, %v6882_v11  ;;  %v7700_v63 = vrot.slane %v7698_v41, 1  ;;  %v8822_v61 = vrot.slane %v15332_v12, 1  ;;  %v8824_v11 = vrot.slane %v15341_v34, 1 }
 0x3ab   : > { %5902 = vst.msk [vmem:[#allocation3 + $0x160] sm:$0xff] %vm450_vm3, %v5823_v37  ;;  %4759 = vst.msk [vmem:[#allocation3 + $0x188] sm:$0xff] %vm450_vm3, %v4680_v36  ;;  %v5824_v22 = vadd.f32 %v5745_v53, %v15280_v28  ;;  %12055 = vmatprep.mubr.msk.bf16.mxu1 %vm450_vm3, %v7685_v24  ;;  %12143 = vmatprep.mubr.msk.bf16.mxu0 %vm450_vm3, %v8817_v21  ;;  %v15383_v24 = vld [vmem:[#allocation2 + $0x60] sm:$0xff]  ;;  %v4610_v2 = vld [vmem:[#allocation3 + $0x1d0] sm:$0xff]  ;;  %v7718_v21 = vshrl.u32 %v15341_v34, 16  ;;  %v7717_v60 = vsel %vm1933_vm8, %v7712_v18, %v7716_v44 }
 0x3ac   : > { %5905 = vst.msk [vmem:[#allocation3 + $0x178] sm:$0xff] %vm450_vm3, %v5826_v5  ;;  %v7701_v15 = vsel %vm1933_vm8, %v7696_v42, %v7700_v63  ;;  %v7704_v16 = vor.u32 %v7702_v52, %v7700_v63  ;;  %v4611_v53 = vld [vmem:[#allocation3 + $0x1d8] sm:$0xff]  ;;  %v8823_v12 = vsel %vm3075_vm7, %v8820_v29, %v8822_v61  ;;  %v8825_v1 = vsel %vm3075_vm7, %v8822_v61, %v8824_v11 }
 0x3ad   : > { %5903 = vst.msk [vmem:[#allocation3 + $0x168] sm:$0xff] %vm450_vm3, %v5824_v22  ;;  %v11757_v50 = vpop.f32.mrb[172].mxu1  ;;  %v15345_v59 = vpop.f32.mrb[172].mxu0  ;;  %v7730_v22 = vshll.u32 %v15383_v24, 16  ;;  %v7720_v52 = vor.u32 %v7718_v21, %v7716_v44  ;;  %v8828_v58 = vrot.slane %v15383_v24, 1 }
 0x3ae   : > { %v4685_v62 = vadd.f32 %v11757_v50, %v4606_v48  ;;  %v4442_v28 = vpop.f32.mrb[173].mxu1  ;;  %v15349_v6 = vpop.f32.mrb[173].mxu0  ;;  %v4609_v48 = vld [vmem:[#allocation3 + $0x1c8] sm:$0xff] }
 0x3af   : > { %v5750_v7 = vld [vmem:[#allocation3 + $0x190] sm:$0xff]  ;;  %v4683_v8 = vadd.f32 %v4604_v3, %v4442_v28  ;;  %v11758_v30 = vpop.f32.mrb[174].mxu1  ;;  %v15352_v26 = vpop.f32.mrb[174].mxu0 }
 0x3b0   : > { %4764 = vst.msk [vmem:[#allocation3 + $0x1b0] sm:$0xff] %vm450_vm3, %v4685_v62  ;;  %v5829_v32 = vadd.f32 %v15304_v51, %v5750_v7  ;;  %v5748_v13 = vld [vmem:[#allocation3 + $0x180] sm:$0xff]  ;;  %v4686_v45 = vadd.f32 %v11758_v30, %v4607_v56  ;;  %v4445_v4 = vpop.f32.mrb[175].mxu1  ;;  %v15361_v55 = vpop.f32.mrb[175].mxu0 }
 0x3b1   : > { %4762 = vst.msk [vmem:[#allocation3 + $0x1a0] sm:$0xff] %vm450_vm3, %v4683_v8  ;;  %v5827_v35 = vadd.f32 %v5748_v13, %v15306_v46  ;;  %v5751_v25 = vld [vmem:[#allocation3 + $0x198] sm:$0xff]  ;;  %v4684_v23 = vadd.f32 %v4605_v17, %v4445_v4  ;;  %v15416_v8 = vld [vmem:[#allocation2 + $0x68] sm:$0xff] }
 0x3b2   : > { %5908 = vst.msk [vmem:[#allocation3 + $0x190] sm:$0xff] %vm450_vm3, %v5829_v32  ;;  %4765 = vst.msk [vmem:[#allocation3 + $0x1b8] sm:$0xff] %vm450_vm3, %v4686_v45  ;;  %v5830_v51 = vadd.f32 %v15313_v0, %v5751_v25  ;;  %v5749_v31 = vld [vmem:[#allocation3 + $0x188] sm:$0xff]  ;;  %12056 = vmatmul.mubr.msk.bf16.vlgmr.msra.gmra.mrb[24].mxu1 %vm450_vm3, %v7693_v14  ;;  %12144 = vmatmul.mubr.msk.bf16.vlgmr.msra.gmra.mrb[24].mxu0 %vm450_vm3, %v8819_v43  ;;  %v15380_v0 = vld [vmem:[#allocation2 + $0x58] sm:$0xff]  ;;  %v7738_v45 = vshll.u32 %v15416_v8, 16 }
 0x3b3   : > { %5906 = vst.msk [vmem:[#allocation3 + $0x180] sm:$0xff] %vm450_vm3, %v5827_v35  ;;  %4763 = vst.msk [vmem:[#allocation3 + $0x1a8] sm:$0xff] %vm450_vm3, %v4684_v23  ;;  %v5828_v46 = vadd.f32 %v5749_v31, %v15319_v54  ;;  %12059 = vmatprep.mubr.msk.bf16.mxu1 %vm450_vm3, %v7701_v15  ;;  %12147 = vmatprep.mubr.msk.bf16.mxu0 %vm450_vm3, %v8821_v10  ;;  %v7709_v54 = vsel %vm1933_vm8, %v7704_v16, %v7708_v49  ;;  %v7722_v37 = vshll.u32 %v15380_v0, 16  ;;  %v15425_v43 = vld [vmem:[#allocation2 + $0x70] sm:$0xff]  ;;  %v4614_v32 = vld [vmem:[#allocation3 + $0x1f0] sm:$0xff] }
 0x3b4   : > { %5909 = vst.msk [vmem:[#allocation3 + $0x198] sm:$0xff] %vm450_vm3, %v5830_v51  ;;  %v7726_v62 = vshrl.u32 %v15380_v0, 16  ;;  %v8826_v30 = vrot.slane %v15380_v0, 1  ;;  %v7734_v35 = vshrl.u32 %v15383_v24, 16  ;;  %v4615_v51 = vld [vmem:[#allocation3 + $0x1f8] sm:$0xff]  ;;  %v7746_v18 = vshll.u32 %v15425_v43, 16 }
 0x3b5   : > { %5907 = vst.msk [vmem:[#allocation3 + $0x188] sm:$0xff] %vm450_vm3, %v5828_v46  ;;  %v11761_v41 = vpop.f32.mrb[176].mxu1  ;;  %v15387_v40 = vpop.f32.mrb[176].mxu0  ;;  %v7724_v7 = vrot.slane %v7722_v37, 1  ;;  %v7742_v46 = vshrl.u32 %v15416_v8, 16  ;;  %v7740_v21 = vrot.slane %v7738_v45, 1 }
 0x3b6   : > { %v4689_v57 = vadd.f32 %v11761_v41, %v4610_v2  ;;  %v4458_v38 = vpop.f32.mrb[177].mxu1  ;;  %v15390_v47 = vpop.f32.mrb[177].mxu0  ;;  %v8827_v16 = vsel %vm3075_vm7, %v8824_v11, %v8826_v30  ;;  %v4613_v2 = vld [vmem:[#allocation3 + $0x1e8] sm:$0xff]  ;;  %v8829_v34 = vsel %vm3075_vm7, %v8826_v30, %v8828_v58 }
 0x3b7   : > { %v5754_v39 = vld [vmem:[#allocation3 + $0x1b0] sm:$0xff]  ;;  %v4687_v36 = vadd.f32 %v4608_v33, %v4458_v38  ;;  %v11762_v5 = vpop.f32.mrb[178].mxu1  ;;  %v15394_v9 = vpop.f32.mrb[178].mxu0  ;;  %v7728_v56 = vor.u32 %v7726_v62, %v7724_v7  ;;  %v7725_v15 = vsel %vm1933_vm8, %v7720_v52, %v7724_v7 }
 0x3b8   : > { %4768 = vst.msk [vmem:[#allocation3 + $0x1d0] sm:$0xff] %vm450_vm3, %v4689_v57  ;;  %v5833_v19 = vadd.f32 %v15345_v59, %v5754_v39  ;;  %v5752_v42 = vld [vmem:[#allocation3 + $0x1a0] sm:$0xff]  ;;  %v4690_v63 = vadd.f32 %v11762_v5, %v4611_v53  ;;  %v4461_v50 = vpop.f32.mrb[179].mxu1  ;;  %v15403_v27 = vpop.f32.mrb[179].mxu0  ;;  %v7748_v5 = vrot.slane %v7746_v18, 1  ;;  %v8830_v53 = vrot.slane %v15416_v8, 1 }
 0x3b9   : > { %4766 = vst.msk [vmem:[#allocation3 + $0x1c0] sm:$0xff] %vm450_vm3, %v4687_v36  ;;  %v5831_v29 = vadd.f32 %v5752_v42, %v15349_v6  ;;  %v5755_v28 = vld [vmem:[#allocation3 + $0x1b8] sm:$0xff]  ;;  %v4688_v3 = vadd.f32 %v4609_v48, %v4461_v50  ;;  %v7744_v36 = vor.u32 %v7742_v46, %v7740_v21  ;;  %v4616_v48 = vld [vmem:[#allocation3 + $0x200] sm:$0xff] }
 0x3ba   : > { %5912 = vst.msk [vmem:[#allocation3 + $0x1b0] sm:$0xff] %vm450_vm3, %v5833_v19  ;;  %4769 = vst.msk [vmem:[#allocation3 + $0x1d8] sm:$0xff] %vm450_vm3, %v4690_v63  ;;  %v5834_v59 = vadd.f32 %v15352_v26, %v5755_v28  ;;  %v5753_v14 = vld [vmem:[#allocation3 + $0x1a8] sm:$0xff]  ;;  %12060 = vmatmul.mubr.msk.bf16.gmra.mrb[28].mxu1 %vm450_vm3, %v7709_v54  ;;  %12148 = vmatmul.mubr.msk.bf16.gmra.mrb[28].mxu0 %vm450_vm3, %v8823_v12  ;;  %v7732_v26 = vrot.slane %v7730_v22, 1  ;;  %v8832_v12 = vrot.slane %v15425_v43, 1  ;;  %v4618_v19 = vld [vmem:[#allocation3 + $0x210] sm:$0xff] }
 0x3bb   : > { %5910 = vst.msk [vmem:[#allocation3 + $0x1a0] sm:$0xff] %vm450_vm3, %v5831_v29  ;;  %4767 = vst.msk [vmem:[#allocation3 + $0x1c8] sm:$0xff] %vm450_vm3, %v4688_v3  ;;  %v5832_v6 = vadd.f32 %v5753_v14, %v15361_v55  ;;  %12063 = vmatprep.mubr.msk.bf16.mxu1 %vm450_vm3, %v7717_v60  ;;  %12151 = vmatprep.mubr.msk.bf16.mxu0 %vm450_vm3, %v8825_v1  ;;  %v4612_v55 = vld [vmem:[#allocation3 + $0x1e0] sm:$0xff]  ;;  %v15467_v60 = vld [vmem:[#allocation2 + $0x80] sm:$0xff]  ;;  %v7750_v1 = vshrl.u32 %v15425_v43, 16  ;;  %v7749_v7 = vsel %vm1933_vm8, %v7744_v36, %v7748_v5 }
 0x3bc   : > { %5913 = vst.msk [vmem:[#allocation3 + $0x1b8] sm:$0xff] %vm450_vm3, %v5834_v59  ;;  %v7733_v38 = vsel %vm1933_vm8, %v7728_v56, %v7732_v26  ;;  %v7736_v39 = vor.u32 %v7734_v35, %v7732_v26  ;;  %v4619_v14 = vld [vmem:[#allocation3 + $0x218] sm:$0xff]  ;;  %v8831_v8 = vsel %vm3075_vm7, %v8828_v58, %v8830_v53  ;;  %v8833_v24 = vsel %vm3075_vm7, %v8830_v53, %v8832_v12 }
 0x3bd   : > { %5911 = vst.msk [vmem:[#allocation3 + $0x1a8] sm:$0xff] %vm450_vm3, %v5832_v6  ;;  %v11765_v20 = vpop.f32.mrb[180].mxu1  ;;  %v15429_v13 = vpop.f32.mrb[180].mxu0  ;;  %v7762_v6 = vshll.u32 %v15467_v60, 16  ;;  %v7752_v35 = vor.u32 %v7750_v1, %v7748_v5  ;;  %v8836_v46 = vrot.slane %v15467_v60, 1 }
 0x3be   : > { %v4693_v4 = vadd.f32 %v11765_v20, %v4614_v32  ;;  %v4474_v17 = vpop.f32.mrb[181].mxu1  ;;  %v15433_v10 = vpop.f32.mrb[181].mxu0  ;;  %v4617_v32 = vld [vmem:[#allocation3 + $0x208] sm:$0xff] }
 0x3bf   : > { %v5758_v25 = vld [vmem:[#allocation3 + $0x1d0] sm:$0xff]  ;;  %v4691_v23 = vadd.f32 %v4612_v55, %v4474_v17  ;;  %v11766_v49 = vpop.f32.mrb[182].mxu1  ;;  %v15436_v31 = vpop.f32.mrb[182].mxu0 }
 0x3c0   : > { %4772 = vst.msk [vmem:[#allocation3 + $0x1f0] sm:$0xff] %vm450_vm3, %v4693_v4  ;;  %v5837_v44 = vadd.f32 %v15387_v40, %v5758_v25  ;;  %v5756_v61 = vld [vmem:[#allocation3 + $0x1c0] sm:$0xff]  ;;  %v4694_v0 = vadd.f32 %v11766_v49, %v4615_v51  ;;  %v4477_v41 = vpop.f32.mrb[183].mxu1  ;;  %v15445_v57 = vpop.f32.mrb[183].mxu0 }
 0x3c1   : > { %4770 = vst.msk [vmem:[#allocation3 + $0x1e0] sm:$0xff] %vm450_vm3, %v4691_v23  ;;  %v5835_v11 = vadd.f32 %v5756_v61, %v15390_v47  ;;  %v5759_v33 = vld [vmem:[#allocation3 + $0x1d8] sm:$0xff]  ;;  %v4692_v54 = vadd.f32 %v4613_v2, %v4477_v41  ;;  %v15500_v23 = vld [vmem:[#allocation2 + $0x88] sm:$0xff] }
 0x3c2   : > { %5916 = vst.msk [vmem:[#allocation3 + $0x1d0] sm:$0xff] %vm450_vm3, %v5837_v44  ;;  %4773 = vst.msk [vmem:[#allocation3 + $0x1f8] sm:$0xff] %vm450_vm3, %v4694_v0  ;;  %v5838_v40 = vadd.f32 %v15394_v9, %v5759_v33  ;;  %v5757_v37 = vld [vmem:[#allocation3 + $0x1c8] sm:$0xff]  ;;  %12064 = vmatmul.mubr.msk.bf16.gmra.mrb[32].mxu1 %vm450_vm3, %v7725_v15  ;;  %12152 = vmatmul.mubr.msk.bf16.gmra.mrb[32].mxu0 %vm450_vm3, %v8827_v16  ;;  %v15464_v9 = vld [vmem:[#allocation2 + $0x78] sm:$0xff]  ;;  %v7770_v0 = vshll.u32 %v15500_v23, 16 }
 0x3c3   : > { %5914 = vst.msk [vmem:[#allocation3 + $0x1c0] sm:$0xff] %vm450_vm3, %v5835_v11  ;;  %4771 = vst.msk [vmem:[#allocation3 + $0x1e8] sm:$0xff] %vm450_vm3, %v4692_v54  ;;  %v5836_v47 = vadd.f32 %v5757_v37, %v15403_v27  ;;  %12067 = vmatprep.mubr.msk.bf16.mxu1 %vm450_vm3, %v7733_v38  ;;  %12155 = vmatprep.mubr.msk.bf16.mxu0 %vm450_vm3, %v8829_v34  ;;  %v7741_v27 = vsel %vm1933_vm8, %v7736_v39, %v7740_v21  ;;  %v7754_v29 = vshll.u32 %v15464_v9, 16  ;;  %v15509_v16 = vld [vmem:[#allocation2 + $0x90] sm:$0xff]  ;;  %v4622_v44 = vld [vmem:[#allocation3 + $0x230] sm:$0xff] }
 0x3c4   : > { %5917 = vst.msk [vmem:[#allocation3 + $0x1d8] sm:$0xff] %vm450_vm3, %v5838_v40  ;;  %v7758_v4 = vshrl.u32 %v15464_v9, 16  ;;  %v8834_v49 = vrot.slane %v15464_v9, 1  ;;  %v7766_v11 = vshrl.u32 %v15467_v60, 16  ;;  %v4623_v40 = vld [vmem:[#allocation3 + $0x238] sm:$0xff]  ;;  %v7778_v36 = vshll.u32 %v15509_v16, 16 }
 0x3c5   : > { %5915 = vst.msk [vmem:[#allocation3 + $0x1c8] sm:$0xff] %vm450_vm3, %v5836_v47  ;;  %v11769_v22 = vpop.f32.mrb[184].mxu1  ;;  %v15471_v42 = vpop.f32.mrb[184].mxu0  ;;  %v7756_v25 = vrot.slane %v7754_v29, 1  ;;  %v7774_v47 = vshrl.u32 %v15500_v23, 16  ;;  %v7772_v1 = vrot.slane %v7770_v0, 1 }
 0x3c6   : > { %v4697_v63 = vadd.f32 %v11769_v22, %v4618_v19  ;;  %v4490_v50 = vpop.f32.mrb[185].mxu1  ;;  %v15474_v62 = vpop.f32.mrb[185].mxu0  ;;  %v8835_v39 = vsel %vm3075_vm7, %v8832_v12, %v8834_v49  ;;  %v4621_v19 = vld [vmem:[#allocation3 + $0x228] sm:$0xff]  ;;  %v8837_v43 = vsel %vm3075_vm7, %v8834_v49, %v8836_v46 }
 0x3c7   : > { %v5762_v28 = vld [vmem:[#allocation3 + $0x1f0] sm:$0xff]  ;;  %v4695_v3 = vadd.f32 %v4616_v48, %v4490_v50  ;;  %v11770_v59 = vpop.f32.mrb[186].mxu1  ;;  %v15478_v52 = vpop.f32.mrb[186].mxu0  ;;  %v7760_v51 = vor.u32 %v7758_v4, %v7756_v25  ;;  %v7757_v38 = vsel %vm1933_vm8, %v7752_v35, %v7756_v25 }
 0x3c8   : > { %4776 = vst.msk [vmem:[#allocation3 + $0x210] sm:$0xff] %vm450_vm3, %v4697_v63  ;;  %v5841_v30 = vadd.f32 %v15429_v13, %v5762_v28  ;;  %v5760_v56 = vld [vmem:[#allocation3 + $0x1e0] sm:$0xff]  ;;  %v4698_v26 = vadd.f32 %v11770_v59, %v4619_v14  ;;  %v4493_v20 = vpop.f32.mrb[187].mxu1  ;;  %v15487_v45 = vpop.f32.mrb[187].mxu0  ;;  %v7780_v59 = vrot.slane %v7778_v36, 1  ;;  %v8838_v14 = vrot.slane %v15500_v23, 1 }
 0x3c9   : > { %4774 = vst.msk [vmem:[#allocation3 + $0x200] sm:$0xff] %vm450_vm3, %v4695_v3  ;;  %v5839_v58 = vadd.f32 %v5760_v56, %v15433_v10  ;;  %v5763_v17 = vld [vmem:[#allocation3 + $0x1f8] sm:$0xff]  ;;  %v4696_v55 = vadd.f32 %v4617_v32, %v4493_v20  ;;  %v7776_v3 = vor.u32 %v7774_v47, %v7772_v1  ;;  %v4624_v32 = vld [vmem:[#allocation3 + $0x240] sm:$0xff] }
 0x3ca   : > { %5920 = vst.msk [vmem:[#allocation3 + $0x1f0] sm:$0xff] %vm450_vm3, %v5841_v30  ;;  %4777 = vst.msk [vmem:[#allocation3 + $0x218] sm:$0xff] %vm450_vm3, %v4698_v26  ;;  %v5842_v13 = vadd.f32 %v15436_v31, %v5763_v17  ;;  %v5761_v15 = vld [vmem:[#allocation3 + $0x1e8] sm:$0xff]  ;;  %12068 = vmatmul.mubr.msk.bf16.gmra.mrb[36].mxu1 %vm450_vm3, %v7741_v27  ;;  %12156 = vmatmul.mubr.msk.bf16.gmra.mrb[36].mxu0 %vm450_vm3, %v8831_v8  ;;  %v7764_v31 = vrot.slane %v7762_v6, 1  ;;  %v8840_v8 = vrot.slane %v15509_v16, 1  ;;  %v4626_v30 = vld [vmem:[#allocation3 + $0x250] sm:$0xff] }
 0x3cb   : > { %5918 = vst.msk [vmem:[#allocation3 + $0x1e0] sm:$0xff] %vm450_vm3, %v5839_v58  ;;  %4775 = vst.msk [vmem:[#allocation3 + $0x208] sm:$0xff] %vm450_vm3, %v4696_v55  ;;  %v5840_v10 = vadd.f32 %v5761_v15, %v15445_v57  ;;  %12071 = vmatprep.mubr.msk.bf16.mxu1 %vm450_vm3, %v7749_v7  ;;  %12159 = vmatprep.mubr.msk.bf16.mxu0 %vm450_vm3, %v8833_v24  ;;  %v4620_v57 = vld [vmem:[#allocation3 + $0x220] sm:$0xff]  ;;  %v15551_v7 = vld [vmem:[#allocation2 + $0xa0] sm:$0xff]  ;;  %v7782_v24 = vshrl.u32 %v15509_v16, 16  ;;  %v7781_v25 = vsel %vm1933_vm8, %v7776_v3, %v7780_v59 }
 0x3cc   : > { %5921 = vst.msk [vmem:[#allocation3 + $0x1f8] sm:$0xff] %vm450_vm3, %v5842_v13  ;;  %v7765_v50 = vsel %vm1933_vm8, %v7760_v51, %v7764_v31  ;;  %v7768_v28 = vor.u32 %v7766_v11, %v7764_v31  ;;  %v4627_v15 = vld [vmem:[#allocation3 + $0x258] sm:$0xff]  ;;  %v8839_v23 = vsel %vm3075_vm7, %v8836_v46, %v8838_v14  ;;  %v8841_v60 = vsel %vm3075_vm7, %v8838_v14, %v8840_v8 }
 0x3cd   : > { %5919 = vst.msk [vmem:[#allocation3 + $0x1e8] sm:$0xff] %vm450_vm3, %v5840_v10  ;;  %v11773_v18 = vpop.f32.mrb[188].mxu1  ;;  %v15513_v61 = vpop.f32.mrb[188].mxu0  ;;  %v7794_v10 = vshll.u32 %v15551_v7, 16  ;;  %v7784_v11 = vor.u32 %v7782_v24, %v7780_v59  ;;  %v8844_v47 = vrot.slane %v15551_v7, 1 }
 0x3ce   : > { %v4701_v41 = vadd.f32 %v11773_v18, %v4622_v44  ;;  %v4506_v2 = vpop.f32.mrb[189].mxu1  ;;  %v15517_v34 = vpop.f32.mrb[189].mxu0  ;;  %v4625_v44 = vld [vmem:[#allocation3 + $0x248] sm:$0xff] }
 0x3cf   : > { %v5766_v33 = vld [vmem:[#allocation3 + $0x210] sm:$0xff]  ;;  %v4699_v54 = vadd.f32 %v4620_v57, %v4506_v2  ;;  %v11774_v21 = vpop.f32.mrb[190].mxu1  ;;  %v15520_v37 = vpop.f32.mrb[190].mxu0 }
 0x3d0   : > { %4780 = vst.msk [vmem:[#allocation3 + $0x230] sm:$0xff] %vm450_vm3, %v4701_v41  ;;  %v5845_v5 = vadd.f32 %v15471_v42, %v5766_v33  ;;  %v5764_v53 = vld [vmem:[#allocation3 + $0x200] sm:$0xff]  ;;  %v4702_v9 = vadd.f32 %v11774_v21, %v4623_v40  ;;  %v4509_v22 = vpop.f32.mrb[191].mxu1  ;;  %v15529_v63 = vpop.f32.mrb[191].mxu0 }
 0x3d1   : > { %4778 = vst.msk [vmem:[#allocation3 + $0x220] sm:$0xff] %vm450_vm3, %v4699_v54  ;;  %v5843_v12 = vadd.f32 %v5764_v53, %v15474_v62  ;;  %v5767_v48 = vld [vmem:[#allocation3 + $0x218] sm:$0xff]  ;;  %v4700_v27 = vadd.f32 %v4621_v19, %v4509_v22  ;;  %v15584_v54 = vld [vmem:[#allocation2 + $0xa8] sm:$0xff] }
 0x3d2   : > { %5924 = vst.msk [vmem:[#allocation3 + $0x210] sm:$0xff] %vm450_vm3, %v5845_v5  ;;  %4781 = vst.msk [vmem:[#allocation3 + $0x238] sm:$0xff] %vm450_vm3, %v4702_v9  ;;  %v5846_v42 = vadd.f32 %v15478_v52, %v5767_v48  ;;  %v5765_v29 = vld [vmem:[#allocation3 + $0x208] sm:$0xff]  ;;  %12072 = vmatmul.mubr.msk.bf16.gmra.mrb[40].mxu1 %vm450_vm3, %v7757_v38  ;;  %12160 = vmatmul.mubr.msk.bf16.gmra.mrb[40].mxu0 %vm450_vm3, %v8835_v39  ;;  %v15548_v52 = vld [vmem:[#allocation2 + $0x98] sm:$0xff]  ;;  %v7802_v9 = vshll.u32 %v15584_v54, 16 }
 0x3d3   : > { %5922 = vst.msk [vmem:[#allocation3 + $0x200] sm:$0xff] %vm450_vm3, %v5843_v12  ;;  %4779 = vst.msk [vmem:[#allocation3 + $0x228] sm:$0xff] %vm450_vm3, %v4700_v27  ;;  %v5844_v62 = vadd.f32 %v5765_v29, %v15487_v45  ;;  %12075 = vmatprep.mubr.msk.bf16.mxu1 %vm450_vm3, %v7765_v50  ;;  %12163 = vmatprep.mubr.msk.bf16.mxu0 %vm450_vm3, %v8837_v43  ;;  %v7773_v45 = vsel %vm1933_vm8, %v7768_v28, %v7772_v1  ;;  %v7786_v58 = vshll.u32 %v15548_v52, 16  ;;  %v15593_v39 = vld [vmem:[#allocation2 + $0xb0] sm:$0xff]  ;;  %v4630_v5 = vld [vmem:[#allocation3 + $0x270] sm:$0xff] }
 0x3d4   : > { %5925 = vst.msk [vmem:[#allocation3 + $0x218] sm:$0xff] %vm450_vm3, %v5846_v42  ;;  %v7790_v41 = vshrl.u32 %v15548_v52, 16  ;;  %v8842_v21 = vrot.slane %v15548_v52, 1  ;;  %v7798_v12 = vshrl.u32 %v15551_v7, 16  ;;  %v7806_v28 = vshrl.u32 %v15584_v54, 16  ;;  %v4629_v52 = vld [vmem:[#allocation3 + $0x268] sm:$0xff] }
 0x3d5   : > { %5923 = vst.msk [vmem:[#allocation3 + $0x208] sm:$0xff] %vm450_vm3, %v5844_v62  ;;  %v11777_v6 = vpop.f32.mrb[192].mxu1  ;;  %v15555_v56 = vpop.f32.mrb[192].mxu0  ;;  %v7788_v33 = vrot.slane %v7786_v58, 1  ;;  %v7810_v62 = vshll.u32 %v15593_v39, 16 }
 0x3d6   : > { %v4705_v26 = vadd.f32 %v11777_v6, %v4626_v30  ;;  %v4522_v20 = vpop.f32.mrb[193].mxu1  ;;  %v15558_v4 = vpop.f32.mrb[193].mxu0  ;;  %v8843_v29 = vsel %vm3075_vm7, %v8840_v8, %v8842_v21  ;;  %v8845_v16 = vsel %vm3075_vm7, %v8842_v21, %v8844_v47 }
 0x3d7   : > { %v5770_v17 = vld [vmem:[#allocation3 + $0x230] sm:$0xff]  ;;  %v4703_v55 = vadd.f32 %v4624_v32, %v4522_v20  ;;  %v11778_v13 = vpop.f32.mrb[194].mxu1  ;;  %v15562_v35 = vpop.f32.mrb[194].mxu0  ;;  %v7792_v40 = vor.u32 %v7790_v41, %v7788_v33  ;;  %v7789_v50 = vsel %vm1933_vm8, %v7784_v11, %v7788_v33  ;;  %v7804_v32 = vrot.slane %v7802_v9, 1 }
 0x3d8   : > { %4784 = vst.msk [vmem:[#allocation3 + $0x250] sm:$0xff] %vm450_vm3, %v4705_v26  ;;  %v5849_v49 = vadd.f32 %v15513_v61, %v5770_v17  ;;  %v5768_v51 = vld [vmem:[#allocation3 + $0x220] sm:$0xff]  ;;  %v4706_v31 = vadd.f32 %v11778_v13, %v4627_v15  ;;  %v4525_v18 = vpop.f32.mrb[195].mxu1  ;;  %v15571_v0 = vpop.f32.mrb[195].mxu0  ;;  %v7812_v17 = vrot.slane %v7810_v62, 1  ;;  %v15629_v13 = vld [vmem:[#allocation2 + $0xb8] sm:$0xff] }
 0x3d9   : > { %4782 = vst.msk [vmem:[#allocation3 + $0x240] sm:$0xff] %vm450_vm3, %v4703_v55  ;;  %v5847_v46 = vadd.f32 %v5768_v51, %v15517_v34  ;;  %v5771_v2 = vld [vmem:[#allocation3 + $0x238] sm:$0xff]  ;;  %v4704_v57 = vadd.f32 %v4625_v44, %v4525_v18  ;;  %v8846_v55 = vrot.slane %v15584_v54, 1  ;;  %v7818_v41 = vshll.u32 %v15629_v13, 16 }
 0x3da   : > { %5928 = vst.msk [vmem:[#allocation3 + $0x230] sm:$0xff] %vm450_vm3, %v5849_v49  ;;  %4785 = vst.msk [vmem:[#allocation3 + $0x258] sm:$0xff] %vm450_vm3, %v4706_v31  ;;  %v5850_v61 = vadd.f32 %v15520_v37, %v5771_v2  ;;  %v5769_v38 = vld [vmem:[#allocation3 + $0x228] sm:$0xff]  ;;  %12076 = vmatmul.mubr.msk.bf16.gmra.mrb[44].mxu1 %vm450_vm3, %v7773_v45  ;;  %12164 = vmatmul.mubr.msk.bf16.gmra.mrb[44].mxu0 %vm450_vm3, %v8839_v23  ;;  %v7796_v37 = vrot.slane %v7794_v10, 1  ;;  %v15632_v15 = vld [vmem:[#allocation2 + $0xc0] sm:$0xff] }
 0x3db   : > { %5926 = vst.msk [vmem:[#allocation3 + $0x220] sm:$0xff] %vm450_vm3, %v5847_v46  ;;  %4783 = vst.msk [vmem:[#allocation3 + $0x248] sm:$0xff] %vm450_vm3, %v4704_v57  ;;  %v5848_v34 = vadd.f32 %v5769_v38, %v15529_v63  ;;  %12079 = vmatprep.mubr.msk.bf16.mxu1 %vm450_vm3, %v7781_v25  ;;  %12167 = vmatprep.mubr.msk.bf16.mxu0 %vm450_vm3, %v8841_v60  ;;  %v4628_v63 = vld [vmem:[#allocation3 + $0x260] sm:$0xff]  ;;  %v6608_v23 = vld [vmem:[#allocation3 + $0x10] sm:$0xff]  ;;  %v8847_v11 = vsel %vm3075_vm7, %v8844_v47, %v8846_v55  ;;  %v7826_v33 = vshll.u32 %v15632_v15, 16 }
 0x3dc   : > { %5929 = vst.msk [vmem:[#allocation3 + $0x238] sm:$0xff] %vm450_vm3, %v5850_v61  ;;  %v7797_v30 = vsel %vm1933_vm8, %v7792_v40, %v7796_v37  ;;  %v7800_v24 = vor.u32 %v7798_v12, %v7796_v37  ;;  %v6606_v31 = vld [vmem:[#allocation3] sm:$0xff]  ;;  %v6609_v57 = vld [vmem:[#allocation3 + $0x18] sm:$0xff]  ;;  %v6607_v37 = vld [vmem:[#allocation3 + $0x8] sm:$0xff] }
 0x3dd   : > { %5927 = vst.msk [vmem:[#allocation3 + $0x228] sm:$0xff] %vm450_vm3, %v5848_v34  ;;  %v11781_v36 = vpop.f32.mrb[196].mxu1  ;;  %v15597_v53 = vpop.f32.mrb[196].mxu0 }
 0x3de   : > { %v4709_v22 = vadd.f32 %v11781_v36, %v4630_v5  ;;  %v4538_v19 = vpop.f32.mrb[197].mxu1  ;;  %v15601_v43 = vpop.f32.mrb[197].mxu0  ;;  %v7805_v18 = vsel %vm1933_vm8, %v7800_v24, %v7804_v32  ;;  %v7822_v5 = vshrl.u32 %v15629_v13, 16 }
 0x3df   : > { %v5774_v48 = vld [vmem:[#allocation3 + $0x250] sm:$0xff]  ;;  %v4707_v27 = vadd.f32 %v4628_v63, %v4538_v19  ;;  %v11782_v1 = vpop.f32.mrb[198].mxu1  ;;  %v11870_v42 = vpop.f32.mrb[198].mxu0  ;;  %v7820_v19 = vrot.slane %v7818_v41, 1  ;;  %v15664_v63 = vld [vmem:[#allocation2 + $0xc8] sm:$0xff] }
 0x3e0   : > { %4788 = vst.msk [vmem:[#allocation3 + $0x270] sm:$0xff] %vm450_vm3, %v4709_v22  ;;  %v5853_v3 = vadd.f32 %v15555_v56, %v5774_v48  ;;  %v5772_v59 = vld [vmem:[#allocation3 + $0x240] sm:$0xff]  ;;  %v4541_v14 = vpop.f32.mrb[199].mxu1  ;;  %v15611_v6 = vpop.f32.mrb[199].mxu0  ;;  %v7828_v48 = vrot.slane %v7826_v33, 1  ;;  %v8852_v1 = vrot.slane %v15632_v15, 1 }
 0x3e1   : > { %4786 = vst.msk [vmem:[#allocation3 + $0x260] sm:$0xff] %vm450_vm3, %v4707_v27  ;;  %v5851_v8 = vadd.f32 %v5772_v59, %v15558_v4  ;;  %v5775_v26 = vld [vmem:[#allocation3 + $0x258] sm:$0xff]  ;;  %v4708_v20 = vadd.f32 %v4629_v52, %v4541_v14  ;;  %v7808_v4 = vor.u32 %v7806_v28, %v7804_v32  ;;  %v7824_v12 = vor.u32 %v7822_v5, %v7820_v19  ;;  %v15672_v27 = vld [vmem:[#allocation2 + $0xd0] sm:$0xff]  ;;  %v6610_v14 = vld [vmem:[#allocation3 + $0x20] sm:$0xff] }
 0x3e2   : > { %5932 = vst.msk [vmem:[#allocation3 + $0x250] sm:$0xff] %vm450_vm3, %v5853_v3  ;;  %v5854_v56 = vadd.f32 %v15562_v35, %v5775_v26  ;;  %v5773_v45 = vld [vmem:[#allocation3 + $0x248] sm:$0xff]  ;;  %12080 = vmatmul.mubr.msk.bf16.gmra.mrb[48].mxu1 %vm450_vm3, %v7789_v50  ;;  %12168 = vmatmul.mubr.msk.bf16.gmra.mrb[48].mxu0 %vm450_vm3, %v8843_v29  ;;  %v8848_v35 = vrot.slane %v15593_v39, 1  ;;  %v6612_v29 = vld [vmem:[#allocation3 + $0x30] sm:$0xff]  ;;  %v7834_v62 = vshll.u32 %v15664_v63, 16  ;;  %v7842_v24 = vshll.u32 %v15672_v27, 16 }
 0x3e3   : > { %5930 = vst.msk [vmem:[#allocation3 + $0x240] sm:$0xff] %vm450_vm3, %v5851_v8  ;;  %4787 = vst.msk [vmem:[#allocation3 + $0x268] sm:$0xff] %vm450_vm3, %v4708_v20  ;;  %v5852_v58 = vadd.f32 %v5773_v45, %v15571_v0  ;;  %12083 = vmatprep.mubr.msk.bf16.mxu1 %vm450_vm3, %v7797_v30  ;;  %12171 = vmatprep.mubr.msk.bf16.mxu0 %vm450_vm3, %v8845_v16  ;;  %v7814_v0 = vshrl.u32 %v15593_v39, 16  ;;  %v7813_v38 = vsel %vm1933_vm8, %v7808_v4, %v7812_v17  ;;  %v6613_v20 = vld [vmem:[#allocation3 + $0x38] sm:$0xff] }
 0x3e4   : > { %5933 = vst.msk [vmem:[#allocation3 + $0x258] sm:$0xff] %vm450_vm3, %v5854_v56  ;;  %v8849_v7 = vsel %vm3075_vm7, %v8846_v55, %v8848_v35  ;;  %v7830_v30 = vshrl.u32 %v15632_v15, 16  ;;  %v7838_v45 = vshrl.u32 %v15664_v63, 16 }
 0x3e5   : > { %5931 = vst.msk [vmem:[#allocation3 + $0x248] sm:$0xff] %vm450_vm3, %v5852_v58  ;;  %v11881_v25 = vpop.f32.mrb[200].mxu1  ;;  %v15636_v10 = vpop.f32.mrb[200].mxu0  ;;  %v7816_v22 = vor.u32 %v7814_v0, %v7812_v17 }
 0x3e6   : > { %v6687_v49 = vadd.f32 %v11881_v25, %v6608_v23  ;;  %v6288_v51 = vpop.f32.mrb[201].mxu1  ;;  %v15639_v44 = vpop.f32.mrb[201].mxu0  ;;  %v7829_v23 = vsel %vm1933_vm8, %v7824_v12, %v7828_v48  ;;  %v7832_v0 = vor.u32 %v7830_v30, %v7828_v48 }
 0x3e7   : > { %v5778_v60 = vld [vmem:[#allocation3 + $0x270] sm:$0xff]  ;;  %v6685_v46 = vadd.f32 %v6606_v31, %v6288_v51  ;;  %v11882_v2 = vpop.f32.mrb[202].mxu1  ;;  %v15643_v61 = vpop.f32.mrb[202].mxu0  ;;  %v7821_v52 = vsel %vm1933_vm8, %v7816_v22, %v7820_v19  ;;  %v7836_v31 = vrot.slane %v7834_v62, 1 }
 0x3e8   : > { %v5857_v54 = vadd.f32 %v15597_v53, %v5778_v60  ;;  %6766 = vst.msk [vmem:[#allocation3 + $0x10] sm:$0xff] %vm450_vm3, %v6687_v49  ;;  %v5776_v34 = vld [vmem:[#allocation3 + $0x260] sm:$0xff]  ;;  %v6688_v21 = vadd.f32 %v11882_v2, %v6609_v57  ;;  %v6291_v40 = vpop.f32.mrb[203].mxu1  ;;  %v15652_v36 = vpop.f32.mrb[203].mxu0  ;;  %v7844_v60 = vrot.slane %v7842_v24, 1  ;;  %v15711_v2 = vld [vmem:[#allocation2 + $0xd8] sm:$0xff] }
 0x3e9   : > { %v5855_v47 = vadd.f32 %v5776_v34, %v15601_v43  ;;  %6764 = vst.msk [vmem:[#allocation3] sm:$0xff] %vm450_vm3, %v6685_v46  ;;  %v6686_v9 = vadd.f32 %v6607_v37, %v6291_v40  ;;  %v8850_v43 = vrot.slane %v15629_v13, 1  ;;  %v6611_v13 = vld [vmem:[#allocation3 + $0x28] sm:$0xff]  ;;  %v7840_v41 = vor.u32 %v7838_v45, %v7836_v31  ;;  %v15714_v57 = vld [vmem:[#allocation2 + $0xe0] sm:$0xff] }
 0x3ea   : > { %5936 = vst.msk [vmem:[#allocation3 + $0x270] sm:$0xff] %vm450_vm3, %v5857_v54  ;;  %6767 = vst.msk [vmem:[#allocation3 + $0x18] sm:$0xff] %vm450_vm3, %v6688_v21  ;;  %v5777_v53 = vld [vmem:[#allocation3 + $0x268] sm:$0xff]  ;;  %12084 = vmatmul.mubr.msk.bf16.gmra.mrb[52].mxu1 %vm450_vm3, %v7805_v18  ;;  %12172 = vmatmul.mubr.msk.bf16.gmra.mrb[52].mxu0 %vm450_vm3, %v8847_v11  ;;  %v8854_v46 = vrot.slane %v15664_v63, 1  ;;  %v6616_v11 = vld [vmem:[#allocation3 + $0x50] sm:$0xff]  ;;  %v7837_v40 = vsel %vm1933_vm8, %v7832_v0, %v7836_v31  ;;  %v7850_v5 = vshll.u32 %v15711_v2, 16 }
 0x3eb   : > { %5934 = vst.msk [vmem:[#allocation3 + $0x260] sm:$0xff] %vm450_vm3, %v5855_v47  ;;  %v5856_v50 = vadd.f32 %v5777_v53, %v15611_v6  ;;  %6765 = vst.msk [vmem:[#allocation3 + $0x8] sm:$0xff] %vm450_vm3, %v6686_v9  ;;  %12087 = vmatprep.mubr.msk.bf16.mxu1 %vm450_vm3, %v7813_v38  ;;  %12175 = vmatprep.mubr.msk.bf16.mxu0 %vm450_vm3, %v8849_v7  ;;  %v8851_v56 = vsel %vm3075_vm7, %v8848_v35, %v8850_v43  ;;  %v6614_v21 = vld [vmem:[#allocation3 + $0x40] sm:$0xff]  ;;  %v6617_v53 = vld [vmem:[#allocation3 + $0x58] sm:$0xff]  ;;  %v8860_v45 = vrot.slane %v15714_v57, 1 }
 0x3ec   : > { %v8853_v39 = vsel %vm3075_vm7, %v8850_v43, %v8852_v1  ;;  %v7845_v19 = vsel %vm1933_vm8, %v7840_v41, %v7844_v60  ;;  %v8855_v63 = vsel %vm3075_vm7, %v8852_v1, %v8854_v46 }
 0x3ed   : > { %5935 = vst.msk [vmem:[#allocation3 + $0x268] sm:$0xff] %vm450_vm3, %v5856_v50  ;;  %v11885_v42 = vpop.f32.mrb[204].mxu1  ;;  %v15676_v28 = vpop.f32.mrb[204].mxu0  ;;  %v7858_v50 = vshll.u32 %v15714_v57, 16 }
 0x3ee   : > { %v6691_v3 = vadd.f32 %v11885_v42, %v6612_v29  ;;  %v6304_v59 = vpop.f32.mrb[205].mxu1  ;;  %v15680_v6 = vpop.f32.mrb[205].mxu0  ;;  %v6615_v29 = vld [vmem:[#allocation3 + $0x48] sm:$0xff] }
 0x3ef   : > { %v7390_v16 = vld [vmem:[#allocation3 + $0x10] sm:$0xff]  ;;  %v6689_v8 = vadd.f32 %v6610_v14, %v6304_v59  ;;  %v11886_v26 = vpop.f32.mrb[206].mxu1  ;;  %v15683_v32 = vpop.f32.mrb[206].mxu0 }
 0x3f0   : > { %6770 = vst.msk [vmem:[#allocation3 + $0x30] sm:$0xff] %vm450_vm3, %v6691_v3  ;;  %v7469_v58 = vadd.f32 %v15636_v10, %v7390_v16  ;;  %v7388_v4 = vld [vmem:[#allocation3] sm:$0xff]  ;;  %v6692_v17 = vadd.f32 %v11886_v26, %v6613_v20  ;;  %v6307_v55 = vpop.f32.mrb[207].mxu1  ;;  %v15692_v25 = vpop.f32.mrb[207].mxu0  ;;  %v7854_v3 = vshrl.u32 %v15711_v2, 16  ;;  %v7852_v16 = vrot.slane %v7850_v5, 1 }
 0x3f1   : > { %6768 = vst.msk [vmem:[#allocation3 + $0x20] sm:$0xff] %vm450_vm3, %v6689_v8  ;;  %v7467_v35 = vadd.f32 %v7388_v4, %v15639_v44  ;;  %v7391_v49 = vld [vmem:[#allocation3 + $0x18] sm:$0xff]  ;;  %v6690_v51 = vadd.f32 %v6611_v13, %v6307_v55  ;;  %v15747_v8 = vld [vmem:[#allocation2 + $0xe8] sm:$0xff]  ;;  %v8858_v26 = vrot.slane %v15711_v2, 1 }
 0x3f2   : > { %7548 = vst.msk [vmem:[#allocation3 + $0x10] sm:$0xff] %vm450_vm3, %v7469_v58  ;;  %6771 = vst.msk [vmem:[#allocation3 + $0x38] sm:$0xff] %vm450_vm3, %v6692_v17  ;;  %v7470_v10 = vadd.f32 %v15643_v61, %v7391_v49  ;;  %v7389_v18 = vld [vmem:[#allocation3 + $0x8] sm:$0xff]  ;;  %12088 = vmatmul.mubr.msk.bf16.gmra.mrb[56].mxu1 %vm450_vm3, %v7821_v52  ;;  %12176 = vmatmul.mubr.msk.bf16.gmra.mrb[56].mxu0 %vm450_vm3, %v8851_v56  ;;  %v8856_v61 = vrot.slane %v15672_v27, 1  ;;  %v7856_v20 = vor.u32 %v7854_v3, %v7852_v16  ;;  %v6620_v58 = vld [vmem:[#allocation3 + $0x70] sm:$0xff] }
 0x3f3   : > { %7546 = vst.msk [vmem:[#allocation3] sm:$0xff] %vm450_vm3, %v7467_v35  ;;  %6769 = vst.msk [vmem:[#allocation3 + $0x28] sm:$0xff] %vm450_vm3, %v6690_v51  ;;  %v7468_v44 = vadd.f32 %v7389_v18, %v15652_v36  ;;  %12091 = vmatprep.mubr.msk.bf16.mxu1 %vm450_vm3, %v7829_v23  ;;  %12179 = vmatprep.mubr.msk.bf16.mxu0 %vm450_vm3, %v8853_v39  ;;  %v7846_v36 = vshrl.u32 %v15672_v27, 16  ;;  %v15756_v56 = vld [vmem:[#allocation2 + $0xf0] sm:$0xff]  ;;  %v7866_v17 = vshll.u32 %v15747_v8, 16  ;;  %v7862_v35 = vshrl.u32 %v15714_v57, 16 }
 0x3f4   : > { %7549 = vst.msk [vmem:[#allocation3 + $0x18] sm:$0xff] %vm450_vm3, %v7470_v10  ;;  %v8857_v15 = vsel %vm3075_vm7, %v8854_v46, %v8856_v61  ;;  %v6621_v10 = vld [vmem:[#allocation3 + $0x78] sm:$0xff]  ;;  %v8859_v0 = vsel %vm3075_vm7, %v8856_v61, %v8858_v26  ;;  %v7874_v41 = vshll.u32 %v15756_v56, 16  ;;  %v8861_v27 = vsel %vm3075_vm7, %v8858_v26, %v8860_v45 }
 0x3f5   : > { %7547 = vst.msk [vmem:[#allocation3 + $0x8] sm:$0xff] %vm450_vm3, %v7468_v44  ;;  %v11889_v38 = vpop.f32.mrb[208].mxu1  ;;  %v15718_v33 = vpop.f32.mrb[208].mxu0  ;;  %v7848_v30 = vor.u32 %v7846_v36, %v7844_v60  ;;  %v7870_v44 = vshrl.u32 %v15747_v8, 16  ;;  %v7868_v36 = vrot.slane %v7866_v17, 1 }
 0x3f6   : > { %v6695_v54 = vadd.f32 %v11889_v38, %v6616_v11  ;;  %v6320_v34 = vpop.f32.mrb[209].mxu1  ;;  %v15721_v37 = vpop.f32.mrb[209].mxu0  ;;  %v6619_v11 = vld [vmem:[#allocation3 + $0x68] sm:$0xff] }
 0x3f7   : > { %v7394_v7 = vld [vmem:[#allocation3 + $0x30] sm:$0xff]  ;;  %v6693_v47 = vadd.f32 %v6614_v21, %v6320_v34  ;;  %v11890_v9 = vpop.f32.mrb[210].mxu1  ;;  %v15725_v22 = vpop.f32.mrb[210].mxu0  ;;  %v7853_v23 = vsel %vm1933_vm8, %v7848_v30, %v7852_v16 }
 0x3f8   : > { %6774 = vst.msk [vmem:[#allocation3 + $0x50] sm:$0xff] %vm450_vm3, %v6695_v54  ;;  %v7473_v43 = vadd.f32 %v15676_v28, %v7394_v7  ;;  %v7392_v12 = vld [vmem:[#allocation3 + $0x20] sm:$0xff]  ;;  %v6696_v48 = vadd.f32 %v11890_v9, %v6617_v53  ;;  %v6323_v42 = vpop.f32.mrb[211].mxu1  ;;  %v15734_v62 = vpop.f32.mrb[211].mxu0  ;;  %v7876_v9 = vrot.slane %v7874_v41, 1  ;;  %v8862_v53 = vrot.slane %v15747_v8, 1 }
 0x3f9   : > { %6772 = vst.msk [vmem:[#allocation3 + $0x40] sm:$0xff] %vm450_vm3, %v6693_v47  ;;  %v7471_v1 = vadd.f32 %v7392_v12, %v15680_v6  ;;  %v7395_v59 = vld [vmem:[#allocation3 + $0x38] sm:$0xff]  ;;  %v6694_v14 = vadd.f32 %v6615_v29, %v6323_v42  ;;  %v7872_v47 = vor.u32 %v7870_v44, %v7868_v36  ;;  %v6622_v29 = vld [vmem:[#allocation3 + $0x80] sm:$0xff] }
 0x3fa   : > { %7552 = vst.msk [vmem:[#allocation3 + $0x30] sm:$0xff] %vm450_vm3, %v7473_v43  ;;  %6775 = vst.msk [vmem:[#allocation3 + $0x58] sm:$0xff] %vm450_vm3, %v6696_v48  ;;  %v7474_v28 = vadd.f32 %v15683_v32, %v7395_v59  ;;  %v7393_v52 = vld [vmem:[#allocation3 + $0x28] sm:$0xff]  ;;  %12092 = vmatmul.mubr.msk.bf16.gmra.mrb[60].mxu1 %vm450_vm3, %v7837_v40  ;;  %12180 = vmatmul.mubr.msk.bf16.gmra.mrb[60].mxu0 %vm450_vm3, %v8855_v63  ;;  %v7860_v32 = vrot.slane %v7858_v50, 1  ;;  %v8864_v63 = vrot.slane %v15756_v56, 1  ;;  %v6624_v43 = vld [vmem:[#allocation3 + $0x90] sm:$0xff] }
 0x3fb   : > { %7550 = vst.msk [vmem:[#allocation3 + $0x20] sm:$0xff] %vm450_vm3, %v7471_v1  ;;  %6773 = vst.msk [vmem:[#allocation3 + $0x48] sm:$0xff] %vm450_vm3, %v6694_v14  ;;  %v7472_v6 = vadd.f32 %v7393_v52, %v15692_v25  ;;  %12095 = vmatprep.mubr.msk.bf16.mxu1 %vm450_vm3, %v7845_v19  ;;  %12183 = vmatprep.mubr.msk.bf16.mxu0 %vm450_vm3, %v8857_v15  ;;  %v6618_v25 = vld [vmem:[#allocation3 + $0x60] sm:$0xff]  ;;  %v15798_v19 = vld [vmem:[#allocation2 + $0x100] sm:$0xff]  ;;  %v7878_v15 = vshrl.u32 %v15756_v56, 16  ;;  %v7877_v16 = vsel %vm1933_vm8, %v7872_v47, %v7876_v9 }
 0x3fc   : > { %7553 = vst.msk [vmem:[#allocation3 + $0x38] sm:$0xff] %vm450_vm3, %v7474_v28  ;;  %v7861_v34 = vsel %vm1933_vm8, %v7856_v20, %v7860_v32  ;;  %v7864_v7 = vor.u32 %v7862_v35, %v7860_v32  ;;  %v6625_v52 = vld [vmem:[#allocation3 + $0x98] sm:$0xff]  ;;  %v8863_v8 = vsel %vm3075_vm7, %v8860_v45, %v8862_v53  ;;  %v8865_v57 = vsel %vm3075_vm7, %v8862_v53, %v8864_v63 }
 0x3fd   : > { %7551 = vst.msk [vmem:[#allocation3 + $0x28] sm:$0xff] %vm450_vm3, %v7472_v6  ;;  %v11893_v24 = vpop.f32.mrb[212].mxu1  ;;  %v15760_v4 = vpop.f32.mrb[212].mxu0  ;;  %v7890_v6 = vshll.u32 %v15798_v19, 16  ;;  %v7880_v35 = vor.u32 %v7878_v15, %v7876_v9  ;;  %v8868_v44 = vrot.slane %v15798_v19, 1 }
 0x3fe   : > { %v6699_v55 = vadd.f32 %v11893_v24, %v6620_v58  ;;  %v6336_v13 = vpop.f32.mrb[213].mxu1  ;;  %v15764_v39 = vpop.f32.mrb[213].mxu0  ;;  %v6623_v58 = vld [vmem:[#allocation3 + $0x88] sm:$0xff] }
 0x3ff   : > { %v7398_v49 = vld [vmem:[#allocation3 + $0x50] sm:$0xff]  ;;  %v6697_v51 = vadd.f32 %v6618_v25, %v6336_v13  ;;  %v11894_v31 = vpop.f32.mrb[214].mxu1  ;;  %v15767_v18 = vpop.f32.mrb[214].mxu0 }
 0x400   : > { %6778 = vst.msk [vmem:[#allocation3 + $0x70] sm:$0xff] %vm450_vm3, %v6699_v55  ;;  %v7477_v60 = vadd.f32 %v15718_v33, %v7398_v49  ;;  %v7396_v46 = vld [vmem:[#allocation3 + $0x40] sm:$0xff]  ;;  %v6700_v2 = vadd.f32 %v11894_v31, %v6621_v10  ;;  %v6339_v38 = vpop.f32.mrb[215].mxu1  ;;  %v15776_v54 = vpop.f32.mrb[215].mxu0 }
 0x401   : > { %6776 = vst.msk [vmem:[#allocation3 + $0x60] sm:$0xff] %vm450_vm3, %v6697_v51  ;;  %v7475_v61 = vadd.f32 %v7396_v46, %v15721_v37  ;;  %v7399_v21 = vld [vmem:[#allocation3 + $0x58] sm:$0xff]  ;;  %v6698_v40 = vadd.f32 %v6619_v11, %v6339_v38  ;;  %v15831_v51 = vld [vmem:[#allocation2 + $0x108] sm:$0xff] }
 0x402   : > { %7556 = vst.msk [vmem:[#allocation3 + $0x50] sm:$0xff] %vm450_vm3, %v7477_v60  ;;  %6779 = vst.msk [vmem:[#allocation3 + $0x78] sm:$0xff] %vm450_vm3, %v6700_v2  ;;  %v7478_v33 = vadd.f32 %v15725_v22, %v7399_v21  ;;  %v7397_v5 = vld [vmem:[#allocation3 + $0x48] sm:$0xff]  ;;  %12096 = vmatmul.mubr.msk.bf16.gmra.mrb[64].mxu1 %vm450_vm3, %v7853_v23  ;;  %12184 = vmatmul.mubr.msk.bf16.gmra.mrb[64].mxu0 %vm450_vm3, %v8859_v0  ;;  %v15795_v22 = vld [vmem:[#allocation2 + $0xf8] sm:$0xff]  ;;  %v7898_v2 = vshll.u32 %v15831_v51, 16 }
 0x403   : > { %7554 = vst.msk [vmem:[#allocation3 + $0x40] sm:$0xff] %vm450_vm3, %v7475_v61  ;;  %6777 = vst.msk [vmem:[#allocation3 + $0x68] sm:$0xff] %vm450_vm3, %v6698_v40  ;;  %v7476_v37 = vadd.f32 %v7397_v5, %v15734_v62  ;;  %12099 = vmatprep.mubr.msk.bf16.mxu1 %vm450_vm3, %v7861_v34  ;;  %12187 = vmatprep.mubr.msk.bf16.mxu0 %vm450_vm3, %v8861_v27  ;;  %v7869_v62 = vsel %vm1933_vm8, %v7864_v7, %v7868_v36  ;;  %v7882_v1 = vshll.u32 %v15795_v22, 16  ;;  %v15840_v0 = vld [vmem:[#allocation2 + $0x110] sm:$0xff]  ;;  %v6628_v60 = vld [vmem:[#allocation3 + $0xb0] sm:$0xff] }
 0x404   : > { %7557 = vst.msk [vmem:[#allocation3 + $0x58] sm:$0xff] %vm450_vm3, %v7478_v33  ;;  %v7886_v55 = vshrl.u32 %v15795_v22, 16  ;;  %v8866_v31 = vrot.slane %v15795_v22, 1  ;;  %v7894_v61 = vshrl.u32 %v15798_v19, 16  ;;  %v6629_v33 = vld [vmem:[#allocation3 + $0xb8] sm:$0xff]  ;;  %v7906_v47 = vshll.u32 %v15840_v0, 16 }
 0x405   : > { %7555 = vst.msk [vmem:[#allocation3 + $0x48] sm:$0xff] %vm450_vm3, %v7476_v37  ;;  %v11897_v50 = vpop.f32.mrb[216].mxu1  ;;  %v15802_v12 = vpop.f32.mrb[216].mxu0  ;;  %v7884_v49 = vrot.slane %v7882_v1, 1  ;;  %v7902_v37 = vshrl.u32 %v15831_v51, 16  ;;  %v7900_v15 = vrot.slane %v7898_v2, 1 }
 0x406   : > { %v6703_v48 = vadd.f32 %v11897_v50, %v6624_v43  ;;  %v6352_v42 = vpop.f32.mrb[217].mxu1  ;;  %v15805_v3 = vpop.f32.mrb[217].mxu0  ;;  %v8867_v7 = vsel %vm3075_vm7, %v8864_v63, %v8866_v31  ;;  %v6627_v43 = vld [vmem:[#allocation3 + $0xa8] sm:$0xff]  ;;  %v8869_v56 = vsel %vm3075_vm7, %v8866_v31, %v8868_v44 }
 0x407   : > { %v7402_v59 = vld [vmem:[#allocation3 + $0x70] sm:$0xff]  ;;  %v6701_v14 = vadd.f32 %v6622_v29, %v6352_v42  ;;  %v11898_v28 = vpop.f32.mrb[218].mxu1  ;;  %v15809_v30 = vpop.f32.mrb[218].mxu0  ;;  %v7888_v10 = vor.u32 %v7886_v55, %v7884_v49  ;;  %v7885_v34 = vsel %vm1933_vm8, %v7880_v35, %v7884_v49 }
 0x408   : > { %6782 = vst.msk [vmem:[#allocation3 + $0x90] sm:$0xff] %vm450_vm3, %v6703_v48  ;;  %v7481_v26 = vadd.f32 %v15760_v4, %v7402_v59  ;;  %v7400_v20 = vld [vmem:[#allocation3 + $0x60] sm:$0xff]  ;;  %v6704_v32 = vadd.f32 %v11898_v28, %v6625_v52  ;;  %v6355_v24 = vpop.f32.mrb[219].mxu1  ;;  %v15818_v17 = vpop.f32.mrb[219].mxu0  ;;  %v7908_v28 = vrot.slane %v7906_v47, 1  ;;  %v8870_v52 = vrot.slane %v15831_v51, 1 }
 0x409   : > { %6780 = vst.msk [vmem:[#allocation3 + $0x80] sm:$0xff] %vm450_vm3, %v6701_v14  ;;  %v7479_v45 = vadd.f32 %v7400_v20, %v15764_v39  ;;  %v7403_v13 = vld [vmem:[#allocation3 + $0x78] sm:$0xff]  ;;  %v6702_v25 = vadd.f32 %v6623_v58, %v6355_v24  ;;  %v7904_v14 = vor.u32 %v7902_v37, %v7900_v15  ;;  %v6630_v58 = vld [vmem:[#allocation3 + $0xc0] sm:$0xff] }
 0x40a   : > { %7560 = vst.msk [vmem:[#allocation3 + $0x70] sm:$0xff] %vm450_vm3, %v7481_v26  ;;  %6783 = vst.msk [vmem:[#allocation3 + $0x98] sm:$0xff] %vm450_vm3, %v6704_v32  ;;  %v7482_v4 = vadd.f32 %v15767_v18, %v7403_v13  ;;  %v7401_v23 = vld [vmem:[#allocation3 + $0x68] sm:$0xff]  ;;  %12100 = vmatmul.mubr.msk.bf16.gmra.mrb[68].mxu1 %vm450_vm3, %v7869_v62  ;;  %12188 = vmatmul.mubr.msk.bf16.gmra.mrb[68].mxu0 %vm450_vm3, %v8863_v8  ;;  %v7892_v18 = vrot.slane %v7890_v6, 1  ;;  %v8872_v8 = vrot.slane %v15840_v0, 1  ;;  %v6632_v26 = vld [vmem:[#allocation3 + $0xd0] sm:$0xff] }
 0x40b   : > { %7558 = vst.msk [vmem:[#allocation3 + $0x60] sm:$0xff] %vm450_vm3, %v7479_v45  ;;  %6781 = vst.msk [vmem:[#allocation3 + $0x88] sm:$0xff] %vm450_vm3, %v6702_v25  ;;  %v7480_v39 = vadd.f32 %v7401_v23, %v15776_v54  ;;  %12103 = vmatprep.mubr.msk.bf16.mxu1 %vm450_vm3, %v7877_v16  ;;  %12191 = vmatprep.mubr.msk.bf16.mxu0 %vm450_vm3, %v8865_v57  ;;  %v6626_v54 = vld [vmem:[#allocation3 + $0xa0] sm:$0xff]  ;;  %v15882_v16 = vld [vmem:[#allocation2 + $0x120] sm:$0xff]  ;;  %v7910_v57 = vshrl.u32 %v15840_v0, 16  ;;  %v7909_v49 = vsel %vm1933_vm8, %v7904_v14, %v7908_v28 }
 0x40c   : > { %7561 = vst.msk [vmem:[#allocation3 + $0x78] sm:$0xff] %vm450_vm3, %v7482_v4  ;;  %v7893_v42 = vsel %vm1933_vm8, %v7888_v10, %v7892_v18  ;;  %v7896_v59 = vor.u32 %v7894_v61, %v7892_v18  ;;  %v6633_v23 = vld [vmem:[#allocation3 + $0xd8] sm:$0xff]  ;;  %v8871_v51 = vsel %vm3075_vm7, %v8868_v44, %v8870_v52  ;;  %v8873_v19 = vsel %vm3075_vm7, %v8870_v52, %v8872_v8 }
 0x40d   : > { %7559 = vst.msk [vmem:[#allocation3 + $0x68] sm:$0xff] %vm450_vm3, %v7480_v39  ;;  %v11901_v41 = vpop.f32.mrb[220].mxu1  ;;  %v15844_v46 = vpop.f32.mrb[220].mxu0  ;;  %v7922_v39 = vshll.u32 %v15882_v16, 16  ;;  %v7912_v61 = vor.u32 %v7910_v57, %v7908_v28  ;;  %v8876_v37 = vrot.slane %v15882_v16, 1 }
 0x40e   : > { %v6707_v38 = vadd.f32 %v11901_v41, %v6628_v60  ;;  %v6368_v11 = vpop.f32.mrb[221].mxu1  ;;  %v15848_v27 = vpop.f32.mrb[221].mxu0  ;;  %v6631_v60 = vld [vmem:[#allocation3 + $0xc8] sm:$0xff] }
 0x40f   : > { %v7406_v21 = vld [vmem:[#allocation3 + $0x90] sm:$0xff]  ;;  %v6705_v40 = vadd.f32 %v6626_v54, %v6368_v11  ;;  %v11902_v36 = vpop.f32.mrb[222].mxu1  ;;  %v15851_v5 = vpop.f32.mrb[222].mxu0 }
 0x410   : > { %6786 = vst.msk [vmem:[#allocation3 + $0xb0] sm:$0xff] %vm450_vm3, %v6707_v38  ;;  %v7485_v9 = vadd.f32 %v15802_v12, %v7406_v21  ;;  %v7404_v53 = vld [vmem:[#allocation3 + $0x80] sm:$0xff]  ;;  %v6708_v22 = vadd.f32 %v11902_v36, %v6629_v33  ;;  %v6371_v50 = vpop.f32.mrb[223].mxu1  ;;  %v15860_v48 = vpop.f32.mrb[223].mxu0 }
 0x411   : > { %6784 = vst.msk [vmem:[#allocation3 + $0xa0] sm:$0xff] %vm450_vm3, %v6705_v40  ;;  %v7483_v63 = vadd.f32 %v7404_v53, %v15805_v3  ;;  %v7407_v29 = vld [vmem:[#allocation3 + $0x98] sm:$0xff]  ;;  %v6706_v62 = vadd.f32 %v6627_v43, %v6371_v50  ;;  %v15915_v40 = vld [vmem:[#allocation2 + $0x128] sm:$0xff] }
 0x412   : > { %7564 = vst.msk [vmem:[#allocation3 + $0x90] sm:$0xff] %vm450_vm3, %v7485_v9  ;;  %6787 = vst.msk [vmem:[#allocation3 + $0xb8] sm:$0xff] %vm450_vm3, %v6708_v22  ;;  %v7486_v12 = vadd.f32 %v15809_v30, %v7407_v29  ;;  %v7405_v1 = vld [vmem:[#allocation3 + $0x88] sm:$0xff]  ;;  %12104 = vmatmul.mubr.msk.bf16.gmra.mrb[72].mxu1 %vm450_vm3, %v7885_v34  ;;  %12192 = vmatmul.mubr.msk.bf16.gmra.mrb[72].mxu0 %vm450_vm3, %v8867_v7  ;;  %v15879_v30 = vld [vmem:[#allocation2 + $0x118] sm:$0xff]  ;;  %v7930_v22 = vshll.u32 %v15915_v40, 16 }
 0x413   : > { %7562 = vst.msk [vmem:[#allocation3 + $0x80] sm:$0xff] %vm450_vm3, %v7483_v63  ;;  %6785 = vst.msk [vmem:[#allocation3 + $0xa8] sm:$0xff] %vm450_vm3, %v6706_v62  ;;  %v7484_v3 = vadd.f32 %v7405_v1, %v15818_v17  ;;  %12107 = vmatprep.mubr.msk.bf16.mxu1 %vm450_vm3, %v7893_v42  ;;  %12195 = vmatprep.mubr.msk.bf16.mxu0 %vm450_vm3, %v8869_v56  ;;  %v7901_v17 = vsel %vm1933_vm8, %v7896_v59, %v7900_v15  ;;  %v7914_v45 = vshll.u32 %v15879_v30, 16  ;;  %v15924_v7 = vld [vmem:[#allocation2 + $0x130] sm:$0xff]  ;;  %v6636_v9 = vld [vmem:[#allocation3 + $0xf0] sm:$0xff] }
 0x414   : > { %7565 = vst.msk [vmem:[#allocation3 + $0x98] sm:$0xff] %vm450_vm3, %v7486_v12  ;;  %v7918_v38 = vshrl.u32 %v15879_v30, 16  ;;  %v8874_v36 = vrot.slane %v15879_v30, 1  ;;  %v7926_v63 = vshrl.u32 %v15882_v16, 16  ;;  %v6637_v12 = vld [vmem:[#allocation3 + $0xf8] sm:$0xff]  ;;  %v7938_v14 = vshll.u32 %v15924_v7, 16 }
 0x415   : > { %7563 = vst.msk [vmem:[#allocation3 + $0x88] sm:$0xff] %vm450_vm3, %v7484_v3  ;;  %v11905_v6 = vpop.f32.mrb[224].mxu1  ;;  %v15886_v20 = vpop.f32.mrb[224].mxu0  ;;  %v7916_v21 = vrot.slane %v7914_v45, 1  ;;  %v7934_v3 = vshrl.u32 %v15915_v40, 16  ;;  %v7932_v57 = vrot.slane %v7930_v22, 1 }
 0x416   : > { %v6711_v32 = vadd.f32 %v11905_v6, %v6632_v26  ;;  %v6384_v24 = vpop.f32.mrb[225].mxu1  ;;  %v15889_v55 = vpop.f32.mrb[225].mxu0  ;;  %v8875_v59 = vsel %vm3075_vm7, %v8872_v8, %v8874_v36  ;;  %v6635_v26 = vld [vmem:[#allocation3 + $0xe8] sm:$0xff]  ;;  %v8877_v0 = vsel %vm3075_vm7, %v8874_v36, %v8876_v37 }
 0x417   : > { %v7410_v13 = vld [vmem:[#allocation3 + $0xb0] sm:$0xff]  ;;  %v6709_v25 = vadd.f32 %v6630_v58, %v6384_v24  ;;  %v11906_v4 = vpop.f32.mrb[226].mxu1  ;;  %v15893_v35 = vpop.f32.mrb[226].mxu0  ;;  %v7920_v33 = vor.u32 %v7918_v38, %v7916_v21  ;;  %v7917_v42 = vsel %vm1933_vm8, %v7912_v61, %v7916_v21 }
 0x418   : > { %6790 = vst.msk [vmem:[#allocation3 + $0xd0] sm:$0xff] %vm450_vm3, %v6711_v32  ;;  %v7489_v31 = vadd.f32 %v15844_v46, %v7410_v13  ;;  %v7408_v10 = vld [vmem:[#allocation3 + $0xa0] sm:$0xff]  ;;  %v6712_v18 = vadd.f32 %v11906_v4, %v6633_v23  ;;  %v6387_v41 = vpop.f32.mrb[227].mxu1  ;;  %v15902_v2 = vpop.f32.mrb[227].mxu0  ;;  %v7940_v4 = vrot.slane %v7938_v14, 1  ;;  %v8878_v23 = vrot.slane %v15915_v40, 1 }
 0x419   : > { %6788 = vst.msk [vmem:[#allocation3 + $0xc0] sm:$0xff] %vm450_vm3, %v6709_v25  ;;  %v7487_v44 = vadd.f32 %v7408_v10, %v15848_v27  ;;  %v7411_v11 = vld [vmem:[#allocation3 + $0xb8] sm:$0xff]  ;;  %v6710_v54 = vadd.f32 %v6631_v60, %v6387_v41  ;;  %v7936_v25 = vor.u32 %v7934_v3, %v7932_v57  ;;  %v6638_v60 = vld [vmem:[#allocation3 + $0x100] sm:$0xff] }
 0x41a   : > { %7568 = vst.msk [vmem:[#allocation3 + $0xb0] sm:$0xff] %vm450_vm3, %v7489_v31  ;;  %6791 = vst.msk [vmem:[#allocation3 + $0xd8] sm:$0xff] %vm450_vm3, %v6712_v18  ;;  %v7490_v46 = vadd.f32 %v15851_v5, %v7411_v11  ;;  %v7409_v34 = vld [vmem:[#allocation3 + $0xa8] sm:$0xff]  ;;  %12108 = vmatmul.mubr.msk.bf16.gmra.mrb[76].mxu1 %vm450_vm3, %v7901_v17  ;;  %12196 = vmatmul.mubr.msk.bf16.gmra.mrb[76].mxu0 %vm450_vm3, %v8871_v51  ;;  %v7924_v5 = vrot.slane %v7922_v39, 1  ;;  %v8880_v51 = vrot.slane %v15924_v7, 1  ;;  %v6640_v31 = vld [vmem:[#allocation3 + $0x110] sm:$0xff] }
 0x41b   : > { %7566 = vst.msk [vmem:[#allocation3 + $0xa0] sm:$0xff] %vm450_vm3, %v7487_v44  ;;  %6789 = vst.msk [vmem:[#allocation3 + $0xc8] sm:$0xff] %vm450_vm3, %v6710_v54  ;;  %v7488_v27 = vadd.f32 %v7409_v34, %v15860_v48  ;;  %12111 = vmatprep.mubr.msk.bf16.mxu1 %vm450_vm3, %v7909_v49  ;;  %12199 = vmatprep.mubr.msk.bf16.mxu0 %vm450_vm3, %v8873_v19  ;;  %v6634_v48 = vld [vmem:[#allocation3 + $0xe0] sm:$0xff]  ;;  %v15966_v49 = vld [vmem:[#allocation2 + $0x140] sm:$0xff]  ;;  %v7942_v19 = vshrl.u32 %v15924_v7, 16  ;;  %v7941_v21 = vsel %vm1933_vm8, %v7936_v25, %v7940_v4 }
 0x41c   : > { %7569 = vst.msk [vmem:[#allocation3 + $0xb8] sm:$0xff] %vm450_vm3, %v7490_v46  ;;  %v7925_v24 = vsel %vm1933_vm8, %v7920_v33, %v7924_v5  ;;  %v7928_v13 = vor.u32 %v7926_v63, %v7924_v5  ;;  %v6641_v34 = vld [vmem:[#allocation3 + $0x118] sm:$0xff]  ;;  %v8879_v40 = vsel %vm3075_vm7, %v8876_v37, %v8878_v23  ;;  %v8881_v16 = vsel %vm3075_vm7, %v8878_v23, %v8880_v51 }
 0x41d   : > { %7567 = vst.msk [vmem:[#allocation3 + $0xa8] sm:$0xff] %vm450_vm3, %v7488_v27  ;;  %v11909_v47 = vpop.f32.mrb[228].mxu1  ;;  %v15928_v53 = vpop.f32.mrb[228].mxu0  ;;  %v7954_v27 = vshll.u32 %v15966_v49, 16  ;;  %v7944_v63 = vor.u32 %v7942_v19, %v7940_v4  ;;  %v8884_v3 = vrot.slane %v15966_v49, 1 }
 0x41e   : > { %v6715_v50 = vadd.f32 %v11909_v47, %v6636_v9  ;;  %v6400_v43 = vpop.f32.mrb[229].mxu1  ;;  %v15932_v56 = vpop.f32.mrb[229].mxu0  ;;  %v6639_v9 = vld [vmem:[#allocation3 + $0x108] sm:$0xff] }
 0x41f   : > { %v7414_v29 = vld [vmem:[#allocation3 + $0xd0] sm:$0xff]  ;;  %v6713_v62 = vadd.f32 %v6634_v48, %v6400_v43  ;;  %v11910_v15 = vpop.f32.mrb[230].mxu1  ;;  %v15935_v1 = vpop.f32.mrb[230].mxu0 }
 0x420   : > { %6794 = vst.msk [vmem:[#allocation3 + $0xf0] sm:$0xff] %vm450_vm3, %v6715_v50  ;;  %v7493_v28 = vadd.f32 %v15886_v20, %v7414_v29  ;;  %v7412_v52 = vld [vmem:[#allocation3 + $0xc0] sm:$0xff]  ;;  %v6716_v30 = vadd.f32 %v11910_v15, %v6637_v12  ;;  %v6403_v6 = vpop.f32.mrb[231].mxu1  ;;  %v15944_v32 = vpop.f32.mrb[231].mxu0 }
 0x421   : > { %6792 = vst.msk [vmem:[#allocation3 + $0xe0] sm:$0xff] %vm450_vm3, %v6713_v62  ;;  %v7491_v8 = vadd.f32 %v7412_v52, %v15889_v55  ;;  %v7415_v58 = vld [vmem:[#allocation3 + $0xd8] sm:$0xff]  ;;  %v6714_v17 = vadd.f32 %v6635_v26, %v6403_v6  ;;  %v15999_v62 = vld [vmem:[#allocation2 + $0x148] sm:$0xff] }
 0x422   : > { %7572 = vst.msk [vmem:[#allocation3 + $0xd0] sm:$0xff] %vm450_vm3, %v7493_v28  ;;  %6795 = vst.msk [vmem:[#allocation3 + $0xf8] sm:$0xff] %vm450_vm3, %v6716_v30  ;;  %v7494_v20 = vadd.f32 %v15893_v35, %v7415_v58  ;;  %v7413_v45 = vld [vmem:[#allocation3 + $0xc8] sm:$0xff]  ;;  %12112 = vmatmul.mubr.msk.bf16.gmra.mrb[80].mxu1 %vm450_vm3, %v7917_v42  ;;  %12200 = vmatmul.mubr.msk.bf16.gmra.mrb[80].mxu0 %vm450_vm3, %v8875_v59  ;;  %v15963_v35 = vld [vmem:[#allocation2 + $0x138] sm:$0xff]  ;;  %v7962_v30 = vshll.u32 %v15999_v62, 16 }
 0x423   : > { %7570 = vst.msk [vmem:[#allocation3 + $0xc0] sm:$0xff] %vm450_vm3, %v7491_v8  ;;  %6793 = vst.msk [vmem:[#allocation3 + $0xe8] sm:$0xff] %vm450_vm3, %v6714_v17  ;;  %v7492_v55 = vadd.f32 %v7413_v45, %v15902_v2  ;;  %12115 = vmatprep.mubr.msk.bf16.mxu1 %vm450_vm3, %v7925_v24  ;;  %12203 = vmatprep.mubr.msk.bf16.mxu0 %vm450_vm3, %v8877_v0  ;;  %v7933_v2 = vsel %vm1933_vm8, %v7928_v13, %v7932_v57  ;;  %v7946_v44 = vshll.u32 %v15963_v35, 16  ;;  %v16008_v59 = vld [vmem:[#allocation2 + $0x150] sm:$0xff]  ;;  %v6644_v28 = vld [vmem:[#allocation3 + $0x130] sm:$0xff] }
 0x424   : > { %7573 = vst.msk [vmem:[#allocation3 + $0xd8] sm:$0xff] %vm450_vm3, %v7494_v20  ;;  %v7950_v50 = vshrl.u32 %v15963_v35, 16  ;;  %v8882_v15 = vrot.slane %v15963_v35, 1  ;;  %v7958_v8 = vshrl.u32 %v15966_v49, 16  ;;  %v6645_v20 = vld [vmem:[#allocation3 + $0x138] sm:$0xff]  ;;  %v7970_v25 = vshll.u32 %v16008_v59, 16 }
 0x425   : > { %7571 = vst.msk [vmem:[#allocation3 + $0xc8] sm:$0xff] %vm450_vm3, %v7492_v55  ;;  %v11913_v39 = vpop.f32.mrb[232].mxu1  ;;  %v15970_v10 = vpop.f32.mrb[232].mxu0  ;;  %v7948_v29 = vrot.slane %v7946_v44, 1  ;;  %v7966_v55 = vshrl.u32 %v15999_v62, 16  ;;  %v7964_v19 = vrot.slane %v7962_v30, 1 }
 0x426   : > { %v6719_v18 = vadd.f32 %v11913_v39, %v6640_v31  ;;  %v6416_v41 = vpop.f32.mrb[233].mxu1  ;;  %v15973_v38 = vpop.f32.mrb[233].mxu0  ;;  %v8883_v13 = vsel %vm3075_vm7, %v8880_v51, %v8882_v15  ;;  %v6643_v31 = vld [vmem:[#allocation3 + $0x128] sm:$0xff]  ;;  %v8885_v7 = vsel %vm3075_vm7, %v8882_v15, %v8884_v3 }
 0x427   : > { %v7418_v11 = vld [vmem:[#allocation3 + $0xf0] sm:$0xff]  ;;  %v6717_v54 = vadd.f32 %v6638_v60, %v6416_v41  ;;  %v11914_v46 = vpop.f32.mrb[234].mxu1  ;;  %v15977_v61 = vpop.f32.mrb[234].mxu0  ;;  %v7952_v12 = vor.u32 %v7950_v50, %v7948_v29  ;;  %v7949_v24 = vsel %vm1933_vm8, %v7944_v63, %v7948_v29 }
 0x428   : > { %6798 = vst.msk [vmem:[#allocation3 + $0x110] sm:$0xff] %vm450_vm3, %v6719_v18  ;;  %v7497_v36 = vadd.f32 %v15928_v53, %v7418_v11  ;;  %v7416_v33 = vld [vmem:[#allocation3 + $0xe0] sm:$0xff]  ;;  %v6720_v5 = vadd.f32 %v11914_v46, %v6641_v34  ;;  %v6419_v47 = vpop.f32.mrb[235].mxu1  ;;  %v15986_v22 = vpop.f32.mrb[235].mxu0  ;;  %v7972_v46 = vrot.slane %v7970_v25, 1  ;;  %v8886_v34 = vrot.slane %v15999_v62, 1 }
 0x429   : > { %6796 = vst.msk [vmem:[#allocation3 + $0x100] sm:$0xff] %vm450_vm3, %v6717_v54  ;;  %v7495_v37 = vadd.f32 %v7416_v33, %v15932_v56  ;;  %v7419_v43 = vld [vmem:[#allocation3 + $0xf8] sm:$0xff]  ;;  %v6718_v48 = vadd.f32 %v6639_v9, %v6419_v47  ;;  %v7968_v54 = vor.u32 %v7966_v55, %v7964_v19  ;;  %v6646_v9 = vld [vmem:[#allocation3 + $0x140] sm:$0xff]  ;;  %v6652_v25 = vld [vmem:[#allocation3 + $0x170] sm:$0xff] }
 0x42a   : > { %7576 = vst.msk [vmem:[#allocation3 + $0xf0] sm:$0xff] %vm450_vm3, %v7497_v36  ;;  %6799 = vst.msk [vmem:[#allocation3 + $0x118] sm:$0xff] %vm450_vm3, %v6720_v5  ;;  %v7498_v53 = vadd.f32 %v15935_v1, %v7419_v43  ;;  %v7417_v42 = vld [vmem:[#allocation3 + $0xe8] sm:$0xff]  ;;  %12116 = vmatmul.mubr.msk.bf16.gmra.mrb[84].mxu1 %vm450_vm3, %v7933_v2  ;;  %12204 = vmatmul.mubr.msk.bf16.gmra.mrb[84].mxu0 %vm450_vm3, %v8879_v40  ;;  %v7956_v1 = vrot.slane %v7954_v27, 1  ;;  %v6648_v27 = vld [vmem:[#allocation3 + $0x150] sm:$0xff]  ;;  %v8887_v62 = vsel %vm3075_vm7, %v8884_v3, %v8886_v34 }
 0x42b   : > { %7574 = vst.msk [vmem:[#allocation3 + $0xe0] sm:$0xff] %vm450_vm3, %v7495_v37  ;;  %6797 = vst.msk [vmem:[#allocation3 + $0x108] sm:$0xff] %vm450_vm3, %v6718_v48  ;;  %v7496_v56 = vadd.f32 %v7417_v42, %v15944_v32  ;;  %12119 = vmatprep.mubr.msk.bf16.mxu1 %vm450_vm3, %v7941_v21  ;;  %12207 = vmatprep.mubr.msk.bf16.mxu0 %vm450_vm3, %v8881_v16  ;;  %v6642_v32 = vld [vmem:[#allocation3 + $0x120] sm:$0xff]  ;;  %v8888_v21 = vrot.slane %v16008_v59, 1  ;;  %v16054_v33 = vld [vmem:[#allocation2 + $0x160] sm:$0x1f]  ;;  %v7973_v29 = vsel %vm1933_vm8, %v7968_v54, %v7972_v46 }
 0x42c   : > { %7577 = vst.msk [vmem:[#allocation3 + $0xf8] sm:$0xff] %vm450_vm3, %v7498_v53  ;;  %v7957_v41 = vsel %vm1933_vm8, %v7952_v12, %v7956_v1  ;;  %v7960_v11 = vor.u32 %v7958_v8, %v7956_v1  ;;  %v7974_v16 = vshrl.u32 %v16008_v59, 16  ;;  %v6649_v42 = vld [vmem:[#allocation3 + $0x158] sm:$0xff]  ;;  %v6651_v54 = vld [vmem:[#allocation3 + $0x168] sm:$0xff] }
 0x42d   : > { %7575 = vst.msk [vmem:[#allocation3 + $0xe8] sm:$0xff] %vm450_vm3, %v7496_v56  ;;  %v11917_v14 = vpop.f32.mrb[236].mxu1  ;;  %v16012_v52 = vpop.f32.mrb[236].mxu0  ;;  %v8889_v49 = vsel %vm3075_vm7, %v8886_v34, %v8888_v21 }
 0x42e   : > { %v6723_v6 = vadd.f32 %v11917_v14, %v6644_v28  ;;  %v6432_v26 = vpop.f32.mrb[237].mxu1  ;;  %v16016_v0 = vpop.f32.mrb[237].mxu0  ;;  %v6647_v28 = vld [vmem:[#allocation3 + $0x148] sm:$0xff] }
 0x42f   : > { %v7422_v58 = vld [vmem:[#allocation3 + $0x110] sm:$0xff]  ;;  %v6721_v17 = vadd.f32 %v6642_v32, %v6432_v26  ;;  %v11918_v57 = vpop.f32.mrb[238].mxu1  ;;  %v16019_v45 = vpop.f32.mrb[238].mxu0 }
 0x430   : > { %6802 = vst.msk [vmem:[#allocation3 + $0x130] sm:$0xff] %vm450_vm3, %v6723_v6  ;;  %v7501_v4 = vadd.f32 %v15970_v10, %v7422_v58  ;;  %v7420_v23 = vld [vmem:[#allocation3 + $0x100] sm:$0xff]  ;;  %v6724_v35 = vadd.f32 %v11918_v57, %v6645_v20  ;;  %v6435_v39 = vpop.f32.mrb[239].mxu1  ;;  %v16028_v18 = vpop.f32.mrb[239].mxu0  ;;  %v7986_v6 = vshll.u32 %v16054_v33, 16 }
 0x431   : > { %6800 = vst.msk [vmem:[#allocation3 + $0x120] sm:$0xff] %vm450_vm3, %v6721_v17  ;;  %v7499_v51 = vadd.f32 %v7420_v23, %v15973_v38  ;;  %v7423_v60 = vld [vmem:[#allocation3 + $0x118] sm:$0xff]  ;;  %v6722_v2 = vadd.f32 %v6643_v31, %v6435_v39  ;;  %v7976_v17 = vor.u32 %v7974_v16, %v7972_v46  ;;  %v6650_v39 = vld [vmem:[#allocation3 + $0x160] sm:$0xff] }
 0x432   : > { %7580 = vst.msk [vmem:[#allocation3 + $0x110] sm:$0xff] %vm450_vm3, %v7501_v4  ;;  %6803 = vst.msk [vmem:[#allocation3 + $0x138] sm:$0xff] %vm450_vm3, %v6724_v35  ;;  %v7502_v10 = vadd.f32 %v15977_v61, %v7423_v60  ;;  %v7421_v44 = vld [vmem:[#allocation3 + $0x108] sm:$0xff]  ;;  %12120 = vmatmul.mubr.msk.bf16.gmra.mrb[88].mxu1 %vm450_vm3, %v7949_v24  ;;  %12208 = vmatmul.mubr.msk.bf16.gmra.mrb[88].mxu0 %vm450_vm3, %v8883_v13  ;;  %v16047_v61 = vld [vmem:[#allocation2 + $0x158] sm:$0xff] }
 0x433   : > { %7578 = vst.msk [vmem:[#allocation3 + $0x100] sm:$0xff] %vm450_vm3, %v7499_v51  ;;  %6801 = vst.msk [vmem:[#allocation3 + $0x128] sm:$0xff] %vm450_vm3, %v6722_v2  ;;  %v7500_v38 = vadd.f32 %v7421_v44, %v15986_v22  ;;  %12123 = vmatprep.mubr.msk.bf16.mxu1 %vm450_vm3, %v7957_v41  ;;  %12211 = vmatprep.mubr.msk.bf16.mxu0 %vm450_vm3, %v8885_v7  ;;  %v7965_v22 = vsel %vm1933_vm8, %v7960_v11, %v7964_v19  ;;  %v7978_v37 = vshll.u32 %v16047_v61, 16  ;;  %v16078_v24 = vld [vmem:[#allocation2 + $0x160] sm:$0x1f] }
 0x434   : > { %7581 = vst.msk [vmem:[#allocation3 + $0x118] sm:$0xff] %vm450_vm3, %v7502_v10  ;;  %v7982_v56 = vshrl.u32 %v16047_v61, 16  ;;  %v8890_v57 = vrot.slane %v16047_v61, 1  ;;  %v8892_v13 = vrot.slane %v16078_v24, 1  ;;  %v6653_v51 = vld [vmem:[#allocation3 + $0x178] sm:$0xff] }
 0x435   : > { %7579 = vst.msk [vmem:[#allocation3 + $0x108] sm:$0xff] %vm450_vm3, %v7500_v38  ;;  %v11921_v40 = vpop.f32.mrb[240].mxu1  ;;  %v16052_v36 = vpop.f32.mrb[240].mxu0  ;;  %v7980_v58 = vrot.slane %v7978_v37, 1  ;;  %v6654_v37 = vld [vmem:[#allocation3 + $0x180] sm:$0xff] }
 0x436   : > { %v6727_v5 = vadd.f32 %v11921_v40, %v6648_v27  ;;  %v6448_v47 = vpop.f32.mrb[241].mxu1  ;;  %v16057_v50 = vpop.f32.mrb[241].mxu0  ;;  %v8891_v19 = vsel %vm3075_vm7, %v8888_v21, %v8890_v57  ;;  %v8893_v61 = vsel %vm3075_vm7, %v8890_v57, %v8892_v13  ;;  %v6658_v57 = vld [vmem:[#allocation3 + $0x1a0] sm:$0xff] }
 0x437   : > { %v7426_v43 = vld [vmem:[#allocation3 + $0x130] sm:$0xff]  ;;  %v6725_v48 = vadd.f32 %v6646_v9, %v6448_v47  ;;  %v11922_v53 = vpop.f32.mrb[242].mxu1  ;;  %v16061_v63 = vpop.f32.mrb[242].mxu0  ;;  %v7984_v20 = vor.u32 %v7982_v56, %v7980_v58  ;;  %v7981_v60 = vsel %vm1933_vm8, %v7976_v17, %v7980_v58 }
 0x438   : > { %6806 = vst.msk [vmem:[#allocation3 + $0x150] sm:$0xff] %vm450_vm3, %v6727_v5  ;;  %v7505_v15 = vadd.f32 %v16012_v52, %v7426_v43  ;;  %v7424_v12 = vld [vmem:[#allocation3 + $0x120] sm:$0xff]  ;;  %v6728_v1 = vadd.f32 %v11922_v53, %v6649_v42  ;;  %v6451_v14 = vpop.f32.mrb[243].mxu1  ;;  %v16070_v30 = vpop.f32.mrb[243].mxu0  ;;  %v7990_v5 = vshrl.u32 %v16054_v33, 16 }
 0x439   : > { %6804 = vst.msk [vmem:[#allocation3 + $0x140] sm:$0xff] %vm450_vm3, %v6725_v48  ;;  %v7503_v3 = vadd.f32 %v7424_v12, %v16016_v0  ;;  %v7427_v26 = vld [vmem:[#allocation3 + $0x138] sm:$0xff]  ;;  %v6726_v32 = vadd.f32 %v6647_v28, %v6451_v14  ;;  %v6655_v14 = vld [vmem:[#allocation3 + $0x188] sm:$0xff] }
 0x43a   : > { %7584 = vst.msk [vmem:[#allocation3 + $0x130] sm:$0xff] %vm450_vm3, %v7505_v15  ;;  %6807 = vst.msk [vmem:[#allocation3 + $0x158] sm:$0xff] %vm450_vm3, %v6728_v1  ;;  %v7506_v52 = vadd.f32 %v16019_v45, %v7427_v26  ;;  %v7425_v8 = vld [vmem:[#allocation3 + $0x128] sm:$0xff]  ;;  %12124 = vmatmul.mubr.msk.bf16.gmra.mrb[92].mxu1 %vm450_vm3, %v7965_v22  ;;  %12212 = vmatmul.mubr.msk.bf16.gmra.mrb[92].mxu0 %vm450_vm3, %v8887_v62  ;;  %v7988_v45 = vrot.slane %v7986_v6, 1  ;;  %v6656_v22 = vld [vmem:[#allocation3 + $0x190] sm:$0xff] }
 0x43b   : > { %7582 = vst.msk [vmem:[#allocation3 + $0x120] sm:$0xff] %vm450_vm3, %v7503_v3  ;;  %6805 = vst.msk [vmem:[#allocation3 + $0x148] sm:$0xff] %vm450_vm3, %v6726_v32  ;;  %v7504_v0 = vadd.f32 %v7425_v8, %v16028_v18  ;;  %12127 = vmatprep.mubr.msk.bf16.mxu1 %vm450_vm3, %v7973_v29  ;;  %12215 = vmatprep.mubr.msk.bf16.mxu0 %vm450_vm3, %v8889_v49  ;;  %v6657_v29 = vld [vmem:[#allocation3 + $0x198] sm:$0xff]  ;;  %v6660_v8 = vld [vmem:[#allocation3 + $0x1b0] sm:$0xff] }
 0x43c   : > { %7585 = vst.msk [vmem:[#allocation3 + $0x138] sm:$0xff] %vm450_vm3, %v7506_v52  ;;  %v7989_v34 = vsel %vm1933_vm8, %v7984_v20, %v7988_v45  ;;  %v7992_v43 = vor.u32 %v7990_v5, %v7988_v45 }
 0x43d   : > { %7583 = vst.msk [vmem:[#allocation3 + $0x128] sm:$0xff] %vm450_vm3, %v7504_v0  ;;  %v11925_v55 = vpop.f32.mrb[244].mxu1  ;;  %v12013_v4 = vpop.f32.mrb[244].mxu0 }
 0x43e   : > { %v6731_v23 = vadd.f32 %v11925_v55, %v6652_v25  ;;  %v6464_v35 = vpop.f32.mrb[245].mxu1  ;;  %v7246_v31 = vpop.f32.mrb[245].mxu0 }
 0x43f   : > { %v7430_v18 = vld [vmem:[#allocation3 + $0x150] sm:$0xff]  ;;  %v6729_v41 = vadd.f32 %v6650_v39, %v6464_v35  ;;  %v11926_v7 = vpop.f32.mrb[246].mxu1  ;;  %v12014_v2 = vpop.f32.mrb[246].mxu0 }
 0x440   : > { %6810 = vst.msk [vmem:[#allocation3 + $0x170] sm:$0xff] %vm450_vm3, %v6731_v23  ;;  %v7509_v10 = vadd.f32 %v16052_v36, %v7430_v18  ;;  %v7428_v44 = vld [vmem:[#allocation3 + $0x140] sm:$0xff]  ;;  %v6732_v11 = vadd.f32 %v11926_v7, %v6653_v51  ;;  %v6467_v38 = vpop.f32.mrb[247].mxu1  ;;  %v7249_v46 = vpop.f32.mrb[247].mxu0 }
 0x441   : > { %6808 = vst.msk [vmem:[#allocation3 + $0x160] sm:$0xff] %vm450_vm3, %v6729_v41  ;;  %v7507_v59 = vadd.f32 %v7428_v44, %v16057_v50  ;;  %v7431_v21 = vld [vmem:[#allocation3 + $0x158] sm:$0xff]  ;;  %v6730_v40 = vadd.f32 %v6651_v54, %v6467_v38  ;;  %v6664_v44 = vld [vmem:[#allocation3 + $0x1d0] sm:$0xff] }
 0x442   : > { %7588 = vst.msk [vmem:[#allocation3 + $0x150] sm:$0xff] %vm450_vm3, %v7509_v10  ;;  %6811 = vst.msk [vmem:[#allocation3 + $0x178] sm:$0xff] %vm450_vm3, %v6732_v11  ;;  %v7510_v27 = vadd.f32 %v16061_v63, %v7431_v21  ;;  %v7429_v36 = vld [vmem:[#allocation3 + $0x148] sm:$0xff]  ;;  %12128 = vmatmul.mubr.msk.bf16.gmra.mrb[96].mxu1 %vm450_vm3, %v7981_v60  ;;  %12216 = vmatmul.mubr.msk.bf16.gmra.mrb[96].mxu0 %vm450_vm3, %v8891_v19 }
 0x443   : > { %7586 = vst.msk [vmem:[#allocation3 + $0x140] sm:$0xff] %vm450_vm3, %v7507_v59  ;;  %6809 = vst.msk [vmem:[#allocation3 + $0x168] sm:$0xff] %vm450_vm3, %v6730_v40  ;;  %v7508_v47 = vadd.f32 %v7429_v36, %v16070_v30  ;;  %12131 = vmatprep.mubr.msk.bf16.mxu1 %vm450_vm3, %v7989_v34  ;;  %12219 = vmatprep.mubr.msk.bf16.mxu0 %vm450_vm3, %v8893_v61  ;;  %v6665_v40 = vld [vmem:[#allocation3 + $0x1d8] sm:$0xff] }
 0x444   : > { %7589 = vst.msk [vmem:[#allocation3 + $0x158] sm:$0xff] %vm450_vm3, %v7510_v27 }
 0x445   : > { %7587 = vst.msk [vmem:[#allocation3 + $0x148] sm:$0xff] %vm450_vm3, %v7508_v47  ;;  %v11929_v9 = vpop.f32.mrb[248].mxu1  ;;  %v12017_v50 = vpop.f32.mrb[248].mxu0 }
 0x446   : > { %v6735_v33 = vadd.f32 %v11929_v9, %v6656_v22  ;;  %v6480_v16 = vpop.f32.mrb[249].mxu1  ;;  %v7262_v48 = vpop.f32.mrb[249].mxu0  ;;  %v6663_v22 = vld [vmem:[#allocation3 + $0x1c8] sm:$0xff] }
 0x447   : > { %v7434_v53 = vld [vmem:[#allocation3 + $0x170] sm:$0xff]  ;;  %v6733_v42 = vadd.f32 %v6654_v37, %v6480_v16  ;;  %v11930_v63 = vpop.f32.mrb[250].mxu1  ;;  %v12018_v62 = vpop.f32.mrb[250].mxu0 }
 0x448   : > { %6814 = vst.msk [vmem:[#allocation3 + $0x190] sm:$0xff] %vm450_vm3, %v6735_v33  ;;  %v7513_v56 = vadd.f32 %v12013_v4, %v7434_v53  ;;  %v7432_v15 = vld [vmem:[#allocation3 + $0x160] sm:$0xff]  ;;  %v6736_v12 = vadd.f32 %v11930_v63, %v6657_v29  ;;  %v6483_v1 = vpop.f32.mrb[251].mxu1  ;;  %v7265_v28 = vpop.f32.mrb[251].mxu0  ;;  %v6668_v63 = vld [vmem:[#allocation3 + $0x1f0] sm:$0xff] }
 0x449   : > { %6812 = vst.msk [vmem:[#allocation3 + $0x180] sm:$0xff] %vm450_vm3, %v6733_v42  ;;  %v7511_v30 = vadd.f32 %v7432_v15, %v7246_v31  ;;  %v7435_v6 = vld [vmem:[#allocation3 + $0x178] sm:$0xff]  ;;  %v6734_v49 = vadd.f32 %v6655_v14, %v6483_v1  ;;  %v6659_v31 = vld [vmem:[#allocation3 + $0x1a8] sm:$0xff]  ;;  %v6666_v15 = vld [vmem:[#allocation3 + $0x1e0] sm:$0xff] }
 0x44a   : > { %7592 = vst.msk [vmem:[#allocation3 + $0x170] sm:$0xff] %vm450_vm3, %v7513_v56  ;;  %6815 = vst.msk [vmem:[#allocation3 + $0x198] sm:$0xff] %vm450_vm3, %v6736_v12  ;;  %v7514_v3 = vadd.f32 %v12014_v2, %v7435_v6  ;;  %v7433_v26 = vld [vmem:[#allocation3 + $0x168] sm:$0xff]  ;;  %12132 = vmatmul.mubr.msk.bf16.gmra.mrb[100].mxu1 %vm450_vm3, %v7992_v43  ;;  %12220 = vmatmul.mubr.msk.bf16.gmra.mrb[100].mxu0 %vm450_vm3, %v8892_v13  ;;  %v6661_v13 = vld [vmem:[#allocation3 + $0x1b8] sm:$0xff] }
 0x44b   : > { %7590 = vst.msk [vmem:[#allocation3 + $0x160] sm:$0xff] %vm450_vm3, %v7511_v30  ;;  %6813 = vst.msk [vmem:[#allocation3 + $0x188] sm:$0xff] %vm450_vm3, %v6734_v49  ;;  %v7512_v32 = vadd.f32 %v7433_v26, %v7249_v46  ;;  %v6662_v46 = vld [vmem:[#allocation3 + $0x1c0] sm:$0xff]  ;;  %v6669_v30 = vld [vmem:[#allocation3 + $0x1f8] sm:$0xff] }
 0x44c   : > { %7593 = vst.msk [vmem:[#allocation3 + $0x178] sm:$0xff] %vm450_vm3, %v7514_v3 }
 0x44d   : > { %7591 = vst.msk [vmem:[#allocation3 + $0x168] sm:$0xff] %vm450_vm3, %v7512_v32  ;;  %v11933_v52 = vpop.f32.mrb[252].mxu1  ;;  %v12021_v58 = vpop.f32.mrb[252].mxu0 }
 0x44e   : > { %v6739_v0 = vadd.f32 %v11933_v52, %v6660_v8  ;;  %v6496_v17 = vpop.f32.mrb[253].mxu1  ;;  %v7278_v20 = vpop.f32.mrb[253].mxu0  ;;  %v6667_v52 = vld [vmem:[#allocation3 + $0x1e8] sm:$0xff] }
 0x44f   : > { %v7438_v45 = vld [vmem:[#allocation3 + $0x190] sm:$0xff]  ;;  %v6737_v24 = vadd.f32 %v6658_v57, %v6496_v17  ;;  %v11934_v55 = vpop.f32.mrb[254].mxu1  ;;  %v12022_v25 = vpop.f32.mrb[254].mxu0 }
 0x450   : > { %6818 = vst.msk [vmem:[#allocation3 + $0x1b0] sm:$0xff] %vm450_vm3, %v6739_v0  ;;  %v7517_v4 = vadd.f32 %v12017_v50, %v7438_v45  ;;  %v7436_v23 = vld [vmem:[#allocation3 + $0x180] sm:$0xff]  ;;  %v6740_v35 = vadd.f32 %v11934_v55, %v6661_v13  ;;  %v6499_v39 = vpop.f32.mrb[255].mxu1  ;;  %v7281_v18 = vpop.f32.mrb[255].mxu0  ;;  %v6672_v55 = vld [vmem:[#allocation3 + $0x210] sm:$0xff] }
 0x451   : > { %6816 = vst.msk [vmem:[#allocation3 + $0x1a0] sm:$0xff] %vm450_vm3, %v6737_v24  ;;  %v7515_v41 = vadd.f32 %v7436_v23, %v7262_v48  ;;  %v7439_v7 = vld [vmem:[#allocation3 + $0x198] sm:$0xff]  ;;  %v6738_v51 = vadd.f32 %v6659_v31, %v6499_v39  ;;  %v6670_v23 = vld [vmem:[#allocation3 + $0x200] sm:$0xff] }
 0x452   : > { %7596 = vst.msk [vmem:[#allocation3 + $0x190] sm:$0xff] %vm450_vm3, %v7517_v4  ;;  %6819 = vst.msk [vmem:[#allocation3 + $0x1b8] sm:$0xff] %vm450_vm3, %v6740_v35  ;;  %v7518_v60 = vadd.f32 %v12018_v62, %v7439_v7  ;;  %v7437_v2 = vld [vmem:[#allocation3 + $0x188] sm:$0xff] }
 0x453   : > { %7594 = vst.msk [vmem:[#allocation3 + $0x180] sm:$0xff] %vm450_vm3, %v7515_v41  ;;  %6817 = vst.msk [vmem:[#allocation3 + $0x1a8] sm:$0xff] %vm450_vm3, %v6738_v51  ;;  %v7516_v19 = vadd.f32 %v7437_v2, %v7265_v28  ;;  %v6673_v41 = vld [vmem:[#allocation3 + $0x218] sm:$0xff] }
 0x454   : > { %7597 = vst.msk [vmem:[#allocation3 + $0x198] sm:$0xff] %vm450_vm3, %v7518_v60 }
 0x455   : > { %7595 = vst.msk [vmem:[#allocation3 + $0x188] sm:$0xff] %vm450_vm3, %v7516_v19  ;;  %v11937_v10 = vpop.f32.mrb[0].mxu1  ;;  %v12025_v11 = vpop.f32.mrb[0].mxu0 }
 0x456   : > { %v6743_v38 = vadd.f32 %v11937_v10, %v6664_v44  ;;  %v6512_v54 = vpop.f32.mrb[1].mxu1  ;;  %v7294_v34 = vpop.f32.mrb[1].mxu0  ;;  %v6671_v10 = vld [vmem:[#allocation3 + $0x208] sm:$0xff] }
 0x457   : > { %v7442_v61 = vld [vmem:[#allocation3 + $0x1b0] sm:$0xff]  ;;  %v6741_v59 = vadd.f32 %v6662_v46, %v6512_v54  ;;  %v11938_v21 = vpop.f32.mrb[2].mxu1  ;;  %v12026_v27 = vpop.f32.mrb[2].mxu0 }
 0x458   : > { %6822 = vst.msk [vmem:[#allocation3 + $0x1d0] sm:$0xff] %vm450_vm3, %v6743_v38  ;;  %v7521_v36 = vadd.f32 %v12021_v58, %v7442_v61  ;;  %v7440_v5 = vld [vmem:[#allocation3 + $0x1a0] sm:$0xff]  ;;  %v6744_v47 = vadd.f32 %v11938_v21, %v6665_v40  ;;  %v6515_v9 = vpop.f32.mrb[3].mxu1  ;;  %v7297_v50 = vpop.f32.mrb[3].mxu0  ;;  %v6676_v21 = vld [vmem:[#allocation3 + $0x230] sm:$0xff] }
 0x459   : > { %6820 = vst.msk [vmem:[#allocation3 + $0x1c0] sm:$0xff] %vm450_vm3, %v6741_v59  ;;  %v7519_v33 = vadd.f32 %v7440_v5, %v7278_v20  ;;  %v7443_v16 = vld [vmem:[#allocation3 + $0x1b8] sm:$0xff]  ;;  %v6742_v37 = vadd.f32 %v6663_v22, %v6515_v9  ;;  %v6674_v5 = vld [vmem:[#allocation3 + $0x220] sm:$0xff] }
 0x45a   : > { %7600 = vst.msk [vmem:[#allocation3 + $0x1b0] sm:$0xff] %vm450_vm3, %v7521_v36  ;;  %6823 = vst.msk [vmem:[#allocation3 + $0x1d8] sm:$0xff] %vm450_vm3, %v6744_v47  ;;  %v7522_v43 = vadd.f32 %v12022_v25, %v7443_v16  ;;  %v7441_v48 = vld [vmem:[#allocation3 + $0x1a8] sm:$0xff] }
 0x45b   : > { %7598 = vst.msk [vmem:[#allocation3 + $0x1a0] sm:$0xff] %vm450_vm3, %v7519_v33  ;;  %6821 = vst.msk [vmem:[#allocation3 + $0x1c8] sm:$0xff] %vm450_vm3, %v6742_v37  ;;  %v7520_v53 = vadd.f32 %v7441_v48, %v7281_v18  ;;  %v6677_v33 = vld [vmem:[#allocation3 + $0x238] sm:$0xff] }
 0x45c   : > { %7601 = vst.msk [vmem:[#allocation3 + $0x1b8] sm:$0xff] %vm450_vm3, %v7522_v43 }
 0x45d   : > { %7599 = vst.msk [vmem:[#allocation3 + $0x1a8] sm:$0xff] %vm450_vm3, %v7520_v53  ;;  %v11941_v42 = vpop.f32.mrb[4].mxu1  ;;  %v12029_v29 = vpop.f32.mrb[4].mxu0 }
 0x45e   : > { %v6747_v62 = vadd.f32 %v11941_v42, %v6668_v63  ;;  %v6528_v56 = vpop.f32.mrb[5].mxu1  ;;  %v7310_v12 = vpop.f32.mrb[5].mxu0  ;;  %v6675_v42 = vld [vmem:[#allocation3 + $0x228] sm:$0xff] }
 0x45f   : > { %v7446_v1 = vld [vmem:[#allocation3 + $0x1d0] sm:$0xff]  ;;  %v6745_v14 = vadd.f32 %v6666_v15, %v6528_v56  ;;  %v11942_v28 = vpop.f32.mrb[6].mxu1  ;;  %v12030_v6 = vpop.f32.mrb[6].mxu0 }
 0x460   : > { %6826 = vst.msk [vmem:[#allocation3 + $0x1f0] sm:$0xff] %vm450_vm3, %v6747_v62  ;;  %v7525_v49 = vadd.f32 %v12025_v11, %v7446_v1  ;;  %v7444_v3 = vld [vmem:[#allocation3 + $0x1c0] sm:$0xff]  ;;  %v6748_v26 = vadd.f32 %v11942_v28, %v6669_v30  ;;  %v6531_v32 = vpop.f32.mrb[7].mxu1  ;;  %v7313_v8 = vpop.f32.mrb[7].mxu0  ;;  %v6680_v28 = vld [vmem:[#allocation3 + $0x250] sm:$0xff] }
 0x461   : > { %6824 = vst.msk [vmem:[#allocation3 + $0x1e0] sm:$0xff] %vm450_vm3, %v6745_v14  ;;  %v7523_v58 = vadd.f32 %v7444_v3, %v7294_v34  ;;  %v7447_v0 = vld [vmem:[#allocation3 + $0x1d8] sm:$0xff]  ;;  %v6746_v17 = vadd.f32 %v6667_v52, %v6531_v32  ;;  %v6678_v3 = vld [vmem:[#allocation3 + $0x240] sm:$0xff] }
 0x462   : > { %7604 = vst.msk [vmem:[#allocation3 + $0x1d0] sm:$0xff] %vm450_vm3, %v7525_v49  ;;  %6827 = vst.msk [vmem:[#allocation3 + $0x1f8] sm:$0xff] %vm450_vm3, %v6748_v26  ;;  %v7526_v57 = vadd.f32 %v12026_v27, %v7447_v0  ;;  %v7445_v20 = vld [vmem:[#allocation3 + $0x1c8] sm:$0xff] }
 0x463   : > { %7602 = vst.msk [vmem:[#allocation3 + $0x1c0] sm:$0xff] %vm450_vm3, %v7523_v58  ;;  %6825 = vst.msk [vmem:[#allocation3 + $0x1e8] sm:$0xff] %vm450_vm3, %v6746_v17  ;;  %v7524_v45 = vadd.f32 %v7445_v20, %v7297_v50  ;;  %v6681_v58 = vld [vmem:[#allocation3 + $0x258] sm:$0xff] }
 0x464   : > { %7605 = vst.msk [vmem:[#allocation3 + $0x1d8] sm:$0xff] %vm450_vm3, %v7526_v57 }
 0x465   : > { %7603 = vst.msk [vmem:[#allocation3 + $0x1c8] sm:$0xff] %vm450_vm3, %v7524_v45  ;;  %v11945_v24 = vpop.f32.mrb[8].mxu1  ;;  %v12033_v13 = vpop.f32.mrb[8].mxu0 }
 0x466   : > { %v6751_v25 = vadd.f32 %v11945_v24, %v6672_v55  ;;  %v6544_v4 = vpop.f32.mrb[9].mxu1  ;;  %v7326_v35 = vpop.f32.mrb[9].mxu0  ;;  %v6679_v24 = vld [vmem:[#allocation3 + $0x248] sm:$0xff] }
 0x467   : > { %v7450_v39 = vld [vmem:[#allocation3 + $0x1f0] sm:$0xff]  ;;  %v6749_v31 = vadd.f32 %v6670_v23, %v6544_v4  ;;  %v11946_v18 = vpop.f32.mrb[10].mxu1  ;;  %v12034_v7 = vpop.f32.mrb[10].mxu0 }
 0x468   : > { %6830 = vst.msk [vmem:[#allocation3 + $0x210] sm:$0xff] %vm450_vm3, %v6751_v25  ;;  %v7529_v51 = vadd.f32 %v12029_v29, %v7450_v39  ;;  %v7448_v60 = vld [vmem:[#allocation3 + $0x1e0] sm:$0xff]  ;;  %v6752_v2 = vadd.f32 %v11946_v18, %v6673_v41  ;;  %v6547_v19 = vpop.f32.mrb[11].mxu1  ;;  %v7329_v44 = vpop.f32.mrb[11].mxu0  ;;  %v6684_v18 = vld [vmem:[#allocation3 + $0x270] sm:$0xff] }
 0x469   : > { %6828 = vst.msk [vmem:[#allocation3 + $0x200] sm:$0xff] %vm450_vm3, %v6749_v31  ;;  %v7527_v11 = vadd.f32 %v7448_v60, %v7310_v12  ;;  %v7451_v38 = vld [vmem:[#allocation3 + $0x1f8] sm:$0xff]  ;;  %v6750_v54 = vadd.f32 %v6671_v10, %v6547_v19  ;;  %v6682_v60 = vld [vmem:[#allocation3 + $0x260] sm:$0xff] }
 0x46a   : > { %7608 = vst.msk [vmem:[#allocation3 + $0x1f0] sm:$0xff] %vm450_vm3, %v7529_v51  ;;  %6831 = vst.msk [vmem:[#allocation3 + $0x218] sm:$0xff] %vm450_vm3, %v6752_v2  ;;  %v7530_v46 = vadd.f32 %v12030_v6, %v7451_v38  ;;  %v7449_v34 = vld [vmem:[#allocation3 + $0x1e8] sm:$0xff] }
 0x46b   : > { %7606 = vst.msk [vmem:[#allocation3 + $0x1e0] sm:$0xff] %vm450_vm3, %v7527_v11  ;;  %6829 = vst.msk [vmem:[#allocation3 + $0x208] sm:$0xff] %vm450_vm3, %v6750_v54  ;;  %v7528_v61 = vadd.f32 %v7449_v34, %v7313_v8  ;;  %v6683_v34 = vld [vmem:[#allocation3 + $0x268] sm:$0xff] }
 0x46c   : > { %7609 = vst.msk [vmem:[#allocation3 + $0x1f8] sm:$0xff] %vm450_vm3, %v7530_v46 }
 0x46d   : > { %7607 = vst.msk [vmem:[#allocation3 + $0x1e8] sm:$0xff] %vm450_vm3, %v7528_v61  ;;  %v11949_v59 = vpop.f32.mrb[12].mxu1  ;;  %v12037_v40 = vpop.f32.mrb[12].mxu0 }
 0x46e   : > { %v6755_v27 = vadd.f32 %v11949_v59, %v6676_v21  ;;  %v6560_v36 = vpop.f32.mrb[13].mxu1  ;;  %v7342_v47 = vpop.f32.mrb[13].mxu0 }
 0x46f   : > { %v7454_v9 = vld [vmem:[#allocation3 + $0x210] sm:$0xff]  ;;  %v6753_v22 = vadd.f32 %v6674_v5, %v6560_v36  ;;  %v11950_v50 = vpop.f32.mrb[14].mxu1  ;;  %v12038_v16 = vpop.f32.mrb[14].mxu0 }
 0x470   : > { %6834 = vst.msk [vmem:[#allocation3 + $0x230] sm:$0xff] %vm450_vm3, %v6755_v27  ;;  %v7533_v37 = vadd.f32 %v12033_v13, %v7454_v9  ;;  %v7452_v43 = vld [vmem:[#allocation3 + $0x200] sm:$0xff]  ;;  %v6756_v48 = vadd.f32 %v11950_v50, %v6677_v33  ;;  %v6563_v53 = vpop.f32.mrb[15].mxu1  ;;  %v7345_v63 = vpop.f32.mrb[15].mxu0  ;;  %v8491_v9 = vld [vmem:[#allocation3 + $0x10] sm:$0xff] }
 0x471   : > { %6832 = vst.msk [vmem:[#allocation3 + $0x220] sm:$0xff] %vm450_vm3, %v6753_v22  ;;  %v7531_v29 = vadd.f32 %v7452_v43, %v7326_v35  ;;  %v7455_v62 = vld [vmem:[#allocation3 + $0x218] sm:$0xff]  ;;  %v6754_v56 = vadd.f32 %v6675_v42, %v6563_v53 }
 0x472   : > { %7612 = vst.msk [vmem:[#allocation3 + $0x210] sm:$0xff] %vm450_vm3, %v7533_v37  ;;  %6835 = vst.msk [vmem:[#allocation3 + $0x238] sm:$0xff] %vm450_vm3, %v6756_v48  ;;  %v7534_v15 = vadd.f32 %v12034_v7, %v7455_v62  ;;  %v7453_v12 = vld [vmem:[#allocation3 + $0x208] sm:$0xff]  ;;  %v8492_v42 = vld [vmem:[#allocation3 + $0x18] sm:$0xff] }
 0x473   : > { %7610 = vst.msk [vmem:[#allocation3 + $0x200] sm:$0xff] %vm450_vm3, %v7531_v29  ;;  %6833 = vst.msk [vmem:[#allocation3 + $0x228] sm:$0xff] %vm450_vm3, %v6754_v56  ;;  %v7532_v1 = vadd.f32 %v7453_v12, %v7329_v44  ;;  %v8490_v12 = vld [vmem:[#allocation3 + $0x8] sm:$0xff] }
 0x474   : > { %7613 = vst.msk [vmem:[#allocation3 + $0x218] sm:$0xff] %vm450_vm3, %v7534_v15 }
 0x475   : > { %7611 = vst.msk [vmem:[#allocation3 + $0x208] sm:$0xff] %vm450_vm3, %v7532_v1  ;;  %v11953_v14 = vpop.f32.mrb[16].mxu1  ;;  %v12041_v30 = vpop.f32.mrb[16].mxu0 }
 0x476   : > { %v6759_v6 = vadd.f32 %v11953_v14, %v6680_v28  ;;  %v6576_v49 = vpop.f32.mrb[17].mxu1  ;;  %v7358_v26 = vpop.f32.mrb[17].mxu0 }
 0x477   : > { %v7458_v32 = vld [vmem:[#allocation3 + $0x230] sm:$0xff]  ;;  %v6757_v52 = vadd.f32 %v6678_v3, %v6576_v49  ;;  %v11954_v8 = vpop.f32.mrb[18].mxu1  ;;  %v12042_v0 = vpop.f32.mrb[18].mxu0 }
 0x478   : > { %6838 = vst.msk [vmem:[#allocation3 + $0x250] sm:$0xff] %vm450_vm3, %v6759_v6  ;;  %v7537_v17 = vadd.f32 %v12037_v40, %v7458_v32  ;;  %v7456_v57 = vld [vmem:[#allocation3 + $0x220] sm:$0xff]  ;;  %v6760_v20 = vadd.f32 %v11954_v8, %v6681_v58  ;;  %v6579_v45 = vpop.f32.mrb[19].mxu1  ;;  %v7361_v55 = vpop.f32.mrb[19].mxu0  ;;  %v8495_v3 = vld [vmem:[#allocation3 + $0x30] sm:$0xff] }
 0x479   : > { %6836 = vst.msk [vmem:[#allocation3 + $0x240] sm:$0xff] %vm450_vm3, %v6757_v52  ;;  %v7535_v13 = vadd.f32 %v7456_v57, %v7342_v47  ;;  %v7459_v25 = vld [vmem:[#allocation3 + $0x238] sm:$0xff]  ;;  %v6758_v4 = vadd.f32 %v6679_v24, %v6579_v45  ;;  %v8493_v8 = vld [vmem:[#allocation3 + $0x20] sm:$0xff] }
 0x47a   : > { %7616 = vst.msk [vmem:[#allocation3 + $0x230] sm:$0xff] %vm450_vm3, %v7537_v17  ;;  %6839 = vst.msk [vmem:[#allocation3 + $0x258] sm:$0xff] %vm450_vm3, %v6760_v20  ;;  %v7538_v23 = vadd.f32 %v12038_v16, %v7459_v25  ;;  %v7457_v35 = vld [vmem:[#allocation3 + $0x228] sm:$0xff]  ;;  %v8489_v16 = vld [vmem:[#allocation3] sm:$0xff] }
 0x47b   : > { %7614 = vst.msk [vmem:[#allocation3 + $0x220] sm:$0xff] %vm450_vm3, %v7535_v13  ;;  %6837 = vst.msk [vmem:[#allocation3 + $0x248] sm:$0xff] %vm450_vm3, %v6758_v4  ;;  %v7536_v39 = vadd.f32 %v7457_v35, %v7345_v63  ;;  %v8496_v20 = vld [vmem:[#allocation3 + $0x38] sm:$0xff]  ;;  %v8494_v4 = vld [vmem:[#allocation3 + $0x28] sm:$0xff] }
 0x47c   : > { %7617 = vst.msk [vmem:[#allocation3 + $0x238] sm:$0xff] %vm450_vm3, %v7538_v23 }
 0x47d   : > { %7615 = vst.msk [vmem:[#allocation3 + $0x228] sm:$0xff] %vm450_vm3, %v7536_v39  ;;  %v11957_v31 = vpop.f32.mrb[20].mxu1  ;;  %v12045_v41 = vpop.f32.mrb[20].mxu0 }
 0x47e   : > { %v6763_v7 = vadd.f32 %v11957_v31, %v6684_v18  ;;  %v6592_v51 = vpop.f32.mrb[21].mxu1  ;;  %v7374_v2 = vpop.f32.mrb[21].mxu0 }
 0x47f   : > { %v7462_v19 = vld [vmem:[#allocation3 + $0x250] sm:$0xff]  ;;  %v6761_v10 = vadd.f32 %v6682_v60, %v6592_v51  ;;  %v11958_v44 = vpop.f32.mrb[22].mxu1  ;;  %v12046_v11 = vpop.f32.mrb[22].mxu0 }
 0x480   : > { %6842 = vst.msk [vmem:[#allocation3 + $0x270] sm:$0xff] %vm450_vm3, %v6763_v7  ;;  %v7541_v38 = vadd.f32 %v12041_v30, %v7462_v19  ;;  %v7460_v54 = vld [vmem:[#allocation3 + $0x240] sm:$0xff]  ;;  %v6595_v46 = vpop.f32.mrb[23].mxu1  ;;  %v7377_v61 = vpop.f32.mrb[23].mxu0  ;;  %v8499_v60 = vld [vmem:[#allocation3 + $0x50] sm:$0xff] }
 0x481   : > { %6840 = vst.msk [vmem:[#allocation3 + $0x260] sm:$0xff] %vm450_vm3, %v6761_v10  ;;  %v7539_v59 = vadd.f32 %v7460_v54, %v7358_v26  ;;  %v7463_v21 = vld [vmem:[#allocation3 + $0x258] sm:$0xff]  ;;  %v6762_v40 = vadd.f32 %v6683_v34, %v6595_v46  ;;  %v8497_v44 = vld [vmem:[#allocation3 + $0x40] sm:$0xff] }
 0x482   : > { %7620 = vst.msk [vmem:[#allocation3 + $0x250] sm:$0xff] %vm450_vm3, %v7541_v38  ;;  %v7542_v27 = vadd.f32 %v12042_v0, %v7463_v21  ;;  %v7461_v36 = vld [vmem:[#allocation3 + $0x248] sm:$0xff]  ;;  %v16206_v38 = vld [vmem:[%s16857_s3] ss:$0 sm:$0xff] }
 0x483   : > { %7618 = vst.msk [vmem:[#allocation3 + $0x240] sm:$0xff] %vm450_vm3, %v7539_v59  ;;  %6841 = vst.msk [vmem:[#allocation3 + $0x268] sm:$0xff] %vm450_vm3, %v6762_v40  ;;  %v7540_v5 = vadd.f32 %v7461_v36, %v7361_v55 }
 0x484   : > { %7621 = vst.msk [vmem:[#allocation3 + $0x258] sm:$0xff] %vm450_vm3, %v7542_v27 }
 0x485   : > { %7619 = vst.msk [vmem:[#allocation3 + $0x248] sm:$0xff] %vm450_vm3, %v7540_v5  ;;  %v12057_v47 = vpop.f32.mrb[24].mxu1  ;;  %v12145_v22 = vpop.f32.mrb[24].mxu0  ;;  %v8498_v5 = vld [vmem:[#allocation3 + $0x48] sm:$0xff] }
 0x486   : > { %v8570_v50 = vadd.f32 %v12057_v47, %v8491_v9  ;;  %v8171_v33 = vpop.f32.mrb[25].mxu1  ;;  %v9072_v37 = vpop.f32.mrb[25].mxu0 }
 0x487   : > { %v7466_v43 = vld [vmem:[#allocation3 + $0x270] sm:$0xff]  ;;  %v8568_v48 = vadd.f32 %v8489_v16, %v8171_v33  ;;  %v12058_v53 = vpop.f32.mrb[26].mxu1  ;;  %v12146_v63 = vpop.f32.mrb[26].mxu0 }
 0x488   : > { %v7545_v29 = vadd.f32 %v12045_v41, %v7466_v43  ;;  %8649 = vst.msk [vmem:[#allocation3 + $0x10] sm:$0xff] %vm450_vm3, %v8570_v50  ;;  %v7464_v62 = vld [vmem:[#allocation3 + $0x260] sm:$0xff]  ;;  %v8571_v56 = vadd.f32 %v12058_v53, %v8492_v42  ;;  %v8174_v15 = vpop.f32.mrb[27].mxu1  ;;  %v9075_v1 = vpop.f32.mrb[27].mxu0 }
 0x489   : > { %v7543_v14 = vadd.f32 %v7464_v62, %v7374_v2  ;;  %8647 = vst.msk [vmem:[#allocation3] sm:$0xff] %vm450_vm3, %v8568_v48  ;;  %v8569_v28 = vadd.f32 %v8490_v12, %v8174_v15 }
 0x48a   : > { %7624 = vst.msk [vmem:[#allocation3 + $0x270] sm:$0xff] %vm450_vm3, %v7545_v29  ;;  %8650 = vst.msk [vmem:[#allocation3 + $0x18] sm:$0xff] %vm450_vm3, %v8571_v56  ;;  %v7465_v30 = vld [vmem:[#allocation3 + $0x268] sm:$0xff] }
 0x48b   : > { %7622 = vst.msk [vmem:[#allocation3 + $0x260] sm:$0xff] %vm450_vm3, %v7543_v14  ;;  %v7544_v6 = vadd.f32 %v7465_v30, %v7377_v61  ;;  %8648 = vst.msk [vmem:[#allocation3 + $0x8] sm:$0xff] %vm450_vm3, %v8569_v28  ;;  %v8500_v61 = vld [vmem:[#allocation3 + $0x58] sm:$0xff]  ;;  %v8503_v14 = vld [vmem:[#allocation3 + $0x70] sm:$0xff] }
 0x48d   : > { %7623 = vst.msk [vmem:[#allocation3 + $0x268] sm:$0xff] %vm450_vm3, %v7544_v6  ;;  %v12061_v49 = vpop.f32.mrb[28].mxu1  ;;  %v12149_v26 = vpop.f32.mrb[28].mxu0 }
 0x48e   : > { %v8574_v32 = vadd.f32 %v12061_v49, %v8495_v3  ;;  %v8187_v52 = vpop.f32.mrb[29].mxu1  ;;  %v9088_v58 = vpop.f32.mrb[29].mxu0  ;;  %v8501_v3 = vld [vmem:[#allocation3 + $0x60] sm:$0xff] }
 0x48f   : > { %v9392_v0 = vld [vmem:[#allocation3 + $0x10] sm:$0xff]  ;;  %v8572_v17 = vadd.f32 %v8493_v8, %v8187_v52  ;;  %v12062_v57 = vpop.f32.mrb[30].mxu1  ;;  %v12150_v45 = vpop.f32.mrb[30].mxu0 }
 0x490   : > { %8653 = vst.msk [vmem:[#allocation3 + $0x30] sm:$0xff] %vm450_vm3, %v8574_v32  ;;  %v9471_v24 = vadd.f32 %v12145_v22, %v9392_v0  ;;  %v9390_v55 = vld [vmem:[#allocation3] sm:$0xff]  ;;  %v8575_v13 = vadd.f32 %v12062_v57, %v8496_v20  ;;  %v8190_v25 = vpop.f32.mrb[31].mxu1  ;;  %v9091_v23 = vpop.f32.mrb[31].mxu0  ;;  %v8504_v0 = vld [vmem:[#allocation3 + $0x78] sm:$0xff] }
 0x491   : > { %8651 = vst.msk [vmem:[#allocation3 + $0x20] sm:$0xff] %vm450_vm3, %v8572_v17  ;;  %v9469_v35 = vadd.f32 %v9390_v55, %v9072_v37  ;;  %v9393_v39 = vld [vmem:[#allocation3 + $0x18] sm:$0xff]  ;;  %v8573_v31 = vadd.f32 %v8494_v4, %v8190_v25  ;;  %v8502_v55 = vld [vmem:[#allocation3 + $0x68] sm:$0xff] }
 0x492   : > { %9550 = vst.msk [vmem:[#allocation3 + $0x10] sm:$0xff] %vm450_vm3, %v9471_v24  ;;  %8654 = vst.msk [vmem:[#allocation3 + $0x38] sm:$0xff] %vm450_vm3, %v8575_v13  ;;  %v9472_v18 = vadd.f32 %v12146_v63, %v9393_v39  ;;  %v9391_v41 = vld [vmem:[#allocation3 + $0x8] sm:$0xff] }
 0x493   : > { %9548 = vst.msk [vmem:[#allocation3] sm:$0xff] %vm450_vm3, %v9469_v35  ;;  %8652 = vst.msk [vmem:[#allocation3 + $0x28] sm:$0xff] %vm450_vm3, %v8573_v31  ;;  %v9470_v7 = vadd.f32 %v9391_v41, %v9075_v1 }
 0x494   : > { %9551 = vst.msk [vmem:[#allocation3 + $0x18] sm:$0xff] %vm450_vm3, %v9472_v18 }
 0x495   : > { %9549 = vst.msk [vmem:[#allocation3 + $0x8] sm:$0xff] %vm450_vm3, %v9470_v7  ;;  %v12065_v51 = vpop.f32.mrb[32].mxu1  ;;  %v12153_v2 = vpop.f32.mrb[32].mxu0 }
 0x496   : > { %v8578_v19 = vadd.f32 %v12065_v51, %v8499_v60  ;;  %v8203_v10 = vpop.f32.mrb[33].mxu1  ;;  %v16201_v11 = vpop.f32.mrb[33].mxu0 }
 0x497   : > { %v9396_v54 = vld [vmem:[#allocation3 + $0x30] sm:$0xff]  ;;  %v8576_v46 = vadd.f32 %v8497_v44, %v8203_v10  ;;  %v12066_v34 = vpop.f32.mrb[34].mxu1  ;;  %v16208_v59 = vpop.f32.mrb[34].mxu0 }
 0x498   : > { %8657 = vst.msk [vmem:[#allocation3 + $0x50] sm:$0xff] %vm450_vm3, %v8578_v19  ;;  %v9475_v21 = vadd.f32 %v12149_v26, %v9396_v54  ;;  %v9394_v40 = vld [vmem:[#allocation3 + $0x20] sm:$0xff]  ;;  %v8579_v27 = vadd.f32 %v12066_v34, %v8500_v61  ;;  %v8206_v36 = vpop.f32.mrb[35].mxu1  ;;  %v9107_v47 = vpop.f32.mrb[35].mxu0  ;;  %v8507_v44 = vld [vmem:[#allocation3 + $0x90] sm:$0xff] }
 0x499   : > { %v9629_v9 = vld [vmem:[#allocation3 + $0x10] sm:$0xff]  ;;  %8655 = vst.msk [vmem:[#allocation3 + $0x40] sm:$0xff] %vm450_vm3, %v8576_v46  ;;  %v9473_v22 = vadd.f32 %v9394_v40, %v9088_v58  ;;  %v9397_v50 = vld [vmem:[#allocation3 + $0x38] sm:$0xff]  ;;  %v8577_v33 = vadd.f32 %v8498_v5, %v8206_v36  ;;  %v8505_v61 = vld [vmem:[#allocation3 + $0x80] sm:$0xff] }
 0x49a   : > { %v9714_v16 = vadd.f32 %v16206_v38, %v9629_v9  ;;  %v9627_v37 = vld [vmem:[#allocation3] sm:$0xff]  ;;  %9554 = vst.msk [vmem:[#allocation3 + $0x30] sm:$0xff] %vm450_vm3, %v9475_v21  ;;  %8658 = vst.msk [vmem:[#allocation3 + $0x58] sm:$0xff] %vm450_vm3, %v8579_v27  ;;  %v9476_v43 = vadd.f32 %v12150_v45, %v9397_v50  ;;  %v9395_v48 = vld [vmem:[#allocation3 + $0x28] sm:$0xff] }
 0x49b   : > { %v9712_v53 = vadd.f32 %v16206_v38, %v9627_v37  ;;  %v9630_v42 = vld [vmem:[#allocation3 + $0x18] sm:$0xff]  ;;  %9552 = vst.msk [vmem:[#allocation3 + $0x20] sm:$0xff] %vm450_vm3, %v9473_v22  ;;  %8656 = vst.msk [vmem:[#allocation3 + $0x48] sm:$0xff] %vm450_vm3, %v8577_v33  ;;  %v9474_v63 = vadd.f32 %v9395_v48, %v9091_v23 }
 0x49c   : > { %v10972_v29 = vpack.c.bf16 %v9714_v16, %v9714_v16  ;;  %v9715_v62 = vadd.f32 %v16206_v38, %v9630_v42  ;;  %v9628_v56 = vld [vmem:[#allocation3 + $0x8] sm:$0xff]  ;;  %9555 = vst.msk [vmem:[#allocation3 + $0x38] sm:$0xff] %vm450_vm3, %v9476_v43  ;;  %v8508_v5 = vld [vmem:[#allocation3 + $0x98] sm:$0xff] }
 0x49d   : > { %v10970_v15 = vpack.c.bf16 %v9712_v53, %v9712_v53  ;;  %v9713_v12 = vadd.f32 %v16206_v38, %v9628_v56  ;;  %9553 = vst.msk [vmem:[#allocation3 + $0x28] sm:$0xff] %vm450_vm3, %v9474_v63  ;;  %v12069_v1 = vpop.f32.mrb[36].mxu1  ;;  %v12157_v28 = vpop.f32.mrb[36].mxu0  ;;  %v8506_v16 = vld [vmem:[#allocation3 + $0x88] sm:$0xff] }
 0x49e   : > { %9847 = vst.msk [vmem:[%s13416_s29 + $0x8] sm:$0xf] %vm494_vm2, %v10972_v29  ;;  %v10973_v30 = vpack.c.bf16 %v9715_v62, %v9715_v62  ;;  %v8582_v6 = vadd.f32 %v12069_v1, %v8503_v14  ;;  %v8219_v49 = vpop.f32.mrb[37].mxu1  ;;  %v16224_v26 = vpop.f32.mrb[37].mxu0 }
 0x49f   : > { %9845 = vst.msk [vmem:[%s13416_s29] sm:$0xf] %vm494_vm2, %v10970_v15  ;;  %v10971_v32 = vpack.c.bf16 %v9713_v12, %v9713_v12  ;;  %v9400_v52 = vld [vmem:[#allocation3 + $0x50] sm:$0xff]  ;;  %v8580_v8 = vadd.f32 %v8501_v3, %v8219_v49  ;;  %v12070_v58 = vpop.f32.mrb[38].mxu1  ;;  %v16228_v17 = vpop.f32.mrb[38].mxu0 }
 0x4a0   : > { %9848 = vst.msk [vmem:[%s13416_s29 + $0xc] sm:$0xf] %vm494_vm2, %v10973_v30  ;;  %v9479_v57 = vadd.f32 %v12153_v2, %v9400_v52  ;;  %v9398_v20 = vld [vmem:[#allocation3 + $0x40] sm:$0xff]  ;;  %v8583_v45 = vadd.f32 %v12070_v58, %v8504_v0  ;;  %v8222_v24 = vpop.f32.mrb[39].mxu1  ;;  %v9123_v13 = vpop.f32.mrb[39].mxu0  ;;  %v8511_v49 = vld [vmem:[#allocation3 + $0xb0] sm:$0xff] }
 0x4a1   : > { %8661 = vst.msk [vmem:[#allocation3 + $0x70] sm:$0xff] %vm450_vm3, %v8582_v6  ;;  %v9633_v25 = vld [vmem:[#allocation3 + $0x30] sm:$0xff]  ;;  %8659 = vst.msk [vmem:[#allocation3 + $0x60] sm:$0xff] %vm450_vm3, %v8580_v8  ;;  %v9477_v4 = vadd.f32 %v9398_v20, %v16201_v11  ;;  %v9401_v23 = vld [vmem:[#allocation3 + $0x58] sm:$0xff]  ;;  %v8581_v35 = vadd.f32 %v8502_v55, %v8222_v24 }
 0x4a2   : > { %9846 = vst.msk [vmem:[%s13416_s29 + $0x4] sm:$0xf] %vm494_vm2, %v10971_v32  ;;  %v9718_v39 = vadd.f32 %v16206_v38, %v9633_v25  ;;  %v9480_v31 = vadd.f32 %v16208_v59, %v9401_v23  ;;  %v9399_v18 = vld [vmem:[#allocation3 + $0x48] sm:$0xff]  ;;  %v8509_v8 = vld [vmem:[#allocation3 + $0xa0] sm:$0xff]  ;;  %v8512_v20 = vld [vmem:[#allocation3 + $0xb8] sm:$0xff] }
 0x4a3   : > { %9558 = vst.msk [vmem:[#allocation3 + $0x50] sm:$0xff] %vm450_vm3, %v9479_v57  ;;  %8662 = vst.msk [vmem:[#allocation3 + $0x78] sm:$0xff] %vm450_vm3, %v8583_v45  ;;  %v9634_v41 = vld [vmem:[#allocation3 + $0x38] sm:$0xff]  ;;  %v9478_v7 = vadd.f32 %v9399_v18, %v9107_v47 }
 0x4a4   : > { %9556 = vst.msk [vmem:[#allocation3 + $0x40] sm:$0xff] %vm450_vm3, %v9477_v4  ;;  %8660 = vst.msk [vmem:[#allocation3 + $0x68] sm:$0xff] %vm450_vm3, %v8581_v35  ;;  %v10975_v51 = vpack.c.bf16 %v9718_v39, %v9718_v39  ;;  %v9719_v60 = vadd.f32 %v16206_v38, %v9634_v41  ;;  %v9632_v2 = vld [vmem:[#allocation3 + $0x28] sm:$0xff] }
 0x4a5   : > { %9559 = vst.msk [vmem:[#allocation3 + $0x58] sm:$0xff] %vm450_vm3, %v9480_v31  ;;  %v9717_v19 = vadd.f32 %v16206_v38, %v9632_v2  ;;  %9557 = vst.msk [vmem:[#allocation3 + $0x48] sm:$0xff] %vm450_vm3, %v9478_v7  ;;  %v12073_v10 = vpop.f32.mrb[40].mxu1  ;;  %v12161_v11 = vpop.f32.mrb[40].mxu0  ;;  %v8510_v4 = vld [vmem:[#allocation3 + $0xa8] sm:$0xff] }
 0x4a6   : > { %10847 = vst.msk [vmem:[%s13416_s29 + $0x14] sm:$0xf] %vm494_vm2, %v10975_v51  ;;  %v10976_v54 = vpack.c.bf16 %v9719_v60, %v9719_v60  ;;  %v8586_v46 = vadd.f32 %v12073_v10, %v8507_v44  ;;  %v8235_v34 = vpop.f32.mrb[41].mxu1  ;;  %v9136_v59 = vpop.f32.mrb[41].mxu0 }
 0x4a7   : > { %v10974_v21 = vpack.c.bf16 %v9717_v19, %v9717_v19  ;;  %v8584_v27 = vadd.f32 %v8505_v61, %v8235_v34  ;;  %v12074_v36 = vpop.f32.mrb[42].mxu1  ;;  %v12162_v47 = vpop.f32.mrb[42].mxu0 }
 0x4a8   : > { %v9404_v40 = vld [vmem:[#allocation3 + $0x70] sm:$0xff]  ;;  %10848 = vst.msk [vmem:[%s13416_s29 + $0x18] sm:$0xf] %vm494_vm2, %v10976_v54  ;;  %v9402_v22 = vld [vmem:[#allocation3 + $0x60] sm:$0xff]  ;;  %v8587_v50 = vadd.f32 %v12074_v36, %v8508_v5  ;;  %v8238_v33 = vpop.f32.mrb[43].mxu1  ;;  %v9139_v37 = vpop.f32.mrb[43].mxu0 }
 0x4a9   : > { %8665 = vst.msk [vmem:[#allocation3 + $0x90] sm:$0xff] %vm450_vm3, %v8586_v46  ;;  %v9483_v9 = vadd.f32 %v12157_v28, %v9404_v40  ;;  %8663 = vst.msk [vmem:[#allocation3 + $0x80] sm:$0xff] %vm450_vm3, %v8584_v27  ;;  %v9481_v48 = vadd.f32 %v9402_v22, %v16224_v26  ;;  %v8585_v42 = vadd.f32 %v8506_v16, %v8238_v33  ;;  %v8515_v46 = vld [vmem:[#allocation3 + $0xd0] sm:$0xff]  ;;  %v8513_v40 = vld [vmem:[#allocation3 + $0xc0] sm:$0xff] }
 0x4aa   : > { %10846 = vst.msk [vmem:[%s13416_s29 + $0x10] sm:$0xf] %vm494_vm2, %v10974_v21  ;;  %v9637_v43 = vld [vmem:[#allocation3 + $0x50] sm:$0xff]  ;;  %v9405_v53 = vld [vmem:[#allocation3 + $0x78] sm:$0xff] }
 0x4ab   : > { %v9722_v63 = vadd.f32 %v16206_v38, %v9637_v43  ;;  %v9635_v29 = vld [vmem:[#allocation3 + $0x40] sm:$0xff]  ;;  %9562 = vst.msk [vmem:[#allocation3 + $0x70] sm:$0xff] %vm450_vm3, %v9483_v9  ;;  %8666 = vst.msk [vmem:[#allocation3 + $0x98] sm:$0xff] %vm450_vm3, %v8587_v50  ;;  %v9484_v62 = vadd.f32 %v16228_v17, %v9405_v53  ;;  %v9403_v56 = vld [vmem:[#allocation3 + $0x68] sm:$0xff] }
 0x4ac   : > { %v9720_v15 = vadd.f32 %v16206_v38, %v9635_v29  ;;  %v9638_v12 = vld [vmem:[#allocation3 + $0x58] sm:$0xff]  ;;  %9560 = vst.msk [vmem:[#allocation3 + $0x60] sm:$0xff] %vm450_vm3, %v9481_v48  ;;  %8664 = vst.msk [vmem:[#allocation3 + $0x88] sm:$0xff] %vm450_vm3, %v8585_v42  ;;  %v9482_v1 = vadd.f32 %v9403_v56, %v9123_v13  ;;  %v8514_v48 = vld [vmem:[#allocation3 + $0xc8] sm:$0xff] }
 0x4ad   : > { %v10978_v14 = vpack.c.bf16 %v9722_v63, %v9722_v63  ;;  %v9723_v28 = vadd.f32 %v16206_v38, %v9638_v12  ;;  %9563 = vst.msk [vmem:[#allocation3 + $0x78] sm:$0xff] %vm450_vm3, %v9484_v62  ;;  %v12077_v6 = vpop.f32.mrb[44].mxu1  ;;  %v12165_v3 = vpop.f32.mrb[44].mxu0  ;;  %v8516_v22 = vld [vmem:[#allocation3 + $0xd8] sm:$0xff] }
 0x4ae   : > { %v10977_v30 = vpack.c.bf16 %v9720_v15, %v9720_v15  ;;  %9561 = vst.msk [vmem:[#allocation3 + $0x68] sm:$0xff] %vm450_vm3, %v9482_v1  ;;  %v8590_v32 = vadd.f32 %v12077_v6, %v8511_v49  ;;  %v8251_v52 = vpop.f32.mrb[45].mxu1  ;;  %v9152_v58 = vpop.f32.mrb[45].mxu0 }
 0x4af   : > { %10854 = vst.msk [vmem:[%s13416_s29 + $0x20] sm:$0xf] %vm494_vm2, %v10978_v14  ;;  %v10979_v26 = vpack.c.bf16 %v9723_v28, %v9723_v28  ;;  %v8588_v17 = vadd.f32 %v8509_v8, %v8251_v52  ;;  %v12078_v57 = vpop.f32.mrb[46].mxu1  ;;  %v12166_v45 = vpop.f32.mrb[46].mxu0 }
 0x4b0   : > { %10849 = vst.msk [vmem:[%s13416_s29 + $0x1c] sm:$0xf] %vm494_vm2, %v10977_v30  ;;  %v9408_v0 = vld [vmem:[#allocation3 + $0x90] sm:$0xff]  ;;  %v9406_v55 = vld [vmem:[#allocation3 + $0x80] sm:$0xff]  ;;  %v8591_v13 = vadd.f32 %v12078_v57, %v8512_v20  ;;  %v8254_v25 = vpop.f32.mrb[47].mxu1  ;;  %v9155_v23 = vpop.f32.mrb[47].mxu0 }
 0x4b1   : > { %10855 = vst.msk [vmem:[%s13416_s29 + $0x24] sm:$0xf] %vm494_vm2, %v10979_v26  ;;  %v9487_v24 = vadd.f32 %v12161_v11, %v9408_v0  ;;  %v9485_v35 = vadd.f32 %v9406_v55, %v9136_v59  ;;  %v8589_v31 = vadd.f32 %v8510_v4, %v8254_v25  ;;  %v8517_v0 = vld [vmem:[#allocation3 + $0xe0] sm:$0xff]  ;;  %v8520_v55 = vld [vmem:[#allocation3 + $0xf8] sm:$0xff] }
 0x4b2   : > { %8669 = vst.msk [vmem:[#allocation3 + $0xb0] sm:$0xff] %vm450_vm3, %v8590_v32  ;;  %8667 = vst.msk [vmem:[#allocation3 + $0xa0] sm:$0xff] %vm450_vm3, %v8588_v17  ;;  %v9409_v39 = vld [vmem:[#allocation3 + $0x98] sm:$0xff]  ;;  %v8519_v32 = vld [vmem:[#allocation3 + $0xf0] sm:$0xff] }
 0x4b3   : > { %v9639_v18 = vld [vmem:[#allocation3 + $0x60] sm:$0xff]  ;;  %9566 = vst.msk [vmem:[#allocation3 + $0x90] sm:$0xff] %vm450_vm3, %v9487_v24  ;;  %8670 = vst.msk [vmem:[#allocation3 + $0xb8] sm:$0xff] %vm450_vm3, %v8591_v13  ;;  %v9488_v41 = vadd.f32 %v12162_v47, %v9409_v39  ;;  %v9407_v7 = vld [vmem:[#allocation3 + $0x88] sm:$0xff] }
 0x4b4   : > { %v9724_v51 = vadd.f32 %v16206_v38, %v9639_v18  ;;  %v9642_v60 = vld [vmem:[#allocation3 + $0x78] sm:$0xff]  ;;  %9564 = vst.msk [vmem:[#allocation3 + $0x80] sm:$0xff] %vm450_vm3, %v9485_v35  ;;  %8668 = vst.msk [vmem:[#allocation3 + $0xa8] sm:$0xff] %vm450_vm3, %v8589_v31  ;;  %v9486_v2 = vadd.f32 %v9407_v7, %v9139_v37  ;;  %v8518_v39 = vld [vmem:[#allocation3 + $0xe8] sm:$0xff] }
 0x4b5   : > { %v9727_v19 = vadd.f32 %v16206_v38, %v9642_v60  ;;  %v9640_v10 = vld [vmem:[#allocation3 + $0x68] sm:$0xff]  ;;  %9567 = vst.msk [vmem:[#allocation3 + $0x98] sm:$0xff] %vm450_vm3, %v9488_v41  ;;  %v12081_v54 = vpop.f32.mrb[48].mxu1  ;;  %v12169_v34 = vpop.f32.mrb[48].mxu0 }
 0x4b6   : > { %v10980_v44 = vpack.c.bf16 %v9724_v51, %v9724_v51  ;;  %v9725_v11 = vadd.f32 %v16206_v38, %v9640_v10  ;;  %9565 = vst.msk [vmem:[#allocation3 + $0x88] sm:$0xff] %vm450_vm3, %v9486_v2  ;;  %v8594_v59 = vadd.f32 %v12081_v54, %v8515_v46  ;;  %v8267_v21 = vpop.f32.mrb[49].mxu1  ;;  %v16283_v27 = vpop.f32.mrb[49].mxu0 }
 0x4b7   : > { %v10982_v61 = vpack.c.bf16 %v9727_v19, %v9727_v19  ;;  %v8592_v47 = vadd.f32 %v8513_v40, %v8267_v21  ;;  %v12082_v9 = vpop.f32.mrb[50].mxu1  ;;  %v16287_v50 = vpop.f32.mrb[50].mxu0 }
 0x4b8   : > { %10856 = vst.msk [vmem:[%s13416_s29 + $0x28] sm:$0xf] %vm494_vm2, %v10980_v44  ;;  %v10981_v36 = vpack.c.bf16 %v9725_v11, %v9725_v11  ;;  %v8595_v37 = vadd.f32 %v12082_v9, %v8516_v22  ;;  %v8270_v43 = vpop.f32.mrb[51].mxu1  ;;  %v9171_v53 = vpop.f32.mrb[51].mxu0  ;;  %v8521_v22 = vld [vmem:[#allocation3 + $0x100] sm:$0xff] }
 0x4b9   : > { %v9412_v5 = vld [vmem:[#allocation3 + $0xb0] sm:$0xff]  ;;  %10862 = vst.msk [vmem:[%s13416_s29 + $0x30] sm:$0xf] %vm494_vm2, %v10982_v61  ;;  %v9410_v16 = vld [vmem:[#allocation3 + $0xa0] sm:$0xff]  ;;  %v8593_v62 = vadd.f32 %v8514_v48, %v8270_v43  ;;  %v8524_v48 = vld [vmem:[#allocation3 + $0x118] sm:$0xff] }
 0x4ba   : > { %8673 = vst.msk [vmem:[#allocation3 + $0xd0] sm:$0xff] %vm450_vm3, %v8594_v59  ;;  %v9491_v33 = vadd.f32 %v12165_v3, %v9412_v5  ;;  %v9645_v42 = vld [vmem:[#allocation3 + $0x90] sm:$0xff]  ;;  %8671 = vst.msk [vmem:[#allocation3 + $0xc0] sm:$0xff] %vm450_vm3, %v8592_v47  ;;  %v9489_v63 = vadd.f32 %v9410_v16, %v9152_v58  ;;  %v9413_v29 = vld [vmem:[#allocation3 + $0xb8] sm:$0xff] }
 0x4bb   : > { %10857 = vst.msk [vmem:[%s13416_s29 + $0x2c] sm:$0xf] %vm494_vm2, %v10981_v36  ;;  %v9730_v56 = vadd.f32 %v16206_v38, %v9645_v42  ;;  %v9643_v15 = vld [vmem:[#allocation3 + $0x80] sm:$0xff]  ;;  %v9492_v12 = vadd.f32 %v12166_v45, %v9413_v29  ;;  %v9411_v1 = vld [vmem:[#allocation3 + $0xa8] sm:$0xff] }
 0x4bc   : > { %9570 = vst.msk [vmem:[#allocation3 + $0xb0] sm:$0xff] %vm450_vm3, %v9491_v33  ;;  %8674 = vst.msk [vmem:[#allocation3 + $0xd8] sm:$0xff] %vm450_vm3, %v8595_v37  ;;  %v9728_v14 = vadd.f32 %v16206_v38, %v9643_v15  ;;  %v9490_v28 = vadd.f32 %v9411_v1, %v9155_v23 }
 0x4bd   : > { %9568 = vst.msk [vmem:[#allocation3 + $0xa0] sm:$0xff] %vm450_vm3, %v9489_v63  ;;  %8672 = vst.msk [vmem:[#allocation3 + $0xc8] sm:$0xff] %vm450_vm3, %v8593_v62  ;;  %v10985_v30 = vpack.c.bf16 %v9730_v56, %v9730_v56  ;;  %v9644_v6 = vld [vmem:[#allocation3 + $0x88] sm:$0xff]  ;;  %v12085_v26 = vpop.f32.mrb[52].mxu1  ;;  %v12173_v52 = vpop.f32.mrb[52].mxu0 }
 0x4be   : > { %9571 = vst.msk [vmem:[#allocation3 + $0xb8] sm:$0xff] %vm450_vm3, %v9492_v12  ;;  %v10983_v49 = vpack.c.bf16 %v9728_v14, %v9728_v14  ;;  %v9729_v3 = vadd.f32 %v16206_v38, %v9644_v6  ;;  %9569 = vst.msk [vmem:[#allocation3 + $0xa8] sm:$0xff] %vm450_vm3, %v9490_v28  ;;  %v8598_v8 = vadd.f32 %v12085_v26, %v8519_v32  ;;  %v8283_v58 = vpop.f32.mrb[53].mxu1  ;;  %v16306_v17 = vpop.f32.mrb[53].mxu0  ;;  %v8522_v56 = vld [vmem:[#allocation3 + $0x108] sm:$0xff] }
 0x4bf   : > { %10865 = vst.msk [vmem:[%s13416_s29 + $0x3c] sm:$0xf] %vm494_vm2, %v10985_v30  ;;  %v8596_v45 = vadd.f32 %v8517_v0, %v8283_v58  ;;  %v12086_v24 = vpop.f32.mrb[54].mxu1  ;;  %v16310_v13 = vpop.f32.mrb[54].mxu0 }
 0x4c0   : > { %10863 = vst.msk [vmem:[%s13416_s29 + $0x34] sm:$0xf] %vm494_vm2, %v10983_v49  ;;  %v10984_v57 = vpack.c.bf16 %v9729_v3, %v9729_v3  ;;  %v8599_v23 = vadd.f32 %v12086_v24, %v8520_v55  ;;  %v8286_v35 = vpop.f32.mrb[55].mxu1  ;;  %v16313_v31 = vpop.f32.mrb[55].mxu0  ;;  %v8525_v55 = vld [vmem:[#allocation3 + $0x120] sm:$0xff] }
 0x4c1   : > { %v9416_v20 = vld [vmem:[#allocation3 + $0xd0] sm:$0xff]  ;;  %8677 = vst.msk [vmem:[#allocation3 + $0xf0] sm:$0xff] %vm450_vm3, %v8598_v8  ;;  %v9414_v4 = vld [vmem:[#allocation3 + $0xc0] sm:$0xff]  ;;  %8675 = vst.msk [vmem:[#allocation3 + $0xe0] sm:$0xff] %vm450_vm3, %v8596_v45  ;;  %v8597_v51 = vadd.f32 %v8518_v39, %v8286_v35 }
 0x4c2   : > { %v9495_v25 = vadd.f32 %v12169_v34, %v9416_v20  ;;  %10864 = vst.msk [vmem:[%s13416_s29 + $0x38] sm:$0xf] %vm494_vm2, %v10984_v57  ;;  %v9493_v41 = vadd.f32 %v9414_v4, %v16283_v27  ;;  %v8523_v27 = vld [vmem:[#allocation3 + $0x110] sm:$0xff]  ;;  %v8528_v39 = vld [vmem:[#allocation3 + $0x138] sm:$0xff] }
 0x4c3   : > { %v9649_v18 = vld [vmem:[#allocation3 + $0xb0] sm:$0xff]  ;;  %v9417_v7 = vld [vmem:[#allocation3 + $0xd8] sm:$0xff]  ;;  %8678 = vst.msk [vmem:[#allocation3 + $0xf8] sm:$0xff] %vm450_vm3, %v8599_v23  ;;  %8676 = vst.msk [vmem:[#allocation3 + $0xe8] sm:$0xff] %vm450_vm3, %v8597_v51 }
 0x4c4   : > { %v9734_v60 = vadd.f32 %v16206_v38, %v9649_v18  ;;  %v9647_v2 = vld [vmem:[#allocation3 + $0xa0] sm:$0xff]  ;;  %9574 = vst.msk [vmem:[#allocation3 + $0xd0] sm:$0xff] %vm450_vm3, %v9495_v25  ;;  %v9496_v19 = vadd.f32 %v16287_v50, %v9417_v7  ;;  %v9415_v10 = vld [vmem:[#allocation3 + $0xc8] sm:$0xff]  ;;  %9572 = vst.msk [vmem:[#allocation3 + $0xc0] sm:$0xff] %vm450_vm3, %v9493_v41 }
 0x4c5   : > { %v9732_v44 = vadd.f32 %v16206_v38, %v9647_v2  ;;  %v9650_v11 = vld [vmem:[#allocation3 + $0xb8] sm:$0xff]  ;;  %v9494_v54 = vadd.f32 %v9415_v10, %v9171_v53  ;;  %v9648_v61 = vld [vmem:[#allocation3 + $0xa8] sm:$0xff]  ;;  %v12089_v40 = vpop.f32.mrb[56].mxu1  ;;  %v12177_v36 = vpop.f32.mrb[56].mxu0 }
 0x4c6   : > { %v10988_v46 = vpack.c.bf16 %v9734_v60, %v9734_v60  ;;  %v9735_v34 = vadd.f32 %v16206_v38, %v9650_v11  ;;  %9575 = vst.msk [vmem:[#allocation3 + $0xd8] sm:$0xff] %vm450_vm3, %v9496_v19  ;;  %v9733_v21 = vadd.f32 %v16206_v38, %v9648_v61  ;;  %v8602_v47 = vadd.f32 %v12089_v40, %v8523_v27  ;;  %v8299_v9 = vpop.f32.mrb[57].mxu1  ;;  %v16332_v50 = vpop.f32.mrb[57].mxu0  ;;  %v8526_v60 = vld [vmem:[#allocation3 + $0x128] sm:$0xff] }
 0x4c7   : > { %v10986_v59 = vpack.c.bf16 %v9732_v44, %v9732_v44  ;;  %9573 = vst.msk [vmem:[#allocation3 + $0xc8] sm:$0xff] %vm450_vm3, %v9494_v54  ;;  %v8600_v37 = vadd.f32 %v8521_v22, %v8299_v9  ;;  %v12090_v43 = vpop.f32.mrb[58].mxu1  ;;  %v16336_v53 = vpop.f32.mrb[58].mxu0  ;;  %v8531_v9 = vld [vmem:[#allocation3 + $0x150] sm:$0xff] }
 0x4c8   : > { %10872 = vst.msk [vmem:[%s13416_s29 + $0x48] sm:$0xf] %vm494_vm2, %v10988_v46  ;;  %v10989_v5 = vpack.c.bf16 %v9735_v34, %v9735_v34  ;;  %v10987_v33 = vpack.c.bf16 %v9733_v21, %v9733_v21  ;;  %v9420_v16 = vld [vmem:[#allocation3 + $0xf0] sm:$0xff]  ;;  %v9418_v63 = vld [vmem:[#allocation3 + $0xe0] sm:$0xff]  ;;  %v8603_v29 = vadd.f32 %v12090_v43, %v8524_v48  ;;  %v8302_v62 = vpop.f32.mrb[59].mxu1  ;;  %v9203_v15 = vpop.f32.mrb[59].mxu0 }
 0x4c9   : > { %10870 = vst.msk [vmem:[%s13416_s29 + $0x40] sm:$0xf] %vm494_vm2, %v10986_v59  ;;  %v9499_v42 = vadd.f32 %v12173_v52, %v9420_v16  ;;  %v9497_v1 = vadd.f32 %v9418_v63, %v16306_v17  ;;  %v8601_v28 = vadd.f32 %v8522_v56, %v8302_v62  ;;  %v8527_v17 = vld [vmem:[#allocation3 + $0x130] sm:$0xff]  ;;  %v8532_v63 = vld [vmem:[#allocation3 + $0x158] sm:$0xff] }
 0x4ca   : > { %10873 = vst.msk [vmem:[%s13416_s29 + $0x4c] sm:$0xf] %vm494_vm2, %v10989_v5  ;;  %10871 = vst.msk [vmem:[%s13416_s29 + $0x44] sm:$0xf] %vm494_vm2, %v10987_v33  ;;  %v9421_v14 = vld [vmem:[#allocation3 + $0xf8] sm:$0xff]  ;;  %v9419_v49 = vld [vmem:[#allocation3 + $0xe8] sm:$0xff] }
 0x4cb   : > { %8681 = vst.msk [vmem:[#allocation3 + $0x110] sm:$0xff] %vm450_vm3, %v8602_v47  ;;  %v9653_v12 = vld [vmem:[#allocation3 + $0xd0] sm:$0xff]  ;;  %8679 = vst.msk [vmem:[#allocation3 + $0x100] sm:$0xff] %vm450_vm3, %v8600_v37  ;;  %v9500_v6 = vadd.f32 %v16310_v13, %v9421_v14  ;;  %v9498_v26 = vadd.f32 %v9419_v49, %v16313_v31  ;;  %v8529_v37 = vld [vmem:[#allocation3 + $0x140] sm:$0xff] }
 0x4cc   : > { %v9738_v30 = vadd.f32 %v16206_v38, %v9653_v12  ;;  %9578 = vst.msk [vmem:[#allocation3 + $0xf0] sm:$0xff] %vm450_vm3, %v9499_v42  ;;  %8682 = vst.msk [vmem:[#allocation3 + $0x118] sm:$0xff] %vm450_vm3, %v8603_v29 }
 0x4cd   : > { %v9654_v3 = vld [vmem:[#allocation3 + $0xd8] sm:$0xff]  ;;  %9576 = vst.msk [vmem:[#allocation3 + $0xe0] sm:$0xff] %vm450_vm3, %v9497_v1  ;;  %8680 = vst.msk [vmem:[#allocation3 + $0x108] sm:$0xff] %vm450_vm3, %v8601_v28  ;;  %v12093_v0 = vpop.f32.mrb[60].mxu1  ;;  %v12181_v57 = vpop.f32.mrb[60].mxu0  ;;  %v8530_v1 = vld [vmem:[#allocation3 + $0x148] sm:$0xff] }
 0x4ce   : > { %v10991_v32 = vpack.c.bf16 %v9738_v30, %v9738_v30  ;;  %v9739_v52 = vadd.f32 %v16206_v38, %v9654_v3  ;;  %v9652_v8 = vld [vmem:[#allocation3 + $0xc8] sm:$0xff]  ;;  %9579 = vst.msk [vmem:[#allocation3 + $0xf8] sm:$0xff] %vm450_vm3, %v9500_v6  ;;  %9577 = vst.msk [vmem:[#allocation3 + $0xe8] sm:$0xff] %vm450_vm3, %v9498_v26  ;;  %v8606_v45 = vadd.f32 %v12093_v0, %v8527_v17  ;;  %v8315_v24 = vpop.f32.mrb[61].mxu1  ;;  %v9216_v13 = vpop.f32.mrb[61].mxu0 }
 0x4cf   : > { %v9737_v58 = vadd.f32 %v16206_v38, %v9652_v8  ;;  %v8604_v23 = vadd.f32 %v8525_v55, %v8315_v24  ;;  %v12094_v35 = vpop.f32.mrb[62].mxu1  ;;  %v12182_v31 = vpop.f32.mrb[62].mxu0 }
 0x4d0   : > { %10879 = vst.msk [vmem:[%s13416_s29 + $0x54] sm:$0xf] %vm494_vm2, %v10991_v32  ;;  %v10992_v20 = vpack.c.bf16 %v9739_v52, %v9739_v52  ;;  %v8607_v7 = vadd.f32 %v12094_v35, %v8528_v39  ;;  %v8318_v51 = vpop.f32.mrb[63].mxu1  ;;  %v9219_v2 = vpop.f32.mrb[63].mxu0 }
 0x4d1   : > { %v10990_v25 = vpack.c.bf16 %v9737_v58, %v9737_v58  ;;  %8685 = vst.msk [vmem:[#allocation3 + $0x130] sm:$0xff] %vm450_vm3, %v8606_v45  ;;  %8683 = vst.msk [vmem:[#allocation3 + $0x120] sm:$0xff] %vm450_vm3, %v8604_v23  ;;  %v8605_v11 = vadd.f32 %v8526_v60, %v8318_v51  ;;  %v8535_v45 = vld [vmem:[#allocation3 + $0x170] sm:$0xff] }
 0x4d2   : > { %v9424_v4 = vld [vmem:[#allocation3 + $0x110] sm:$0xff]  ;;  %10880 = vst.msk [vmem:[%s13416_s29 + $0x58] sm:$0xf] %vm494_vm2, %v10992_v20  ;;  %v9422_v41 = vld [vmem:[#allocation3 + $0x100] sm:$0xff] }
 0x4d3   : > { %v9503_v18 = vadd.f32 %v12177_v36, %v9424_v4  ;;  %10878 = vst.msk [vmem:[%s13416_s29 + $0x50] sm:$0xf] %vm494_vm2, %v10990_v25  ;;  %v9657_v19 = vld [vmem:[#allocation3 + $0xf0] sm:$0xff]  ;;  %v9501_v10 = vadd.f32 %v9422_v41, %v16332_v50  ;;  %v9425_v44 = vld [vmem:[#allocation3 + $0x118] sm:$0xff]  ;;  %v8533_v4 = vld [vmem:[#allocation3 + $0x160] sm:$0xff] }
 0x4d4   : > { %v9742_v54 = vadd.f32 %v16206_v38, %v9657_v19  ;;  %v9655_v46 = vld [vmem:[#allocation3 + $0xe0] sm:$0xff]  ;;  %8686 = vst.msk [vmem:[#allocation3 + $0x138] sm:$0xff] %vm450_vm3, %v8607_v7  ;;  %v9504_v34 = vadd.f32 %v16336_v53, %v9425_v44  ;;  %v9423_v61 = vld [vmem:[#allocation3 + $0x108] sm:$0xff]  ;;  %8684 = vst.msk [vmem:[#allocation3 + $0x128] sm:$0xff] %vm450_vm3, %v8605_v11 }
 0x4d5   : > { %9582 = vst.msk [vmem:[#allocation3 + $0x110] sm:$0xff] %vm450_vm3, %v9503_v18  ;;  %v9740_v59 = vadd.f32 %v16206_v38, %v9655_v46  ;;  %v9658_v21 = vld [vmem:[#allocation3 + $0xf8] sm:$0xff]  ;;  %9580 = vst.msk [vmem:[#allocation3 + $0x100] sm:$0xff] %vm450_vm3, %v9501_v10  ;;  %v9502_v40 = vadd.f32 %v9423_v61, %v9203_v15  ;;  %v12097_v47 = vpop.f32.mrb[64].mxu1  ;;  %v12185_v22 = vpop.f32.mrb[64].mxu0  ;;  %v8534_v10 = vld [vmem:[#allocation3 + $0x168] sm:$0xff] }
 0x4d6   : > { %v10994_v27 = vpack.c.bf16 %v9742_v54, %v9742_v54  ;;  %v9743_v36 = vadd.f32 %v16206_v38, %v9658_v21  ;;  %9583 = vst.msk [vmem:[#allocation3 + $0x118] sm:$0xff] %vm450_vm3, %v9504_v34  ;;  %v8610_v33 = vadd.f32 %v12097_v47, %v8531_v9  ;;  %v8331_v16 = vpop.f32.mrb[65].mxu1  ;;  %v9232_v43 = vpop.f32.mrb[65].mxu0  ;;  %v8536_v41 = vld [vmem:[#allocation3 + $0x178] sm:$0xff] }
 0x4d7   : > { %v10993_v5 = vpack.c.bf16 %v9740_v59, %v9740_v59  ;;  %9581 = vst.msk [vmem:[#allocation3 + $0x108] sm:$0xff] %vm450_vm3, %v9502_v40  ;;  %v8608_v53 = vadd.f32 %v8529_v37, %v8331_v16  ;;  %v12098_v42 = vpop.f32.mrb[66].mxu1  ;;  %v12186_v29 = vpop.f32.mrb[66].mxu0 }
 0x4d8   : > { %10886 = vst.msk [vmem:[%s13416_s29 + $0x60] sm:$0xf] %vm494_vm2, %v10994_v27  ;;  %v10995_v50 = vpack.c.bf16 %v9743_v36, %v9743_v36  ;;  %v9428_v48 = vld [vmem:[#allocation3 + $0x130] sm:$0xff]  ;;  %v9426_v56 = vld [vmem:[#allocation3 + $0x120] sm:$0xff]  ;;  %v8611_v15 = vadd.f32 %v12098_v42, %v8532_v63  ;;  %v8334_v12 = vpop.f32.mrb[67].mxu1  ;;  %v9235_v14 = vpop.f32.mrb[67].mxu0 }
 0x4d9   : > { %10881 = vst.msk [vmem:[%s13416_s29 + $0x5c] sm:$0xf] %vm494_vm2, %v10993_v5  ;;  %v9507_v62 = vadd.f32 %v12181_v57, %v9428_v48  ;;  %v9505_v28 = vadd.f32 %v9426_v56, %v9216_v13  ;;  %v8609_v6 = vadd.f32 %v8530_v1, %v8334_v12  ;;  %v8537_v48 = vld [vmem:[#allocation3 + $0x180] sm:$0xff]  ;;  %v8540_v56 = vld [vmem:[#allocation3 + $0x198] sm:$0xff] }
 0x4da   : > { %10887 = vst.msk [vmem:[%s13416_s29 + $0x64] sm:$0xf] %vm494_vm2, %v10995_v50 }
 0x4db   : > { %8689 = vst.msk [vmem:[#allocation3 + $0x150] sm:$0xff] %vm450_vm3, %v8610_v33  ;;  %8687 = vst.msk [vmem:[#allocation3 + $0x140] sm:$0xff] %vm450_vm3, %v8608_v53  ;;  %v9429_v30 = vld [vmem:[#allocation3 + $0x138] sm:$0xff]  ;;  %v9427_v26 = vld [vmem:[#allocation3 + $0x128] sm:$0xff] }
 0x4dc   : > { %v9659_v49 = vld [vmem:[#allocation3 + $0x100] sm:$0xff]  ;;  %9586 = vst.msk [vmem:[#allocation3 + $0x130] sm:$0xff] %vm450_vm3, %v9507_v62  ;;  %8690 = vst.msk [vmem:[#allocation3 + $0x158] sm:$0xff] %vm450_vm3, %v8611_v15  ;;  %v9508_v3 = vadd.f32 %v12182_v31, %v9429_v30  ;;  %v9506_v8 = vadd.f32 %v9427_v26, %v9219_v2  ;;  %v8539_v33 = vld [vmem:[#allocation3 + $0x190] sm:$0xff] }
 0x4dd   : > { %v9744_v32 = vadd.f32 %v16206_v38, %v9659_v49  ;;  %v9662_v52 = vld [vmem:[#allocation3 + $0x118] sm:$0xff]  ;;  %9584 = vst.msk [vmem:[#allocation3 + $0x120] sm:$0xff] %vm450_vm3, %v9505_v28  ;;  %8688 = vst.msk [vmem:[#allocation3 + $0x148] sm:$0xff] %vm450_vm3, %v8609_v6  ;;  %v12101_v20 = vpop.f32.mrb[68].mxu1  ;;  %v12189_v24 = vpop.f32.mrb[68].mxu0  ;;  %v8538_v30 = vld [vmem:[#allocation3 + $0x188] sm:$0xff] }
 0x4de   : > { %v9747_v58 = vadd.f32 %v16206_v38, %v9662_v52  ;;  %v9660_v0 = vld [vmem:[#allocation3 + $0x108] sm:$0xff]  ;;  %9587 = vst.msk [vmem:[#allocation3 + $0x138] sm:$0xff] %vm450_vm3, %v9508_v3  ;;  %9585 = vst.msk [vmem:[#allocation3 + $0x128] sm:$0xff] %vm450_vm3, %v9506_v8  ;;  %v8614_v13 = vadd.f32 %v12101_v20, %v8535_v45  ;;  %v8347_v25 = vpop.f32.mrb[69].mxu1  ;;  %v16392_v23 = vpop.f32.mrb[69].mxu0 }
 0x4df   : > { %v10996_v17 = vpack.c.bf16 %v9744_v32, %v9744_v32  ;;  %v9745_v57 = vadd.f32 %v16206_v38, %v9660_v0  ;;  %v8612_v31 = vadd.f32 %v8533_v4, %v8347_v25  ;;  %v12102_v18 = vpop.f32.mrb[70].mxu1  ;;  %v16396_v7 = vpop.f32.mrb[70].mxu0 }
 0x4e0   : > { %v10998_v55 = vpack.c.bf16 %v9747_v58, %v9747_v58  ;;  %8693 = vst.msk [vmem:[#allocation3 + $0x170] sm:$0xff] %vm450_vm3, %v8614_v13  ;;  %v8615_v2 = vadd.f32 %v12102_v18, %v8536_v41  ;;  %v8350_v19 = vpop.f32.mrb[71].mxu1  ;;  %v9251_v44 = vpop.f32.mrb[71].mxu0  ;;  %v8541_v41 = vld [vmem:[#allocation3 + $0x1a0] sm:$0xff] }
 0x4e1   : > { %10888 = vst.msk [vmem:[%s13416_s29 + $0x68] sm:$0xf] %vm494_vm2, %v10996_v17  ;;  %v10997_v35 = vpack.c.bf16 %v9745_v57, %v9745_v57  ;;  %v8613_v34 = vadd.f32 %v8534_v10, %v8350_v19  ;;  %v8544_v19 = vld [vmem:[#allocation3 + $0x1b8] sm:$0xff] }
 0x4e2   : > { %v9432_v39 = vld [vmem:[#allocation3 + $0x150] sm:$0xff]  ;;  %10894 = vst.msk [vmem:[%s13416_s29 + $0x70] sm:$0xf] %vm494_vm2, %v10998_v55  ;;  %v9430_v60 = vld [vmem:[#allocation3 + $0x140] sm:$0xff] }
 0x4e3   : > { %v9511_v51 = vadd.f32 %v12185_v22, %v9432_v39  ;;  %10889 = vst.msk [vmem:[%s13416_s29 + $0x6c] sm:$0xf] %vm494_vm2, %v10997_v35  ;;  %v9665_v11 = vld [vmem:[#allocation3 + $0x130] sm:$0xff]  ;;  %v9509_v54 = vadd.f32 %v9430_v60, %v9232_v43  ;;  %v9433_v46 = vld [vmem:[#allocation3 + $0x158] sm:$0xff] }
 0x4e4   : > { %8691 = vst.msk [vmem:[#allocation3 + $0x160] sm:$0xff] %vm450_vm3, %v8612_v31  ;;  %v9750_v61 = vadd.f32 %v16206_v38, %v9665_v11  ;;  %v9663_v59 = vld [vmem:[#allocation3 + $0x120] sm:$0xff]  ;;  %8694 = vst.msk [vmem:[#allocation3 + $0x178] sm:$0xff] %vm450_vm3, %v8615_v2  ;;  %v9512_v21 = vadd.f32 %v12186_v29, %v9433_v46  ;;  %v9431_v40 = vld [vmem:[#allocation3 + $0x148] sm:$0xff] }
 0x4e5   : > { %9590 = vst.msk [vmem:[#allocation3 + $0x150] sm:$0xff] %vm450_vm3, %v9511_v51  ;;  %v9748_v27 = vadd.f32 %v16206_v38, %v9663_v59  ;;  %9588 = vst.msk [vmem:[#allocation3 + $0x140] sm:$0xff] %vm450_vm3, %v9509_v54  ;;  %v9510_v36 = vadd.f32 %v9431_v40, %v9235_v14  ;;  %v9664_v47 = vld [vmem:[#allocation3 + $0x128] sm:$0xff]  ;;  %v12105_v50 = vpop.f32.mrb[72].mxu1  ;;  %v12193_v16 = vpop.f32.mrb[72].mxu0 }
 0x4e6   : > { %8692 = vst.msk [vmem:[#allocation3 + $0x168] sm:$0xff] %vm450_vm3, %v8613_v34  ;;  %v11001_v5 = vpack.c.bf16 %v9750_v61, %v9750_v61  ;;  %9591 = vst.msk [vmem:[#allocation3 + $0x158] sm:$0xff] %vm450_vm3, %v9512_v21  ;;  %v9749_v22 = vadd.f32 %v16206_v38, %v9664_v47  ;;  %v8618_v37 = vadd.f32 %v12105_v50, %v8539_v33  ;;  %v8363_v43 = vpop.f32.mrb[73].mxu1  ;;  %v16415_v53 = vpop.f32.mrb[73].mxu0  ;;  %v8542_v34 = vld [vmem:[#allocation3 + $0x1a8] sm:$0xff] }
 0x4e7   : > { %v10999_v9 = vpack.c.bf16 %v9748_v27, %v9748_v27  ;;  %9589 = vst.msk [vmem:[#allocation3 + $0x148] sm:$0xff] %vm450_vm3, %v9510_v36  ;;  %v9436_v63 = vld [vmem:[#allocation3 + $0x170] sm:$0xff]  ;;  %v8616_v29 = vadd.f32 %v8537_v48, %v8363_v43  ;;  %v12106_v62 = vpop.f32.mrb[74].mxu1  ;;  %v16419_v15 = vpop.f32.mrb[74].mxu0  ;;  %v16457_v36 = vld [vmem:[%s16857_s3] ss:$0 sm:$0xff] }
 0x4e8   : > { %10897 = vst.msk [vmem:[%s13416_s29 + $0x7c] sm:$0xf] %vm494_vm2, %v11001_v5  ;;  %v11000_v42 = vpack.c.bf16 %v9749_v22, %v9749_v22  ;;  %v9515_v12 = vadd.f32 %v12189_v24, %v9436_v63  ;;  %v8619_v14 = vadd.f32 %v12106_v62, %v8540_v56  ;;  %v8366_v28 = vpop.f32.mrb[75].mxu1  ;;  %v16422_v6 = vpop.f32.mrb[75].mxu0  ;;  %v8545_v56 = vld [vmem:[#allocation3 + $0x1c0] sm:$0xff] }
 0x4e9   : > { %10895 = vst.msk [vmem:[%s13416_s29 + $0x74] sm:$0xf] %vm494_vm2, %v10999_v9  ;;  %v8617_v32 = vadd.f32 %v8538_v30, %v8366_v28  ;;  %v8548_v30 = vld [vmem:[#allocation3 + $0x1d8] sm:$0xff] }
 0x4ea   : > { %8697 = vst.msk [vmem:[#allocation3 + $0x190] sm:$0xff] %vm450_vm3, %v8618_v37  ;;  %8695 = vst.msk [vmem:[#allocation3 + $0x180] sm:$0xff] %vm450_vm3, %v8616_v29 }
 0x4eb   : > { %v9434_v1 = vld [vmem:[#allocation3 + $0x160] sm:$0xff]  ;;  %10896 = vst.msk [vmem:[%s13416_s29 + $0x78] sm:$0xf] %vm494_vm2, %v11000_v42  ;;  %v9437_v26 = vld [vmem:[#allocation3 + $0x178] sm:$0xff] }
 0x4ec   : > { %v9669_v49 = vld [vmem:[#allocation3 + $0x150] sm:$0xff]  ;;  %v9513_v3 = vadd.f32 %v9434_v1, %v16392_v23  ;;  %v9667_v8 = vld [vmem:[#allocation3 + $0x140] sm:$0xff]  ;;  %9594 = vst.msk [vmem:[#allocation3 + $0x170] sm:$0xff] %vm450_vm3, %v9515_v12  ;;  %8698 = vst.msk [vmem:[#allocation3 + $0x198] sm:$0xff] %vm450_vm3, %v8619_v14  ;;  %v9516_v58 = vadd.f32 %v16396_v7, %v9437_v26 }
 0x4ed   : > { %v9754_v52 = vadd.f32 %v16206_v38, %v9669_v49  ;;  %v9435_v0 = vld [vmem:[#allocation3 + $0x168] sm:$0xff]  ;;  %v9752_v17 = vadd.f32 %v16206_v38, %v9667_v8  ;;  %v9670_v57 = vld [vmem:[#allocation3 + $0x158] sm:$0xff]  ;;  %8696 = vst.msk [vmem:[#allocation3 + $0x188] sm:$0xff] %vm450_vm3, %v8617_v32  ;;  %v12109_v4 = vpop.f32.mrb[76].mxu1  ;;  %v8543_v23 = vld [vmem:[#allocation3 + $0x1b0] sm:$0xff]  ;;  %v12197_v35 = vpop.f32.mrb[76].mxu0 }
 0x4ee   : > { %9592 = vst.msk [vmem:[#allocation3 + $0x160] sm:$0xff] %vm450_vm3, %v9513_v3  ;;  %v9514_v20 = vadd.f32 %v9435_v0, %v9251_v44  ;;  %v9755_v24 = vadd.f32 %v16206_v38, %v9670_v57  ;;  %v9668_v55 = vld [vmem:[#allocation3 + $0x148] sm:$0xff]  ;;  %9595 = vst.msk [vmem:[#allocation3 + $0x178] sm:$0xff] %vm450_vm3, %v9516_v58  ;;  %v8622_v31 = vadd.f32 %v12109_v4, %v8543_v23  ;;  %v8379_v18 = vpop.f32.mrb[77].mxu1  ;;  %v16441_v7 = vpop.f32.mrb[77].mxu0 }
 0x4ef   : > { %v11004_v45 = vpack.c.bf16 %v9754_v52, %v9754_v52  ;;  %v11002_v13 = vpack.c.bf16 %v9752_v17, %v9752_v17  ;;  %v9753_v25 = vadd.f32 %v16206_v38, %v9668_v55  ;;  %v8620_v38 = vadd.f32 %v8541_v41, %v8379_v18  ;;  %v12110_v2 = vpop.f32.mrb[78].mxu1  ;;  %v16445_v10 = vpop.f32.mrb[78].mxu0  ;;  %v8546_v52 = vld [vmem:[#allocation3 + $0x1c8] sm:$0xff]  ;;  %v8551_v18 = vld [vmem:[#allocation3 + $0x1f0] sm:$0xff] }
 0x4f0   : > { %9593 = vst.msk [vmem:[#allocation3 + $0x168] sm:$0xff] %vm450_vm3, %v9514_v20  ;;  %v11005_v39 = vpack.c.bf16 %v9755_v24, %v9755_v24  ;;  %8701 = vst.msk [vmem:[#allocation3 + $0x1b0] sm:$0xff] %vm450_vm3, %v8622_v31  ;;  %v8623_v54 = vadd.f32 %v12110_v2, %v8544_v19  ;;  %v8382_v46 = vpop.f32.mrb[79].mxu1  ;;  %v9283_v61 = vpop.f32.mrb[79].mxu0 }
 0x4f1   : > { %10904 = vst.msk [vmem:[%s13416_s29 + $0x88] sm:$0xf] %vm494_vm2, %v11004_v45  ;;  %10902 = vst.msk [vmem:[%s13416_s29 + $0x80] sm:$0xf] %vm494_vm2, %v11002_v13  ;;  %v11003_v51 = vpack.c.bf16 %v9753_v25, %v9753_v25  ;;  %v9440_v60 = vld [vmem:[#allocation3 + $0x190] sm:$0xff]  ;;  %v9438_v11 = vld [vmem:[#allocation3 + $0x180] sm:$0xff]  ;;  %v8621_v27 = vadd.f32 %v8542_v34, %v8382_v46 }
 0x4f2   : > { %10905 = vst.msk [vmem:[%s13416_s29 + $0x8c] sm:$0xf] %vm494_vm2, %v11005_v39  ;;  %v9519_v44 = vadd.f32 %v12193_v16, %v9440_v60  ;;  %v9517_v21 = vadd.f32 %v9438_v11, %v16415_v53  ;;  %v8547_v53 = vld [vmem:[#allocation3 + $0x1d0] sm:$0xff]  ;;  %v8552_v11 = vld [vmem:[#allocation3 + $0x1f8] sm:$0xff] }
 0x4f3   : > { %10903 = vst.msk [vmem:[%s13416_s29 + $0x84] sm:$0xf] %vm494_vm2, %v11003_v51  ;;  %v9673_v59 = vld [vmem:[#allocation3 + $0x170] sm:$0xff]  ;;  %v9441_v40 = vld [vmem:[#allocation3 + $0x198] sm:$0xff] }
 0x4f4   : > { %8699 = vst.msk [vmem:[#allocation3 + $0x1a0] sm:$0xff] %vm450_vm3, %v8620_v38  ;;  %v9758_v5 = vadd.f32 %v16457_v36, %v9673_v59  ;;  %9598 = vst.msk [vmem:[#allocation3 + $0x190] sm:$0xff] %vm450_vm3, %v9519_v44  ;;  %v9520_v47 = vadd.f32 %v16419_v15, %v9441_v40  ;;  %v9439_v9 = vld [vmem:[#allocation3 + $0x188] sm:$0xff]  ;;  %v8549_v38 = vld [vmem:[#allocation3 + $0x1e0] sm:$0xff] }
 0x4f5   : > { %8702 = vst.msk [vmem:[#allocation3 + $0x1b8] sm:$0xff] %vm450_vm3, %v8623_v54  ;;  %v9674_v22 = vld [vmem:[#allocation3 + $0x178] sm:$0xff]  ;;  %9596 = vst.msk [vmem:[#allocation3 + $0x180] sm:$0xff] %vm450_vm3, %v9517_v21  ;;  %v9518_v50 = vadd.f32 %v9439_v9, %v16422_v6  ;;  %v12113_v48 = vpop.f32.mrb[80].mxu1  ;;  %v12201_v42 = vpop.f32.mrb[80].mxu0  ;;  %v8550_v21 = vld [vmem:[#allocation3 + $0x1e8] sm:$0xff] }
 0x4f6   : > { %8700 = vst.msk [vmem:[#allocation3 + $0x1a8] sm:$0xff] %vm450_vm3, %v8621_v27  ;;  %v11007_v33 = vpack.c.bf16 %v9758_v5, %v9758_v5  ;;  %v9759_v16 = vadd.f32 %v16457_v36, %v9674_v22  ;;  %9599 = vst.msk [vmem:[#allocation3 + $0x198] sm:$0xff] %vm450_vm3, %v9520_v47  ;;  %v8626_v29 = vadd.f32 %v12113_v48, %v8547_v53  ;;  %v8395_v62 = vpop.f32.mrb[81].mxu1  ;;  %v9296_v15 = vpop.f32.mrb[81].mxu0 }
 0x4f7   : > { %v9672_v37 = vld [vmem:[#allocation3 + $0x168] sm:$0xff]  ;;  %9597 = vst.msk [vmem:[#allocation3 + $0x188] sm:$0xff] %vm450_vm3, %v9518_v50  ;;  %v9444_v1 = vld [vmem:[#allocation3 + $0x1b0] sm:$0xff]  ;;  %v8624_v14 = vadd.f32 %v8545_v56, %v8395_v62  ;;  %v12114_v28 = vpop.f32.mrb[82].mxu1  ;;  %v12202_v6 = vpop.f32.mrb[82].mxu0 }
 0x4f8   : > { %v9757_v43 = vadd.f32 %v16457_v36, %v9672_v37  ;;  %10911 = vst.msk [vmem:[%s13416_s29 + $0x94] sm:$0xf] %vm494_vm2, %v11007_v33  ;;  %v11008_v63 = vpack.c.bf16 %v9759_v16, %v9759_v16  ;;  %v9523_v49 = vadd.f32 %v12197_v35, %v9444_v1  ;;  %v8627_v26 = vadd.f32 %v12114_v28, %v8548_v30  ;;  %v8398_v32 = vpop.f32.mrb[83].mxu1  ;;  %v9299_v8 = vpop.f32.mrb[83].mxu0  ;;  %v8553_v1 = vld [vmem:[#allocation3 + $0x200] sm:$0xff] }
 0x4f9   : > { %8705 = vst.msk [vmem:[#allocation3 + $0x1d0] sm:$0xff] %vm450_vm3, %v8626_v29  ;;  %8703 = vst.msk [vmem:[#allocation3 + $0x1c0] sm:$0xff] %vm450_vm3, %v8624_v14  ;;  %v8625_v57 = vadd.f32 %v8546_v52, %v8398_v32  ;;  %v8555_v29 = vld [vmem:[#allocation3 + $0x210] sm:$0xff] }
 0x4fa   : > { %v11006_v12 = vpack.c.bf16 %v9757_v43, %v9757_v43  ;;  %10912 = vst.msk [vmem:[%s13416_s29 + $0x98] sm:$0xf] %vm494_vm2, %v11008_v63 }
 0x4fb   : > { %v9442_v3 = vld [vmem:[#allocation3 + $0x1a0] sm:$0xff]  ;;  %v9677_v58 = vld [vmem:[#allocation3 + $0x190] sm:$0xff]  ;;  %9602 = vst.msk [vmem:[#allocation3 + $0x1b0] sm:$0xff] %vm450_vm3, %v9523_v49  ;;  %8706 = vst.msk [vmem:[#allocation3 + $0x1d8] sm:$0xff] %vm450_vm3, %v8627_v26 }
 0x4fc   : > { %10910 = vst.msk [vmem:[%s13416_s29 + $0x90] sm:$0xf] %vm494_vm2, %v11006_v12  ;;  %v9521_v0 = vadd.f32 %v9442_v3, %v16441_v7  ;;  %v9445_v17 = vld [vmem:[#allocation3 + $0x1b8] sm:$0xff]  ;;  %v9762_v20 = vadd.f32 %v16457_v36, %v9677_v58  ;;  %v9675_v45 = vld [vmem:[#allocation3 + $0x180] sm:$0xff] }
 0x4fd   : > { %v9524_v24 = vadd.f32 %v16445_v10, %v9445_v17  ;;  %v9443_v55 = vld [vmem:[#allocation3 + $0x1a8] sm:$0xff]  ;;  %v9760_v13 = vadd.f32 %v16457_v36, %v9675_v45  ;;  %v9678_v25 = vld [vmem:[#allocation3 + $0x198] sm:$0xff]  ;;  %8704 = vst.msk [vmem:[#allocation3 + $0x1c8] sm:$0xff] %vm450_vm3, %v8625_v57  ;;  %v12117_v31 = vpop.f32.mrb[84].mxu1  ;;  %v12205_v41 = vpop.f32.mrb[84].mxu0 }
 0x4fe   : > { %9600 = vst.msk [vmem:[#allocation3 + $0x1a0] sm:$0xff] %vm450_vm3, %v9521_v0  ;;  %v9522_v4 = vadd.f32 %v9443_v55, %v9283_v61  ;;  %v11010_v23 = vpack.c.bf16 %v9762_v20, %v9762_v20  ;;  %v9763_v35 = vadd.f32 %v16457_v36, %v9678_v25  ;;  %v8630_v51 = vadd.f32 %v12117_v31, %v8551_v18  ;;  %v8411_v60 = vpop.f32.mrb[85].mxu1  ;;  %v9312_v2 = vpop.f32.mrb[85].mxu0  ;;  %v8556_v3 = vld [vmem:[#allocation3 + $0x218] sm:$0xff]  ;;  %v8554_v0 = vld [vmem:[#allocation3 + $0x208] sm:$0xff] }
 0x4ff   : > { %9603 = vst.msk [vmem:[#allocation3 + $0x1b8] sm:$0xff] %vm450_vm3, %v9524_v24  ;;  %v11009_v39 = vpack.c.bf16 %v9760_v13, %v9760_v13  ;;  %v8628_v10 = vadd.f32 %v8549_v38, %v8411_v60  ;;  %v12118_v44 = vpop.f32.mrb[86].mxu1  ;;  %v12206_v54 = vpop.f32.mrb[86].mxu0 }
 0x500   : > { %9601 = vst.msk [vmem:[#allocation3 + $0x1a8] sm:$0xff] %vm450_vm3, %v9522_v4  ;;  %v11011_v7 = vpack.c.bf16 %v9763_v35, %v9763_v35  ;;  %v9448_v19 = vld [vmem:[#allocation3 + $0x1d0] sm:$0xff]  ;;  %8709 = vst.msk [vmem:[#allocation3 + $0x1f0] sm:$0xff] %vm450_vm3, %v8630_v51  ;;  %v9446_v34 = vld [vmem:[#allocation3 + $0x1c0] sm:$0xff]  ;;  %v8631_v61 = vadd.f32 %v12118_v44, %v8552_v11  ;;  %v8414_v59 = vpop.f32.mrb[87].mxu1  ;;  %v9315_v40 = vpop.f32.mrb[87].mxu0 }
 0x501   : > { %10918 = vst.msk [vmem:[%s13416_s29 + $0xa0] sm:$0xf] %vm494_vm2, %v11010_v23  ;;  %10913 = vst.msk [vmem:[%s13416_s29 + $0x9c] sm:$0xf] %vm494_vm2, %v11009_v39  ;;  %v9527_v46 = vadd.f32 %v12201_v42, %v9448_v19  ;;  %v9525_v27 = vadd.f32 %v9446_v34, %v9296_v15  ;;  %v8629_v47 = vadd.f32 %v8550_v21, %v8414_v59  ;;  %v8559_v51 = vld [vmem:[#allocation3 + $0x230] sm:$0xff]  ;;  %v8557_v19 = vld [vmem:[#allocation3 + $0x220] sm:$0xff] }
 0x502   : > { %10919 = vst.msk [vmem:[%s13416_s29 + $0xa4] sm:$0xf] %vm494_vm2, %v11011_v7  ;;  %v9449_v5 = vld [vmem:[#allocation3 + $0x1d8] sm:$0xff] }
 0x503   : > { %8707 = vst.msk [vmem:[#allocation3 + $0x1e0] sm:$0xff] %vm450_vm3, %v8628_v10  ;;  %9606 = vst.msk [vmem:[#allocation3 + $0x1d0] sm:$0xff] %vm450_vm3, %v9527_v46  ;;  %v9528_v22 = vadd.f32 %v12202_v6, %v9449_v5  ;;  %v8560_v34 = vld [vmem:[#allocation3 + $0x238] sm:$0xff]  ;;  %v8558_v5 = vld [vmem:[#allocation3 + $0x228] sm:$0xff] }
 0x504   : > { %8710 = vst.msk [vmem:[#allocation3 + $0x1f8] sm:$0xff] %vm450_vm3, %v8631_v61  ;;  %v9447_v50 = vld [vmem:[#allocation3 + $0x1c8] sm:$0xff]  ;;  %9604 = vst.msk [vmem:[#allocation3 + $0x1c0] sm:$0xff] %vm450_vm3, %v9525_v27 }
 0x505   : > { %v9679_v9 = vld [vmem:[#allocation3 + $0x1a0] sm:$0xff]  ;;  %8708 = vst.msk [vmem:[#allocation3 + $0x1e8] sm:$0xff] %vm450_vm3, %v8629_v47  ;;  %v9526_v37 = vadd.f32 %v9447_v50, %v9299_v8  ;;  %9607 = vst.msk [vmem:[#allocation3 + $0x1d8] sm:$0xff] %vm450_vm3, %v9528_v22  ;;  %v12121_v63 = vpop.f32.mrb[88].mxu1  ;;  %v12209_v62 = vpop.f32.mrb[88].mxu0 }
 0x506   : > { %v9764_v33 = vadd.f32 %v16457_v36, %v9679_v9  ;;  %v9682_v16 = vld [vmem:[#allocation3 + $0x1b8] sm:$0xff]  ;;  %v8634_v15 = vadd.f32 %v12121_v63, %v8555_v29  ;;  %v8427_v12 = vpop.f32.mrb[89].mxu1  ;;  %v16506_v14 = vpop.f32.mrb[89].mxu0 }
 0x507   : > { %v9767_v43 = vadd.f32 %v16457_v36, %v9682_v16  ;;  %v9680_v48 = vld [vmem:[#allocation3 + $0x1a8] sm:$0xff]  ;;  %9605 = vst.msk [vmem:[#allocation3 + $0x1c8] sm:$0xff] %vm450_vm3, %v9526_v37  ;;  %v9452_v30 = vld [vmem:[#allocation3 + $0x1f0] sm:$0xff]  ;;  %v8632_v6 = vadd.f32 %v8553_v1, %v8427_v12  ;;  %v12122_v49 = vpop.f32.mrb[90].mxu1  ;;  %v16510_v26 = vpop.f32.mrb[90].mxu0 }
 0x508   : > { %v11012_v53 = vpack.c.bf16 %v9764_v33, %v9764_v33  ;;  %v9765_v42 = vadd.f32 %v16457_v36, %v9680_v48  ;;  %8713 = vst.msk [vmem:[#allocation3 + $0x210] sm:$0xff] %vm450_vm3, %v8634_v15  ;;  %v9531_v32 = vadd.f32 %v12205_v41, %v9452_v30  ;;  %v8635_v8 = vadd.f32 %v12122_v49, %v8556_v3  ;;  %v8430_v58 = vpop.f32.mrb[91].mxu1  ;;  %v9331_v17 = vpop.f32.mrb[91].mxu0  ;;  %v8561_v3 = vld [vmem:[#allocation3 + $0x240] sm:$0xff] }
 0x509   : > { %v11014_v56 = vpack.c.bf16 %v9767_v43, %v9767_v43  ;;  %8711 = vst.msk [vmem:[#allocation3 + $0x200] sm:$0xff] %vm450_vm3, %v8632_v6  ;;  %v8633_v24 = vadd.f32 %v8554_v0, %v8430_v58  ;;  %v8564_v0 = vld [vmem:[#allocation3 + $0x258] sm:$0xff] }
 0x50a   : > { %10920 = vst.msk [vmem:[%s13416_s29 + $0xa8] sm:$0xf] %vm494_vm2, %v11012_v53  ;;  %v11013_v28 = vpack.c.bf16 %v9765_v42, %v9765_v42  ;;  %v9450_v52 = vld [vmem:[#allocation3 + $0x1e0] sm:$0xff]  ;;  %v9685_v57 = vld [vmem:[#allocation3 + $0x1d0] sm:$0xff] }
 0x50b   : > { %10926 = vst.msk [vmem:[%s13416_s29 + $0xb0] sm:$0xf] %vm494_vm2, %v11014_v56  ;;  %v9529_v20 = vadd.f32 %v9450_v52, %v9312_v2  ;;  %v9453_v45 = vld [vmem:[#allocation3 + $0x1f8] sm:$0xff]  ;;  %v9770_v55 = vadd.f32 %v16457_v36, %v9685_v57  ;;  %v9683_v13 = vld [vmem:[#allocation3 + $0x1c0] sm:$0xff] }
 0x50c   : > { %10921 = vst.msk [vmem:[%s13416_s29 + $0xac] sm:$0xf] %vm494_vm2, %v11013_v28  ;;  %v9532_v25 = vadd.f32 %v12206_v54, %v9453_v45  ;;  %v9451_v4 = vld [vmem:[#allocation3 + $0x1e8] sm:$0xff]  ;;  %v9768_v23 = vadd.f32 %v16457_v36, %v9683_v13 }
 0x50d   : > { %9610 = vst.msk [vmem:[#allocation3 + $0x1f0] sm:$0xff] %vm450_vm3, %v9531_v32  ;;  %8714 = vst.msk [vmem:[#allocation3 + $0x218] sm:$0xff] %vm450_vm3, %v8635_v8  ;;  %v9530_v35 = vadd.f32 %v9451_v4, %v9315_v40  ;;  %v11017_v39 = vpack.c.bf16 %v9770_v55, %v9770_v55  ;;  %v12125_v7 = vpop.f32.mrb[92].mxu1  ;;  %v12213_v60 = vpop.f32.mrb[92].mxu0  ;;  %v8562_v55 = vld [vmem:[#allocation3 + $0x248] sm:$0xff] }
 0x50e   : > { %9608 = vst.msk [vmem:[#allocation3 + $0x1e0] sm:$0xff] %vm450_vm3, %v9529_v20  ;;  %8712 = vst.msk [vmem:[#allocation3 + $0x208] sm:$0xff] %vm450_vm3, %v8633_v24  ;;  %v9684_v31 = vld [vmem:[#allocation3 + $0x1c8] sm:$0xff]  ;;  %v11015_v18 = vpack.c.bf16 %v9768_v23, %v9768_v23  ;;  %v8638_v38 = vadd.f32 %v12125_v7, %v8559_v51  ;;  %v8443_v2 = vpop.f32.mrb[93].mxu1  ;;  %v16529_v10 = vpop.f32.mrb[93].mxu0 }
 0x50f   : > { %9611 = vst.msk [vmem:[#allocation3 + $0x1f8] sm:$0xff] %vm450_vm3, %v9532_v25  ;;  %v9769_v41 = vadd.f32 %v16457_v36, %v9684_v31  ;;  %9609 = vst.msk [vmem:[#allocation3 + $0x1e8] sm:$0xff] %vm450_vm3, %v9530_v35  ;;  %v9456_v11 = vld [vmem:[#allocation3 + $0x210] sm:$0xff]  ;;  %v8636_v54 = vadd.f32 %v8557_v19, %v8443_v2  ;;  %v12126_v46 = vpop.f32.mrb[94].mxu1  ;;  %v16533_v61 = vpop.f32.mrb[94].mxu0 }
 0x510   : > { %10929 = vst.msk [vmem:[%s13416_s29 + $0xbc] sm:$0xf] %vm494_vm2, %v11017_v39  ;;  %10927 = vst.msk [vmem:[%s13416_s29 + $0xb4] sm:$0xf] %vm494_vm2, %v11015_v18  ;;  %v9535_v59 = vadd.f32 %v12209_v62, %v9456_v11  ;;  %v9454_v21 = vld [vmem:[#allocation3 + $0x200] sm:$0xff]  ;;  %v8639_v40 = vadd.f32 %v12126_v46, %v8560_v34  ;;  %v8446_v27 = vpop.f32.mrb[95].mxu1 }
 0x511   : > { %v11016_v44 = vpack.c.bf16 %v9769_v41, %v9769_v41  ;;  %8717 = vst.msk [vmem:[#allocation3 + $0x230] sm:$0xff] %vm450_vm3, %v8638_v38  ;;  %v16536_v47 = vpop.f32.mrb[95].mxu0  ;;  %8715 = vst.msk [vmem:[#allocation3 + $0x220] sm:$0xff] %vm450_vm3, %v8636_v54  ;;  %v9533_v22 = vadd.f32 %v9454_v21, %v16506_v14  ;;  %v8637_v33 = vadd.f32 %v8558_v5, %v8446_v27  ;;  %v8563_v14 = vld [vmem:[#allocation3 + $0x250] sm:$0xff]  ;;  %v8565_v34 = vld [vmem:[#allocation3 + $0x260] sm:$0xff] }
 0x512   : > { %9614 = vst.msk [vmem:[#allocation3 + $0x210] sm:$0xff] %vm450_vm3, %v9535_v59  ;;  %8718 = vst.msk [vmem:[#allocation3 + $0x238] sm:$0xff] %vm450_vm3, %v8639_v40 }
 0x513   : > { %10928 = vst.msk [vmem:[%s13416_s29 + $0xb8] sm:$0xf] %vm494_vm2, %v11016_v44 }
 0x514   : > { %v9689_v9 = vld [vmem:[#allocation3 + $0x1f0] sm:$0xff]  ;;  %v9457_v50 = vld [vmem:[#allocation3 + $0x218] sm:$0xff]  ;;  %9612 = vst.msk [vmem:[#allocation3 + $0x200] sm:$0xff] %vm450_vm3, %v9533_v22  ;;  %8716 = vst.msk [vmem:[#allocation3 + $0x228] sm:$0xff] %vm450_vm3, %v8637_v33 }
 0x515   : > { %v9774_v16 = vadd.f32 %v16457_v36, %v9689_v9  ;;  %v9687_v37 = vld [vmem:[#allocation3 + $0x1e0] sm:$0xff]  ;;  %v9536_v43 = vadd.f32 %v16510_v26, %v9457_v50  ;;  %v9455_v48 = vld [vmem:[#allocation3 + $0x208] sm:$0xff]  ;;  %v12129_v1 = vpop.f32.mrb[96].mxu1  ;;  %v12217_v28 = vpop.f32.mrb[96].mxu0 }
 0x516   : > { %v9772_v53 = vadd.f32 %v16457_v36, %v9687_v37  ;;  %v9690_v42 = vld [vmem:[#allocation3 + $0x1f8] sm:$0xff]  ;;  %v9534_v63 = vadd.f32 %v9455_v48, %v9331_v17  ;;  %v9688_v56 = vld [vmem:[#allocation3 + $0x1e8] sm:$0xff]  ;;  %v8642_v6 = vadd.f32 %v12129_v1, %v8563_v14  ;;  %v8459_v49 = vpop.f32.mrb[97].mxu1  ;;  %v9360_v26 = vpop.f32.mrb[97].mxu0 }
 0x517   : > { %v11020_v29 = vpack.c.bf16 %v9774_v16, %v9774_v16  ;;  %v9775_v62 = vadd.f32 %v16457_v36, %v9690_v42  ;;  %9615 = vst.msk [vmem:[#allocation3 + $0x218] sm:$0xff] %vm450_vm3, %v9536_v43  ;;  %v9773_v12 = vadd.f32 %v16457_v36, %v9688_v56  ;;  %v8640_v8 = vadd.f32 %v8561_v3, %v8459_v49  ;;  %v12130_v58 = vpop.f32.mrb[98].mxu1  ;;  %v12218_v17 = vpop.f32.mrb[98].mxu0  ;;  %v8566_v50 = vld [vmem:[#allocation3 + $0x268] sm:$0xff] }
 0x518   : > { %v11018_v15 = vpack.c.bf16 %v9772_v53, %v9772_v53  ;;  %9613 = vst.msk [vmem:[#allocation3 + $0x208] sm:$0xff] %vm450_vm3, %v9534_v63  ;;  %v9460_v52 = vld [vmem:[#allocation3 + $0x230] sm:$0xff]  ;;  %8721 = vst.msk [vmem:[#allocation3 + $0x250] sm:$0xff] %vm450_vm3, %v8642_v6  ;;  %v9458_v20 = vld [vmem:[#allocation3 + $0x220] sm:$0xff]  ;;  %v8643_v45 = vadd.f32 %v12130_v58, %v8564_v0  ;;  %v8462_v24 = vpop.f32.mrb[99].mxu1  ;;  %v9363_v13 = vpop.f32.mrb[99].mxu0 }
 0x519   : > { %10936 = vst.msk [vmem:[%s13416_s29 + $0xc8] sm:$0xf] %vm494_vm2, %v11020_v29  ;;  %v11021_v30 = vpack.c.bf16 %v9775_v62, %v9775_v62  ;;  %v11019_v32 = vpack.c.bf16 %v9773_v12, %v9773_v12  ;;  %v9539_v57 = vadd.f32 %v12213_v60, %v9460_v52  ;;  %v9693_v25 = vld [vmem:[#allocation3 + $0x210] sm:$0xff]  ;;  %v9537_v4 = vadd.f32 %v9458_v20, %v16529_v10  ;;  %v9461_v23 = vld [vmem:[#allocation3 + $0x238] sm:$0xff] }
 0x51a   : > { %10934 = vst.msk [vmem:[%s13416_s29 + $0xc0] sm:$0xf] %vm494_vm2, %v11018_v15  ;;  %v8641_v35 = vadd.f32 %v8562_v55, %v8462_v24  ;;  %v9778_v39 = vadd.f32 %v16457_v36, %v9693_v25  ;;  %v9540_v31 = vadd.f32 %v16533_v61, %v9461_v23  ;;  %v8567_v10 = vld [vmem:[#allocation3 + $0x270] sm:$0xff] }
 0x51b   : > { %10937 = vst.msk [vmem:[%s13416_s29 + $0xcc] sm:$0xf] %vm494_vm2, %v11021_v30  ;;  %10935 = vst.msk [vmem:[%s13416_s29 + $0xc4] sm:$0xf] %vm494_vm2, %v11019_v32  ;;  %v9459_v18 = vld [vmem:[#allocation3 + $0x228] sm:$0xff] }
 0x51c   : > { %8719 = vst.msk [vmem:[#allocation3 + $0x240] sm:$0xff] %vm450_vm3, %v8640_v8  ;;  %9618 = vst.msk [vmem:[#allocation3 + $0x230] sm:$0xff] %vm450_vm3, %v9539_v57  ;;  %v9538_v7 = vadd.f32 %v9459_v18, %v16536_v47  ;;  %v11023_v51 = vpack.c.bf16 %v9778_v39, %v9778_v39 }
 0x51d   : > { %8722 = vst.msk [vmem:[#allocation3 + $0x258] sm:$0xff] %vm450_vm3, %v8643_v45  ;;  %9616 = vst.msk [vmem:[#allocation3 + $0x220] sm:$0xff] %vm450_vm3, %v9537_v4  ;;  %v12133_v19 = vpop.f32.mrb[100].mxu1  ;;  %v12221_v44 = vpop.f32.mrb[100].mxu0 }
 0x51e   : > { %v9694_v41 = vld [vmem:[#allocation3 + $0x218] sm:$0xff]  ;;  %8720 = vst.msk [vmem:[#allocation3 + $0x248] sm:$0xff] %vm450_vm3, %v8641_v35  ;;  %9619 = vst.msk [vmem:[#allocation3 + $0x238] sm:$0xff] %vm450_vm3, %v9540_v31  ;;  %v8646_v54 = vadd.f32 %v12133_v19, %v8567_v10  ;;  %v8475_v46 = vpop.f32.mrb[101].mxu1  ;;  %v9376_v61 = vpop.f32.mrb[101].mxu0 }
 0x51f   : > { %v9779_v60 = vadd.f32 %v16457_v36, %v9694_v41  ;;  %v9692_v38 = vld [vmem:[#allocation3 + $0x208] sm:$0xff]  ;;  %9617 = vst.msk [vmem:[#allocation3 + $0x228] sm:$0xff] %vm450_vm3, %v9538_v7  ;;  %v9464_v21 = vld [vmem:[#allocation3 + $0x250] sm:$0xff]  ;;  %v8644_v40 = vadd.f32 %v8565_v34, %v8475_v46  ;;  %v12134_v27 = vpop.f32.mrb[102].mxu1  ;;  %v12222_v5 = vpop.f32.mrb[102].mxu0 }
 0x520   : > { %v9777_v2 = vadd.f32 %v16457_v36, %v9692_v38  ;;  %10943 = vst.msk [vmem:[%s13416_s29 + $0xd4] sm:$0xf] %vm494_vm2, %v11023_v51  ;;  %v9543_v47 = vadd.f32 %v12217_v28, %v9464_v21  ;;  %v8478_v22 = vpop.f32.mrb[103].mxu1  ;;  %v9379_v33 = vpop.f32.mrb[103].mxu0 }
 0x521   : > { %v11024_v11 = vpack.c.bf16 %v9779_v60, %v9779_v60  ;;  %8725 = vst.msk [vmem:[#allocation3 + $0x270] sm:$0xff] %vm450_vm3, %v8646_v54  ;;  %8723 = vst.msk [vmem:[#allocation3 + $0x260] sm:$0xff] %vm450_vm3, %v8644_v40  ;;  %v8645_v48 = vadd.f32 %v8566_v50, %v8478_v22 }
 0x522   : > { %v11022_v59 = vpack.c.bf16 %v9777_v2, %v9777_v2  ;;  %9622 = vst.msk [vmem:[#allocation3 + $0x250] sm:$0xff] %vm450_vm3, %v9543_v47 }
 0x523   : > { %10944 = vst.msk [vmem:[%s13416_s29 + $0xd8] sm:$0xf] %vm494_vm2, %v11024_v11  ;;  %v9462_v9 = vld [vmem:[#allocation3 + $0x240] sm:$0xff]  ;;  %v9697_v16 = vld [vmem:[#allocation3 + $0x230] sm:$0xff] }
 0x524   : > { %10942 = vst.msk [vmem:[%s13416_s29 + $0xd0] sm:$0xf] %vm494_vm2, %v11022_v59  ;;  %v9541_v37 = vadd.f32 %v9462_v9, %v9360_v26  ;;  %v9465_v43 = vld [vmem:[#allocation3 + $0x258] sm:$0xff]  ;;  %v9782_v53 = vadd.f32 %v16457_v36, %v9697_v16  ;;  %v9695_v42 = vld [vmem:[#allocation3 + $0x220] sm:$0xff] }
 0x525   : > { %v9544_v63 = vadd.f32 %v12218_v17, %v9465_v43  ;;  %v9463_v29 = vld [vmem:[#allocation3 + $0x248] sm:$0xff]  ;;  %v9780_v62 = vadd.f32 %v16457_v36, %v9695_v42  ;;  %v9698_v56 = vld [vmem:[#allocation3 + $0x238] sm:$0xff]  ;;  %8724 = vst.msk [vmem:[#allocation3 + $0x268] sm:$0xff] %vm450_vm3, %v8645_v48 }
 0x526   : > { %9620 = vst.msk [vmem:[#allocation3 + $0x240] sm:$0xff] %vm450_vm3, %v9541_v37  ;;  %v9542_v15 = vadd.f32 %v9463_v29, %v9363_v13  ;;  %v11026_v12 = vpack.c.bf16 %v9782_v53, %v9782_v53  ;;  %v9783_v1 = vadd.f32 %v16457_v36, %v9698_v56 }
 0x527   : > { %9623 = vst.msk [vmem:[#allocation3 + $0x258] sm:$0xff] %vm450_vm3, %v9544_v63  ;;  %v11025_v14 = vpack.c.bf16 %v9780_v62, %v9780_v62 }
 0x528   : > { %9621 = vst.msk [vmem:[#allocation3 + $0x248] sm:$0xff] %vm450_vm3, %v9542_v15  ;;  %v11027_v28 = vpack.c.bf16 %v9783_v1, %v9783_v1  ;;  %v9468_v30 = vld [vmem:[#allocation3 + $0x270] sm:$0xff]  ;;  %v9466_v49 = vld [vmem:[#allocation3 + $0x260] sm:$0xff] }
 0x529   : > { %10950 = vst.msk [vmem:[%s13416_s29 + $0xe0] sm:$0xf] %vm494_vm2, %v11026_v12  ;;  %10945 = vst.msk [vmem:[%s13416_s29 + $0xdc] sm:$0xf] %vm494_vm2, %v11025_v14  ;;  %v9547_v6 = vadd.f32 %v12221_v44, %v9468_v30  ;;  %v9545_v3 = vadd.f32 %v9466_v49, %v9376_v61 }
 0x52a   : > { %10951 = vst.msk [vmem:[%s13416_s29 + $0xe4] sm:$0xf] %vm494_vm2, %v11027_v28 }
 0x52b   : > { %9626 = vst.msk [vmem:[#allocation3 + $0x270] sm:$0xff] %vm450_vm3, %v9547_v6  ;;  %9624 = vst.msk [vmem:[#allocation3 + $0x260] sm:$0xff] %vm450_vm3, %v9545_v3 }
 0x52c   : > { %v9467_v32 = vld [vmem:[#allocation3 + $0x268] sm:$0xff] }
 0x52d   : > { %v9699_v26 = vld [vmem:[#allocation3 + $0x240] sm:$0xff]  ;;  %v9546_v58 = vadd.f32 %v9467_v32, %v9379_v33 }
 0x52e   : > { %v9784_v52 = vadd.f32 %v16457_v36, %v9699_v26  ;;  %v9702_v8 = vld [vmem:[#allocation3 + $0x258] sm:$0xff] }
 0x52f   : > { %v9787_v0 = vadd.f32 %v16457_v36, %v9702_v8  ;;  %v9700_v17 = vld [vmem:[#allocation3 + $0x248] sm:$0xff]  ;;  %9625 = vst.msk [vmem:[#allocation3 + $0x268] sm:$0xff] %vm450_vm3, %v9546_v58 }
 0x530   : > { %v11028_v57 = vpack.c.bf16 %v9784_v52, %v9784_v52  ;;  %v9785_v20 = vadd.f32 %v16457_v36, %v9700_v17 }
 0x531   : > { %v11030_v45 = vpack.c.bf16 %v9787_v0, %v9787_v0 }
 0x532   : > { %10952 = vst.msk [vmem:[%s13416_s29 + $0xe8] sm:$0xf] %vm494_vm2, %v11028_v57  ;;  %v11029_v24 = vpack.c.bf16 %v9785_v20, %v9785_v20  ;;  %v9705_v55 = vld [vmem:[#allocation3 + $0x270] sm:$0xff]  ;;  %v9703_v25 = vld [vmem:[#allocation3 + $0x260] sm:$0xff] }
 0x533   : > { %10958 = vst.msk [vmem:[%s13416_s29 + $0xf0] sm:$0xf] %vm494_vm2, %v11030_v45  ;;  %v9790_v13 = vadd.f32 %v16457_v36, %v9705_v55  ;;  %v9788_v4 = vadd.f32 %v16457_v36, %v9703_v25 }
 0x534   : > { %10953 = vst.msk [vmem:[%s13416_s29 + $0xec] sm:$0xf] %vm494_vm2, %v11029_v24 }
 0x535   : > { %v11033_v23 = vpack.c.bf16 %v9790_v13, %v9790_v13  ;;  %v11031_v39 = vpack.c.bf16 %v9788_v4, %v9788_v4 }
 0x536   : > { %v9704_v35 = vld [vmem:[#allocation3 + $0x268] sm:$0xff] }
 0x537   : > { %v9789_v31 = vadd.f32 %v16457_v36, %v9704_v35  ;;  %10961 = vst.msk [vmem:[%s13416_s29 + $0xfc] sm:$0xf] %vm494_vm2, %v11033_v23  ;;  %10959 = vst.msk [vmem:[%s13416_s29 + $0xf4] sm:$0xf] %vm494_vm2, %v11031_v39 }
 0x539   : > { %v11032_v18 = vpack.c.bf16 %v9789_v31, %v9789_v31 }
 0x53b   : > { %10960 = vst.msk [vmem:[%s13416_s29 + $0xf8] sm:$0xf] %vm494_vm2, %v11032_v18 }
 0x53c   : > { %12557 = shalt.err (!%p12554_p5)
}
 0x53d   : > { %s12558_s29 = scalar_lea.hbm %s16620_s23, 4096  ;;  %s12562_s20 = scalar_lea.hbm %s16861_s4, 16384 }
 0x53e   : > { %p12559_p4 = scmp.ne.s32.totalorder %s16620_s23, %s12558_s29  ;;  %p12563_p1 = scmp.lt.u32.totalorder %s16620_s23, %s16861_s4 }
 0x53f   : > { %p12564_p13 = scmp.lt.u32.totalorder %s12562_s20, %s12558_s29  ;;  %p12566_p8 = scmp.lt.u32.totalorder %s12558_s29, %s16620_s23 }
 0x540   : > { %p12560_p10 = pnand %p12559_p4, %p16862_p11 }
 0x541   : > { %p12565_p12 = por %p12564_p13, %p12563_p1 }
 0x542   : > { %p12561_p7 = pneg %p12560_p10 }
 0x543   : > { %p12567_p6 = por %p12566_p8, %p12565_p12 }
 0x545   : > { %p12568_p2 = pnand %p12567_p6, %p12561_p7 }
 0x547   : > { %12571 = shalt.err (!%p12568_p2)
}
 0x548   : > { %s12716_s1 = smov 64   ;;  %s12717_s11 = smov 4  }
 0x549   : > { %12241 = dma.vmem_to_hbm [thread:$0]  (%p16862_p11), %s16622_s14, 4096, %s16620_s23, %s10143_s10, %s12716_s1, %s12716_s1, %s12717_s11  }
 0x54a PF: > { %s16863_s0 = sld [smem:[#allocation33_spill]]  ;;  %p12264_p3 = scmp.ge.s32.totalorder %s12702_s6, 2 }
 0x54b   : > { %s10174_s2 = sand.u32 1, %s12674_s24  }
 0x54c   : > { %s10175_s5 = scalar_lea.sflag [#allocation6], %s10174_s2 }
 0x550   : > { %p16864_p0 = scmp.ne.s32.totalorder %s16863_s0, 0 }
 0x552   : > { %p12258_p9 = pnand %p12264_p3, %p16864_p0 }
 0x554   : > { %12645 = dma.done.wait (!%p12258_p9), %s10175_s5, 4096  }
 0x555   : > { %12647 = vsyncadd (!%p12258_p9), %s10175_s5, 4294963200  ;;  %s25_s6 = sadd.s32 1, %s12702_s6   ;;  %s16866_s18 = sld [smem:[#allocation19_spill]] }
 0x556   : > { %p16657_p5 = scmp.ge.s32.totalorder %s25_s6, 6   ;;  %s16867_s19 = sld [smem:[#allocation20_spill]] }
 0x557   : > { %s16868_s17 = sld [smem:[#allocation21_spill]]  ;;  %s16869_s23 = sld [smem:[#allocation31_spill]] }
 0x558   : > { %s16870_s13 = sld [smem:[#allocation22_spill]]  ;;  %s16871_s26 = sld [smem:[#allocation32_spill]] }
 0x559   : > { %s16872_s14 = sld [smem:[#allocation25_spill]]  ;;  %s16873_s28 = sld [smem:[#allocation26_spill]] }
 0x55a   : > { %s16874_s29 = sld [smem:[#allocation27_spill]]  ;;  %s16875_s30 = sld [smem:[#allocation28_spill]] }
 0x55b   : > { %s16877_s20 = smov %s16898_s12  ;;  %s16878_s21 = smov %s12666_s22 }
 0x55c   : > { %s16880_s24 = smov %s12678_s25  ;;  %24 = sbr.rel (!%p16657_p5) target bundleno = 20 (0x14), region = 167 }
 0x55d   : > { %s16879_s22 = smov %s16868_s17 }
 0x55e   : > { %s16881_s25 = smov %s16870_s13 }
 0x55f   : > { %s16882_s27 = smov %s16872_s14 }
 0x563   :  { %10180 = vsyncpa [#allocation5], 1 }
 0x564   :  { %10182 = vsyncpa [#allocation5 + $0x1], 1 }
 0x565   :  { %10183 = vsyncpa [#allocation8], 1 }
 0x566   :  { %10185 = vsyncpa [#allocation8 + $0x1], 1 }
 0x567   :  { %10186 = vsyncpa [#allocation11], 1 }
 0x568   :  { %10187 = vsyncpa [#allocation6], 1 }
 0x569   :  { %10189 = vsyncpa [#allocation6 + $0x1], 1 }

</bundles_post_ra>
